<compile_context>
chip_gen: v7x
topology: tpu7x:2x2x1
jax: 0.10.0
libtpu: 0.0.40
codegen_flags: <defaults>
</compile_context>

<pallas_src>
import functools

import jax
import jax.numpy as jnp
from jax.experimental import pallas as pl
from jax.experimental.pallas import tpu as pltpu


NUM_FTRS = 2048      # inception_v3 fc.in_features
STEM_C = 32          # Conv2d_1a_3x3 output channels
KP = 32              # 3*3*3 = 27 conv taps, zero-padded to 32 for clean packing
EPS = 1e-3           # torchvision InceptionV3 BatchNorm eps
HO = WO = 149        # stem conv output spatial size for a 299x299 input
NUM_HEAD = 8         # 2 class + 4 domain logits, zero-padded to 8 lanes


# ----------------------------------------------------------------------------
# Fused kernel: stem conv (as matmul) + folded BN + ReLU + global-average-pool
#               + 32->2048 projection + merged class/domain heads.
#   grid = (N, m_tiles); N is "parallel", the M-tile axis is "arbitrary" and
#   accumulates the per-channel GAP sum in a (32, 1) VMEM scratch.
# ----------------------------------------------------------------------------
def dann_kernel(p_ref, w1_ref, s_ref, b_ref, wp_ref, bp_ref, wcd_ref, bcd_ref,
                out_ref, pooled_acc, *, tm, m_valid):
    t = pl.program_id(1)
    n_t = pl.num_programs(1)

    @pl.when(t == 0)
    def _init():
        pooled_acc[...] = jnp.zeros_like(pooled_acc)

    # Stem conv as a lane-dense matmul: (32, 32)bf16 @ (32, tm)bf16 -> f32 MXU.
    acc = jnp.dot(w1_ref[...], p_ref[...], preferred_element_type=jnp.float32)
    # Folded BatchNorm (per-channel scale/bias, lane-broadcast) + ReLU, f32.
    act = jnp.maximum(acc * s_ref[...] + b_ref[...], 0.0)            # (32, tm)

    @pl.when(t != n_t - 1)
    def _full_tile():
        pooled_acc[...] += jnp.sum(act, axis=-1, keepdims=True)

    @pl.when(t == n_t - 1)
    def _last_tile_and_heads():
        # Mask the lanes past the end of the image: the last block overhangs
        # the array, so its tail contents are unspecified.  jnp.where is a
        # select, so NaN/Inf garbage in the overhang cannot propagate.
        lanes = t * tm + jax.lax.broadcasted_iota(jnp.int32, act.shape, 1)
        act_m = jnp.where(lanes < m_valid, act, 0.0)
        pooled = pooled_acc[...] + jnp.sum(act_m, axis=-1, keepdims=True)
        pooled = pooled * (1.0 / m_valid)                             # (32, 1)

        # 32 -> 2048 projection (+bias, ReLU).  Gradient reversal is identity
        # in the forward pass, so both heads consume the same feature.
        feat = jnp.dot(pooled.T.astype(jnp.bfloat16), wp_ref[...],
                       preferred_element_type=jnp.float32)            # (1, 2048)
        feat = jnp.maximum(feat + bp_ref[...], 0.0)

        # Merged class(2) + domain(4) heads; weight pre-transposed to (2048, 8).
        logits = jnp.dot(feat.astype(jnp.bfloat16), wcd_ref[...],
                         preferred_element_type=jnp.float32)          # (1, 8)
        out_ref[...] = logits + bcd_ref[...]


def stem_gap_heads(patches, w1_t, bn_scale, bn_bias, wp, bp, wcd_t, bcd,
                   *, tm=11136):
    """patches: (N, KP, M) bf16 -> merged class/domain logits (N, 8) f32."""
    N, K, M = patches.shape
    n_tiles = pl.cdiv(M, tm)
    kernel = functools.partial(dann_kernel, tm=tm, m_valid=M)
    out = pl.pallas_call(
        kernel,
        out_shape=jax.ShapeDtypeStruct((N, 1, NUM_HEAD), jnp.float32),
        grid=(N, n_tiles),
        in_specs=[
            pl.BlockSpec((None, K, tm), lambda n, t: (n, 0, t)),
            pl.BlockSpec((STEM_C, K), lambda n, t: (0, 0)),
            pl.BlockSpec((STEM_C, 1), lambda n, t: (0, 0)),
            pl.BlockSpec((STEM_C, 1), lambda n, t: (0, 0)),
            pl.BlockSpec((STEM_C, NUM_FTRS), lambda n, t: (0, 0)),
            pl.BlockSpec((1, NUM_FTRS), lambda n, t: (0, 0)),
            pl.BlockSpec((NUM_FTRS, NUM_HEAD), lambda n, t: (0, 0)),
            pl.BlockSpec((1, NUM_HEAD), lambda n, t: (0, 0)),
        ],
        out_specs=pl.BlockSpec((None, 1, NUM_HEAD), lambda n, t: (n, 0, 0)),
        scratch_shapes=[pltpu.VMEM((STEM_C, 1), jnp.float32)],
        compiler_params=pltpu.CompilerParams(
            dimension_semantics=("parallel", "arbitrary")),
    )(patches, w1_t, bn_scale, bn_bias, wp, bp, wcd_t, bcd)
    return out.reshape(N, NUM_HEAD)


# ----------------------------------------------------------------------------
# Parameters (deterministic, synthetic)
# ----------------------------------------------------------------------------
def init_params(key):
    ks = jax.random.split(key, 8)
    # stem conv weight (kh, kw, cin, cout); taps flattened (kh,kw,cin)-major,
    # zero-padded 27 -> 32, then transposed to (cout=32, taps=32) for the
    # lane-dense matmul.
    w1 = jax.random.normal(ks[0], (3, 3, 3, STEM_C), jnp.float32) * 0.05
    w1_t = jnp.pad(w1.reshape(27, STEM_C), ((0, KP - 27), (0, 0))).T    # (32, 32)
    gamma = jax.random.uniform(ks[1], (STEM_C,), jnp.float32, 0.5, 1.5)
    beta = jax.random.normal(ks[2], (STEM_C,), jnp.float32) * 0.1
    rmean = jax.random.normal(ks[3], (STEM_C,), jnp.float32) * 0.1
    rvar = jax.random.uniform(ks[4], (STEM_C,), jnp.float32, 0.5, 1.5)
    bn_scale = gamma / jnp.sqrt(rvar + EPS)
    bn_bias = beta - rmean * bn_scale
    # synthetic 32 -> 2048 projection so num_ftrs == 2048
    wp = jax.random.normal(ks[5], (STEM_C, NUM_FTRS), jnp.float32) * 0.05
    bp = jnp.zeros((1, NUM_FTRS), jnp.float32)
    # class (2) and domain (4) heads, merged, pre-transposed, padded to 8 cols
    wc = jax.random.normal(ks[6], (2, NUM_FTRS), jnp.float32) * 0.02
    wd = jax.random.normal(ks[7], (4, NUM_FTRS), jnp.float32) * 0.02
    wcd = jnp.concatenate([wc, wd], axis=0)                              # (6, 2048)
    wcd_t = jnp.pad(wcd, ((0, NUM_HEAD - 6), (0, 0))).T                  # (2048, 8)
    bcd = jnp.zeros((1, NUM_HEAD), jnp.float32)
    return dict(
        w1_t=w1_t.astype(jnp.bfloat16),
        bn_scale=bn_scale.reshape(STEM_C, 1),
        bn_bias=bn_bias.reshape(STEM_C, 1),
        wp=wp.astype(jnp.bfloat16), bp=bp,
        wcd_t=wcd_t.astype(jnp.bfloat16), bcd=bcd)


# ----------------------------------------------------------------------------
# Forward (mirrors DANN_InceptionV3.forward)
# ----------------------------------------------------------------------------
@jax.jit
def dann_inception_forward(params, x, alpha):
    del alpha  # only affects gradients (ReverseLayerF); forward is identity
    N = x.shape[0]
    # input_data.expand(N, 3, 299, 299); cast to bf16 early (no f32 im2col).
    x = jnp.broadcast_to(x.astype(jnp.bfloat16), (N, 3, 299, 299))

    # Taps-major im2col for the 3x3 / stride-2 / valid stem conv:
    # k = kh*9 + kw*3 + cin (matches w1.reshape(27, 32)), padded to 32 rows,
    # output shape (N, 32, 149*149) so M sits on lanes in the kernel.
    taps = [x[:, :, dy:dy + 2 * HO:2, dx:dx + 2 * WO:2]
            for dy in range(3) for dx in range(3)]
    taps.append(jnp.zeros((N, KP - 27, HO, WO), jnp.bfloat16))
    patches = jnp.concatenate(taps, axis=1).reshape(N, KP, HO * WO)

    logits = stem_gap_heads(patches, params["w1_t"],
                            params["bn_scale"], params["bn_bias"],
                            params["wp"], params["bp"],
                            params["wcd_t"], params["bcd"])
    class_out = logits[:, :2]
    domain_out = logits[:, 2:6]
    return class_out, domain_out


if __name__ == "__main__":
    key = jax.random.PRNGKey(0)
    pkey, xkey = jax.random.split(key)
    params = init_params(pkey)
    # grayscale input, expanded to 3 channels inside forward (as in the module)
    x = jax.random.normal(xkey, (2, 1, 299, 299), jnp.float32)
    alpha = 0.5
    class_out, domain_out = dann_inception_forward(params, x, alpha)
    jax.block_until_ready((class_out, domain_out))
    assert class_out.shape == (2, 2) and domain_out.shape == (2, 4)
    print("KERNEL_OK")
</pallas_src>

<mosaic_0001>
module attributes {stable_mosaic.version = 11 : i64} {
  func.func @dann_kernel(%arg0: i32, %arg1: i32, %arg2: memref<1x32x11136xbf16, #tpu.memory_space<vmem>>, %arg3: memref<32x32xbf16, #tpu.memory_space<vmem>>, %arg4: memref<32x1xf32, #tpu.memory_space<vmem>>, %arg5: memref<32x1xf32, #tpu.memory_space<vmem>>, %arg6: memref<32x2048xbf16, #tpu.memory_space<vmem>>, %arg7: memref<1x2048xf32, #tpu.memory_space<vmem>>, %arg8: memref<2048x8xbf16, #tpu.memory_space<vmem>>, %arg9: memref<1x8xf32, #tpu.memory_space<vmem>>, %arg10: memref<1x1x8xf32, #tpu.memory_space<vmem>>, %arg11: memref<32x1xf32, #tpu.memory_space<vmem>>) attributes {dimension_semantics = [#tpu.dimension_semantics<parallel>, #tpu.dimension_semantics<arbitrary>], iteration_bounds = array<i64: 2, 2>, scalar_prefetch = 0 : i64, scratch_operands = 1 : i64, tpu.core_type = #tpu.core_type<tc>, window_params = [{transform_indices = @transform_0, window_bounds = array<i64: 1, 32, 11136>}, {pipeline_mode = #tpu.pipeline_mode<synchronous>, transform_indices = @transform_1, window_bounds = array<i64: 32, 32>}, {pipeline_mode = #tpu.pipeline_mode<synchronous>, transform_indices = @transform_2, window_bounds = array<i64: 32, 1>}, {pipeline_mode = #tpu.pipeline_mode<synchronous>, transform_indices = @transform_3, window_bounds = array<i64: 32, 1>}, {pipeline_mode = #tpu.pipeline_mode<synchronous>, transform_indices = @transform_4, window_bounds = array<i64: 32, 2048>}, {pipeline_mode = #tpu.pipeline_mode<synchronous>, transform_indices = @transform_5, window_bounds = array<i64: 1, 2048>}, {pipeline_mode = #tpu.pipeline_mode<synchronous>, transform_indices = @transform_6, window_bounds = array<i64: 2048, 8>}, {pipeline_mode = #tpu.pipeline_mode<synchronous>, transform_indices = @transform_7, window_bounds = array<i64: 1, 8>}, {transform_indices = @transform_8, window_bounds = array<i64: 1, 1, 8>}]} {
    %c0_i32 = arith.constant 0 : i32
    %0 = arith.cmpi eq, %arg1, %c0_i32 : i32
    %1 = arith.extui %0 : i1 to i32
    %c0_i32_0 = arith.constant 0 : i32
    %2 = arith.cmpi ne, %1, %c0_i32_0 : i32
    scf.if %2 {
      %cst_13 = arith.constant 0.000000e+00 : f32
      %21 = vector.broadcast %cst_13 : f32 to vector<32x1xf32>
      %c0_14 = arith.constant 0 : index
      %c0_15 = arith.constant 0 : index
      %22 = vector.load %arg11[%c0_14, %c0_15] : memref<32x1xf32, #tpu.memory_space<vmem>>, vector<32x1xf32>
      tpu.vector_store %arg11[%c0_14, %c0_15], %21 {strides = array<i32>} : memref<32x1xf32, #tpu.memory_space<vmem>>, vector<32x1xf32>,
    } else {
    }
    %c0 = arith.constant 0 : index
    %c0_1 = arith.constant 0 : index
    %3 = vector.load %arg3[%c0, %c0_1] : memref<32x32xbf16, #tpu.memory_space<vmem>>, vector<32x32xbf16>
    %c0_2 = arith.constant 0 : index
    %c0_3 = arith.constant 0 : index
    %c0_4 = arith.constant 0 : index
    %4 = vector.load %arg2[%c0_2, %c0_3, %c0_4] : memref<1x32x11136xbf16, #tpu.memory_space<vmem>>, vector<1x32x11136xbf16>
    %5 = vector.shape_cast %4 : vector<1x32x11136xbf16> to vector<32x11136xbf16>
    %cst = arith.constant dense<0.000000e+00> : vector<32x11136xf32>
    %6 = tpu.matmul %3, %5, %cst {dimension_numbers = #tpu.dot_dimension_numbers<[1], [0], [0], [1], [0, 0, 1, 1], [], []>} : vector<32x32xbf16>, vector<32x11136xbf16>, vector<32x11136xf32> -> vector<32x11136xf32>
    %c0_5 = arith.constant 0 : index
    %c0_6 = arith.constant 0 : index
    %7 = vector.load %arg4[%c0_5, %c0_6] : memref<32x1xf32, #tpu.memory_space<vmem>>, vector<32x1xf32>
    %8 = vector.broadcast %7 : vector<32x1xf32> to vector<32x11136xf32>
    %9 = arith.mulf %6, %8 : vector<32x11136xf32>
    %c0_7 = arith.constant 0 : index
    %c0_8 = arith.constant 0 : index
    %10 = vector.load %arg5[%c0_7, %c0_8] : memref<32x1xf32, #tpu.memory_space<vmem>>, vector<32x1xf32>
    %11 = vector.broadcast %10 : vector<32x1xf32> to vector<32x11136xf32>
    %12 = arith.addf %9, %11 : vector<32x11136xf32>
    %cst_9 = arith.constant 0.000000e+00 : f32
    %13 = vector.broadcast %cst_9 : f32 to vector<32x11136xf32>
    %14 = arith.maximumf %12, %13 : vector<32x11136xf32>
    %c1_i32 = arith.constant 1 : i32
    %15 = arith.cmpi ne, %arg1, %c1_i32 : i32
    %16 = arith.extui %15 : i1 to i32
    %c0_i32_10 = arith.constant 0 : i32
    %17 = arith.cmpi ne, %16, %c0_i32_10 : i32
    scf.if %17 {
      %c0_13 = arith.constant 0 : index
      %c0_14 = arith.constant 0 : index
      %21 = vector.load %arg11[%c0_13, %c0_14] : memref<32x1xf32, #tpu.memory_space<vmem>>, vector<32x1xf32>
      %cst_15 = arith.constant dense<0.000000e+00> : vector<32xf32>
      %22 = vector.multi_reduction <add>, %14, %cst_15 [1] : vector<32x11136xf32> to vector<32xf32>
      %23 = vector.shape_cast %22 : vector<32xf32> to vector<32x1xf32>
      %24 = arith.addf %21, %23 : vector<32x1xf32>
      %c0_16 = arith.constant 0 : index
      %c0_17 = arith.constant 0 : index
      %25 = vector.load %arg11[%c0_16, %c0_17] : memref<32x1xf32, #tpu.memory_space<vmem>>, vector<32x1xf32>
      tpu.vector_store %arg11[%c0_16, %c0_17], %24 {strides = array<i32>} : memref<32x1xf32, #tpu.memory_space<vmem>>, vector<32x1xf32>,
    } else {
    }
    %c1_i32_11 = arith.constant 1 : i32
    %18 = arith.cmpi eq, %arg1, %c1_i32_11 : i32
    %19 = arith.extui %18 : i1 to i32
    %c0_i32_12 = arith.constant 0 : i32
    %20 = arith.cmpi ne, %19, %c0_i32_12 : i32
    scf.if %20 {
      %c11136_i32 = arith.constant 11136 : i32
      %21 = arith.muli %arg1, %c11136_i32 : i32
      %22 = tpu.iota {dimensions = array<i32: 1>} : vector<32x11136xi32>
      %23 = vector.broadcast %21 : i32 to vector<32x11136xi32>
      %24 = arith.addi %23, %22 : vector<32x11136xi32>
      %c22201_i32 = arith.constant 22201 : i32
      %25 = vector.broadcast %c22201_i32 : i32 to vector<32x11136xi32>
      %26 = arith.cmpi slt, %24, %25 : vector<32x11136xi32>
      %cst_13 = arith.constant 0.000000e+00 : f32
      %27 = vector.broadcast %cst_13 : f32 to vector<32x11136xf32>
      %28 = arith.select %26, %14, %27 : vector<32x11136xi1>, vector<32x11136xf32>
      %c0_14 = arith.constant 0 : index
      %c0_15 = arith.constant 0 : index
      %29 = vector.load %arg11[%c0_14, %c0_15] : memref<32x1xf32, #tpu.memory_space<vmem>>, vector<32x1xf32>
      %cst_16 = arith.constant dense<0.000000e+00> : vector<32xf32>
      %30 = vector.multi_reduction <add>, %28, %cst_16 [1] : vector<32x11136xf32> to vector<32xf32>
      %31 = vector.shape_cast %30 : vector<32xf32> to vector<32x1xf32>
      %32 = arith.addf %29, %31 : vector<32x1xf32>
      %cst_17 = arith.constant 4.50430161E-5 : f32
      %33 = vector.broadcast %cst_17 : f32 to vector<32x1xf32>
      %34 = arith.mulf %32, %33 : vector<32x1xf32>
      %35 = tpu.transpose %34, [1, 0] : vector<32x1xf32> -> vector<1x32xf32>
      %36 = arith.truncf %35 : vector<1x32xf32> to vector<1x32xbf16>
      %c0_18 = arith.constant 0 : index
      %c0_19 = arith.constant 0 : index
      %37 = vector.load %arg6[%c0_18, %c0_19] : memref<32x2048xbf16, #tpu.memory_space<vmem>>, vector<32x2048xbf16>
      %cst_20 = arith.constant dense<0.000000e+00> : vector<1x2048xf32>
      %38 = tpu.matmul %36, %37, %cst_20 {dimension_numbers = #tpu.dot_dimension_numbers<[1], [0], [0], [1], [0, 0, 1, 1], [], []>} : vector<1x32xbf16>, vector<32x2048xbf16>, vector<1x2048xf32> -> vector<1x2048xf32>
      %c0_21 = arith.constant 0 : index
      %c0_22 = arith.constant 0 : index
      %39 = vector.load %arg7[%c0_21, %c0_22] : memref<1x2048xf32, #tpu.memory_space<vmem>>, vector<1x2048xf32>
      %40 = arith.addf %38, %39 : vector<1x2048xf32>
      %cst_23 = arith.constant 0.000000e+00 : f32
      %41 = vector.broadcast %cst_23 : f32 to vector<1x2048xf32>
      %42 = arith.maximumf %40, %41 : vector<1x2048xf32>
      %43 = arith.truncf %42 : vector<1x2048xf32> to vector<1x2048xbf16>
      %c0_24 = arith.constant 0 : index
      %c0_25 = arith.constant 0 : index
      %44 = vector.load %arg8[%c0_24, %c0_25] : memref<2048x8xbf16, #tpu.memory_space<vmem>>, vector<2048x8xbf16>
      %cst_26 = arith.constant dense<0.000000e+00> : vector<1x8xf32>
      %45 = tpu.matmul %43, %44, %cst_26 {dimension_numbers = #tpu.dot_dimension_numbers<[1], [0], [0], [1], [0, 0, 1, 1], [], []>} : vector<1x2048xbf16>, vector<2048x8xbf16>, vector<1x8xf32> -> vector<1x8xf32>
      %c0_27 = arith.constant 0 : index
      %c0_28 = arith.constant 0 : index
      %46 = vector.load %arg9[%c0_27, %c0_28] : memref<1x8xf32, #tpu.memory_space<vmem>>, vector<1x8xf32>
      %47 = arith.addf %45, %46 : vector<1x8xf32>
      %c0_29 = arith.constant 0 : index
      %c0_30 = arith.constant 0 : index
      %c0_31 = arith.constant 0 : index
      %48 = vector.load %arg10[%c0_29, %c0_30, %c0_31] : memref<1x1x8xf32, #tpu.memory_space<vmem>>, vector<1x1x8xf32>
      %49 = vector.shape_cast %48 : vector<1x1x8xf32> to vector<1x8xf32>
      %50 = vector.shape_cast %47 : vector<1x8xf32> to vector<1x1x8xf32>
      tpu.vector_store %arg10[%c0_29, %c0_30, %c0_31], %50 {strides = array<i32>} : memref<1x1x8xf32, #tpu.memory_space<vmem>>, vector<1x1x8xf32>,
    } else {
    }
    return
  }
  func.func @transform_0(%arg0: i32, %arg1: i32) -> (i32, i32, i32) {
    %c0_i32 = arith.constant 0 : i32
    %c0_i32_0 = arith.constant 0 : i32
    return %arg0, %c0_i32, %arg1 : i32, i32, i32
  }
  func.func @transform_1(%arg0: i32, %arg1: i32) -> (i32, i32) {
    %c0_i32 = arith.constant 0 : i32
    %c0_i32_0 = arith.constant 0 : i32
    %c0_i32_1 = arith.constant 0 : i32
    return %c0_i32, %c0_i32_0 : i32, i32
  }
  func.func @transform_2(%arg0: i32, %arg1: i32) -> (i32, i32) {
    %c0_i32 = arith.constant 0 : i32
    %c0_i32_0 = arith.constant 0 : i32
    %c0_i32_1 = arith.constant 0 : i32
    return %c0_i32, %c0_i32_0 : i32, i32
  }
  func.func @transform_3(%arg0: i32, %arg1: i32) -> (i32, i32) {
    %c0_i32 = arith.constant 0 : i32
    %c0_i32_0 = arith.constant 0 : i32
    %c0_i32_1 = arith.constant 0 : i32
    return %c0_i32, %c0_i32_0 : i32, i32
  }
  func.func @transform_4(%arg0: i32, %arg1: i32) -> (i32, i32) {
    %c0_i32 = arith.constant 0 : i32
    %c0_i32_0 = arith.constant 0 : i32
    %c0_i32_1 = arith.constant 0 : i32
    return %c0_i32, %c0_i32_0 : i32, i32
  }
  func.func @transform_5(%arg0: i32, %arg1: i32) -> (i32, i32) {
    %c0_i32 = arith.constant 0 : i32
    %c0_i32_0 = arith.constant 0 : i32
    %c0_i32_1 = arith.constant 0 : i32
    return %c0_i32, %c0_i32_0 : i32, i32
  }
  func.func @transform_6(%arg0: i32, %arg1: i32) -> (i32, i32) {
    %c0_i32 = arith.constant 0 : i32
    %c0_i32_0 = arith.constant 0 : i32
    %c0_i32_1 = arith.constant 0 : i32
    return %c0_i32, %c0_i32_0 : i32, i32
  }
  func.func @transform_7(%arg0: i32, %arg1: i32) -> (i32, i32) {
    %c0_i32 = arith.constant 0 : i32
    %c0_i32_0 = arith.constant 0 : i32
    %c0_i32_1 = arith.constant 0 : i32
    return %c0_i32, %c0_i32_0 : i32, i32
  }
  func.func @transform_8(%arg0: i32, %arg1: i32) -> (i32, i32, i32) {
    %c0_i32 = arith.constant 0 : i32
    %c0_i32_0 = arith.constant 0 : i32
    %c0_i32_1 = arith.constant 0 : i32
    return %arg0, %c0_i32, %c0_i32_0 : i32, i32, i32
  }
}

</mosaic_0001>

<bundles_post_ra>
// kernel: dann_inception_forward.1
= control target key start
LH: loop header
LB: loop body
LE: loop exit
PB: predicated region body
PF: predicated region fallthrough
CT: control target
= control target key end

     0   :  { %s9838_s27 = smov 0   ;;  %s9840_s28 = smov 0   ;;  %s15672_s0 = inlined_call_operand.vmem [shape: bf16[2,32,22201], index: 0, kind: input, shape index: {}]   ;;  %s15673_s1 = inlined_call_operand.vmem [shape: bf16[32,32], index: 1, kind: input, shape index: {}]   ;;  %s15674_s2 = inlined_call_operand.vmem [shape: f32[32,1], index: 2, kind: input, shape index: {}]   ;;  %s15675_s3 = inlined_call_operand.vmem [shape: f32[32,1], index: 3, kind: input, shape index: {}]   ;;  %s15676_s4 = inlined_call_operand.vmem [shape: bf16[32,2048], index: 4, kind: input, shape index: {}]   ;;  %s15677_s5 = inlined_call_operand.vmem [shape: f32[1,2048], index: 5, kind: input, shape index: {}]   ;;  %s15678_s6 = inlined_call_operand.vmem [shape: bf16[2048,8], index: 6, kind: input, shape index: {}]   ;;  %s15679_s7 = inlined_call_operand.vmem [shape: f32[1,8], index: 7, kind: input, shape index: {}]   ;;  %s15680_s8 = inlined_call_operand.vmem [shape: f32[2,1,8], index: 8, kind: output, shape index: {}]  }
   0x1   :  { %s9842_s29 = smov 0   ;;  %s9844_s30 = smov 0  }
   0x2   :  { %s9846_s9 = smov 0   ;;  %s9848_s10 = smov 0  }
   0x3   :  { %s9850_s11 = smov 0  }
   0x4 LB: > { %s27_s12 = sadd.s32 1, %s9780_s9  ;;  %s30_s13 = sadd.s32 1, %s9784_s10  ;;  %s9788_s11 = sphi %s9850_s11, %s18_s11   ;;  %s9784_s10 = sphi %s9848_s10, %s18192_s10   ;;  %s9780_s9 = sphi %s9846_s9, %s18191_s9   ;;  %s9776_s30 = sphi %s9844_s30, %s18190_s30   ;;  %s9772_s29 = sphi %s9842_s29, %s18189_s29   ;;  %s9768_s28 = sphi %s9840_s28, %s18188_s28   ;;  %s9764_s27 = sphi %s9838_s27, %s18187_s27  }
   0x5   : > { %p28_p0 = scmp.ge.s32.totalorder %s27_s12, 2  ;;  %p46_p1 = scmp.ne.s32.totalorder %s9768_s28, %s9764_s27 }
   0x6   : > { %p47_p2 = scmp.eq.s32.totalorder %s9788_s11, 0  ;;  %s39_s17 = sadd.s32 1, %s9768_s28 }
   0x7   : > { %s18194_s12 = smov (%p28_p0, %s27_s12), 0  ;;  %s18196_s13 = smov (!%p28_p0, %s30_s13), %s9784_s10 }
   0x8   : > { %p48_p3 = por %p47_p2, %p46_p1  ;;  %p32_p4 = scmp.ge.s32.totalorder %s18196_s13, 2 }
   0x9   : > { %s35_s14 = ssub.s32 %s9780_s9, %s18194_s12  ;;  %p8639_p6 = scmp.ge.s32.totalorder %s9788_s11, 4 }
   0xa   : > { %s18198_s13 = smov (%p32_p4, %s18196_s13), 0 }
   0xb   : > { %s34_s15 = ssub.s32 %s9784_s10, %s18198_s13  ;;  %266 = sbr.rel (%p8639_p6) target bundleno = 115 (0x73), region = 44 }
   0xc   : > { %s36_s16 = sor.u32 %s35_s14, %s34_s15 }
   0xd   : > { %p37_p5 = scmp.eq.s32.totalorder %s36_s16, 0 }
   0xf   : > { %s9889_s18 = scalar_select %p37_p5, %s9768_s28, %s39_s17  }
  0x12   : > { %269 = sbr.rel (!%p48_p3) target bundleno = 115 (0x73), region = 48  ;;  %s271_s19 = sand.u32 (%p48_p3), 1, %s9768_s28  }
  0x13   : > { %s274_s20 = smul.u32 (%p48_p3), 87, %s9780_s9 }
  0x14   : > { %s9275_s21 = smul.u32 (%p48_p3), 1392, %s271_s19 }
  0x15   : > { %s9276_s22 = smul.u32 (%p48_p3), 696, %s9784_s10 }
  0x16   : > { %s9903_s15 = scalar_lea.vmem (%p48_p3), [#allocation3], %s9275_s21 }
  0x17   : > { %s276_s23 = sadd.s32 (%p48_p3), %s9276_s22, %s274_s20 }
  0x18   : > { %s8640_s24 = sshll.u32 (%p48_p3), %s276_s23, 2 }
  0x19   : > { %s9898_s14 = scalar_lea.vmem %s15672_s0, %s8640_s24 }
  0x1a   : > { %v293_v0 = vld [vmem:[%s9898_s14] sm:$0xff]  ;;  %v295_v1 = vld [vmem:[%s9898_s14 + $0x8] sm:$0xff]  ;;  %v297_v2 = vld [vmem:[%s9898_s14 + $0x10] sm:$0xff] }
  0x1b   : > { %294 = vst [vmem:[%s9903_s15] sm:$0xff] %v293_v0  ;;  %296 = vst [vmem:[%s9903_s15 + $0x8] sm:$0xff] %v295_v1  ;;  %v299_v3 = vld [vmem:[%s9898_s14 + $0x18] sm:$0xff]  ;;  %v301_v4 = vld [vmem:[%s9898_s14 + $0x20] sm:$0xff] }
  0x1c   : > { %298 = vst [vmem:[%s9903_s15 + $0x10] sm:$0xff] %v297_v2  ;;  %v303_v5 = vld [vmem:[%s9898_s14 + $0x28] sm:$0xff]  ;;  %300 = vst [vmem:[%s9903_s15 + $0x18] sm:$0xff] %v299_v3  ;;  %v305_v6 = vld [vmem:[%s9898_s14 + $0x30] sm:$0xff] }
  0x1d   : > { %302 = vst [vmem:[%s9903_s15 + $0x20] sm:$0xff] %v301_v4  ;;  %304 = vst [vmem:[%s9903_s15 + $0x28] sm:$0xff] %v303_v5  ;;  %v307_v7 = vld [vmem:[%s9898_s14 + $0x38] sm:$0xff]  ;;  %v309_v8 = vld [vmem:[%s9898_s14 + $0x40] sm:$0xff] }
  0x1e   : > { %306 = vst [vmem:[%s9903_s15 + $0x30] sm:$0xff] %v305_v6  ;;  %308 = vst [vmem:[%s9903_s15 + $0x38] sm:$0xff] %v307_v7  ;;  %v311_v9 = vld [vmem:[%s9898_s14 + $0x48] sm:$0xff]  ;;  %v313_v10 = vld [vmem:[%s9898_s14 + $0x50] sm:$0xff] }
  0x1f   : > { %310 = vst [vmem:[%s9903_s15 + $0x40] sm:$0xff] %v309_v8  ;;  %v315_v11 = vld [vmem:[%s9898_s14 + $0x58] sm:$0xff]  ;;  %312 = vst [vmem:[%s9903_s15 + $0x48] sm:$0xff] %v311_v9  ;;  %v317_v12 = vld [vmem:[%s9898_s14 + $0x60] sm:$0xff] }
  0x20   : > { %314 = vst [vmem:[%s9903_s15 + $0x50] sm:$0xff] %v313_v10  ;;  %316 = vst [vmem:[%s9903_s15 + $0x58] sm:$0xff] %v315_v11  ;;  %v319_v13 = vld [vmem:[%s9898_s14 + $0x68] sm:$0xff]  ;;  %v321_v14 = vld [vmem:[%s9898_s14 + $0x70] sm:$0xff] }
  0x21   : > { %318 = vst [vmem:[%s9903_s15 + $0x60] sm:$0xff] %v317_v12  ;;  %320 = vst [vmem:[%s9903_s15 + $0x68] sm:$0xff] %v319_v13  ;;  %v323_v15 = vld [vmem:[%s9898_s14 + $0x78] sm:$0xff]  ;;  %v325_v16 = vld [vmem:[%s9898_s14 + $0x80] sm:$0xff] }
  0x22   : > { %322 = vst [vmem:[%s9903_s15 + $0x70] sm:$0xff] %v321_v14  ;;  %v327_v17 = vld [vmem:[%s9898_s14 + $0x88] sm:$0xff]  ;;  %324 = vst [vmem:[%s9903_s15 + $0x78] sm:$0xff] %v323_v15  ;;  %v329_v18 = vld [vmem:[%s9898_s14 + $0x90] sm:$0xff] }
  0x23   : > { %326 = vst [vmem:[%s9903_s15 + $0x80] sm:$0xff] %v325_v16  ;;  %328 = vst [vmem:[%s9903_s15 + $0x88] sm:$0xff] %v327_v17  ;;  %v331_v19 = vld [vmem:[%s9898_s14 + $0x98] sm:$0xff]  ;;  %v333_v20 = vld [vmem:[%s9898_s14 + $0xa0] sm:$0xff] }
  0x24   : > { %330 = vst [vmem:[%s9903_s15 + $0x90] sm:$0xff] %v329_v18  ;;  %332 = vst [vmem:[%s9903_s15 + $0x98] sm:$0xff] %v331_v19  ;;  %v335_v21 = vld [vmem:[%s9898_s14 + $0xa8] sm:$0xff]  ;;  %v337_v22 = vld [vmem:[%s9898_s14 + $0xb0] sm:$0xff] }
  0x25   : > { %334 = vst [vmem:[%s9903_s15 + $0xa0] sm:$0xff] %v333_v20  ;;  %v339_v23 = vld [vmem:[%s9898_s14 + $0xb8] sm:$0xff]  ;;  %336 = vst [vmem:[%s9903_s15 + $0xa8] sm:$0xff] %v335_v21  ;;  %v341_v24 = vld [vmem:[%s9898_s14 + $0xc0] sm:$0xff] }
  0x26   : > { %338 = vst [vmem:[%s9903_s15 + $0xb0] sm:$0xff] %v337_v22  ;;  %340 = vst [vmem:[%s9903_s15 + $0xb8] sm:$0xff] %v339_v23  ;;  %v343_v25 = vld [vmem:[%s9898_s14 + $0xc8] sm:$0xff]  ;;  %v345_v26 = vld [vmem:[%s9898_s14 + $0xd0] sm:$0xff] }
  0x27   : > { %342 = vst [vmem:[%s9903_s15 + $0xc0] sm:$0xff] %v341_v24  ;;  %344 = vst [vmem:[%s9903_s15 + $0xc8] sm:$0xff] %v343_v25  ;;  %v347_v27 = vld [vmem:[%s9898_s14 + $0xd8] sm:$0xff]  ;;  %v349_v28 = vld [vmem:[%s9898_s14 + $0xe0] sm:$0xff] }
  0x28   : > { %346 = vst [vmem:[%s9903_s15 + $0xd0] sm:$0xff] %v345_v26  ;;  %v351_v29 = vld [vmem:[%s9898_s14 + $0xe8] sm:$0xff]  ;;  %348 = vst [vmem:[%s9903_s15 + $0xd8] sm:$0xff] %v347_v27  ;;  %v353_v30 = vld [vmem:[%s9898_s14 + $0xf0] sm:$0xff] }
  0x29   : > { %350 = vst [vmem:[%s9903_s15 + $0xe0] sm:$0xff] %v349_v28  ;;  %352 = vst [vmem:[%s9903_s15 + $0xe8] sm:$0xff] %v351_v29  ;;  %v355_v31 = vld [vmem:[%s9898_s14 + $0xf8] sm:$0xff]  ;;  %v357_v32 = vld [vmem:[%s9898_s14 + $0x100] sm:$0xff] }
  0x2a   : > { %354 = vst [vmem:[%s9903_s15 + $0xf0] sm:$0xff] %v353_v30  ;;  %356 = vst [vmem:[%s9903_s15 + $0xf8] sm:$0xff] %v355_v31  ;;  %v359_v33 = vld [vmem:[%s9898_s14 + $0x108] sm:$0xff]  ;;  %v361_v34 = vld [vmem:[%s9898_s14 + $0x110] sm:$0xff] }
  0x2b   : > { %358 = vst [vmem:[%s9903_s15 + $0x100] sm:$0xff] %v357_v32  ;;  %v363_v35 = vld [vmem:[%s9898_s14 + $0x118] sm:$0xff]  ;;  %360 = vst [vmem:[%s9903_s15 + $0x108] sm:$0xff] %v359_v33  ;;  %v365_v36 = vld [vmem:[%s9898_s14 + $0x120] sm:$0xff] }
  0x2c   : > { %362 = vst [vmem:[%s9903_s15 + $0x110] sm:$0xff] %v361_v34  ;;  %364 = vst [vmem:[%s9903_s15 + $0x118] sm:$0xff] %v363_v35  ;;  %v367_v37 = vld [vmem:[%s9898_s14 + $0x128] sm:$0xff]  ;;  %v369_v38 = vld [vmem:[%s9898_s14 + $0x130] sm:$0xff] }
  0x2d   : > { %366 = vst [vmem:[%s9903_s15 + $0x120] sm:$0xff] %v365_v36  ;;  %368 = vst [vmem:[%s9903_s15 + $0x128] sm:$0xff] %v367_v37  ;;  %v371_v39 = vld [vmem:[%s9898_s14 + $0x138] sm:$0xff]  ;;  %v373_v40 = vld [vmem:[%s9898_s14 + $0x140] sm:$0xff] }
  0x2e   : > { %370 = vst [vmem:[%s9903_s15 + $0x130] sm:$0xff] %v369_v38  ;;  %v375_v41 = vld [vmem:[%s9898_s14 + $0x148] sm:$0xff]  ;;  %372 = vst [vmem:[%s9903_s15 + $0x138] sm:$0xff] %v371_v39  ;;  %v377_v42 = vld [vmem:[%s9898_s14 + $0x150] sm:$0xff] }
  0x2f   : > { %374 = vst [vmem:[%s9903_s15 + $0x140] sm:$0xff] %v373_v40  ;;  %376 = vst [vmem:[%s9903_s15 + $0x148] sm:$0xff] %v375_v41  ;;  %v379_v43 = vld [vmem:[%s9898_s14 + $0x2b8] sm:$0xff]  ;;  %v381_v44 = vld [vmem:[%s9898_s14 + $0x2c0] sm:$0xff] }
  0x30   : > { %378 = vst [vmem:[%s9903_s15 + $0x150] sm:$0xff] %v377_v42  ;;  %380 = vst [vmem:[%s9903_s15 + $0x15c] sm:$0xff] %v379_v43  ;;  %v383_v45 = vld [vmem:[%s9898_s14 + $0x2c8] sm:$0xff]  ;;  %v385_v46 = vld [vmem:[%s9898_s14 + $0x2d0] sm:$0xff] }
  0x31   : > { %382 = vst [vmem:[%s9903_s15 + $0x164] sm:$0xff] %v381_v44  ;;  %v387_v47 = vld [vmem:[%s9898_s14 + $0x2d8] sm:$0xff]  ;;  %384 = vst [vmem:[%s9903_s15 + $0x16c] sm:$0xff] %v383_v45  ;;  %v389_v48 = vld [vmem:[%s9898_s14 + $0x2e0] sm:$0xff] }
  0x32   : > { %386 = vst [vmem:[%s9903_s15 + $0x174] sm:$0xff] %v385_v46  ;;  %388 = vst [vmem:[%s9903_s15 + $0x17c] sm:$0xff] %v387_v47  ;;  %v391_v49 = vld [vmem:[%s9898_s14 + $0x2e8] sm:$0xff]  ;;  %v393_v50 = vld [vmem:[%s9898_s14 + $0x2f0] sm:$0xff] }
  0x33   : > { %390 = vst [vmem:[%s9903_s15 + $0x184] sm:$0xff] %v389_v48  ;;  %392 = vst [vmem:[%s9903_s15 + $0x18c] sm:$0xff] %v391_v49  ;;  %v395_v51 = vld [vmem:[%s9898_s14 + $0x2f8] sm:$0xff]  ;;  %v397_v52 = vld [vmem:[%s9898_s14 + $0x300] sm:$0xff] }
  0x34   : > { %394 = vst [vmem:[%s9903_s15 + $0x194] sm:$0xff] %v393_v50  ;;  %v399_v53 = vld [vmem:[%s9898_s14 + $0x308] sm:$0xff]  ;;  %396 = vst [vmem:[%s9903_s15 + $0x19c] sm:$0xff] %v395_v51  ;;  %v401_v54 = vld [vmem:[%s9898_s14 + $0x310] sm:$0xff] }
  0x35   : > { %398 = vst [vmem:[%s9903_s15 + $0x1a4] sm:$0xff] %v397_v52  ;;  %400 = vst [vmem:[%s9903_s15 + $0x1ac] sm:$0xff] %v399_v53  ;;  %v403_v55 = vld [vmem:[%s9898_s14 + $0x318] sm:$0xff]  ;;  %v405_v56 = vld [vmem:[%s9898_s14 + $0x320] sm:$0xff] }
  0x36   : > { %402 = vst [vmem:[%s9903_s15 + $0x1b4] sm:$0xff] %v401_v54  ;;  %404 = vst [vmem:[%s9903_s15 + $0x1bc] sm:$0xff] %v403_v55  ;;  %v407_v57 = vld [vmem:[%s9898_s14 + $0x328] sm:$0xff]  ;;  %v409_v58 = vld [vmem:[%s9898_s14 + $0x330] sm:$0xff] }
  0x37   : > { %406 = vst [vmem:[%s9903_s15 + $0x1c4] sm:$0xff] %v405_v56  ;;  %v411_v59 = vld [vmem:[%s9898_s14 + $0x338] sm:$0xff]  ;;  %408 = vst [vmem:[%s9903_s15 + $0x1cc] sm:$0xff] %v407_v57  ;;  %v413_v60 = vld [vmem:[%s9898_s14 + $0x340] sm:$0xff] }
  0x38   : > { %410 = vst [vmem:[%s9903_s15 + $0x1d4] sm:$0xff] %v409_v58  ;;  %412 = vst [vmem:[%s9903_s15 + $0x1dc] sm:$0xff] %v411_v59  ;;  %v415_v61 = vld [vmem:[%s9898_s14 + $0x348] sm:$0xff]  ;;  %v417_v62 = vld [vmem:[%s9898_s14 + $0x350] sm:$0xff] }
  0x39   : > { %414 = vst [vmem:[%s9903_s15 + $0x1e4] sm:$0xff] %v413_v60  ;;  %416 = vst [vmem:[%s9903_s15 + $0x1ec] sm:$0xff] %v415_v61  ;;  %v419_v63 = vld [vmem:[%s9898_s14 + $0x358] sm:$0xff]  ;;  %v421_v0 = vld [vmem:[%s9898_s14 + $0x360] sm:$0xff] }
  0x3a   : > { %418 = vst [vmem:[%s9903_s15 + $0x1f4] sm:$0xff] %v417_v62  ;;  %v423_v1 = vld [vmem:[%s9898_s14 + $0x368] sm:$0xff]  ;;  %420 = vst [vmem:[%s9903_s15 + $0x1fc] sm:$0xff] %v419_v63  ;;  %v425_v2 = vld [vmem:[%s9898_s14 + $0x370] sm:$0xff] }
  0x3b   : > { %422 = vst [vmem:[%s9903_s15 + $0x204] sm:$0xff] %v421_v0  ;;  %424 = vst [vmem:[%s9903_s15 + $0x20c] sm:$0xff] %v423_v1  ;;  %v427_v3 = vld [vmem:[%s9898_s14 + $0x378] sm:$0xff]  ;;  %v429_v4 = vld [vmem:[%s9898_s14 + $0x380] sm:$0xff] }
  0x3c   : > { %426 = vst [vmem:[%s9903_s15 + $0x214] sm:$0xff] %v425_v2  ;;  %428 = vst [vmem:[%s9903_s15 + $0x21c] sm:$0xff] %v427_v3  ;;  %v431_v5 = vld [vmem:[%s9898_s14 + $0x388] sm:$0xff]  ;;  %v433_v6 = vld [vmem:[%s9898_s14 + $0x390] sm:$0xff] }
  0x3d   : > { %430 = vst [vmem:[%s9903_s15 + $0x224] sm:$0xff] %v429_v4  ;;  %v435_v7 = vld [vmem:[%s9898_s14 + $0x398] sm:$0xff]  ;;  %432 = vst [vmem:[%s9903_s15 + $0x22c] sm:$0xff] %v431_v5  ;;  %v437_v8 = vld [vmem:[%s9898_s14 + $0x3a0] sm:$0xff] }
  0x3e   : > { %434 = vst [vmem:[%s9903_s15 + $0x234] sm:$0xff] %v433_v6  ;;  %436 = vst [vmem:[%s9903_s15 + $0x23c] sm:$0xff] %v435_v7  ;;  %v439_v9 = vld [vmem:[%s9898_s14 + $0x3a8] sm:$0xff]  ;;  %v441_v10 = vld [vmem:[%s9898_s14 + $0x3b0] sm:$0xff] }
  0x3f   : > { %438 = vst [vmem:[%s9903_s15 + $0x244] sm:$0xff] %v437_v8  ;;  %440 = vst [vmem:[%s9903_s15 + $0x24c] sm:$0xff] %v439_v9  ;;  %v443_v11 = vld [vmem:[%s9898_s14 + $0x3b8] sm:$0xff]  ;;  %v445_v12 = vld [vmem:[%s9898_s14 + $0x3c0] sm:$0xff] }
  0x40   : > { %442 = vst [vmem:[%s9903_s15 + $0x254] sm:$0xff] %v441_v10  ;;  %v447_v13 = vld [vmem:[%s9898_s14 + $0x3c8] sm:$0xff]  ;;  %444 = vst [vmem:[%s9903_s15 + $0x25c] sm:$0xff] %v443_v11  ;;  %v449_v14 = vld [vmem:[%s9898_s14 + $0x3d0] sm:$0xff] }
  0x41   : > { %446 = vst [vmem:[%s9903_s15 + $0x264] sm:$0xff] %v445_v12  ;;  %448 = vst [vmem:[%s9903_s15 + $0x26c] sm:$0xff] %v447_v13  ;;  %v451_v15 = vld [vmem:[%s9898_s14 + $0x3d8] sm:$0xff]  ;;  %v453_v16 = vld [vmem:[%s9898_s14 + $0x3e0] sm:$0xff] }
  0x42   : > { %450 = vst [vmem:[%s9903_s15 + $0x274] sm:$0xff] %v449_v14  ;;  %452 = vst [vmem:[%s9903_s15 + $0x27c] sm:$0xff] %v451_v15  ;;  %v455_v17 = vld [vmem:[%s9898_s14 + $0x3e8] sm:$0xff]  ;;  %v457_v18 = vld [vmem:[%s9898_s14 + $0x3f0] sm:$0xff] }
  0x43   : > { %454 = vst [vmem:[%s9903_s15 + $0x284] sm:$0xff] %v453_v16  ;;  %v459_v19 = vld [vmem:[%s9898_s14 + $0x3f8] sm:$0xff]  ;;  %456 = vst [vmem:[%s9903_s15 + $0x28c] sm:$0xff] %v455_v17  ;;  %v461_v20 = vld [vmem:[%s9898_s14 + $0x400] sm:$0xff] }
  0x44   : > { %458 = vst [vmem:[%s9903_s15 + $0x294] sm:$0xff] %v457_v18  ;;  %460 = vst [vmem:[%s9903_s15 + $0x29c] sm:$0xff] %v459_v19  ;;  %v463_v21 = vld [vmem:[%s9898_s14 + $0x408] sm:$0xff]  ;;  %v465_v22 = vld [vmem:[%s9898_s14 + $0x570] sm:$0xff] }
  0x45   : > { %462 = vst [vmem:[%s9903_s15 + $0x2a4] sm:$0xff] %v461_v20  ;;  %464 = vst [vmem:[%s9903_s15 + $0x2ac] sm:$0xff] %v463_v21  ;;  %v467_v23 = vld [vmem:[%s9898_s14 + $0x578] sm:$0xff]  ;;  %v469_v24 = vld [vmem:[%s9898_s14 + $0x580] sm:$0xff] }
  0x46   : > { %466 = vst [vmem:[%s9903_s15 + $0x2b8] sm:$0xff] %v465_v22  ;;  %v471_v25 = vld [vmem:[%s9898_s14 + $0x588] sm:$0xff]  ;;  %468 = vst [vmem:[%s9903_s15 + $0x2c0] sm:$0xff] %v467_v23  ;;  %v473_v26 = vld [vmem:[%s9898_s14 + $0x590] sm:$0xff] }
  0x47   : > { %470 = vst [vmem:[%s9903_s15 + $0x2c8] sm:$0xff] %v469_v24  ;;  %472 = vst [vmem:[%s9903_s15 + $0x2d0] sm:$0xff] %v471_v25  ;;  %v475_v27 = vld [vmem:[%s9898_s14 + $0x598] sm:$0xff]  ;;  %v477_v28 = vld [vmem:[%s9898_s14 + $0x5a0] sm:$0xff] }
  0x48   : > { %474 = vst [vmem:[%s9903_s15 + $0x2d8] sm:$0xff] %v473_v26  ;;  %476 = vst [vmem:[%s9903_s15 + $0x2e0] sm:$0xff] %v475_v27  ;;  %v479_v29 = vld [vmem:[%s9898_s14 + $0x5a8] sm:$0xff]  ;;  %v481_v30 = vld [vmem:[%s9898_s14 + $0x5b0] sm:$0xff] }
  0x49   : > { %478 = vst [vmem:[%s9903_s15 + $0x2e8] sm:$0xff] %v477_v28  ;;  %v483_v31 = vld [vmem:[%s9898_s14 + $0x5b8] sm:$0xff]  ;;  %480 = vst [vmem:[%s9903_s15 + $0x2f0] sm:$0xff] %v479_v29  ;;  %v485_v32 = vld [vmem:[%s9898_s14 + $0x5c0] sm:$0xff] }
  0x4a   : > { %482 = vst [vmem:[%s9903_s15 + $0x2f8] sm:$0xff] %v481_v30  ;;  %484 = vst [vmem:[%s9903_s15 + $0x300] sm:$0xff] %v483_v31  ;;  %v487_v33 = vld [vmem:[%s9898_s14 + $0x5c8] sm:$0xff]  ;;  %v489_v34 = vld [vmem:[%s9898_s14 + $0x5d0] sm:$0xff] }
  0x4b   : > { %486 = vst [vmem:[%s9903_s15 + $0x308] sm:$0xff] %v485_v32  ;;  %488 = vst [vmem:[%s9903_s15 + $0x310] sm:$0xff] %v487_v33  ;;  %v491_v35 = vld [vmem:[%s9898_s14 + $0x5d8] sm:$0xff]  ;;  %v493_v36 = vld [vmem:[%s9898_s14 + $0x5e0] sm:$0xff] }
  0x4c   : > { %490 = vst [vmem:[%s9903_s15 + $0x318] sm:$0xff] %v489_v34  ;;  %v495_v37 = vld [vmem:[%s9898_s14 + $0x5e8] sm:$0xff]  ;;  %492 = vst [vmem:[%s9903_s15 + $0x320] sm:$0xff] %v491_v35  ;;  %v497_v38 = vld [vmem:[%s9898_s14 + $0x5f0] sm:$0xff] }
  0x4d   : > { %494 = vst [vmem:[%s9903_s15 + $0x328] sm:$0xff] %v493_v36  ;;  %496 = vst [vmem:[%s9903_s15 + $0x330] sm:$0xff] %v495_v37  ;;  %v499_v39 = vld [vmem:[%s9898_s14 + $0x5f8] sm:$0xff]  ;;  %v501_v40 = vld [vmem:[%s9898_s14 + $0x600] sm:$0xff] }
  0x4e   : > { %498 = vst [vmem:[%s9903_s15 + $0x338] sm:$0xff] %v497_v38  ;;  %500 = vst [vmem:[%s9903_s15 + $0x340] sm:$0xff] %v499_v39  ;;  %v503_v41 = vld [vmem:[%s9898_s14 + $0x608] sm:$0xff]  ;;  %v505_v42 = vld [vmem:[%s9898_s14 + $0x610] sm:$0xff] }
  0x4f   : > { %502 = vst [vmem:[%s9903_s15 + $0x348] sm:$0xff] %v501_v40  ;;  %v507_v43 = vld [vmem:[%s9898_s14 + $0x618] sm:$0xff]  ;;  %504 = vst [vmem:[%s9903_s15 + $0x350] sm:$0xff] %v503_v41  ;;  %v509_v44 = vld [vmem:[%s9898_s14 + $0x620] sm:$0xff] }
  0x50   : > { %506 = vst [vmem:[%s9903_s15 + $0x358] sm:$0xff] %v505_v42  ;;  %508 = vst [vmem:[%s9903_s15 + $0x360] sm:$0xff] %v507_v43  ;;  %v511_v45 = vld [vmem:[%s9898_s14 + $0x628] sm:$0xff]  ;;  %v513_v46 = vld [vmem:[%s9898_s14 + $0x630] sm:$0xff] }
  0x51   : > { %510 = vst [vmem:[%s9903_s15 + $0x368] sm:$0xff] %v509_v44  ;;  %512 = vst [vmem:[%s9903_s15 + $0x370] sm:$0xff] %v511_v45  ;;  %v515_v47 = vld [vmem:[%s9898_s14 + $0x638] sm:$0xff]  ;;  %v517_v48 = vld [vmem:[%s9898_s14 + $0x640] sm:$0xff] }
  0x52   : > { %514 = vst [vmem:[%s9903_s15 + $0x378] sm:$0xff] %v513_v46  ;;  %v519_v49 = vld [vmem:[%s9898_s14 + $0x648] sm:$0xff]  ;;  %516 = vst [vmem:[%s9903_s15 + $0x380] sm:$0xff] %v515_v47  ;;  %v521_v50 = vld [vmem:[%s9898_s14 + $0x650] sm:$0xff] }
  0x53   : > { %518 = vst [vmem:[%s9903_s15 + $0x388] sm:$0xff] %v517_v48  ;;  %520 = vst [vmem:[%s9903_s15 + $0x390] sm:$0xff] %v519_v49  ;;  %v523_v51 = vld [vmem:[%s9898_s14 + $0x658] sm:$0xff]  ;;  %v525_v52 = vld [vmem:[%s9898_s14 + $0x660] sm:$0xff] }
  0x54   : > { %522 = vst [vmem:[%s9903_s15 + $0x398] sm:$0xff] %v521_v50  ;;  %524 = vst [vmem:[%s9903_s15 + $0x3a0] sm:$0xff] %v523_v51  ;;  %v527_v53 = vld [vmem:[%s9898_s14 + $0x668] sm:$0xff]  ;;  %v529_v54 = vld [vmem:[%s9898_s14 + $0x670] sm:$0xff] }
  0x55   : > { %526 = vst [vmem:[%s9903_s15 + $0x3a8] sm:$0xff] %v525_v52  ;;  %v531_v55 = vld [vmem:[%s9898_s14 + $0x678] sm:$0xff]  ;;  %528 = vst [vmem:[%s9903_s15 + $0x3b0] sm:$0xff] %v527_v53  ;;  %v533_v56 = vld [vmem:[%s9898_s14 + $0x680] sm:$0xff] }
  0x56   : > { %530 = vst [vmem:[%s9903_s15 + $0x3b8] sm:$0xff] %v529_v54  ;;  %532 = vst [vmem:[%s9903_s15 + $0x3c0] sm:$0xff] %v531_v55  ;;  %v535_v57 = vld [vmem:[%s9898_s14 + $0x688] sm:$0xff]  ;;  %v537_v58 = vld [vmem:[%s9898_s14 + $0x690] sm:$0xff] }
  0x57   : > { %534 = vst [vmem:[%s9903_s15 + $0x3c8] sm:$0xff] %v533_v56  ;;  %536 = vst [vmem:[%s9903_s15 + $0x3d0] sm:$0xff] %v535_v57  ;;  %v539_v59 = vld [vmem:[%s9898_s14 + $0x698] sm:$0xff]  ;;  %v541_v60 = vld [vmem:[%s9898_s14 + $0x6a0] sm:$0xff] }
  0x58   : > { %538 = vst [vmem:[%s9903_s15 + $0x3d8] sm:$0xff] %v537_v58  ;;  %v543_v61 = vld [vmem:[%s9898_s14 + $0x6a8] sm:$0xff]  ;;  %540 = vst [vmem:[%s9903_s15 + $0x3e0] sm:$0xff] %v539_v59  ;;  %v545_v62 = vld [vmem:[%s9898_s14 + $0x6b0] sm:$0xff] }
  0x59   : > { %542 = vst [vmem:[%s9903_s15 + $0x3e8] sm:$0xff] %v541_v60  ;;  %544 = vst [vmem:[%s9903_s15 + $0x3f0] sm:$0xff] %v543_v61  ;;  %v547_v63 = vld [vmem:[%s9898_s14 + $0x6b8] sm:$0xff]  ;;  %v549_v0 = vld [vmem:[%s9898_s14 + $0x6c0] sm:$0xff] }
  0x5a   : > { %546 = vst [vmem:[%s9903_s15 + $0x3f8] sm:$0xff] %v545_v62  ;;  %548 = vst [vmem:[%s9903_s15 + $0x400] sm:$0xff] %v547_v63  ;;  %v551_v1 = vld [vmem:[%s9898_s14 + $0x828] sm:$0xff]  ;;  %v553_v2 = vld [vmem:[%s9898_s14 + $0x830] sm:$0xff] }
  0x5b   : > { %550 = vst [vmem:[%s9903_s15 + $0x408] sm:$0xff] %v549_v0  ;;  %v555_v3 = vld [vmem:[%s9898_s14 + $0x838] sm:$0xff]  ;;  %552 = vst [vmem:[%s9903_s15 + $0x414] sm:$0xff] %v551_v1  ;;  %v557_v4 = vld [vmem:[%s9898_s14 + $0x840] sm:$0xff] }
  0x5c   : > { %554 = vst [vmem:[%s9903_s15 + $0x41c] sm:$0xff] %v553_v2  ;;  %556 = vst [vmem:[%s9903_s15 + $0x424] sm:$0xff] %v555_v3  ;;  %v559_v5 = vld [vmem:[%s9898_s14 + $0x848] sm:$0xff]  ;;  %v561_v6 = vld [vmem:[%s9898_s14 + $0x850] sm:$0xff] }
  0x5d   : > { %558 = vst [vmem:[%s9903_s15 + $0x42c] sm:$0xff] %v557_v4  ;;  %560 = vst [vmem:[%s9903_s15 + $0x434] sm:$0xff] %v559_v5  ;;  %v563_v7 = vld [vmem:[%s9898_s14 + $0x858] sm:$0xff]  ;;  %v565_v8 = vld [vmem:[%s9898_s14 + $0x860] sm:$0xff] }
  0x5e   : > { %562 = vst [vmem:[%s9903_s15 + $0x43c] sm:$0xff] %v561_v6  ;;  %v567_v9 = vld [vmem:[%s9898_s14 + $0x868] sm:$0xff]  ;;  %564 = vst [vmem:[%s9903_s15 + $0x444] sm:$0xff] %v563_v7  ;;  %v569_v10 = vld [vmem:[%s9898_s14 + $0x870] sm:$0xff] }
  0x5f   : > { %566 = vst [vmem:[%s9903_s15 + $0x44c] sm:$0xff] %v565_v8  ;;  %568 = vst [vmem:[%s9903_s15 + $0x454] sm:$0xff] %v567_v9  ;;  %v571_v11 = vld [vmem:[%s9898_s14 + $0x878] sm:$0xff]  ;;  %v573_v12 = vld [vmem:[%s9898_s14 + $0x880] sm:$0xff] }
  0x60   : > { %570 = vst [vmem:[%s9903_s15 + $0x45c] sm:$0xff] %v569_v10  ;;  %572 = vst [vmem:[%s9903_s15 + $0x464] sm:$0xff] %v571_v11  ;;  %v575_v13 = vld [vmem:[%s9898_s14 + $0x888] sm:$0xff]  ;;  %v577_v14 = vld [vmem:[%s9898_s14 + $0x890] sm:$0xff] }
  0x61   : > { %574 = vst [vmem:[%s9903_s15 + $0x46c] sm:$0xff] %v573_v12  ;;  %v579_v15 = vld [vmem:[%s9898_s14 + $0x898] sm:$0xff]  ;;  %576 = vst [vmem:[%s9903_s15 + $0x474] sm:$0xff] %v575_v13  ;;  %v581_v16 = vld [vmem:[%s9898_s14 + $0x8a0] sm:$0xff] }
  0x62   : > { %578 = vst [vmem:[%s9903_s15 + $0x47c] sm:$0xff] %v577_v14  ;;  %580 = vst [vmem:[%s9903_s15 + $0x484] sm:$0xff] %v579_v15  ;;  %v583_v17 = vld [vmem:[%s9898_s14 + $0x8a8] sm:$0xff]  ;;  %v585_v18 = vld [vmem:[%s9898_s14 + $0x8b0] sm:$0xff] }
  0x63   : > { %582 = vst [vmem:[%s9903_s15 + $0x48c] sm:$0xff] %v581_v16  ;;  %584 = vst [vmem:[%s9903_s15 + $0x494] sm:$0xff] %v583_v17  ;;  %v587_v19 = vld [vmem:[%s9898_s14 + $0x8b8] sm:$0xff]  ;;  %v589_v20 = vld [vmem:[%s9898_s14 + $0x8c0] sm:$0xff] }
  0x64   : > { %586 = vst [vmem:[%s9903_s15 + $0x49c] sm:$0xff] %v585_v18  ;;  %v591_v21 = vld [vmem:[%s9898_s14 + $0x8c8] sm:$0xff]  ;;  %588 = vst [vmem:[%s9903_s15 + $0x4a4] sm:$0xff] %v587_v19  ;;  %v593_v22 = vld [vmem:[%s9898_s14 + $0x8d0] sm:$0xff] }
  0x65   : > { %590 = vst [vmem:[%s9903_s15 + $0x4ac] sm:$0xff] %v589_v20  ;;  %592 = vst [vmem:[%s9903_s15 + $0x4b4] sm:$0xff] %v591_v21  ;;  %v595_v23 = vld [vmem:[%s9898_s14 + $0x8d8] sm:$0xff]  ;;  %v597_v24 = vld [vmem:[%s9898_s14 + $0x8e0] sm:$0xff] }
  0x66   : > { %594 = vst [vmem:[%s9903_s15 + $0x4bc] sm:$0xff] %v593_v22  ;;  %596 = vst [vmem:[%s9903_s15 + $0x4c4] sm:$0xff] %v595_v23  ;;  %v599_v25 = vld [vmem:[%s9898_s14 + $0x8e8] sm:$0xff]  ;;  %v601_v26 = vld [vmem:[%s9898_s14 + $0x8f0] sm:$0xff] }
  0x67   : > { %598 = vst [vmem:[%s9903_s15 + $0x4cc] sm:$0xff] %v597_v24  ;;  %v603_v27 = vld [vmem:[%s9898_s14 + $0x8f8] sm:$0xff]  ;;  %600 = vst [vmem:[%s9903_s15 + $0x4d4] sm:$0xff] %v599_v25  ;;  %v605_v28 = vld [vmem:[%s9898_s14 + $0x900] sm:$0xff] }
  0x68   : > { %602 = vst [vmem:[%s9903_s15 + $0x4dc] sm:$0xff] %v601_v26  ;;  %604 = vst [vmem:[%s9903_s15 + $0x4e4] sm:$0xff] %v603_v27  ;;  %v607_v29 = vld [vmem:[%s9898_s14 + $0x908] sm:$0xff]  ;;  %v609_v30 = vld [vmem:[%s9898_s14 + $0x910] sm:$0xff] }
  0x69   : > { %606 = vst [vmem:[%s9903_s15 + $0x4ec] sm:$0xff] %v605_v28  ;;  %608 = vst [vmem:[%s9903_s15 + $0x4f4] sm:$0xff] %v607_v29  ;;  %v611_v31 = vld [vmem:[%s9898_s14 + $0x918] sm:$0xff]  ;;  %v613_v32 = vld [vmem:[%s9898_s14 + $0x920] sm:$0xff] }
  0x6a   : > { %610 = vst [vmem:[%s9903_s15 + $0x4fc] sm:$0xff] %v609_v30  ;;  %v615_v33 = vld [vmem:[%s9898_s14 + $0x928] sm:$0xff]  ;;  %612 = vst [vmem:[%s9903_s15 + $0x504] sm:$0xff] %v611_v31  ;;  %v617_v34 = vld [vmem:[%s9898_s14 + $0x930] sm:$0xff] }
  0x6b   : > { %614 = vst [vmem:[%s9903_s15 + $0x50c] sm:$0xff] %v613_v32  ;;  %616 = vst [vmem:[%s9903_s15 + $0x514] sm:$0xff] %v615_v33  ;;  %v619_v35 = vld [vmem:[%s9898_s14 + $0x938] sm:$0xff]  ;;  %v621_v36 = vld [vmem:[%s9898_s14 + $0x940] sm:$0xff] }
  0x6c   : > { %618 = vst [vmem:[%s9903_s15 + $0x51c] sm:$0xff] %v617_v34  ;;  %620 = vst [vmem:[%s9903_s15 + $0x524] sm:$0xff] %v619_v35  ;;  %v623_v37 = vld [vmem:[%s9898_s14 + $0x948] sm:$0xff]  ;;  %v625_v38 = vld [vmem:[%s9898_s14 + $0x950] sm:$0xff] }
  0x6d   : > { %622 = vst [vmem:[%s9903_s15 + $0x52c] sm:$0xff] %v621_v36  ;;  %v627_v39 = vld [vmem:[%s9898_s14 + $0x958] sm:$0xff]  ;;  %624 = vst [vmem:[%s9903_s15 + $0x534] sm:$0xff] %v623_v37  ;;  %v629_v40 = vld [vmem:[%s9898_s14 + $0x960] sm:$0xff] }
  0x6e   : > { %626 = vst [vmem:[%s9903_s15 + $0x53c] sm:$0xff] %v625_v38  ;;  %628 = vst [vmem:[%s9903_s15 + $0x544] sm:$0xff] %v627_v39  ;;  %v631_v41 = vld [vmem:[%s9898_s14 + $0x968] sm:$0xff]  ;;  %v633_v42 = vld [vmem:[%s9898_s14 + $0x970] sm:$0xff] }
  0x6f   : > { %630 = vst [vmem:[%s9903_s15 + $0x54c] sm:$0xff] %v629_v40  ;;  %632 = vst [vmem:[%s9903_s15 + $0x554] sm:$0xff] %v631_v41  ;;  %v635_v43 = vld [vmem:[%s9898_s14 + $0x978] sm:$0xff]  ;;  %v8643_v45 = vld [vmem:[%s9898_s14 + $0x410] sm:$0xf] }
  0x70   : > { %634 = vst [vmem:[%s9903_s15 + $0x55c] sm:$0xff] %v633_v42  ;;  %v8641_v44 = vld [vmem:[%s9898_s14 + $0x158] sm:$0xf]  ;;  %636 = vst [vmem:[%s9903_s15 + $0x564] sm:$0xff] %v635_v43  ;;  %v8645_v46 = vld [vmem:[%s9898_s14 + $0x6c8] sm:$0xf] }
  0x71   : > { %8642 = vst [vmem:[%s9903_s15 + $0x158] sm:$0xf] %v8641_v44  ;;  %8644 = vst [vmem:[%s9903_s15 + $0x2b4] sm:$0xf] %v8643_v45  ;;  %v8647_v47 = vld [vmem:[%s9898_s14 + $0x980] sm:$0xf] }
  0x72   : > { %8646 = vst [vmem:[%s9903_s15 + $0x410] sm:$0xf] %v8645_v46  ;;  %8648 = vst [vmem:[%s9903_s15 + $0x56c] sm:$0xf] %v8647_v47 }
  0x73 PF: > { %p8649_p7 = scmp.ge.s32.totalorder %s9788_s11, 1  ;;  %p656_p8 = scmp.lt.s32.totalorder %s9788_s11, 5 }
  0x75   : > { %p657_p9 = pnand %p8649_p7, %p656_p8 }
  0x77   : > { %660 = sbr.rel (%p657_p9) target bundleno = 2249 (0x8c9), region = 74 }
  0x7e   : > { %s663_s16 = sand.u32 1, %s9764_s27   ;;  %p695_p10 = scmp.lt.s32.totalorder %s9776_s30, 1 }
  0x7f   : > { %s9277_s17 = smul.u32 1392, %s663_s16  ;;  %p8650_p11 = scmp.ne.s32.totalorder %s9772_s29, 0 }
  0x80   : > { %s18200_s30 = smov (!%p695_p10, %s9776_s30), 1  ;;  %vm703_vm0 = vcmask (!%p8650_p11), 7168   ;;  %v9790_v48 = vmov (!%p8650_p11), 0.0  }
  0x81   : > { %s697_s21 = scalar_lea.vmem %s15680_s8, %s18200_s30  ;;  %s10265_s22 = scalar_lea.vmem [#allocation3], %s9277_s17  ;;  %704 = vst.msk [vmem:[#allocation2] sm:$0xff] (!%p8650_p11), %vm703_vm0, %v9790_v48  ;;  %705 = vst.msk [vmem:[#allocation2 + $0x8] sm:$0xff] (!%p8650_p11), %vm703_vm0, %v9790_v48 }
  0x82   : > { %702 = sbr.rel (%p8650_p11) target bundleno = 137 (0x89), region = 82  ;;  %706 = vst.msk [vmem:[#allocation2 + $0x10] sm:$0xff] (!%p8650_p11), %vm703_vm0, %v9790_v48  ;;  %707 = vst.msk [vmem:[#allocation2 + $0x18] sm:$0xff] (!%p8650_p11), %vm703_vm0, %v9790_v48 }
  0x89 PF: > { %v9340_v49 = vld [vmem:[%s10265_s22 + $0x4] ss:$348 sps:$4 sm:$0xff]   ;;  %v9342_v50 = vld [vmem:[%s10265_s22 + $0xc] ss:$348 sps:$4 sm:$0xff]   ;;  %v15681_v51 = vmov 0   ;;  %vm16057_vm1 = vcmask 261120  }
  0x8a   : > { %1809 = vmatprep.mubr.bf16.mxu0 %v15681_v51  ;;  %1862 = vmatprep.mubr.bf16.mxu1 %v15681_v51  ;;  %v9344_v52 = vld [vmem:[%s10265_s22] ss:$348 sps:$4 sm:$0xff]   ;;  %v9345_v53 = vld [vmem:[%s10265_s22 + $0x8] ss:$348 sps:$4 sm:$0xff]   ;;  %v9350_v56 = vld [vmem:[%s10265_s22 + $0x2b8] ss:$348 sps:$4 sm:$0xff]  }
  0x8b   : > { %1777 = vmatprep.subr.bf16.mxu0 %v9340_v49  ;;  %9338 = vset.pattern.permute.xlu0 %v15681_v51  ;;  %v9346_v54 = vld [vmem:[%s10265_s22 + $0x2bc] ss:$348 sps:$4 sm:$0xff]   ;;  %v9348_v55 = vld [vmem:[%s10265_s22 + $0x2c4] ss:$348 sps:$4 sm:$0xff]   ;;  %v9355_v59 = vld [vmem:[%s10265_s22 + $0x14] ss:$348 sps:$4 sm:$0xff]  }
  0x8c   : > { %1830 = vmatprep.subr.bf16.mxu1 %v9342_v50  ;;  %9339 = vset.pattern.permute.xlu1 %v15681_v51  ;;  %v9351_v57 = vld [vmem:[%s10265_s22 + $0x2c0] ss:$348 sps:$4 sm:$0xff]   ;;  %v9353_v60 = vld [vmem:[%s10265_s22 + $0x10] ss:$348 sps:$4 sm:$0xff]   ;;  %v9360_v62 = vld [vmem:[%s10265_s22 + $0x18] ss:$348 sps:$4 sm:$0xff]  }
  0x8d   : > { %1778 = vmatpush1.bf16.msra.mxu0 %v9344_v52  ;;  %1831 = vmatpush1.bf16.msra.mxu1 %v9345_v53  ;;  %v10283_v58 = vld [vmem:[%s15673_s1] sm:$0xff]   ;;  %v9359_v61 = vld [vmem:[%s10265_s22 + $0x2cc] ss:$348 sps:$4 sm:$0xff]   ;;  %v9362_v63 = vld [vmem:[%s10265_s22 + $0x1c] ss:$348 sps:$4 sm:$0xff]   ;;  %p8915_p12 = scmp.eq.s32.totalorder %s9772_s29, 1 }
  0x8e   : > { %1779 = vmatprep.subr.bf16.mxu0 %v9346_v54  ;;  %1832 = vmatprep.subr.bf16.mxu1 %v9348_v55  ;;  %v9357_v0 = vld [vmem:[%s10265_s22 + $0x2c8] ss:$348 sps:$4 sm:$0xff]   ;;  %v9365_v1 = vld [vmem:[%s10265_s22 + $0x2d4] ss:$348 sps:$4 sm:$0xff]   ;;  %v9366_v6 = vld [vmem:[%s10265_s22 + $0x20] ss:$348 sps:$4 sm:$0xff]  }
  0x8f   : > { %v9368_v2 = vld [vmem:[%s10265_s22 + $0x24] ss:$348 sps:$4 sm:$0xff]   ;;  %v10302_v3 = vld [vmem:[%s15673_s1 + $0x8] sm:$0xff]   ;;  %v9380_v11 = vld [vmem:[%s10265_s22 + $0x34] ss:$348 sps:$4 sm:$0xff]   ;;  %vm5561_vm2 = vcmask (!%p8915_p12), 7168  }
  0x90   : > { %v9363_v4 = vld [vmem:[%s10265_s22 + $0x2d0] ss:$348 sps:$4 sm:$0xff]   ;;  %v9371_v7 = vld [vmem:[%s10265_s22 + $0x2dc] ss:$348 sps:$4 sm:$0xff]   ;;  %v9372_v8 = vld [vmem:[%s10265_s22 + $0x28] ss:$348 sps:$4 sm:$0xff]  }
  0x91   : > { %1780 = vmatpush1.bf16.msra.mxu0 %v9350_v56  ;;  %1833 = vmatpush1.bf16.msra.mxu1 %v9351_v57  ;;  %v9374_v5 = vld [vmem:[%s10265_s22 + $0x2c] ss:$348 sps:$4 sm:$0xff]   ;;  %v9377_v9 = vld [vmem:[%s10265_s22 + $0x2e4] ss:$348 sps:$4 sm:$0xff]   ;;  %v9369_v10 = vld [vmem:[%s10265_s22 + $0x2d8] ss:$348 sps:$4 sm:$0xff]  }
  0x92   : > { %1883 = vmatprep.subr.bf16.mxu0 %v9355_v59  ;;  %1936 = vmatprep.subr.bf16.mxu1 %v9362_v63  ;;  %v9375_v12 = vld [vmem:[%s10265_s22 + $0x2e0] ss:$348 sps:$4 sm:$0xff]   ;;  %v9378_v18 = vld [vmem:[%s10265_s22 + $0x30] ss:$348 sps:$4 sm:$0xff]   ;;  %v9384_v20 = vld [vmem:[%s10265_s22 + $0x38] ss:$348 sps:$4 sm:$0xff]  }
  0x93   : > { %v9386_v13 = vld [vmem:[%s10265_s22 + $0x3c] ss:$348 sps:$4 sm:$0xff]   ;;  %v4105_v14 = vld [vmem:[%s15674_s2] sm:$0xff]  ;;  %v4107_v15 = vld [vmem:[%s15674_s2 + $0x10] sm:$0xff] }
  0x94   : > { %8827 = vmatmul.mubr.msk.bf16.vlgmr.msra.gmra.mrb[0].mxu0 %vm16057_vm1, %v10283_v58  ;;  %8829 = vmatmul.mubr.msk.bf16.vlgmr.msra.gmra.mrb[0].mxu1 %vm16057_vm1, %v10283_v58  ;;  %v4106_v16 = vld [vmem:[%s15674_s2 + $0x8] sm:$0xff]  ;;  %v4108_v17 = vld [vmem:[%s15674_s2 + $0x18] sm:$0xff]  ;;  %v9389_v21 = vld [vmem:[%s10265_s22 + $0x2f4] ss:$348 sps:$4 sm:$0xff]  }
  0x95   : > { %1884 = vmatpush1.bf16.msra.mxu0 %v9353_v60  ;;  %1819 = vmatprep.mubr.bf16.mxu0 %v15681_v51  ;;  %v9383_v19 = vld [vmem:[%s10265_s22 + $0x2ec] ss:$348 sps:$4 sm:$0xff]   ;;  %v4477_v22 = vld [vmem:[%s15675_s3] sm:$0xff]  ;;  %v4479_v27 = vld [vmem:[%s15675_s3 + $0x10] sm:$0xff] }
  0x96   : > { %1872 = vmatprep.mubr.bf16.mxu1 %v15681_v51  ;;  %1885 = vmatprep.subr.bf16.mxu0 %v9359_v61  ;;  %v9381_v23 = vld [vmem:[%s10265_s22 + $0x2e8] ss:$348 sps:$4 sm:$0xff]   ;;  %v9387_v26 = vld [vmem:[%s10265_s22 + $0x2f0] ss:$348 sps:$4 sm:$0xff]   ;;  %v9390_v30 = vld [vmem:[%s10265_s22 + $0x40] ss:$348 sps:$4 sm:$0xff]  }
  0x97   : > { %1937 = vmatpush1.bf16.msra.mxu1 %v9360_v62  ;;  %4111 = vperm.xlu0 %9338, %v4105_v14   ;;  %v4478_v24 = vld [vmem:[%s15675_s3 + $0x8] sm:$0xff]  ;;  %v9392_v25 = vld [vmem:[%s10265_s22 + $0x44] ss:$348 sps:$4 sm:$0xff]   ;;  %v4480_v29 = vld [vmem:[%s15675_s3 + $0x18] sm:$0xff] }
  0x98   : > { %1938 = vmatprep.subr.bf16.mxu1 %v9365_v1  ;;  %4121 = vperm.xlu1 %9339, %v4107_v15   ;;  %v9398_v28 = vld [vmem:[%s10265_s22 + $0x4c] ss:$348 sps:$4 sm:$0xff]   ;;  %v9395_v31 = vld [vmem:[%s10265_s22 + $0x2fc] ss:$348 sps:$4 sm:$0xff]   ;;  %v9401_v33 = vld [vmem:[%s10265_s22 + $0x304] ss:$348 sps:$4 sm:$0xff]  }
  0x99   : > { %1886 = vmatpush1.bf16.msra.mxu0 %v9357_v0  ;;  %v9396_v32 = vld [vmem:[%s10265_s22 + $0x48] ss:$348 sps:$4 sm:$0xff]   ;;  %v9393_v34 = vld [vmem:[%s10265_s22 + $0x2f8] ss:$348 sps:$4 sm:$0xff]   ;;  %v9399_v36 = vld [vmem:[%s10265_s22 + $0x300] ss:$348 sps:$4 sm:$0xff]  }
  0x9a   : > { %1989 = vmatprep.subr.bf16.mxu0 %v9368_v2  ;;  %v9404_v35 = vld [vmem:[%s10265_s22 + $0x54] ss:$348 sps:$4 sm:$0xff]   ;;  %v9410_v37 = vld [vmem:[%s10265_s22 + $0x5c] ss:$348 sps:$4 sm:$0xff]   ;;  %v9407_v39 = vld [vmem:[%s10265_s22 + $0x30c] ss:$348 sps:$4 sm:$0xff]  }
  0x9b   : > { %1939 = vmatpush1.bf16.msra.mxu1 %v9363_v4  ;;  %4116 = vperm.xlu0 %9338, %v4106_v16   ;;  %v9402_v38 = vld [vmem:[%s10265_s22 + $0x50] ss:$348 sps:$4 sm:$0xff]   ;;  %v9408_v40 = vld [vmem:[%s10265_s22 + $0x58] ss:$348 sps:$4 sm:$0xff]   ;;  %v9405_v41 = vld [vmem:[%s10265_s22 + $0x308] ss:$348 sps:$4 sm:$0xff]  }
  0x9c   : > { %8828 = vmatmul.mubr.msk.bf16.gmra.mrb[4].mxu0 %vm16057_vm1, %v10302_v3  ;;  %8830 = vmatmul.mubr.msk.bf16.gmra.mrb[4].mxu1 %vm16057_vm1, %v10302_v3  ;;  %v9413_v42 = vld [vmem:[%s10265_s22 + $0x314] ss:$348 sps:$4 sm:$0xff]   ;;  %v9416_v43 = vld [vmem:[%s10265_s22 + $0x64] ss:$348 sps:$4 sm:$0xff]   ;;  %v9422_v45 = vld [vmem:[%s10265_s22 + $0x6c] ss:$348 sps:$4 sm:$0xff]  }
  0x9d   : > { %1915 = vmatprep.mubr.bf16.mxu0 %v15681_v51  ;;  %1968 = vmatprep.mubr.bf16.mxu1 %v15681_v51  ;;  %v9411_v44 = vld [vmem:[%s10265_s22 + $0x310] ss:$348 sps:$4 sm:$0xff]   ;;  %v9414_v46 = vld [vmem:[%s10265_s22 + $0x60] ss:$348 sps:$4 sm:$0xff]   ;;  %v9420_v48 = vld [vmem:[%s10265_s22 + $0x68] ss:$348 sps:$4 sm:$0xff]  }
  0x9e   : > { %2042 = vmatprep.subr.bf16.mxu1 %v9374_v5  ;;  %4126 = vperm.xlu1 %9339, %v4108_v17   ;;  %v9419_v47 = vld [vmem:[%s10265_s22 + $0x31c] ss:$348 sps:$4 sm:$0xff]   ;;  %v9425_v50 = vld [vmem:[%s10265_s22 + $0x324] ss:$348 sps:$4 sm:$0xff]   ;;  %v9428_v52 = vld [vmem:[%s10265_s22 + $0x74] ss:$348 sps:$4 sm:$0xff]  }
  0x9f   : > { %4483 = vperm.xlu0 %9338, %v4477_v22   ;;  %v9417_v49 = vld [vmem:[%s10265_s22 + $0x318] ss:$348 sps:$4 sm:$0xff]   ;;  %v9423_v53 = vld [vmem:[%s10265_s22 + $0x320] ss:$348 sps:$4 sm:$0xff]   ;;  %v9426_v55 = vld [vmem:[%s10265_s22 + $0x70] ss:$348 sps:$4 sm:$0xff]  }
  0xa0   : > { %v9434_v54 = vld [vmem:[%s10265_s22 + $0x7c] ss:$348 sps:$4 sm:$0xff]   ;;  %v9431_v56 = vld [vmem:[%s10265_s22 + $0x32c] ss:$348 sps:$4 sm:$0xff]   ;;  %v9437_v59 = vld [vmem:[%s10265_s22 + $0x334] ss:$348 sps:$4 sm:$0xff]  }
  0xa1   : > { %v9432_v57 = vld [vmem:[%s10265_s22 + $0x78] ss:$348 sps:$4 sm:$0xff]   ;;  %v9429_v60 = vld [vmem:[%s10265_s22 + $0x328] ss:$348 sps:$4 sm:$0xff]   ;;  %v9435_v62 = vld [vmem:[%s10265_s22 + $0x330] ss:$348 sps:$4 sm:$0xff]  }
  0xa2   : > { %4488 = vperm.xlu1 %9339, %v4478_v24   ;;  %v9440_v61 = vld [vmem:[%s10265_s22 + $0x84] ss:$348 sps:$4 sm:$0xff]   ;;  %v9446_v63 = vld [vmem:[%s10265_s22 + $0x8c] ss:$348 sps:$4 sm:$0xff]   ;;  %v9443_v1 = vld [vmem:[%s10265_s22 + $0x33c] ss:$348 sps:$4 sm:$0xff]  }
  0xa3   : > { %4493 = vperm.xlu0 %9338, %v4479_v27   ;;  %v9438_v0 = vld [vmem:[%s10265_s22 + $0x80] ss:$348 sps:$4 sm:$0xff]   ;;  %v9444_v2 = vld [vmem:[%s10265_s22 + $0x88] ss:$348 sps:$4 sm:$0xff]   ;;  %v9441_v5 = vld [vmem:[%s10265_s22 + $0x338] ss:$348 sps:$4 sm:$0xff]  }
  0xa4   : > { %8831 = vmatmul.mubr.msk.bf16.vlgmr.msra.gmra.mrb[8].mxu0 %vm16057_vm1, %v10283_v58  ;;  %8833 = vmatmul.mubr.msk.bf16.vlgmr.msra.gmra.mrb[8].mxu1 %vm16057_vm1, %v10283_v58  ;;  %v9449_v4 = vld [vmem:[%s10265_s22 + $0x344] ss:$348 sps:$4 sm:$0xff]   ;;  %v9459_v15 = vld [vmem:[%s10265_s22 + $0x350] ss:$348 sps:$4 sm:$0xff]   ;;  %v9482_v24 = vld [vmem:[%s10265_s22 + $0xbc] ss:$348 sps:$4 sm:$0xff]  }
  0xa5   : > { %1990 = vmatpush1.bf16.msra.mxu0 %v9366_v6  ;;  %1925 = vmatprep.mubr.bf16.mxu0 %v15681_v51  ;;  %v9452_v6 = vld [vmem:[%s10265_s22 + $0x94] ss:$348 sps:$4 sm:$0xff]   ;;  %v9464_v14 = vld [vmem:[%s10265_s22 + $0xa4] ss:$348 sps:$4 sm:$0xff]   ;;  %v9470_v16 = vld [vmem:[%s10265_s22 + $0xac] ss:$348 sps:$4 sm:$0xff]  }
  0xa6   : > { %1978 = vmatprep.mubr.bf16.mxu1 %v15681_v51  ;;  %1991 = vmatprep.subr.bf16.mxu0 %v9371_v7  ;;  %v9447_v7 = vld [vmem:[%s10265_s22 + $0x340] ss:$348 sps:$4 sm:$0xff]   ;;  %v9476_v22 = vld [vmem:[%s10265_s22 + $0xb4] ss:$348 sps:$4 sm:$0xff]  }
  0xa7   : > { %2043 = vmatpush1.bf16.msra.mxu1 %v9372_v8  ;;  %4498 = vperm.xlu1 %9339, %v4480_v29   ;;  %v9458_v8 = vld [vmem:[%s10265_s22 + $0x9c] ss:$348 sps:$4 sm:$0xff]   ;;  %v9477_v29 = vld [vmem:[%s10265_s22 + $0x368] ss:$348 sps:$4 sm:$0xff]  }
  0xa8   : > { %2044 = vmatprep.subr.bf16.mxu1 %v9377_v9  ;;  %v9450_v9 = vld [vmem:[%s10265_s22 + $0x90] ss:$348 sps:$4 sm:$0xff]   ;;  %v9462_v17 = vld [vmem:[%s10265_s22 + $0xa0] ss:$348 sps:$4 sm:$0xff]   ;;  %v9480_v27 = vld [vmem:[%s10265_s22 + $0xb8] ss:$348 sps:$4 sm:$0xff]  }
  0xa9   : > { %1992 = vmatpush1.bf16.msra.mxu0 %v9369_v10  ;;  %v9455_v10 = vld [vmem:[%s10265_s22 + $0x34c] ss:$348 sps:$4 sm:$0xff]  }
  0xaa   : > { %2095 = vmatprep.subr.bf16.mxu0 %v9380_v11  ;;  %v9456_v11 = vld [vmem:[%s10265_s22 + $0x98] ss:$348 sps:$4 sm:$0xff]  }
  0xab   : > { %2045 = vmatpush1.bf16.msra.mxu1 %v9375_v12  ;;  %v9461_v12 = vld [vmem:[%s10265_s22 + $0x354] ss:$348 sps:$4 sm:$0xff]  }
  0xac   : > { %8832 = vmatmul.mubr.msk.bf16.gmra.mrb[12].mxu0 %vm16057_vm1, %v10302_v3  ;;  %8834 = vmatmul.mubr.msk.bf16.gmra.mrb[12].mxu1 %vm16057_vm1, %v10302_v3 }
  0xad   : > { %2021 = vmatprep.mubr.bf16.mxu0 %v15681_v51  ;;  %2074 = vmatprep.mubr.bf16.mxu1 %v15681_v51 }
  0xae   : > { %2148 = vmatprep.subr.bf16.mxu1 %v9386_v13  ;;  %v9453_v13 = vld [vmem:[%s10265_s22 + $0x348] ss:$348 sps:$4 sm:$0xff]  }
  0xb4   : > { %8835 = vmatmul.mubr.msk.bf16.vlgmr.msra.gmra.mrb[16].mxu0 %vm16057_vm1, %v10283_v58  ;;  %8837 = vmatmul.mubr.msk.bf16.vlgmr.msra.gmra.mrb[16].mxu1 %vm16057_vm1, %v10283_v58 }
  0xb5   : > { %2096 = vmatpush1.bf16.msra.mxu0 %v9378_v18  ;;  %2031 = vmatprep.mubr.bf16.mxu0 %v15681_v51  ;;  %v9467_v18 = vld [vmem:[%s10265_s22 + $0x35c] ss:$348 sps:$4 sm:$0xff]  }
  0xb6   : > { %2084 = vmatprep.mubr.bf16.mxu1 %v15681_v51  ;;  %2097 = vmatprep.subr.bf16.mxu0 %v9383_v19  ;;  %v9468_v19 = vld [vmem:[%s10265_s22 + $0xa8] ss:$348 sps:$4 sm:$0xff]  }
  0xb7   : > { %2149 = vmatpush1.bf16.msra.mxu1 %v9384_v20  ;;  %v9473_v20 = vld [vmem:[%s10265_s22 + $0x364] ss:$348 sps:$4 sm:$0xff]  }
  0xb8   : > { %2150 = vmatprep.subr.bf16.mxu1 %v9389_v21  ;;  %v9465_v21 = vld [vmem:[%s10265_s22 + $0x358] ss:$348 sps:$4 sm:$0xff]  }
  0xb9   : > { %2098 = vmatpush1.bf16.msra.mxu0 %v9381_v23  ;;  %v9471_v23 = vld [vmem:[%s10265_s22 + $0x360] ss:$348 sps:$4 sm:$0xff]  }
  0xba   : > { %2201 = vmatprep.subr.bf16.mxu0 %v9392_v25  ;;  %v9474_v25 = vld [vmem:[%s10265_s22 + $0xb0] ss:$348 sps:$4 sm:$0xff]  }
  0xbb   : > { %2151 = vmatpush1.bf16.msra.mxu1 %v9387_v26  ;;  %v9479_v26 = vld [vmem:[%s10265_s22 + $0x36c] ss:$348 sps:$4 sm:$0xff]  }
  0xbc   : > { %8836 = vmatmul.mubr.msk.bf16.gmra.mrb[20].mxu0 %vm16057_vm1, %v10302_v3  ;;  %8838 = vmatmul.mubr.msk.bf16.gmra.mrb[20].mxu1 %vm16057_vm1, %v10302_v3 }
  0xbd   : > { %2127 = vmatprep.mubr.bf16.mxu0 %v15681_v51  ;;  %2180 = vmatprep.mubr.bf16.mxu1 %v15681_v51 }
  0xbe   : > { %2254 = vmatprep.subr.bf16.mxu1 %v9398_v28  ;;  %v9485_v28 = vld [vmem:[%s10265_s22 + $0x374] ss:$348 sps:$4 sm:$0xff]  }
  0xc4   : > { %8839 = vmatmul.mubr.msk.bf16.vlgmr.msra.gmra.mrb[24].mxu0 %vm16057_vm1, %v10283_v58  ;;  %8841 = vmatmul.mubr.msk.bf16.vlgmr.msra.gmra.mrb[24].mxu1 %vm16057_vm1, %v10283_v58 }
  0xc5   : > { %2202 = vmatpush1.bf16.msra.mxu0 %v9390_v30  ;;  %2137 = vmatprep.mubr.bf16.mxu0 %v15681_v51  ;;  %v9488_v30 = vld [vmem:[%s10265_s22 + $0xc4] ss:$348 sps:$4 sm:$0xff]  }
  0xc6   : > { %2190 = vmatprep.mubr.bf16.mxu1 %v15681_v51  ;;  %2203 = vmatprep.subr.bf16.mxu0 %v9395_v31  ;;  %v9483_v31 = vld [vmem:[%s10265_s22 + $0x370] ss:$348 sps:$4 sm:$0xff]  }
  0xc7   : > { %2255 = vmatpush1.bf16.msra.mxu1 %v9396_v32  ;;  %v9494_v32 = vld [vmem:[%s10265_s22 + $0xcc] ss:$348 sps:$4 sm:$0xff]  }
  0xc8   : > { %2256 = vmatprep.subr.bf16.mxu1 %v9401_v33  ;;  %v9486_v33 = vld [vmem:[%s10265_s22 + $0xc0] ss:$348 sps:$4 sm:$0xff]  }
  0xc9   : > { %2204 = vmatpush1.bf16.msra.mxu0 %v9393_v34  ;;  %v9491_v34 = vld [vmem:[%s10265_s22 + $0x37c] ss:$348 sps:$4 sm:$0xff]  }
  0xca   : > { %2307 = vmatprep.subr.bf16.mxu0 %v9404_v35  ;;  %v9492_v35 = vld [vmem:[%s10265_s22 + $0xc8] ss:$348 sps:$4 sm:$0xff]  }
  0xcb   : > { %2257 = vmatpush1.bf16.msra.mxu1 %v9399_v36  ;;  %v9497_v36 = vld [vmem:[%s10265_s22 + $0x384] ss:$348 sps:$4 sm:$0xff]  }
  0xcc   : > { %8840 = vmatmul.mubr.msk.bf16.gmra.mrb[28].mxu0 %vm16057_vm1, %v10302_v3  ;;  %8842 = vmatmul.mubr.msk.bf16.gmra.mrb[28].mxu1 %vm16057_vm1, %v10302_v3 }
  0xcd   : > { %2233 = vmatprep.mubr.bf16.mxu0 %v15681_v51  ;;  %2286 = vmatprep.mubr.bf16.mxu1 %v15681_v51 }
  0xce   : > { %2360 = vmatprep.subr.bf16.mxu1 %v9410_v37  ;;  %v9489_v37 = vld [vmem:[%s10265_s22 + $0x378] ss:$348 sps:$4 sm:$0xff]  }
  0xd4   : > { %8843 = vmatmul.mubr.msk.bf16.vlgmr.msra.gmra.mrb[32].mxu0 %vm16057_vm1, %v10283_v58  ;;  %8845 = vmatmul.mubr.msk.bf16.vlgmr.msra.gmra.mrb[32].mxu1 %vm16057_vm1, %v10283_v58 }
  0xd5   : > { %2308 = vmatpush1.bf16.msra.mxu0 %v9402_v38  ;;  %2243 = vmatprep.mubr.bf16.mxu0 %v15681_v51  ;;  %v9500_v38 = vld [vmem:[%s10265_s22 + $0xd4] ss:$348 sps:$4 sm:$0xff]  }
  0xd6   : > { %2296 = vmatprep.mubr.bf16.mxu1 %v15681_v51  ;;  %2309 = vmatprep.subr.bf16.mxu0 %v9407_v39  ;;  %v9495_v39 = vld [vmem:[%s10265_s22 + $0x380] ss:$348 sps:$4 sm:$0xff]  }
  0xd7   : > { %2361 = vmatpush1.bf16.msra.mxu1 %v9408_v40  ;;  %v9506_v40 = vld [vmem:[%s10265_s22 + $0xdc] ss:$348 sps:$4 sm:$0xff]  }
  0xd8   : > { %2362 = vmatprep.subr.bf16.mxu1 %v9413_v42  ;;  %v9503_v42 = vld [vmem:[%s10265_s22 + $0x38c] ss:$348 sps:$4 sm:$0xff]  }
  0xd9   : > { %2310 = vmatpush1.bf16.msra.mxu0 %v9405_v41  ;;  %v9498_v41 = vld [vmem:[%s10265_s22 + $0xd0] ss:$348 sps:$4 sm:$0xff]  }
  0xda   : > { %2413 = vmatprep.subr.bf16.mxu0 %v9416_v43  ;;  %v9504_v43 = vld [vmem:[%s10265_s22 + $0xd8] ss:$348 sps:$4 sm:$0xff]  }
  0xdb   : > { %2363 = vmatpush1.bf16.msra.mxu1 %v9411_v44  ;;  %v9509_v44 = vld [vmem:[%s10265_s22 + $0x394] ss:$348 sps:$4 sm:$0xff]  }
  0xdc   : > { %8844 = vmatmul.mubr.msk.bf16.gmra.mrb[36].mxu0 %vm16057_vm1, %v10302_v3  ;;  %8846 = vmatmul.mubr.msk.bf16.gmra.mrb[36].mxu1 %vm16057_vm1, %v10302_v3 }
  0xdd   : > { %2339 = vmatprep.mubr.bf16.mxu0 %v15681_v51  ;;  %2392 = vmatprep.mubr.bf16.mxu1 %v15681_v51 }
  0xde   : > { %2466 = vmatprep.subr.bf16.mxu1 %v9422_v45  ;;  %v9501_v45 = vld [vmem:[%s10265_s22 + $0x388] ss:$348 sps:$4 sm:$0xff]  }
  0xe4   : > { %8847 = vmatmul.mubr.msk.bf16.vlgmr.msra.gmra.mrb[40].mxu0 %vm16057_vm1, %v10283_v58  ;;  %8849 = vmatmul.mubr.msk.bf16.vlgmr.msra.gmra.mrb[40].mxu1 %vm16057_vm1, %v10283_v58 }
  0xe5   : > { %2414 = vmatpush1.bf16.msra.mxu0 %v9414_v46  ;;  %2349 = vmatprep.mubr.bf16.mxu0 %v15681_v51  ;;  %v9512_v46 = vld [vmem:[%s10265_s22 + $0xe4] ss:$348 sps:$4 sm:$0xff]  }
  0xe6   : > { %2402 = vmatprep.mubr.bf16.mxu1 %v15681_v51  ;;  %2415 = vmatprep.subr.bf16.mxu0 %v9419_v47  ;;  %v9507_v47 = vld [vmem:[%s10265_s22 + $0x390] ss:$348 sps:$4 sm:$0xff]  }
  0xe7   : > { %2467 = vmatpush1.bf16.msra.mxu1 %v9420_v48 }
  0xe8   : > { %2468 = vmatprep.subr.bf16.mxu1 %v9425_v50 }
  0xe9   : > { %2416 = vmatpush1.bf16.msra.mxu0 %v9417_v49 }
  0xea   : > { %2519 = vmatprep.subr.bf16.mxu0 %v9428_v52 }
  0xeb   : > { %2469 = vmatpush1.bf16.msra.mxu1 %v9423_v53  ;;  %v9510_v53 = vld [vmem:[%s10265_s22 + $0xe0] ss:$348 sps:$4 sm:$0xff]  }
  0xec   : > { %8848 = vmatmul.mubr.msk.bf16.gmra.mrb[44].mxu0 %vm16057_vm1, %v10302_v3  ;;  %8850 = vmatmul.mubr.msk.bf16.gmra.mrb[44].mxu1 %vm16057_vm1, %v10302_v3 }
  0xed   : > { %2445 = vmatprep.mubr.bf16.mxu0 %v15681_v51  ;;  %2498 = vmatprep.mubr.bf16.mxu1 %v15681_v51 }
  0xee   : > { %2572 = vmatprep.subr.bf16.mxu1 %v9434_v54  ;;  %v9515_v54 = vld [vmem:[%s10265_s22 + $0x39c] ss:$348 sps:$4 sm:$0xff]  }
  0xf4   : > { %8851 = vmatmul.mubr.msk.bf16.vlgmr.msra.gmra.mrb[48].mxu0 %vm16057_vm1, %v10283_v58  ;;  %8853 = vmatmul.mubr.msk.bf16.vlgmr.msra.gmra.mrb[48].mxu1 %vm16057_vm1, %v10283_v58 }
  0xf5   : > { %2520 = vmatpush1.bf16.msra.mxu0 %v9426_v55  ;;  %2455 = vmatprep.mubr.bf16.mxu0 %v15681_v51  ;;  %v9516_v55 = vld [vmem:[%s10265_s22 + $0xe8] ss:$348 sps:$4 sm:$0xff]  }
  0xf6   : > { %2508 = vmatprep.mubr.bf16.mxu1 %v15681_v51  ;;  %2521 = vmatprep.subr.bf16.mxu0 %v9431_v56  ;;  %v10590_v56 = vld [vmem:[%s15673_s1] sm:$0xff]  }
  0xf7   : > { %2573 = vmatpush1.bf16.msra.mxu1 %v9432_v57  ;;  %v9513_v57 = vld [vmem:[%s10265_s22 + $0x398] ss:$348 sps:$4 sm:$0xff]  }
  0xf8   : > { %2574 = vmatprep.subr.bf16.mxu1 %v9437_v59 }
  0xf9   : > { %2522 = vmatpush1.bf16.msra.mxu0 %v9429_v60 }
  0xfa   : > { %2625 = vmatprep.subr.bf16.mxu0 %v9440_v61  ;;  %v9524_v61 = vld [vmem:[%s10265_s22 + $0xf4] ss:$348 sps:$4 sm:$0xff]  }
  0xfb   : > { %2575 = vmatpush1.bf16.msra.mxu1 %v9435_v62 }
  0xfc   : > { %8852 = vmatmul.mubr.msk.bf16.gmra.mrb[52].mxu0 %vm16057_vm1, %v10302_v3  ;;  %8854 = vmatmul.mubr.msk.bf16.gmra.mrb[52].mxu1 %vm16057_vm1, %v10302_v3 }
  0xfd   : > { %2551 = vmatprep.mubr.bf16.mxu0 %v15681_v51  ;;  %2604 = vmatprep.mubr.bf16.mxu1 %v15681_v51 }
  0xfe   : > { %2678 = vmatprep.subr.bf16.mxu1 %v9446_v63 }
 0x104   : > { %8855 = vmatmul.mubr.msk.bf16.vlgmr.msra.gmra.mrb[56].mxu0 %vm16057_vm1, %v10283_v58  ;;  %8857 = vmatmul.mubr.msk.bf16.vlgmr.msra.gmra.mrb[56].mxu1 %vm16057_vm1, %v10283_v58 }
 0x105   : > { %2626 = vmatpush1.bf16.msra.mxu0 %v9438_v0  ;;  %2561 = vmatprep.mubr.bf16.mxu0 %v15681_v51  ;;  %v9519_v0 = vld [vmem:[%s10265_s22 + $0x3a0] ss:$348 sps:$4 sm:$0xff]  }
 0x106   : > { %2614 = vmatprep.mubr.bf16.mxu1 %v15681_v51  ;;  %2627 = vmatprep.subr.bf16.mxu0 %v9443_v1 }
 0x107   : > { %2679 = vmatpush1.bf16.msra.mxu1 %v9444_v2 }
 0x108   : > { %2680 = vmatprep.subr.bf16.mxu1 %v9449_v4 }
 0x109   : > { %2628 = vmatpush1.bf16.msra.mxu0 %v9441_v5 }
 0x10a   : > { %2731 = vmatprep.subr.bf16.mxu0 %v9452_v6 }
 0x10b   : > { %2681 = vmatpush1.bf16.msra.mxu1 %v9447_v7 }
 0x10c   : > { %8856 = vmatmul.mubr.msk.bf16.gmra.mrb[60].mxu0 %vm16057_vm1, %v10302_v3  ;;  %8858 = vmatmul.mubr.msk.bf16.gmra.mrb[60].mxu1 %vm16057_vm1, %v10302_v3 }
 0x10d   : > { %2657 = vmatprep.mubr.bf16.mxu0 %v15681_v51  ;;  %2710 = vmatprep.mubr.bf16.mxu1 %v15681_v51 }
 0x10e   : > { %2784 = vmatprep.subr.bf16.mxu1 %v9458_v8 }
 0x114   : > { %8859 = vmatmul.mubr.msk.bf16.vlgmr.msra.gmra.mrb[64].mxu0 %vm16057_vm1, %v10283_v58  ;;  %8861 = vmatmul.mubr.msk.bf16.vlgmr.msra.gmra.mrb[64].mxu1 %vm16057_vm1, %v10283_v58 }
 0x115   : > { %2732 = vmatpush1.bf16.msra.mxu0 %v9450_v9  ;;  %2667 = vmatprep.mubr.bf16.mxu0 %v15681_v51 }
 0x116   : > { %2720 = vmatprep.mubr.bf16.mxu1 %v15681_v51  ;;  %2733 = vmatprep.subr.bf16.mxu0 %v9455_v10  ;;  %v10569_v48 = vpop.permute.xlu0 %4111 }
 0x117   : > { %2785 = vmatpush1.bf16.msra.mxu1 %v9456_v11  ;;  %v10571_v49 = vpop.permute.xlu1 %4121 }
 0x118   : > { %2786 = vmatprep.subr.bf16.mxu1 %v9461_v12 }
 0x119   : > { %2734 = vmatpush1.bf16.msra.mxu0 %v9453_v13 }
 0x11a   : > { %2837 = vmatprep.subr.bf16.mxu0 %v9464_v14  ;;  %v10580_v50 = vpop.permute.xlu0 %4116 }
 0x11b   : > { %2787 = vmatpush1.bf16.msra.mxu1 %v9459_v15 }
 0x11c   : > { %8860 = vmatmul.mubr.msk.bf16.gmra.mrb[68].mxu0 %vm16057_vm1, %v10302_v3  ;;  %8862 = vmatmul.mubr.msk.bf16.gmra.mrb[68].mxu1 %vm16057_vm1, %v10302_v3 }
 0x11d   : > { %2763 = vmatprep.mubr.bf16.mxu0 %v15681_v51  ;;  %2816 = vmatprep.mubr.bf16.mxu1 %v15681_v51  ;;  %v10582_v52 = vpop.permute.xlu1 %4126 }
 0x11e   : > { %2890 = vmatprep.subr.bf16.mxu1 %v9470_v16  ;;  %v10599_v59 = vpop.permute.xlu0 %4483  ;;  %v9530_v16 = vld [vmem:[%s10265_s22 + $0xfc] ss:$348 sps:$4 sm:$0xff]  }
 0x121   : > { %v10601_v60 = vpop.permute.xlu1 %4488 }
 0x124   : > { %8863 = vmatmul.mubr.msk.bf16.vlgmr.msra.gmra.mrb[72].mxu0 %vm16057_vm1, %v10283_v58  ;;  %8865 = vmatmul.mubr.msk.bf16.vlgmr.msra.gmra.mrb[72].mxu1 %vm16057_vm1, %v10283_v58 }
 0x125   : > { %2838 = vmatpush1.bf16.msra.mxu0 %v9462_v17  ;;  %2773 = vmatprep.mubr.bf16.mxu0 %v15681_v51 }
 0x126   : > { %2826 = vmatprep.mubr.bf16.mxu1 %v15681_v51  ;;  %2839 = vmatprep.subr.bf16.mxu0 %v9467_v18 }
 0x127   : > { %2891 = vmatpush1.bf16.msra.mxu1 %v9468_v19 }
 0x128   : > { %2892 = vmatprep.subr.bf16.mxu1 %v9473_v20 }
 0x129   : > { %2840 = vmatpush1.bf16.msra.mxu0 %v9465_v21 }
 0x12a   : > { %2943 = vmatprep.subr.bf16.mxu0 %v9476_v22 }
 0x12b   : > { %2893 = vmatpush1.bf16.msra.mxu1 %v9471_v23  ;;  %v10634_v23 = vld [vmem:[%s15673_s1 + $0x8] sm:$0xff]  }
 0x12c   : > { %8864 = vmatmul.mubr.msk.bf16.gmra.mrb[76].mxu0 %vm16057_vm1, %v10302_v3  ;;  %8866 = vmatmul.mubr.msk.bf16.gmra.mrb[76].mxu1 %vm16057_vm1, %v10302_v3 }
 0x12d   : > { %2869 = vmatprep.mubr.bf16.mxu0 %v15681_v51  ;;  %2922 = vmatprep.mubr.bf16.mxu1 %v15681_v51 }
 0x12e   : > { %2996 = vmatprep.subr.bf16.mxu1 %v9482_v24 }
 0x134   : > { %8867 = vmatmul.mubr.msk.bf16.vlgmr.msra.gmra.mrb[80].mxu0 %vm16057_vm1, %v10283_v58  ;;  %8869 = vmatmul.mubr.msk.bf16.vlgmr.msra.gmra.mrb[80].mxu1 %vm16057_vm1, %v10283_v58 }
 0x135   : > { %2944 = vmatpush1.bf16.msra.mxu0 %v9474_v25  ;;  %2879 = vmatprep.mubr.bf16.mxu0 %v15681_v51 }
 0x136   : > { %2932 = vmatprep.mubr.bf16.mxu1 %v15681_v51  ;;  %2945 = vmatprep.subr.bf16.mxu0 %v9479_v26 }
 0x137   : > { %2997 = vmatpush1.bf16.msra.mxu1 %v9480_v27 }
 0x138   : > { %2998 = vmatprep.subr.bf16.mxu1 %v9485_v28 }
 0x139   : > { %2946 = vmatpush1.bf16.msra.mxu0 %v9477_v29 }
 0x13a   : > { %3049 = vmatprep.subr.bf16.mxu0 %v9488_v30 }
 0x13b   : > { %2999 = vmatpush1.bf16.msra.mxu1 %v9483_v31 }
 0x13c   : > { %8868 = vmatmul.mubr.msk.bf16.gmra.mrb[84].mxu0 %vm16057_vm1, %v10302_v3  ;;  %8870 = vmatmul.mubr.msk.bf16.gmra.mrb[84].mxu1 %vm16057_vm1, %v10302_v3 }
 0x13d   : > { %2975 = vmatprep.mubr.bf16.mxu0 %v15681_v51  ;;  %3028 = vmatprep.mubr.bf16.mxu1 %v15681_v51 }
 0x13e   : > { %3102 = vmatprep.subr.bf16.mxu1 %v9494_v32  ;;  %v10656_v32 = vpop.permute.xlu0 %4493 }
 0x144   : > { %8871 = vmatmul.mubr.msk.bf16.vlgmr.msra.gmra.mrb[88].mxu0 %vm16057_vm1, %v10283_v58  ;;  %8873 = vmatmul.mubr.msk.bf16.vlgmr.msra.gmra.mrb[88].mxu1 %vm16057_vm1, %v10283_v58 }
 0x145   : > { %3050 = vmatpush1.bf16.msra.mxu0 %v9486_v33  ;;  %2985 = vmatprep.mubr.bf16.mxu0 %v15681_v51  ;;  %v10658_v33 = vpop.permute.xlu1 %4498 }
 0x146   : > { %3038 = vmatprep.mubr.bf16.mxu1 %v15681_v51  ;;  %3051 = vmatprep.subr.bf16.mxu0 %v9491_v34 }
 0x147   : > { %3103 = vmatpush1.bf16.msra.mxu1 %v9492_v35 }
 0x148   : > { %3104 = vmatprep.subr.bf16.mxu1 %v9497_v36 }
 0x149   : > { %3052 = vmatpush1.bf16.msra.mxu0 %v9489_v37 }
 0x14a   : > { %3155 = vmatprep.subr.bf16.mxu0 %v9500_v38 }
 0x14b   : > { %3105 = vmatpush1.bf16.msra.mxu1 %v9495_v39 }
 0x14c   : > { %8872 = vmatmul.mubr.msk.bf16.gmra.mrb[92].mxu0 %vm16057_vm1, %v10302_v3  ;;  %8874 = vmatmul.mubr.msk.bf16.gmra.mrb[92].mxu1 %vm16057_vm1, %v10302_v3 }
 0x14d   : > { %3081 = vmatprep.mubr.bf16.mxu0 %v15681_v51  ;;  %3134 = vmatprep.mubr.bf16.mxu1 %v15681_v51 }
 0x14e   : > { %3208 = vmatprep.subr.bf16.mxu1 %v9506_v40 }
 0x154   : > { %8875 = vmatmul.mubr.msk.bf16.vlgmr.msra.gmra.mrb[96].mxu0 %vm16057_vm1, %v10283_v58  ;;  %8877 = vmatmul.mubr.msk.bf16.vlgmr.msra.gmra.mrb[96].mxu1 %vm16057_vm1, %v10283_v58  ;;  %v9518_v58 = vld [vmem:[%s10265_s22 + $0xec] ss:$348 sps:$4 sm:$0xff]  }
 0x155   : > { %3156 = vmatpush1.bf16.msra.mxu0 %v9498_v41  ;;  %3091 = vmatprep.mubr.bf16.mxu0 %v15681_v51 }
 0x156   : > { %3144 = vmatprep.mubr.bf16.mxu1 %v15681_v51  ;;  %3157 = vmatprep.subr.bf16.mxu0 %v9503_v42 }
 0x157   : > { %3209 = vmatpush1.bf16.msra.mxu1 %v9504_v43 }
 0x158   : > { %3210 = vmatprep.subr.bf16.mxu1 %v9509_v44  ;;  %v9522_v44 = vld [vmem:[%s10265_s22 + $0xf0] ss:$348 sps:$4 sm:$0xff]  }
 0x159   : > { %3158 = vmatpush1.bf16.msra.mxu0 %v9501_v45 }
 0x15a   : > { %3261 = vmatprep.subr.bf16.mxu0 %v9512_v46 }
 0x15b   : > { %3211 = vmatpush1.bf16.msra.mxu1 %v9507_v47 }
 0x15c   : > { %8876 = vmatmul.mubr.msk.bf16.gmra.mrb[100].mxu0 %vm16057_vm1, %v10302_v3  ;;  %8878 = vmatmul.mubr.msk.bf16.gmra.mrb[100].mxu1 %vm16057_vm1, %v10302_v3  ;;  %v9521_v3 = vld [vmem:[%s10265_s22 + $0x3a4] ss:$348 sps:$4 sm:$0xff]  }
 0x15d   : > { %3187 = vmatprep.mubr.bf16.mxu0 %v15681_v51  ;;  %3240 = vmatprep.mubr.bf16.mxu1 %v15681_v51 }
 0x15e   : > { %3314 = vmatprep.subr.bf16.mxu1 %v9518_v58 }
 0x164   : > { %8879 = vmatmul.mubr.msk.bf16.vlgmr.msra.gmra.mrb[104].mxu0 %vm16057_vm1, %v10590_v56  ;;  %8881 = vmatmul.mubr.msk.bf16.vlgmr.msra.gmra.mrb[104].mxu1 %vm16057_vm1, %v10590_v56 }
 0x165   : > { %3262 = vmatpush1.bf16.msra.mxu0 %v9510_v53  ;;  %3197 = vmatprep.mubr.bf16.mxu0 %v15681_v51 }
 0x166   : > { %3250 = vmatprep.mubr.bf16.mxu1 %v15681_v51  ;;  %3263 = vmatprep.subr.bf16.mxu0 %v9515_v54 }
 0x167   : > { %v1811_v62 = vpop.f32.mrb[0].mxu0  ;;  %v1864_v63 = vpop.f32.mrb[0].mxu1  ;;  %3315 = vmatpush1.bf16.msra.mxu1 %v9516_v55 }
 0x168   : > { %v4129_v1 = vmul.f32 %v10569_v48, %v1811_v62  ;;  %v1813_v2 = vpop.f32.mrb[1].mxu0  ;;  %v4131_v4 = vmul.f32 %v10569_v48, %v1864_v63  ;;  %v1866_v5 = vpop.f32.mrb[1].mxu1  ;;  %3316 = vmatprep.subr.bf16.mxu1 %v9521_v3 }
 0x169   : > { %v4130_v6 = vmul.f32 %v10569_v48, %v1813_v2  ;;  %v1815_v7 = vpop.f32.mrb[2].mxu0  ;;  %3264 = vmatpush1.bf16.msra.mxu0 %v9513_v57  ;;  %v4132_v8 = vmul.f32 %v10569_v48, %v1866_v5  ;;  %v1868_v9 = vpop.f32.mrb[2].mxu1  ;;  %v9527_v57 = vld [vmem:[%s10265_s22 + $0x3ac] ss:$348 sps:$4 sm:$0xff]  }
 0x16a   : > { %v4216_v10 = vmul.f32 %v10580_v50, %v1815_v7  ;;  %v10612_v11 = vadd.f32 %v10599_v59, %v4129_v1  ;;  %v1817_v12 = vpop.f32.mrb[3].mxu0  ;;  %v10615_v13 = vadd.f32 %v10599_v59, %v4131_v4  ;;  %v4218_v14 = vmul.f32 %v10580_v50, %v1868_v9  ;;  %v1870_v15 = vpop.f32.mrb[3].mxu1  ;;  %3367 = vmatprep.subr.bf16.mxu0 %v9524_v61  ;;  %v9528_v1 = vld [vmem:[%s10265_s22 + $0xf8] ss:$348 sps:$4 sm:$0xff]   ;;  %v9546_v2 = vld [vmem:[%s10265_s22 + $0x110] ss:$348 sps:$4 sm:$0xff]  }
 0x16b   : > { %v10620_v17 = vadd.f32 %v10599_v59, %v4130_v6  ;;  %v4217_v18 = vmul.f32 %v10580_v50, %v1817_v12  ;;  %v10624_v19 = vadd.f32 %v10599_v59, %v4132_v8  ;;  %v4219_v20 = vmul.f32 %v10580_v50, %v1870_v15  ;;  %3317 = vmatpush1.bf16.msra.mxu1 %v9519_v0  ;;  %v9533_v7 = vld [vmem:[%s10265_s22 + $0x3b4] ss:$348 sps:$4 sm:$0xff]  }
 0x16c   : > { %16184 = vst [vmem:[#allocation4_spill] sm:$0xff] %v10615_v13  ;;  %v10629_v22 = vadd.f32 %v10601_v60, %v4216_v10  ;;  %8880 = vmatmul.mubr.msk.bf16.gmra.mrb[108].mxu0 %vm16057_vm1, %v10634_v23  ;;  %8882 = vmatmul.mubr.msk.bf16.gmra.mrb[108].mxu1 %vm16057_vm1, %v10634_v23  ;;  %v10642_v25 = vadd.f32 %v10601_v60, %v4218_v14  ;;  %v9525_v14 = vld [vmem:[%s10265_s22 + $0x3a8] ss:$348 sps:$4 sm:$0xff]  }
 0x16d   : > { %16185 = vst [vmem:[#allocation5_spill] sm:$0xff] %v10620_v17  ;;  %16186 = vst [vmem:[#allocation6_spill] sm:$0xff] %v10624_v19  ;;  %v10646_v27 = vadd.f32 %v10601_v60, %v4217_v18  ;;  %v10650_v29 = vadd.f32 %v10601_v60, %v4219_v20  ;;  %3293 = vmatprep.mubr.bf16.mxu0 %v15681_v51  ;;  %3346 = vmatprep.mubr.bf16.mxu1 %v15681_v51  ;;  %v9536_v18 = vld [vmem:[%s10265_s22 + $0x104] ss:$348 sps:$4 sm:$0xff]  }
 0x16e   : > { %16187 = vst [vmem:[#allocation7_spill] sm:$0xff] %v10629_v22  ;;  %16188 = vst [vmem:[#allocation8_spill] sm:$0xff] %v10642_v25  ;;  %3420 = vmatprep.subr.bf16.mxu1 %v9530_v16  ;;  %v9537_v16 = vld [vmem:[%s10265_s22 + $0x3b8] ss:$348 sps:$4 sm:$0xff]  }
 0x16f   : > { %16189 = vst [vmem:[#allocation9_spill] sm:$0xff] %v10646_v27  ;;  %16190 = vst [vmem:[#allocation10_spill] sm:$0xff] %v10650_v29  ;;  %v1821_v35 = vpop.f32.mrb[4].mxu0  ;;  %v1874_v37 = vpop.f32.mrb[4].mxu1 }
 0x170   : > { %v4303_v38 = vmul.f32 %v10571_v49, %v1821_v35  ;;  %v1823_v39 = vpop.f32.mrb[5].mxu0  ;;  %v4305_v40 = vmul.f32 %v10571_v49, %v1874_v37  ;;  %v1876_v41 = vpop.f32.mrb[5].mxu1 }
 0x171   : > { %v4304_v42 = vmul.f32 %v10571_v49, %v1823_v39  ;;  %v1825_v43 = vpop.f32.mrb[6].mxu0  ;;  %v4306_v45 = vmul.f32 %v10571_v49, %v1876_v41  ;;  %v1878_v46 = vpop.f32.mrb[6].mxu1  ;;  %v9531_v39 = vld [vmem:[%s10265_s22 + $0x3b0] ss:$348 sps:$4 sm:$0xff]  }
 0x172   : > { %v4390_v47 = vmul.f32 %v10582_v52, %v1825_v43  ;;  %v10669_v58 = vadd.f32 %v10656_v32, %v4303_v38  ;;  %v1827_v53 = vpop.f32.mrb[7].mxu0  ;;  %v10672_v54 = vadd.f32 %v10656_v32, %v4305_v40  ;;  %v4392_v55 = vmul.f32 %v10582_v52, %v1878_v46  ;;  %v1880_v3 = vpop.f32.mrb[7].mxu1 }
 0x173   : > { %v10677_v61 = vadd.f32 %v10656_v32, %v4304_v42  ;;  %v4391_v62 = vmul.f32 %v10582_v52, %v1827_v53  ;;  %v10681_v63 = vadd.f32 %v10656_v32, %v4306_v45  ;;  %v4393_v0 = vmul.f32 %v10582_v52, %v1880_v3 }
 0x174   : > { %16191 = vst [vmem:[#allocation11_spill] sm:$0xff] %v10669_v58  ;;  %16192 = vst [vmem:[#allocation12_spill] sm:$0xff] %v10672_v54  ;;  %v10687_v4 = vadd.f32 %v10658_v33, %v4390_v47  ;;  %8883 = vmatmul.mubr.msk.bf16.vlgmr.msra.gmra.mrb[112].mxu0 %vm16057_vm1, %v10590_v56  ;;  %8885 = vmatmul.mubr.msk.bf16.vlgmr.msra.gmra.mrb[112].mxu1 %vm16057_vm1, %v10590_v56  ;;  %v10695_v6 = vadd.f32 %v10658_v33, %v4392_v55 }
 0x175   : > { %16193 = vst [vmem:[#allocation13_spill] sm:$0xff] %v10677_v61  ;;  %16194 = vst [vmem:[#allocation14_spill] sm:$0xff] %v10681_v63  ;;  %v10700_v9 = vadd.f32 %v10658_v33, %v4391_v62  ;;  %3368 = vmatpush1.bf16.msra.mxu0 %v9522_v44  ;;  %v10704_v12 = vadd.f32 %v10658_v33, %v4393_v0  ;;  %3303 = vmatprep.mubr.bf16.mxu0 %v15681_v51 }
 0x176   : > { %16195 = vst [vmem:[#allocation15_spill] sm:$0xff] %v10687_v4  ;;  %16196 = vst [vmem:[#allocation16_spill] sm:$0xff] %v10695_v6  ;;  %3356 = vmatprep.mubr.bf16.mxu1 %v15681_v51  ;;  %3369 = vmatprep.subr.bf16.mxu0 %v9527_v57 }
 0x177   : > { %16197 = vst [vmem:[#allocation17_spill] sm:$0xff] %v10700_v9  ;;  %16198 = vst [vmem:[#allocation18_spill] sm:$0xff] %v10704_v12  ;;  %v1917_v35 = vpop.f32.mrb[8].mxu0  ;;  %v1970_v38 = vpop.f32.mrb[8].mxu1  ;;  %3421 = vmatpush1.bf16.msra.mxu1 %v9528_v1  ;;  %v9542_v1 = vld [vmem:[%s10265_s22 + $0x10c] ss:$348 sps:$4 sm:$0xff]  }
 0x178   : > { %v4133_v40 = vmul.f32 %v10569_v48, %v1917_v35  ;;  %v1919_v41 = vpop.f32.mrb[9].mxu0  ;;  %v4135_v42 = vmul.f32 %v10569_v48, %v1970_v38  ;;  %v1972_v43 = vpop.f32.mrb[9].mxu1  ;;  %3422 = vmatprep.subr.bf16.mxu1 %v9533_v7 }
 0x179   : > { %v4134_v44 = vmul.f32 %v10569_v48, %v1919_v41  ;;  %v1921_v45 = vpop.f32.mrb[10].mxu0  ;;  %3370 = vmatpush1.bf16.msra.mxu0 %v9525_v14  ;;  %v4136_v46 = vmul.f32 %v10569_v48, %v1972_v43  ;;  %v1974_v47 = vpop.f32.mrb[10].mxu1 }
 0x17a   : > { %v10720_v53 = vadd.f32 %v10599_v59, %v4133_v40  ;;  %v4220_v55 = vmul.f32 %v10580_v50, %v1921_v45  ;;  %v1923_v3 = vpop.f32.mrb[11].mxu0  ;;  %v10724_v57 = vadd.f32 %v10599_v59, %v4135_v42  ;;  %v4222_v62 = vmul.f32 %v10580_v50, %v1974_v47  ;;  %v1976_v0 = vpop.f32.mrb[11].mxu1  ;;  %3473 = vmatprep.subr.bf16.mxu0 %v9536_v18  ;;  %v9534_v40 = vld [vmem:[%s10265_s22 + $0x100] ss:$348 sps:$4 sm:$0xff]  }
 0x17b   : > { %v10729_v7 = vadd.f32 %v10599_v59, %v4134_v44  ;;  %v4221_v14 = vmul.f32 %v10580_v50, %v1923_v3  ;;  %v10733_v35 = vadd.f32 %v10599_v59, %v4136_v46  ;;  %v4223_v38 = vmul.f32 %v10580_v50, %v1976_v0  ;;  %3423 = vmatpush1.bf16.msra.mxu1 %v9531_v39 }
 0x17c   : > { %16199 = vst [vmem:[#allocation19_spill] sm:$0xff] %v10720_v53  ;;  %16200 = vst [vmem:[#allocation20_spill] sm:$0xff] %v10724_v57  ;;  %v10738_v41 = vadd.f32 %v10601_v60, %v4220_v55  ;;  %8884 = vmatmul.mubr.msk.bf16.gmra.mrb[116].mxu0 %vm16057_vm1, %v10634_v23  ;;  %8886 = vmatmul.mubr.msk.bf16.gmra.mrb[116].mxu1 %vm16057_vm1, %v10634_v23  ;;  %v10746_v42 = vadd.f32 %v10601_v60, %v4222_v62 }
 0x17d   : > { %16201 = vst [vmem:[#allocation21_spill] sm:$0xff] %v10729_v7  ;;  %16202 = vst [vmem:[#allocation22_spill] sm:$0xff] %v10733_v35  ;;  %v10750_v39 = vadd.f32 %v10601_v60, %v4221_v14  ;;  %v10754_v45 = vadd.f32 %v10601_v60, %v4223_v38  ;;  %3399 = vmatprep.mubr.bf16.mxu0 %v15681_v51  ;;  %3452 = vmatprep.mubr.bf16.mxu1 %v15681_v51 }
 0x17e   : > { %16203 = vst [vmem:[#allocation23_spill] sm:$0xff] %v10738_v41  ;;  %16204 = vst [vmem:[#allocation24_spill] sm:$0xff] %v10746_v42  ;;  %3526 = vmatprep.subr.bf16.mxu1 %v9542_v1 }
 0x17f   : > { %16205 = vst [vmem:[#allocation25_spill] sm:$0xff] %v10750_v39  ;;  %16206 = vst [vmem:[#allocation26_spill] sm:$0xff] %v10754_v45  ;;  %v1927_v3 = vpop.f32.mrb[12].mxu0  ;;  %v1980_v0 = vpop.f32.mrb[12].mxu1 }
 0x180   : > { %v4307_v14 = vmul.f32 %v10571_v49, %v1927_v3  ;;  %v1929_v38 = vpop.f32.mrb[13].mxu0  ;;  %v4309_v44 = vmul.f32 %v10571_v49, %v1980_v0  ;;  %v1982_v18 = vpop.f32.mrb[13].mxu1 }
 0x181   : > { %v4308_v43 = vmul.f32 %v10571_v49, %v1929_v38  ;;  %v1931_v46 = vpop.f32.mrb[14].mxu0  ;;  %v4310_v1 = vmul.f32 %v10571_v49, %v1982_v18  ;;  %v1984_v47 = vpop.f32.mrb[14].mxu1  ;;  %v9539_v38 = vld [vmem:[%s10265_s22 + $0x3bc] ss:$348 sps:$4 sm:$0xff]  }
 0x182   : > { %v10768_v55 = vadd.f32 %v10656_v32, %v4307_v14  ;;  %v4394_v62 = vmul.f32 %v10582_v52, %v1931_v46  ;;  %v1933_v36 = vpop.f32.mrb[15].mxu0  ;;  %v10772_v3 = vadd.f32 %v10656_v32, %v4309_v44  ;;  %v4396_v0 = vmul.f32 %v10582_v52, %v1984_v47  ;;  %v1986_v37 = vpop.f32.mrb[15].mxu1  ;;  %v9540_v14 = vld [vmem:[%s10265_s22 + $0x108] ss:$348 sps:$4 sm:$0xff]  }
 0x183   : > { %v10777_v28 = vadd.f32 %v10656_v32, %v4308_v43  ;;  %v4395_v18 = vmul.f32 %v10582_v52, %v1933_v36  ;;  %v10781_v10 = vadd.f32 %v10656_v32, %v4310_v1  ;;  %v4397_v46 = vmul.f32 %v10582_v52, %v1986_v37  ;;  %v9545_v47 = vld [vmem:[%s10265_s22 + $0x3c4] ss:$348 sps:$4 sm:$0xff]   ;;  %v9548_v37 = vld [vmem:[%s10265_s22 + $0x114] ss:$348 sps:$4 sm:$0xff]  }
 0x184   : > { %16207 = vst [vmem:[#allocation27_spill] sm:$0xff] %v10768_v55  ;;  %16208 = vst [vmem:[#allocation28_spill] sm:$0xff] %v10772_v3  ;;  %v10787_v44 = vadd.f32 %v10658_v33, %v4394_v62  ;;  %8887 = vmatmul.mubr.msk.bf16.vlgmr.msra.gmra.mrb[120].mxu0 %vm16057_vm1, %v10590_v56  ;;  %8889 = vmatmul.mubr.msk.bf16.vlgmr.msra.gmra.mrb[120].mxu1 %vm16057_vm1, %v10590_v56  ;;  %v10795_v43 = vadd.f32 %v10658_v33, %v4396_v0 }
 0x185   : > { %16209 = vst [vmem:[#allocation29_spill] sm:$0xff] %v10777_v28  ;;  %16210 = vst [vmem:[#allocation30_spill] sm:$0xff] %v10781_v10  ;;  %v10800_v1 = vadd.f32 %v10658_v33, %v4395_v18  ;;  %3474 = vmatpush1.bf16.msra.mxu0 %v9534_v40  ;;  %v10804_v31 = vadd.f32 %v10658_v33, %v4397_v46  ;;  %3409 = vmatprep.mubr.bf16.mxu0 %v15681_v51  ;;  %v9543_v46 = vld [vmem:[%s10265_s22 + $0x3c0] ss:$348 sps:$4 sm:$0xff]  }
 0x186   : > { %16211 = vst [vmem:[#allocation31_spill] sm:$0xff] %v10787_v44  ;;  %16212 = vst [vmem:[#allocation32_spill] sm:$0xff] %v10795_v43  ;;  %3462 = vmatprep.mubr.bf16.mxu1 %v15681_v51  ;;  %3475 = vmatprep.subr.bf16.mxu0 %v9539_v38 }
 0x187   : > { %16213 = vst [vmem:[#allocation33_spill] sm:$0xff] %v10800_v1  ;;  %16214 = vst [vmem:[#allocation34_spill] sm:$0xff] %v10804_v31  ;;  %v2023_v24 = vpop.f32.mrb[16].mxu0  ;;  %v2076_v62 = vpop.f32.mrb[16].mxu1  ;;  %3527 = vmatpush1.bf16.msra.mxu1 %v9540_v14 }
 0x188   : > { %v4137_v5 = vmul.f32 %v10569_v48, %v2023_v24  ;;  %v2025_v34 = vpop.f32.mrb[17].mxu0  ;;  %v4139_v36 = vmul.f32 %v10569_v48, %v2076_v62  ;;  %v2078_v30 = vpop.f32.mrb[17].mxu1  ;;  %3528 = vmatprep.subr.bf16.mxu1 %v9545_v47  ;;  %v9554_v47 = vld [vmem:[%s10265_s22 + $0x11c] ss:$348 sps:$4 sm:$0xff]  }
 0x189   : > { %v4138_v0 = vmul.f32 %v10569_v48, %v2025_v34  ;;  %v2027_v38 = vpop.f32.mrb[18].mxu0  ;;  %3476 = vmatpush1.bf16.msra.mxu0 %v9537_v16  ;;  %v4140_v18 = vmul.f32 %v10569_v48, %v2078_v30  ;;  %v2080_v20 = vpop.f32.mrb[18].mxu1 }
 0x18a   : > { %v10820_v40 = vadd.f32 %v10599_v59, %v4137_v5  ;;  %v4224_v14 = vmul.f32 %v10580_v50, %v2027_v38  ;;  %v2029_v15 = vpop.f32.mrb[19].mxu0  ;;  %v10824_v24 = vadd.f32 %v10599_v59, %v4139_v36  ;;  %v4226_v62 = vmul.f32 %v10580_v50, %v2080_v20  ;;  %v2082_v26 = vpop.f32.mrb[19].mxu1  ;;  %3579 = vmatprep.subr.bf16.mxu0 %v9548_v37 }
 0x18b   : > { %v10829_v34 = vadd.f32 %v10599_v59, %v4138_v0  ;;  %v4225_v30 = vmul.f32 %v10580_v50, %v2029_v15  ;;  %v10833_v16 = vadd.f32 %v10599_v59, %v4140_v18  ;;  %v4227_v5 = vmul.f32 %v10580_v50, %v2082_v26  ;;  %3529 = vmatpush1.bf16.msra.mxu1 %v9543_v46 }
 0x18c   : > { %16215 = vst [vmem:[#allocation35_spill] sm:$0xff] %v10820_v40  ;;  %16216 = vst [vmem:[#allocation36_spill] sm:$0xff] %v10824_v24  ;;  %v10838_v36 = vadd.f32 %v10601_v60, %v4224_v14  ;;  %8888 = vmatmul.mubr.msk.bf16.gmra.mrb[124].mxu0 %vm16057_vm1, %v10634_v23  ;;  %8890 = vmatmul.mubr.msk.bf16.gmra.mrb[124].mxu1 %vm16057_vm1, %v10634_v23  ;;  %v10846_v15 = vadd.f32 %v10601_v60, %v4226_v62 }
 0x18d   : > { %16217 = vst [vmem:[#allocation37_spill] sm:$0xff] %v10829_v34  ;;  %16218 = vst [vmem:[#allocation38_spill] sm:$0xff] %v10833_v16  ;;  %v10850_v26 = vadd.f32 %v10601_v60, %v4225_v30  ;;  %v10854_v18 = vadd.f32 %v10601_v60, %v4227_v5  ;;  %3505 = vmatprep.mubr.bf16.mxu0 %v15681_v51  ;;  %3558 = vmatprep.mubr.bf16.mxu1 %v15681_v51  ;;  %v9549_v34 = vld [vmem:[%s10265_s22 + $0x3c8] ss:$348 sps:$4 sm:$0xff]  }
 0x18e   : > { %16219 = vst [vmem:[#allocation39_spill] sm:$0xff] %v10838_v36  ;;  %16220 = vst [vmem:[#allocation40_spill] sm:$0xff] %v10846_v15  ;;  %3632 = vmatprep.subr.bf16.mxu1 %v9554_v47 }
 0x18f   : > { %16221 = vst [vmem:[#allocation41_spill] sm:$0xff] %v10850_v26  ;;  %16222 = vst [vmem:[#allocation42_spill] sm:$0xff] %v10854_v18  ;;  %v2033_v20 = vpop.f32.mrb[20].mxu0  ;;  %v2086_v37 = vpop.f32.mrb[20].mxu1  ;;  %v16231_v26 = vmov 0  }
 0x190   : > { %v4311_v5 = vmul.f32 %v10571_v49, %v2033_v20  ;;  %v2035_v0 = vpop.f32.mrb[21].mxu0  ;;  %v4313_v38 = vmul.f32 %v10571_v49, %v2086_v37  ;;  %v2088_v21 = vpop.f32.mrb[21].mxu1 }
 0x191   : > { %v4312_v8 = vmul.f32 %v10571_v49, %v2035_v0  ;;  %v2037_v46 = vpop.f32.mrb[22].mxu0  ;;  %v4314_v47 = vmul.f32 %v10571_v49, %v2088_v21  ;;  %v2090_v14 = vpop.f32.mrb[22].mxu1  ;;  %v9551_v0 = vld [vmem:[%s10265_s22 + $0x3cc] ss:$348 sps:$4 sm:$0xff]  }
 0x192   : > { %v10868_v62 = vadd.f32 %v10656_v32, %v4311_v5  ;;  %v4398_v30 = vmul.f32 %v10582_v52, %v2037_v46  ;;  %v2039_v51 = vpop.f32.mrb[23].mxu0  ;;  %v10872_v20 = vadd.f32 %v10656_v32, %v4313_v38  ;;  %v4400_v37 = vmul.f32 %v10582_v52, %v2090_v14  ;;  %v2092_v18 = vpop.f32.mrb[23].mxu1  ;;  %v9552_v5 = vld [vmem:[%s10265_s22 + $0x118] ss:$348 sps:$4 sm:$0xff]  }
 0x193   : > { %v10877_v16 = vadd.f32 %v10656_v32, %v4312_v8  ;;  %v4399_v21 = vmul.f32 %v10582_v52, %v2039_v51  ;;  %v10881_v15 = vadd.f32 %v10656_v32, %v4314_v47  ;;  %v4401_v46 = vmul.f32 %v10582_v52, %v2092_v18  ;;  %v9557_v14 = vld [vmem:[%s10265_s22 + $0x3d4] ss:$348 sps:$4 sm:$0xff]   ;;  %v9560_v18 = vld [vmem:[%s10265_s22 + $0x124] ss:$348 sps:$4 sm:$0xff]  }
 0x194   : > { %16223 = vst [vmem:[#allocation43_spill] sm:$0xff] %v10868_v62  ;;  %16224 = vst [vmem:[#allocation44_spill] sm:$0xff] %v10872_v20  ;;  %v10887_v38 = vadd.f32 %v10658_v33, %v4398_v30  ;;  %8891 = vmatmul.mubr.msk.bf16.vlgmr.msra.gmra.mrb[128].mxu0 %vm16057_vm1, %v10590_v56  ;;  %8893 = vmatmul.mubr.msk.bf16.vlgmr.msra.gmra.mrb[128].mxu1 %vm16057_vm1, %v10590_v56  ;;  %v10895_v8 = vadd.f32 %v10658_v33, %v4400_v37 }
 0x195   : > { %16225 = vst [vmem:[#allocation45_spill] sm:$0xff] %v10877_v16  ;;  %16226 = vst [vmem:[#allocation46_spill] sm:$0xff] %v10881_v15  ;;  %v10900_v47 = vadd.f32 %v10658_v33, %v4399_v21  ;;  %3580 = vmatpush1.bf16.msra.mxu0 %v9546_v2  ;;  %v10904_v24 = vadd.f32 %v10658_v33, %v4401_v46  ;;  %3515 = vmatprep.mubr.bf16.mxu0 %v16231_v26  ;;  %v9555_v46 = vld [vmem:[%s10265_s22 + $0x3d0] ss:$348 sps:$4 sm:$0xff]  }
 0x196   : > { %16227 = vst [vmem:[#allocation47_spill] sm:$0xff] %v10887_v38  ;;  %16228 = vst [vmem:[#allocation48_spill] sm:$0xff] %v10895_v8  ;;  %3568 = vmatprep.mubr.bf16.mxu1 %v16231_v26  ;;  %3581 = vmatprep.subr.bf16.mxu0 %v9551_v0 }
 0x197   : > { %16229 = vst [vmem:[#allocation49_spill] sm:$0xff] %v10900_v47  ;;  %16230 = vst [vmem:[#allocation50_spill] sm:$0xff] %v10904_v24  ;;  %v2129_v20 = vpop.f32.mrb[24].mxu0  ;;  %v2182_v30 = vpop.f32.mrb[24].mxu1  ;;  %3633 = vmatpush1.bf16.msra.mxu1 %v9552_v5 }
 0x198   : > { %v4141_v15 = vmul.f32 %v10569_v48, %v2129_v20  ;;  %v2131_v16 = vpop.f32.mrb[25].mxu0  ;;  %v4143_v51 = vmul.f32 %v10569_v48, %v2182_v30  ;;  %v2184_v36 = vpop.f32.mrb[25].mxu1  ;;  %3634 = vmatprep.subr.bf16.mxu1 %v9557_v14  ;;  %v9566_v14 = vld [vmem:[%s10265_s22 + $0x12c] ss:$348 sps:$4 sm:$0xff]  }
 0x199   : > { %v4142_v37 = vmul.f32 %v10569_v48, %v2131_v16  ;;  %v2133_v0 = vpop.f32.mrb[26].mxu0  ;;  %3582 = vmatpush1.bf16.msra.mxu0 %v9549_v34  ;;  %v4144_v21 = vmul.f32 %v10569_v48, %v2184_v36  ;;  %v2186_v8 = vpop.f32.mrb[26].mxu1 }
 0x19a   : > { %v10920_v2 = vadd.f32 %v10599_v59, %v4141_v15  ;;  %v4228_v5 = vmul.f32 %v10580_v50, %v2133_v0  ;;  %v2135_v24 = vpop.f32.mrb[27].mxu0  ;;  %v10924_v20 = vadd.f32 %v10599_v59, %v4143_v51  ;;  %v4230_v30 = vmul.f32 %v10580_v50, %v2186_v8  ;;  %v2188_v47 = vpop.f32.mrb[27].mxu1  ;;  %3685 = vmatprep.subr.bf16.mxu0 %v9560_v18 }
 0x19b   : > { %v10929_v16 = vadd.f32 %v10599_v59, %v4142_v37  ;;  %v4229_v34 = vmul.f32 %v10580_v50, %v2135_v24  ;;  %v10933_v36 = vadd.f32 %v10599_v59, %v4144_v21  ;;  %v4231_v15 = vmul.f32 %v10580_v50, %v2188_v47  ;;  %3635 = vmatpush1.bf16.msra.mxu1 %v9555_v46 }
 0x19c   : > { %16232 = vst [vmem:[#allocation51_spill] sm:$0xff] %v10920_v2  ;;  %16233 = vst [vmem:[#allocation52_spill] sm:$0xff] %v10924_v20  ;;  %v10938_v51 = vadd.f32 %v10601_v60, %v4228_v5  ;;  %8892 = vmatmul.mubr.msk.bf16.gmra.mrb[132].mxu0 %vm16057_vm1, %v10634_v23  ;;  %8894 = vmatmul.mubr.msk.bf16.gmra.mrb[132].mxu1 %vm16057_vm1, %v10634_v23  ;;  %v10946_v24 = vadd.f32 %v10601_v60, %v4230_v30 }
 0x19d   : > { %16234 = vst [vmem:[#allocation53_spill] sm:$0xff] %v10929_v16  ;;  %16235 = vst [vmem:[#allocation54_spill] sm:$0xff] %v10933_v36  ;;  %v10950_v47 = vadd.f32 %v10601_v60, %v4229_v34  ;;  %v10954_v21 = vadd.f32 %v10601_v60, %v4231_v15  ;;  %3611 = vmatprep.mubr.bf16.mxu0 %v16231_v26  ;;  %3664 = vmatprep.mubr.bf16.mxu1 %v16231_v26  ;;  %v9558_v16 = vld [vmem:[%s10265_s22 + $0x120] ss:$348 sps:$4 sm:$0xff]  }
 0x19e   : > { %16236 = vst [vmem:[#allocation55_spill] sm:$0xff] %v10938_v51  ;;  %16237 = vst [vmem:[#allocation56_spill] sm:$0xff] %v10946_v24  ;;  %3738 = vmatprep.subr.bf16.mxu1 %v9566_v14 }
 0x19f   : > { %16238 = vst [vmem:[#allocation57_spill] sm:$0xff] %v10950_v47  ;;  %16239 = vst [vmem:[#allocation58_spill] sm:$0xff] %v10954_v21  ;;  %v2139_v8 = vpop.f32.mrb[28].mxu0  ;;  %v2192_v18 = vpop.f32.mrb[28].mxu1 }
 0x1a0   : > { %v4315_v15 = vmul.f32 %v10571_v49, %v2139_v8  ;;  %v2141_v37 = vpop.f32.mrb[29].mxu0  ;;  %v4317_v0 = vmul.f32 %v10571_v49, %v2192_v18  ;;  %v2194_v36 = vpop.f32.mrb[29].mxu1 }
 0x1a1   : > { %v4316_v20 = vmul.f32 %v10571_v49, %v2141_v37  ;;  %v2143_v46 = vpop.f32.mrb[30].mxu0  ;;  %v4318_v14 = vmul.f32 %v10571_v49, %v2194_v36  ;;  %v2196_v5 = vpop.f32.mrb[30].mxu1  ;;  %v9563_v37 = vld [vmem:[%s10265_s22 + $0x3dc] ss:$348 sps:$4 sm:$0xff]  }
 0x1a2   : > { %v10968_v30 = vadd.f32 %v10656_v32, %v4315_v15  ;;  %v4402_v34 = vmul.f32 %v10582_v52, %v2143_v46  ;;  %v2145_v21 = vpop.f32.mrb[31].mxu0  ;;  %v10972_v8 = vadd.f32 %v10656_v32, %v4317_v0  ;;  %v4404_v18 = vmul.f32 %v10582_v52, %v2196_v5  ;;  %v2198_v24 = vpop.f32.mrb[31].mxu1  ;;  %v9564_v15 = vld [vmem:[%s10265_s22 + $0x128] ss:$348 sps:$4 sm:$0xff]  }
 0x1a3   : > { %v10977_v47 = vadd.f32 %v10656_v32, %v4316_v20  ;;  %v4403_v36 = vmul.f32 %v10582_v52, %v2145_v21  ;;  %v10981_v51 = vadd.f32 %v10656_v32, %v4318_v14  ;;  %v4405_v46 = vmul.f32 %v10582_v52, %v2198_v24  ;;  %v9569_v5 = vld [vmem:[%s10265_s22 + $0x3e4] ss:$348 sps:$4 sm:$0xff]   ;;  %v9572_v24 = vld [vmem:[%s10265_s22 + $0x134] ss:$348 sps:$4 sm:$0xff]  }
 0x1a4   : > { %16240 = vst [vmem:[#allocation59_spill] sm:$0xff] %v10968_v30  ;;  %16241 = vst [vmem:[#allocation60_spill] sm:$0xff] %v10972_v8  ;;  %v10987_v0 = vadd.f32 %v10658_v33, %v4402_v34  ;;  %8895 = vmatmul.mubr.msk.bf16.vlgmr.msra.gmra.mrb[136].mxu0 %vm16057_vm1, %v10590_v56  ;;  %8897 = vmatmul.mubr.msk.bf16.vlgmr.msra.gmra.mrb[136].mxu1 %vm16057_vm1, %v10590_v56  ;;  %v10995_v21 = vadd.f32 %v10658_v33, %v4404_v18  ;;  %v9561_v30 = vld [vmem:[%s10265_s22 + $0x3d8] ss:$348 sps:$4 sm:$0xff]  }
 0x1a5   : > { %16242 = vst [vmem:[#allocation61_spill] sm:$0xff] %v10977_v47  ;;  %16243 = vst [vmem:[#allocation62_spill] sm:$0xff] %v10981_v51  ;;  %v11000_v14 = vadd.f32 %v10658_v33, %v4403_v36  ;;  %3686 = vmatpush1.bf16.msra.mxu0 %v9558_v16  ;;  %v11004_v2 = vadd.f32 %v10658_v33, %v4405_v46  ;;  %3621 = vmatprep.mubr.bf16.mxu0 %v16231_v26  ;;  %v9567_v46 = vld [vmem:[%s10265_s22 + $0x3e0] ss:$348 sps:$4 sm:$0xff]  }
 0x1a6   : > { %16244 = vst [vmem:[#allocation63_spill] sm:$0xff] %v10987_v0  ;;  %16245 = vst [vmem:[#allocation64_spill] sm:$0xff] %v10995_v21  ;;  %3674 = vmatprep.mubr.bf16.mxu1 %v16231_v26  ;;  %3687 = vmatprep.subr.bf16.mxu0 %v9563_v37 }
 0x1a7   : > { %16246 = vst [vmem:[#allocation65_spill] sm:$0xff] %v11000_v14  ;;  %16247 = vst [vmem:[#allocation66_spill] sm:$0xff] %v11004_v2  ;;  %v2235_v8 = vpop.f32.mrb[32].mxu0  ;;  %v2288_v34 = vpop.f32.mrb[32].mxu1  ;;  %3739 = vmatpush1.bf16.msra.mxu1 %v9564_v15 }
 0x1a8   : > { %v4145_v51 = vmul.f32 %v10569_v48, %v2235_v8  ;;  %v2237_v47 = vpop.f32.mrb[33].mxu0  ;;  %v4147_v20 = vmul.f32 %v10569_v48, %v2288_v34  ;;  %v2290_v0 = vpop.f32.mrb[33].mxu1  ;;  %3740 = vmatprep.subr.bf16.mxu1 %v9569_v5  ;;  %v9578_v5 = vld [vmem:[%s10265_s22 + $0x13c] ss:$348 sps:$4 sm:$0xff]  }
 0x1a9   : > { %v4146_v18 = vmul.f32 %v10569_v48, %v2237_v47  ;;  %v2239_v37 = vpop.f32.mrb[34].mxu0  ;;  %3688 = vmatpush1.bf16.msra.mxu0 %v9561_v30  ;;  %v4148_v36 = vmul.f32 %v10569_v48, %v2290_v0  ;;  %v2292_v21 = vpop.f32.mrb[34].mxu1 }
 0x1aa   : > { %v11020_v16 = vadd.f32 %v10599_v59, %v4145_v51  ;;  %v4232_v15 = vmul.f32 %v10580_v50, %v2239_v37  ;;  %v2241_v2 = vpop.f32.mrb[35].mxu0  ;;  %v11024_v8 = vadd.f32 %v10599_v59, %v4147_v20  ;;  %v4234_v34 = vmul.f32 %v10580_v50, %v2292_v21  ;;  %v2294_v14 = vpop.f32.mrb[35].mxu1  ;;  %3791 = vmatprep.subr.bf16.mxu0 %v9572_v24 }
 0x1ab   : > { %v11029_v47 = vadd.f32 %v10599_v59, %v4146_v18  ;;  %v4233_v30 = vmul.f32 %v10580_v50, %v2241_v2  ;;  %v11033_v0 = vadd.f32 %v10599_v59, %v4148_v36  ;;  %v4235_v51 = vmul.f32 %v10580_v50, %v2294_v14  ;;  %3741 = vmatpush1.bf16.msra.mxu1 %v9567_v46 }
 0x1ac   : > { %16248 = vst [vmem:[#allocation67_spill] sm:$0xff] %v11020_v16  ;;  %16249 = vst [vmem:[#allocation68_spill] sm:$0xff] %v11024_v8  ;;  %v11038_v20 = vadd.f32 %v10601_v60, %v4232_v15  ;;  %8896 = vmatmul.mubr.msk.bf16.gmra.mrb[140].mxu0 %vm16057_vm1, %v10634_v23  ;;  %8898 = vmatmul.mubr.msk.bf16.gmra.mrb[140].mxu1 %vm16057_vm1, %v10634_v23  ;;  %v11046_v2 = vadd.f32 %v10601_v60, %v4234_v34 }
 0x1ad   : > { %16250 = vst [vmem:[#allocation69_spill] sm:$0xff] %v11029_v47  ;;  %16251 = vst [vmem:[#allocation70_spill] sm:$0xff] %v11033_v0  ;;  %v11050_v14 = vadd.f32 %v10601_v60, %v4233_v30  ;;  %v11054_v36 = vadd.f32 %v10601_v60, %v4235_v51  ;;  %3717 = vmatprep.mubr.bf16.mxu0 %v16231_v26  ;;  %3770 = vmatprep.mubr.bf16.mxu1 %v16231_v26  ;;  %v9570_v47 = vld [vmem:[%s10265_s22 + $0x130] ss:$348 sps:$4 sm:$0xff]  }
 0x1ae   : > { %16252 = vst [vmem:[#allocation71_spill] sm:$0xff] %v11038_v20  ;;  %16253 = vst [vmem:[#allocation72_spill] sm:$0xff] %v11046_v2  ;;  %3844 = vmatprep.subr.bf16.mxu1 %v9578_v5 }
 0x1af   : > { %16254 = vst [vmem:[#allocation73_spill] sm:$0xff] %v11050_v14  ;;  %16255 = vst [vmem:[#allocation74_spill] sm:$0xff] %v11054_v36  ;;  %v2245_v21 = vpop.f32.mrb[36].mxu0  ;;  %v2298_v24 = vpop.f32.mrb[36].mxu1 }
 0x1b0   : > { %v4319_v51 = vmul.f32 %v10571_v49, %v2245_v21  ;;  %v2247_v18 = vpop.f32.mrb[37].mxu0  ;;  %v4321_v37 = vmul.f32 %v10571_v49, %v2298_v24  ;;  %v2300_v0 = vpop.f32.mrb[37].mxu1 }
 0x1b1   : > { %v4320_v8 = vmul.f32 %v10571_v49, %v2247_v18  ;;  %v2249_v46 = vpop.f32.mrb[38].mxu0  ;;  %v4322_v5 = vmul.f32 %v10571_v49, %v2300_v0  ;;  %v2302_v15 = vpop.f32.mrb[38].mxu1  ;;  %v9575_v18 = vld [vmem:[%s10265_s22 + $0x3ec] ss:$348 sps:$4 sm:$0xff]  }
 0x1b2   : > { %v11068_v34 = vadd.f32 %v10656_v32, %v4319_v51  ;;  %v4406_v30 = vmul.f32 %v10582_v52, %v2249_v46  ;;  %v2251_v36 = vpop.f32.mrb[39].mxu0  ;;  %v11072_v21 = vadd.f32 %v10656_v32, %v4321_v37  ;;  %v4408_v24 = vmul.f32 %v10582_v52, %v2302_v15  ;;  %v2304_v2 = vpop.f32.mrb[39].mxu1  ;;  %v9576_v51 = vld [vmem:[%s10265_s22 + $0x138] ss:$348 sps:$4 sm:$0xff]  }
 0x1b3   : > { %v11077_v14 = vadd.f32 %v10656_v32, %v4320_v8  ;;  %v4407_v0 = vmul.f32 %v10582_v52, %v2251_v36  ;;  %v11081_v20 = vadd.f32 %v10656_v32, %v4322_v5  ;;  %v4409_v46 = vmul.f32 %v10582_v52, %v2304_v2  ;;  %v9581_v15 = vld [vmem:[%s10265_s22 + $0x3f4] ss:$348 sps:$4 sm:$0xff]   ;;  %v9584_v2 = vld [vmem:[%s10265_s22 + $0x144] ss:$348 sps:$4 sm:$0xff]  }
 0x1b4   : > { %16256 = vst [vmem:[#allocation75_spill] sm:$0xff] %v11068_v34  ;;  %16257 = vst [vmem:[#allocation76_spill] sm:$0xff] %v11072_v21  ;;  %v11087_v37 = vadd.f32 %v10658_v33, %v4406_v30  ;;  %8899 = vmatmul.mubr.msk.bf16.vlgmr.msra.gmra.mrb[144].mxu0 %vm16057_vm1, %v10590_v56  ;;  %8901 = vmatmul.mubr.msk.bf16.vlgmr.msra.gmra.mrb[144].mxu1 %vm16057_vm1, %v10590_v56  ;;  %v11095_v36 = vadd.f32 %v10658_v33, %v4408_v24  ;;  %v9573_v56 = vld [vmem:[%s10265_s22 + $0x3e8] ss:$348 sps:$4 sm:$0xff]  }
 0x1b5   : > { %16258 = vst [vmem:[#allocation77_spill] sm:$0xff] %v11077_v14  ;;  %16259 = vst [vmem:[#allocation78_spill] sm:$0xff] %v11081_v20  ;;  %v11100_v5 = vadd.f32 %v10658_v33, %v4407_v0  ;;  %3792 = vmatpush1.bf16.msra.mxu0 %v9570_v47  ;;  %v11104_v16 = vadd.f32 %v10658_v33, %v4409_v46  ;;  %3727 = vmatprep.mubr.bf16.mxu0 %v16231_v26  ;;  %v9579_v46 = vld [vmem:[%s10265_s22 + $0x3f0] ss:$348 sps:$4 sm:$0xff]  }
 0x1b6   : > { %16260 = vst [vmem:[#allocation79_spill] sm:$0xff] %v11087_v37  ;;  %16261 = vst [vmem:[#allocation80_spill] sm:$0xff] %v11095_v36  ;;  %3780 = vmatprep.mubr.bf16.mxu1 %v16231_v26  ;;  %3793 = vmatprep.subr.bf16.mxu0 %v9575_v18 }
 0x1b7   : > { %16262 = vst [vmem:[#allocation81_spill] sm:$0xff] %v11100_v5  ;;  %16263 = vst [vmem:[#allocation82_spill] sm:$0xff] %v11104_v16  ;;  %v2341_v21 = vpop.f32.mrb[40].mxu0  ;;  %v2394_v30 = vpop.f32.mrb[40].mxu1  ;;  %3845 = vmatpush1.bf16.msra.mxu1 %v9576_v51 }
 0x1b8   : > { %v4149_v20 = vmul.f32 %v10569_v48, %v2341_v21  ;;  %v2343_v14 = vpop.f32.mrb[41].mxu0  ;;  %v4151_v8 = vmul.f32 %v10569_v48, %v2394_v30  ;;  %v2396_v37 = vpop.f32.mrb[41].mxu1  ;;  %3846 = vmatprep.subr.bf16.mxu1 %v9581_v15  ;;  %v9590_v15 = vld [vmem:[%s10265_s22 + $0x14c] ss:$348 sps:$4 sm:$0xff]  }
 0x1b9   : > { %v4150_v24 = vmul.f32 %v10569_v48, %v2343_v14  ;;  %v2345_v18 = vpop.f32.mrb[42].mxu0  ;;  %3794 = vmatpush1.bf16.msra.mxu0 %v9573_v56  ;;  %v4152_v0 = vmul.f32 %v10569_v48, %v2396_v37  ;;  %v2398_v36 = vpop.f32.mrb[42].mxu1 }
 0x1ba   : > { %v11120_v47 = vadd.f32 %v10599_v59, %v4149_v20  ;;  %v4236_v51 = vmul.f32 %v10580_v50, %v2345_v18  ;;  %v2347_v16 = vpop.f32.mrb[43].mxu0  ;;  %v11124_v21 = vadd.f32 %v10599_v59, %v4151_v8  ;;  %v4238_v30 = vmul.f32 %v10580_v50, %v2398_v36  ;;  %v2400_v5 = vpop.f32.mrb[43].mxu1  ;;  %3897 = vmatprep.subr.bf16.mxu0 %v9584_v2 }
 0x1bb   : > { %v11129_v14 = vadd.f32 %v10599_v59, %v4150_v24  ;;  %v4237_v37 = vmul.f32 %v10580_v50, %v2347_v16  ;;  %v11133_v56 = vadd.f32 %v10599_v59, %v4152_v0  ;;  %v4239_v20 = vmul.f32 %v10580_v50, %v2400_v5  ;;  %3847 = vmatpush1.bf16.msra.mxu1 %v9579_v46 }
 0x1bc   : > { %16264 = vst [vmem:[#allocation83_spill] sm:$0xff] %v11120_v47  ;;  %16265 = vst [vmem:[#allocation84_spill] sm:$0xff] %v11124_v21  ;;  %v11138_v8 = vadd.f32 %v10601_v60, %v4236_v51  ;;  %8900 = vmatmul.mubr.msk.bf16.gmra.mrb[148].mxu0 %vm16057_vm1, %v10634_v23  ;;  %8902 = vmatmul.mubr.msk.bf16.gmra.mrb[148].mxu1 %vm16057_vm1, %v10634_v23  ;;  %v11146_v16 = vadd.f32 %v10601_v60, %v4238_v30  ;;  %v9582_v21 = vld [vmem:[%s10265_s22 + $0x140] ss:$348 sps:$4 sm:$0xff]  }
 0x1bd   : > { %16266 = vst [vmem:[#allocation85_spill] sm:$0xff] %v11129_v14  ;;  %16267 = vst [vmem:[#allocation86_spill] sm:$0xff] %v11133_v56  ;;  %v11150_v5 = vadd.f32 %v10601_v60, %v4237_v37  ;;  %v11154_v0 = vadd.f32 %v10601_v60, %v4239_v20  ;;  %3823 = vmatprep.mubr.bf16.mxu0 %v16231_v26  ;;  %3876 = vmatprep.mubr.bf16.mxu1 %v16231_v26 }
 0x1be   : > { %16268 = vst [vmem:[#allocation87_spill] sm:$0xff] %v11138_v8  ;;  %16269 = vst [vmem:[#allocation88_spill] sm:$0xff] %v11146_v16  ;;  %3950 = vmatprep.subr.bf16.mxu1 %v9590_v15 }
 0x1bf   : > { %16270 = vst [vmem:[#allocation89_spill] sm:$0xff] %v11150_v5  ;;  %16271 = vst [vmem:[#allocation90_spill] sm:$0xff] %v11154_v0  ;;  %v2351_v30 = vpop.f32.mrb[44].mxu0  ;;  %v2404_v36 = vpop.f32.mrb[44].mxu1 }
 0x1c0   : > { %v4323_v20 = vmul.f32 %v10571_v49, %v2351_v30  ;;  %v2353_v24 = vpop.f32.mrb[45].mxu0  ;;  %v4325_v2 = vmul.f32 %v10571_v49, %v2404_v36  ;;  %v2406_v18 = vpop.f32.mrb[45].mxu1 }
 0x1c1   : > { %v4324_v56 = vmul.f32 %v10571_v49, %v2353_v24  ;;  %v2355_v23 = vpop.f32.mrb[46].mxu0  ;;  %v4326_v15 = vmul.f32 %v10571_v49, %v2406_v18  ;;  %v2408_v46 = vpop.f32.mrb[46].mxu1  ;;  %v9587_v24 = vld [vmem:[%s10265_s22 + $0x3fc] ss:$348 sps:$4 sm:$0xff]  }
 0x1c2   : > { %v11168_v51 = vadd.f32 %v10656_v32, %v4323_v20  ;;  %v4410_v37 = vmul.f32 %v10582_v52, %v2355_v23  ;;  %v2357_v0 = vpop.f32.mrb[47].mxu0  ;;  %v11172_v30 = vadd.f32 %v10656_v32, %v4325_v2  ;;  %v4412_v36 = vmul.f32 %v10582_v52, %v2408_v46  ;;  %v2410_v16 = vpop.f32.mrb[47].mxu1  ;;  %v9588_v23 = vld [vmem:[%s10265_s22 + $0x148] ss:$348 sps:$4 sm:$0xff]  }
 0x1c3   : > { %v11177_v5 = vadd.f32 %v10656_v32, %v4324_v56  ;;  %v4411_v18 = vmul.f32 %v10582_v52, %v2357_v0  ;;  %v11181_v14 = vadd.f32 %v10656_v32, %v4326_v15  ;;  %v4413_v20 = vmul.f32 %v10582_v52, %v2410_v16  ;;  %v11192_v46 = vld [vmem:[%s15673_s1] sm:$0xff]  }
 0x1c4   : > { %16272 = vst [vmem:[#allocation91_spill] sm:$0xff] %v11168_v51  ;;  %16273 = vst [vmem:[#allocation92_spill] sm:$0xff] %v11172_v30  ;;  %v11187_v8 = vadd.f32 %v10658_v33, %v4410_v37  ;;  %8903 = vmatmul.mubr.msk.bf16.vlgmr.msra.gmra.mrb[152].mxu0 %vm16057_vm1, %v11192_v46  ;;  %8905 = vmatmul.mubr.msk.bf16.vlgmr.msra.gmra.mrb[152].mxu1 %vm16057_vm1, %v11192_v46  ;;  %v11200_v16 = vadd.f32 %v10658_v33, %v4412_v36  ;;  %v9593_v0 = vld [vmem:[%s10265_s22 + $0x404] ss:$348 sps:$4 sm:$0xff]   ;;  %v9585_v51 = vld [vmem:[%s10265_s22 + $0x3f8] ss:$348 sps:$4 sm:$0xff]  }
 0x1c5   : > { %16274 = vst [vmem:[#allocation93_spill] sm:$0xff] %v11177_v5  ;;  %16275 = vst [vmem:[#allocation94_spill] sm:$0xff] %v11181_v14  ;;  %v11205_v15 = vadd.f32 %v10658_v33, %v4411_v18  ;;  %3898 = vmatpush1.bf16.msra.mxu0 %v9582_v21  ;;  %v11209_v47 = vadd.f32 %v10658_v33, %v4413_v20  ;;  %3833 = vmatprep.mubr.bf16.mxu0 %v16231_v26  ;;  %v9596_v37 = vld [vmem:[%s10265_s22 + $0x154] ss:$348 sps:$4 sm:$0xff]   ;;  %v9591_v20 = vld [vmem:[%s10265_s22 + $0x400] ss:$348 sps:$4 sm:$0xff]  }
 0x1c6   : > { %16276 = vst [vmem:[#allocation95_spill] sm:$0xff] %v11187_v8  ;;  %16277 = vst [vmem:[#allocation96_spill] sm:$0xff] %v11200_v16  ;;  %3886 = vmatprep.mubr.bf16.mxu1 %v16231_v26  ;;  %3899 = vmatprep.subr.bf16.mxu0 %v9587_v24 }
 0x1c7   : > { %16278 = vst [vmem:[#allocation97_spill] sm:$0xff] %v11205_v15  ;;  %16279 = vst [vmem:[#allocation98_spill] sm:$0xff] %v11209_v47  ;;  %v2447_v30 = vpop.f32.mrb[48].mxu0  ;;  %v2500_v2 = vpop.f32.mrb[48].mxu1  ;;  %3951 = vmatpush1.bf16.msra.mxu1 %v9588_v23 }
 0x1c8   : > { %v4153_v14 = vmul.f32 %v10569_v48, %v2447_v30  ;;  %v2449_v5 = vpop.f32.mrb[49].mxu0  ;;  %v4155_v56 = vmul.f32 %v10569_v48, %v2500_v2  ;;  %v2502_v8 = vpop.f32.mrb[49].mxu1  ;;  %3952 = vmatprep.subr.bf16.mxu1 %v9593_v0  ;;  %v11233_v0 = vld [vmem:[%s10265_s22 + $0x158] ss:$348 sps:$4 sm:$0xff]  }
 0x1c9   : > { %v4154_v36 = vmul.f32 %v10569_v48, %v2449_v5  ;;  %v2451_v24 = vpop.f32.mrb[50].mxu0  ;;  %3900 = vmatpush1.bf16.msra.mxu0 %v9585_v51  ;;  %v4156_v18 = vmul.f32 %v10569_v48, %v2502_v8  ;;  %v2504_v16 = vpop.f32.mrb[50].mxu1 }
 0x1ca   : > { %v11225_v21 = vadd.f32 %v10599_v59, %v4153_v14  ;;  %v4240_v23 = vmul.f32 %v10580_v50, %v2451_v24  ;;  %v2453_v47 = vpop.f32.mrb[51].mxu0  ;;  %v11229_v30 = vadd.f32 %v10599_v59, %v4155_v56  ;;  %v4242_v2 = vmul.f32 %v10580_v50, %v2504_v16  ;;  %v2506_v15 = vpop.f32.mrb[51].mxu1  ;;  %4003 = vmatprep.subr.bf16.mxu0 %v9596_v37  ;;  %v11250_v16 = vld [vmem:[%s15673_s1 + $0x8] sm:$0xff]  }
 0x1cb   : > { %v11236_v5 = vadd.f32 %v10599_v59, %v4154_v36  ;;  %v4241_v8 = vmul.f32 %v10580_v50, %v2453_v47  ;;  %v11240_v14 = vadd.f32 %v10599_v59, %v4156_v18  ;;  %v4243_v51 = vmul.f32 %v10580_v50, %v2506_v15  ;;  %3953 = vmatpush1.bf16.msra.mxu1 %v9591_v20 }
 0x1cc   : > { %16280 = vst [vmem:[#allocation99_spill] sm:$0xff] %v11225_v21  ;;  %16281 = vst [vmem:[#allocation100_spill] sm:$0xff] %v11229_v30  ;;  %v11245_v24 = vadd.f32 %v10601_v60, %v4240_v23  ;;  %8904 = vmatmul.mubr.msk.bf16.gmra.mrb[156].mxu0 %vm16057_vm1, %v11250_v16  ;;  %8906 = vmatmul.mubr.msk.bf16.gmra.mrb[156].mxu1 %vm16057_vm1, %v11250_v16  ;;  %v11258_v37 = vadd.f32 %v10601_v60, %v4242_v2  ;;  %v9599_v21 = vld [vmem:[%s10265_s22 + $0x40c] ss:$348 sps:$4 sm:$0xff]  }
 0x1cd   : > { %16282 = vst [vmem:[#allocation101_spill] sm:$0xff] %v11236_v5  ;;  %16283 = vst [vmem:[#allocation102_spill] sm:$0xff] %v11240_v14  ;;  %v11262_v36 = vadd.f32 %v10601_v60, %v4241_v8  ;;  %v11266_v20 = vadd.f32 %v10601_v60, %v4243_v51  ;;  %3929 = vmatprep.mubr.bf16.mxu0 %v16231_v26  ;;  %3982 = vmatprep.mubr.bf16.mxu1 %v16231_v26 }
 0x1ce   : > { %16284 = vst [vmem:[#allocation103_spill] sm:$0xff] %v11245_v24  ;;  %16285 = vst [vmem:[#allocation104_spill] sm:$0xff] %v11258_v37  ;;  %9267 = vmatprep.subr.bf16.mxu1 %v11233_v0  ;;  %v9594_v24 = vld [vmem:[%s10265_s22 + $0x150] ss:$348 sps:$4 sm:$0xff]  }
 0x1cf   : > { %16286 = vst [vmem:[#allocation105_spill] sm:$0xff] %v11262_v36  ;;  %16287 = vst [vmem:[#allocation106_spill] sm:$0xff] %v11266_v20  ;;  %v2457_v8 = vpop.f32.mrb[52].mxu0  ;;  %v2510_v18 = vpop.f32.mrb[52].mxu1 }
 0x1d0   : > { %v4327_v51 = vmul.f32 %v10571_v49, %v2457_v8  ;;  %v2459_v56 = vpop.f32.mrb[53].mxu0  ;;  %v4329_v14 = vmul.f32 %v10571_v49, %v2510_v18  ;;  %v2512_v30 = vpop.f32.mrb[53].mxu1 }
 0x1d1   : > { %v4328_v5 = vmul.f32 %v10571_v49, %v2459_v56  ;;  %v2461_v23 = vpop.f32.mrb[54].mxu0  ;;  %v4330_v2 = vmul.f32 %v10571_v49, %v2512_v30  ;;  %v2514_v37 = vpop.f32.mrb[54].mxu1 }
 0x1d2   : > { %v11281_v47 = vadd.f32 %v10656_v32, %v4327_v51  ;;  %v4414_v15 = vmul.f32 %v10582_v52, %v2461_v23  ;;  %v2463_v20 = vpop.f32.mrb[55].mxu0  ;;  %v11285_v8 = vadd.f32 %v10656_v32, %v4329_v14  ;;  %v4416_v18 = vmul.f32 %v10582_v52, %v2514_v37  ;;  %v2516_v36 = vpop.f32.mrb[55].mxu1 }
 0x1d3   : > { %v11290_v56 = vadd.f32 %v10656_v32, %v4328_v5  ;;  %v4415_v30 = vmul.f32 %v10582_v52, %v2463_v20  ;;  %v11294_v51 = vadd.f32 %v10656_v32, %v4330_v2  ;;  %v4417_v23 = vmul.f32 %v10582_v52, %v2516_v36  ;;  %v9601_v20 = vld [vmem:[%s10265_s22 + $0x410] ss:$348 sps:$4 sm:$0xff]  }
 0x1d4   : > { %16288 = vst [vmem:[#allocation107_spill] sm:$0xff] %v11281_v47  ;;  %16289 = vst [vmem:[#allocation108_spill] sm:$0xff] %v11285_v8  ;;  %v11299_v14 = vadd.f32 %v10658_v33, %v4414_v15  ;;  %8907 = vmatmul.mubr.msk.bf16.vlgmr.msra.gmra.mrb[160].mxu0 %vm16057_vm1, %v11192_v46  ;;  %8909 = vmatmul.mubr.msk.bf16.vlgmr.msra.gmra.mrb[160].mxu1 %vm16057_vm1, %v11192_v46  ;;  %v11307_v37 = vadd.f32 %v10658_v33, %v4416_v18  ;;  %v9597_v47 = vld [vmem:[%s10265_s22 + $0x408] ss:$348 sps:$4 sm:$0xff]  }
 0x1d5   : > { %16290 = vst [vmem:[#allocation109_spill] sm:$0xff] %v11290_v56  ;;  %16291 = vst [vmem:[#allocation110_spill] sm:$0xff] %v11294_v51  ;;  %v11312_v36 = vadd.f32 %v10658_v33, %v4415_v30  ;;  %4004 = vmatpush1.bf16.msra.mxu0 %v9594_v24  ;;  %v11316_v34 = vadd.f32 %v10658_v33, %v4417_v23  ;;  %3939 = vmatprep.mubr.bf16.mxu0 %v16231_v26 }
 0x1d6   : > { %16292 = vst [vmem:[#allocation111_spill] sm:$0xff] %v11299_v14  ;;  %16293 = vst [vmem:[#allocation112_spill] sm:$0xff] %v11307_v37  ;;  %3992 = vmatprep.mubr.bf16.mxu1 %v16231_v26  ;;  %4005 = vmatprep.subr.bf16.mxu0 %v9599_v21 }
 0x1d7   : > { %16294 = vst [vmem:[#allocation113_spill] sm:$0xff] %v11312_v36  ;;  %16295 = vst [vmem:[#allocation114_spill] sm:$0xff] %v11316_v34  ;;  %v2553_v30 = vpop.f32.mrb[56].mxu0  ;;  %v2606_v8 = vpop.f32.mrb[56].mxu1  ;;  %9268 = vmatpush3.bf16.msra.mxu1 %v11233_v0 }
 0x1d8   : > { %v4157_v23 = vmul.f32 %v10569_v48, %v2553_v30  ;;  %v2555_v15 = vpop.f32.mrb[57].mxu0  ;;  %v4159_v51 = vmul.f32 %v10569_v48, %v2606_v8  ;;  %v2608_v56 = vpop.f32.mrb[57].mxu1  ;;  %9269 = vmatprep.subr.bf16.mxu1 %v9601_v20 }
 0x1d9   : > { %v4158_v18 = vmul.f32 %v10569_v48, %v2555_v15  ;;  %v2557_v5 = vpop.f32.mrb[58].mxu0  ;;  %4006 = vmatpush1.bf16.msra.mxu0 %v9597_v47  ;;  %v4160_v21 = vmul.f32 %v10569_v48, %v2608_v56  ;;  %v2610_v2 = vpop.f32.mrb[58].mxu1 }
 0x1da   : > { %v11331_v37 = vadd.f32 %v10599_v59, %v4157_v23  ;;  %v4244_v24 = vmul.f32 %v10580_v50, %v2557_v5  ;;  %v2559_v0 = vpop.f32.mrb[59].mxu0  ;;  %v11335_v30 = vadd.f32 %v10599_v59, %v4159_v51  ;;  %v4246_v8 = vmul.f32 %v10580_v50, %v2610_v2  ;;  %v2612_v34 = vpop.f32.mrb[59].mxu1 }
 0x1db   : > { %v11339_v36 = vadd.f32 %v10599_v59, %v4158_v18  ;;  %v4245_v47 = vmul.f32 %v10580_v50, %v2559_v0  ;;  %v11343_v56 = vadd.f32 %v10599_v59, %v4160_v21  ;;  %v4247_v15 = vmul.f32 %v10580_v50, %v2612_v34  ;;  %9270 = vmatpush3.bf16.msra.mxu1 %v9601_v20 }
 0x1dc   : > { %16296 = vst [vmem:[#allocation115_spill] sm:$0xff] %v11331_v37  ;;  %16297 = vst [vmem:[#allocation116_spill] sm:$0xff] %v11335_v30  ;;  %v11348_v23 = vadd.f32 %v10601_v60, %v4244_v24  ;;  %8908 = vmatmul.mubr.msk.bf16.gmra.mrb[164].mxu0 %vm16057_vm1, %v11250_v16  ;;  %8910 = vmatmul.mubr.msk.bf16.gmra.mrb[164].mxu1 %vm16057_vm1, %v11250_v16  ;;  %v11356_v2 = vadd.f32 %v10601_v60, %v4246_v8 }
 0x1dd   : > { %16298 = vst [vmem:[#allocation117_spill] sm:$0xff] %v11339_v36  ;;  %16299 = vst [vmem:[#allocation118_spill] sm:$0xff] %v11343_v56  ;;  %v11360_v34 = vadd.f32 %v10601_v60, %v4245_v47  ;;  %v11364_v24 = vadd.f32 %v10601_v60, %v4247_v15  ;;  %4035 = vmatprep.mubr.bf16.mxu0 %v16231_v26  ;;  %9271 = vmatprep.mubr.msk.bf16.mxu1 %vm16057_vm1, %v11192_v46 }
 0x1de   : > { %16300 = vst [vmem:[#allocation119_spill] sm:$0xff] %v11348_v23  ;;  %16301 = vst [vmem:[#allocation120_spill] sm:$0xff] %v11356_v2 }
 0x1df   : > { %16302 = vst [vmem:[#allocation121_spill] sm:$0xff] %v11360_v34  ;;  %16303 = vst [vmem:[#allocation122_spill] sm:$0xff] %v11364_v24  ;;  %v2563_v51 = vpop.f32.mrb[60].mxu0  ;;  %v2616_v18 = vpop.f32.mrb[60].mxu1 }
 0x1e0   : > { %v4331_v20 = vmul.f32 %v10571_v49, %v2563_v51  ;;  %v2565_v5 = vpop.f32.mrb[61].mxu0  ;;  %v4333_v15 = vmul.f32 %v10571_v49, %v2616_v18  ;;  %v2618_v56 = vpop.f32.mrb[61].mxu1 }
 0x1e1   : > { %v4332_v30 = vmul.f32 %v10571_v49, %v2565_v5  ;;  %v2567_v36 = vpop.f32.mrb[62].mxu0  ;;  %v4334_v37 = vmul.f32 %v10571_v49, %v2618_v56  ;;  %v2620_v21 = vpop.f32.mrb[62].mxu1 }
 0x1e2   : > { %v11378_v0 = vadd.f32 %v10656_v32, %v4331_v20  ;;  %v4418_v8 = vmul.f32 %v10582_v52, %v2567_v36  ;;  %v2569_v2 = vpop.f32.mrb[63].mxu0  ;;  %v11382_v47 = vadd.f32 %v10656_v32, %v4333_v15  ;;  %v4420_v51 = vmul.f32 %v10582_v52, %v2620_v21  ;;  %v2622_v24 = vpop.f32.mrb[63].mxu1 }
 0x1e3   : > { %v11386_v18 = vadd.f32 %v10656_v32, %v4332_v30  ;;  %v4419_v5 = vmul.f32 %v10582_v52, %v2569_v2  ;;  %v11390_v56 = vadd.f32 %v10656_v32, %v4334_v37  ;;  %v4421_v20 = vmul.f32 %v10582_v52, %v2622_v24 }
 0x1e4   : > { %16304 = vst [vmem:[#allocation123_spill] sm:$0xff] %v11378_v0  ;;  %16305 = vst [vmem:[#allocation124_spill] sm:$0xff] %v11382_v47  ;;  %v11395_v36 = vadd.f32 %v10658_v33, %v4418_v8  ;;  %8911 = vmatmul.mubr.msk.bf16.vlgmr.msra.gmra.mrb[168].mxu0 %vm16057_vm1, %v11192_v46  ;;  %9272 = vmatmul.mubr.msk.bf16.vlgmr.msra.gmra.mrb[168].mxu1 %vm16057_vm1, %v11250_v16  ;;  %v11403_v2 = vadd.f32 %v10658_v33, %v4420_v51 }
 0x1e5   : > { %16306 = vst [vmem:[#allocation125_spill] sm:$0xff] %v11386_v18  ;;  %16307 = vst [vmem:[#allocation126_spill] sm:$0xff] %v11390_v56  ;;  %v11407_v24 = vadd.f32 %v10658_v33, %v4419_v5  ;;  %v11411_v8 = vadd.f32 %v10658_v33, %v4421_v20  ;;  %4045 = vmatprep.mubr.bf16.mxu0 %v16231_v26 }
 0x1e6   : > { %16308 = vst [vmem:[#allocation127_spill] sm:$0xff] %v11395_v36  ;;  %16309 = vst [vmem:[#allocation128_spill] sm:$0xff] %v11403_v2 }
 0x1e7   : > { %16310 = vst [vmem:[#allocation129_spill] sm:$0xff] %v11407_v24  ;;  %16311 = vst [vmem:[#allocation130_spill] sm:$0xff] %v11411_v8  ;;  %v2659_v51 = vpop.f32.mrb[64].mxu0  ;;  %v2712_v37 = vpop.f32.mrb[64].mxu1 }
 0x1e8   : > { %v4161_v5 = vmul.f32 %v10569_v48, %v2659_v51  ;;  %v2661_v47 = vpop.f32.mrb[65].mxu0  ;;  %v4163_v21 = vmul.f32 %v10569_v48, %v2712_v37  ;;  %v2714_v56 = vpop.f32.mrb[65].mxu1 }
 0x1e9   : > { %v4162_v20 = vmul.f32 %v10569_v48, %v2661_v47  ;;  %v2663_v18 = vpop.f32.mrb[66].mxu0  ;;  %v4164_v26 = vmul.f32 %v10569_v48, %v2714_v56  ;;  %v2716_v46 = vpop.f32.mrb[66].mxu1 }
 0x1ea   : > { %v11423_v15 = vadd.f32 %v10599_v59, %v4161_v5  ;;  %v4248_v30 = vmul.f32 %v10580_v50, %v2663_v18  ;;  %v2665_v2 = vpop.f32.mrb[67].mxu0  ;;  %v11427_v34 = vadd.f32 %v10599_v59, %v4163_v21  ;;  %v4250_v51 = vmul.f32 %v10580_v50, %v2716_v46  ;;  %v2718_v8 = vpop.f32.mrb[67].mxu1 }
 0x1eb   : > { %v11431_v37 = vadd.f32 %v10599_v59, %v4162_v20  ;;  %v4249_v47 = vmul.f32 %v10580_v50, %v2665_v2  ;;  %v11435_v56 = vadd.f32 %v10599_v59, %v4164_v26  ;;  %v4251_v5 = vmul.f32 %v10580_v50, %v2718_v8 }
 0x1ec   : > { %16312 = vst [vmem:[#allocation131_spill] sm:$0xff] %v11423_v15  ;;  %16313 = vst [vmem:[#allocation132_spill] sm:$0xff] %v11427_v34  ;;  %v11440_v18 = vadd.f32 %v10601_v60, %v4248_v30  ;;  %8912 = vmatmul.mubr.msk.bf16.gmra.mrb[172].mxu0 %vm16057_vm1, %v11250_v16  ;;  %v11446_v46 = vadd.f32 %v10601_v60, %v4250_v51 }
 0x1ed   : > { %16314 = vst [vmem:[#allocation133_spill] sm:$0xff] %v11431_v37  ;;  %16315 = vst [vmem:[#allocation134_spill] sm:$0xff] %v11435_v56  ;;  %v11450_v20 = vadd.f32 %v10601_v60, %v4249_v47  ;;  %v11454_v26 = vadd.f32 %v10601_v60, %v4251_v5 }
 0x1ee   : > { %16316 = vst [vmem:[#allocation135_spill] sm:$0xff] %v11440_v18  ;;  %16317 = vst [vmem:[#allocation136_spill] sm:$0xff] %v11446_v46 }
 0x1ef   : > { %16318 = vst [vmem:[#allocation137_spill] sm:$0xff] %v11450_v20  ;;  %16319 = vst [vmem:[#allocation138_spill] sm:$0xff] %v11454_v26  ;;  %v2669_v21 = vpop.f32.mrb[68].mxu0  ;;  %v2722_v34 = vpop.f32.mrb[68].mxu1 }
 0x1f0   : > { %v4335_v2 = vmul.f32 %v10571_v49, %v2669_v21  ;;  %v2671_v37 = vpop.f32.mrb[69].mxu0  ;;  %v4337_v47 = vmul.f32 %v10571_v49, %v2722_v34  ;;  %v2724_v15 = vpop.f32.mrb[69].mxu1 }
 0x1f1   : > { %v4336_v8 = vmul.f32 %v10571_v49, %v2671_v37  ;;  %v2673_v5 = vpop.f32.mrb[70].mxu0  ;;  %v4338_v56 = vmul.f32 %v10571_v49, %v2724_v15  ;;  %v2726_v30 = vpop.f32.mrb[70].mxu1 }
 0x1f2   : > { %v11465_v24 = vadd.f32 %v10656_v32, %v4335_v2  ;;  %v4422_v16 = vmul.f32 %v10582_v52, %v2673_v5  ;;  %v2675_v46 = vpop.f32.mrb[71].mxu0  ;;  %v11469_v51 = vadd.f32 %v10656_v32, %v4337_v47  ;;  %v4424_v21 = vmul.f32 %v10582_v52, %v2726_v30  ;;  %v2728_v26 = vpop.f32.mrb[71].mxu1 }
 0x1f3   : > { %v11473_v34 = vadd.f32 %v10656_v32, %v4336_v8  ;;  %v4423_v37 = vmul.f32 %v10582_v52, %v2675_v46  ;;  %v11477_v15 = vadd.f32 %v10656_v32, %v4338_v56  ;;  %v4425_v2 = vmul.f32 %v10582_v52, %v2728_v26 }
 0x1f4   : > { %16320 = vst [vmem:[#allocation139_spill] sm:$0xff] %v11465_v24  ;;  %16321 = vst [vmem:[#allocation140_spill] sm:$0xff] %v11469_v51  ;;  %v11482_v5 = vadd.f32 %v10658_v33, %v4422_v16  ;;  %v11486_v30 = vadd.f32 %v10658_v33, %v4424_v21 }
 0x1f5   : > { %16322 = vst [vmem:[#allocation141_spill] sm:$0xff] %v11473_v34  ;;  %16323 = vst [vmem:[#allocation142_spill] sm:$0xff] %v11477_v15  ;;  %v11490_v18 = vadd.f32 %v10658_v33, %v4423_v37  ;;  %v11494_v46 = vadd.f32 %v10658_v33, %v4425_v2 }
 0x1f6   : > { %16324 = vst [vmem:[#allocation143_spill] sm:$0xff] %v11482_v5  ;;  %16325 = vst [vmem:[#allocation144_spill] sm:$0xff] %v11486_v30 }
 0x1f7   : > { %16326 = vst [vmem:[#allocation145_spill] sm:$0xff] %v11490_v18  ;;  %16327 = vst [vmem:[#allocation146_spill] sm:$0xff] %v11494_v46  ;;  %v2765_v47 = vpop.f32.mrb[72].mxu0  ;;  %v2818_v51 = vpop.f32.mrb[72].mxu1 }
 0x1f8   : > { %v4165_v8 = vmul.f32 %v10569_v48, %v2765_v47  ;;  %v2767_v34 = vpop.f32.mrb[73].mxu0  ;;  %v4167_v37 = vmul.f32 %v10569_v48, %v2818_v51  ;;  %v2820_v24 = vpop.f32.mrb[73].mxu1 }
 0x1f9   : > { %v4166_v56 = vmul.f32 %v10569_v48, %v2767_v34  ;;  %v2769_v2 = vpop.f32.mrb[74].mxu0  ;;  %v4168_v15 = vmul.f32 %v10569_v48, %v2820_v24  ;;  %v2822_v26 = vpop.f32.mrb[74].mxu1 }
 0x1fa   : > { %v11505_v16 = vadd.f32 %v10599_v59, %v4165_v8  ;;  %v4252_v20 = vmul.f32 %v10580_v50, %v2769_v2  ;;  %v2771_v30 = vpop.f32.mrb[75].mxu0  ;;  %v11509_v21 = vadd.f32 %v10599_v59, %v4167_v37  ;;  %v4254_v47 = vmul.f32 %v10580_v50, %v2822_v26  ;;  %v2824_v46 = vpop.f32.mrb[75].mxu1 }
 0x1fb   : > { %v11513_v51 = vadd.f32 %v10599_v59, %v4166_v56  ;;  %v4253_v34 = vmul.f32 %v10580_v50, %v2771_v30  ;;  %v11517_v24 = vadd.f32 %v10599_v59, %v4168_v15  ;;  %v4255_v8 = vmul.f32 %v10580_v50, %v2824_v46 }
 0x1fc   : > { %16328 = vst [vmem:[#allocation147_spill] sm:$0xff] %v11505_v16  ;;  %16329 = vst [vmem:[#allocation148_spill] sm:$0xff] %v11509_v21  ;;  %v11522_v2 = vadd.f32 %v10601_v60, %v4252_v20  ;;  %v11526_v26 = vadd.f32 %v10601_v60, %v4254_v47 }
 0x1fd   : > { %16330 = vst [vmem:[#allocation149_spill] sm:$0xff] %v11513_v51  ;;  %16331 = vst [vmem:[#allocation150_spill] sm:$0xff] %v11517_v24  ;;  %v11530_v5 = vadd.f32 %v10601_v60, %v4253_v34  ;;  %v11534_v30 = vadd.f32 %v10601_v60, %v4255_v8 }
 0x1fe   : > { %16332 = vst [vmem:[#allocation151_spill] sm:$0xff] %v11522_v2  ;;  %16333 = vst [vmem:[#allocation152_spill] sm:$0xff] %v11526_v26 }
 0x1ff   : > { %16334 = vst [vmem:[#allocation153_spill] sm:$0xff] %v11530_v5  ;;  %16335 = vst [vmem:[#allocation154_spill] sm:$0xff] %v11534_v30  ;;  %v2775_v37 = vpop.f32.mrb[76].mxu0  ;;  %v2828_v21 = vpop.f32.mrb[76].mxu1 }
 0x200   : > { %v4339_v56 = vmul.f32 %v10571_v49, %v2775_v37  ;;  %v2777_v51 = vpop.f32.mrb[77].mxu0  ;;  %v4341_v34 = vmul.f32 %v10571_v49, %v2828_v21  ;;  %v2830_v16 = vpop.f32.mrb[77].mxu1 }
 0x201   : > { %v4340_v15 = vmul.f32 %v10571_v49, %v2777_v51  ;;  %v2779_v8 = vpop.f32.mrb[78].mxu0  ;;  %v4342_v24 = vmul.f32 %v10571_v49, %v2830_v16  ;;  %v2832_v46 = vpop.f32.mrb[78].mxu1 }
 0x202   : > { %v11545_v20 = vadd.f32 %v10656_v32, %v4339_v56  ;;  %v4426_v18 = vmul.f32 %v10582_v52, %v2779_v8  ;;  %v2781_v26 = vpop.f32.mrb[79].mxu0  ;;  %v11549_v47 = vadd.f32 %v10656_v32, %v4341_v34  ;;  %v4428_v37 = vmul.f32 %v10582_v52, %v2832_v46  ;;  %v2834_v30 = vpop.f32.mrb[79].mxu1 }
 0x203   : > { %v11553_v21 = vadd.f32 %v10656_v32, %v4340_v15  ;;  %v4427_v51 = vmul.f32 %v10582_v52, %v2781_v26  ;;  %v11557_v16 = vadd.f32 %v10656_v32, %v4342_v24  ;;  %v4429_v56 = vmul.f32 %v10582_v52, %v2834_v30 }
 0x204   : > { %16336 = vst [vmem:[#allocation155_spill] sm:$0xff] %v11545_v20  ;;  %16337 = vst [vmem:[#allocation156_spill] sm:$0xff] %v11549_v47  ;;  %v11562_v8 = vadd.f32 %v10658_v33, %v4426_v18  ;;  %v11566_v46 = vadd.f32 %v10658_v33, %v4428_v37 }
 0x205   : > { %16338 = vst [vmem:[#allocation157_spill] sm:$0xff] %v11553_v21  ;;  %16339 = vst [vmem:[#allocation158_spill] sm:$0xff] %v11557_v16  ;;  %v11570_v2 = vadd.f32 %v10658_v33, %v4427_v51  ;;  %v11574_v26 = vadd.f32 %v10658_v33, %v4429_v56 }
 0x206   : > { %16340 = vst [vmem:[#allocation159_spill] sm:$0xff] %v11562_v8  ;;  %16341 = vst [vmem:[#allocation160_spill] sm:$0xff] %v11566_v46 }
 0x207   : > { %16342 = vst [vmem:[#allocation161_spill] sm:$0xff] %v11570_v2  ;;  %16343 = vst [vmem:[#allocation162_spill] sm:$0xff] %v11574_v26  ;;  %v2871_v34 = vpop.f32.mrb[80].mxu0  ;;  %v2924_v47 = vpop.f32.mrb[80].mxu1 }
 0x208   : > { %v4169_v15 = vmul.f32 %v10569_v48, %v2871_v34  ;;  %v2873_v21 = vpop.f32.mrb[81].mxu0  ;;  %v4171_v51 = vmul.f32 %v10569_v48, %v2924_v47  ;;  %v2926_v20 = vpop.f32.mrb[81].mxu1 }
 0x209   : > { %v4170_v24 = vmul.f32 %v10569_v48, %v2873_v21  ;;  %v2875_v56 = vpop.f32.mrb[82].mxu0  ;;  %v4172_v16 = vmul.f32 %v10569_v48, %v2926_v20  ;;  %v2928_v30 = vpop.f32.mrb[82].mxu1 }
 0x20a   : > { %v11585_v18 = vadd.f32 %v10599_v59, %v4169_v15  ;;  %v4256_v5 = vmul.f32 %v10580_v50, %v2875_v56  ;;  %v2877_v46 = vpop.f32.mrb[83].mxu0  ;;  %v11589_v37 = vadd.f32 %v10599_v59, %v4171_v51  ;;  %v4258_v34 = vmul.f32 %v10580_v50, %v2928_v30  ;;  %v2930_v26 = vpop.f32.mrb[83].mxu1 }
 0x20b   : > { %v11593_v47 = vadd.f32 %v10599_v59, %v4170_v24  ;;  %v4257_v21 = vmul.f32 %v10580_v50, %v2877_v46  ;;  %v11597_v20 = vadd.f32 %v10599_v59, %v4172_v16  ;;  %v4259_v15 = vmul.f32 %v10580_v50, %v2930_v26 }
 0x20c   : > { %16344 = vst [vmem:[#allocation163_spill] sm:$0xff] %v11585_v18  ;;  %16345 = vst [vmem:[#allocation164_spill] sm:$0xff] %v11589_v37  ;;  %v11602_v56 = vadd.f32 %v10601_v60, %v4256_v5  ;;  %v11606_v30 = vadd.f32 %v10601_v60, %v4258_v34 }
 0x20d   : > { %16346 = vst [vmem:[#allocation165_spill] sm:$0xff] %v11593_v47  ;;  %16347 = vst [vmem:[#allocation166_spill] sm:$0xff] %v11597_v20  ;;  %v11610_v8 = vadd.f32 %v10601_v60, %v4257_v21  ;;  %v11614_v46 = vadd.f32 %v10601_v60, %v4259_v15 }
 0x20e   : > { %16348 = vst [vmem:[#allocation167_spill] sm:$0xff] %v11602_v56  ;;  %16349 = vst [vmem:[#allocation168_spill] sm:$0xff] %v11606_v30 }
 0x20f   : > { %16350 = vst [vmem:[#allocation169_spill] sm:$0xff] %v11610_v8  ;;  %16351 = vst [vmem:[#allocation170_spill] sm:$0xff] %v11614_v46  ;;  %v2881_v51 = vpop.f32.mrb[84].mxu0  ;;  %v2934_v37 = vpop.f32.mrb[84].mxu1 }
 0x210   : > { %v4343_v24 = vmul.f32 %v10571_v49, %v2881_v51  ;;  %v2883_v47 = vpop.f32.mrb[85].mxu0  ;;  %v4345_v21 = vmul.f32 %v10571_v49, %v2934_v37  ;;  %v2936_v18 = vpop.f32.mrb[85].mxu1 }
 0x211   : > { %v4344_v16 = vmul.f32 %v10571_v49, %v2883_v47  ;;  %v2885_v15 = vpop.f32.mrb[86].mxu0  ;;  %v4346_v20 = vmul.f32 %v10571_v49, %v2936_v18  ;;  %v2938_v26 = vpop.f32.mrb[86].mxu1 }
 0x212   : > { %v11625_v5 = vadd.f32 %v10656_v32, %v4343_v24  ;;  %v4430_v2 = vmul.f32 %v10582_v52, %v2885_v15  ;;  %v2887_v30 = vpop.f32.mrb[87].mxu0  ;;  %v11629_v34 = vadd.f32 %v10656_v32, %v4345_v21  ;;  %v4432_v51 = vmul.f32 %v10582_v52, %v2938_v26  ;;  %v2940_v46 = vpop.f32.mrb[87].mxu1 }
 0x213   : > { %v11633_v37 = vadd.f32 %v10656_v32, %v4344_v16  ;;  %v4431_v47 = vmul.f32 %v10582_v52, %v2887_v30  ;;  %v11637_v18 = vadd.f32 %v10656_v32, %v4346_v20  ;;  %v4433_v24 = vmul.f32 %v10582_v52, %v2940_v46 }
 0x214   : > { %16352 = vst [vmem:[#allocation171_spill] sm:$0xff] %v11625_v5  ;;  %16353 = vst [vmem:[#allocation172_spill] sm:$0xff] %v11629_v34  ;;  %v11642_v15 = vadd.f32 %v10658_v33, %v4430_v2  ;;  %v11646_v26 = vadd.f32 %v10658_v33, %v4432_v51 }
 0x215   : > { %16354 = vst [vmem:[#allocation173_spill] sm:$0xff] %v11633_v37  ;;  %16355 = vst [vmem:[#allocation174_spill] sm:$0xff] %v11637_v18  ;;  %v11650_v56 = vadd.f32 %v10658_v33, %v4431_v47  ;;  %v11654_v30 = vadd.f32 %v10658_v33, %v4433_v24 }
 0x216   : > { %16356 = vst [vmem:[#allocation175_spill] sm:$0xff] %v11642_v15  ;;  %16357 = vst [vmem:[#allocation176_spill] sm:$0xff] %v11646_v26 }
 0x217   : > { %16358 = vst [vmem:[#allocation177_spill] sm:$0xff] %v11650_v56  ;;  %16359 = vst [vmem:[#allocation178_spill] sm:$0xff] %v11654_v30  ;;  %v2977_v21 = vpop.f32.mrb[88].mxu0  ;;  %v3030_v34 = vpop.f32.mrb[88].mxu1 }
 0x218   : > { %v4173_v16 = vmul.f32 %v10569_v48, %v2977_v21  ;;  %v2979_v37 = vpop.f32.mrb[89].mxu0  ;;  %v4175_v47 = vmul.f32 %v10569_v48, %v3030_v34  ;;  %v3032_v5 = vpop.f32.mrb[89].mxu1 }
 0x219   : > { %v4174_v20 = vmul.f32 %v10569_v48, %v2979_v37  ;;  %v2981_v24 = vpop.f32.mrb[90].mxu0  ;;  %v4176_v18 = vmul.f32 %v10569_v48, %v3032_v5  ;;  %v3034_v46 = vpop.f32.mrb[90].mxu1 }
 0x21a   : > { %v11665_v2 = vadd.f32 %v10599_v59, %v4173_v16  ;;  %v4260_v8 = vmul.f32 %v10580_v50, %v2981_v24  ;;  %v2983_v26 = vpop.f32.mrb[91].mxu0  ;;  %v11669_v51 = vadd.f32 %v10599_v59, %v4175_v47  ;;  %v4262_v21 = vmul.f32 %v10580_v50, %v3034_v46  ;;  %v3036_v30 = vpop.f32.mrb[91].mxu1 }
 0x21b   : > { %v11673_v34 = vadd.f32 %v10599_v59, %v4174_v20  ;;  %v4261_v37 = vmul.f32 %v10580_v50, %v2983_v26  ;;  %v11677_v5 = vadd.f32 %v10599_v59, %v4176_v18  ;;  %v4263_v16 = vmul.f32 %v10580_v50, %v3036_v30 }
 0x21c   : > { %16360 = vst [vmem:[#allocation179_spill] sm:$0xff] %v11665_v2  ;;  %16361 = vst [vmem:[#allocation180_spill] sm:$0xff] %v11669_v51  ;;  %v11682_v24 = vadd.f32 %v10601_v60, %v4260_v8  ;;  %v11686_v46 = vadd.f32 %v10601_v60, %v4262_v21 }
 0x21d   : > { %16362 = vst [vmem:[#allocation181_spill] sm:$0xff] %v11673_v34  ;;  %16363 = vst [vmem:[#allocation182_spill] sm:$0xff] %v11677_v5  ;;  %v11690_v15 = vadd.f32 %v10601_v60, %v4261_v37  ;;  %v11694_v26 = vadd.f32 %v10601_v60, %v4263_v16 }
 0x21e   : > { %16364 = vst [vmem:[#allocation183_spill] sm:$0xff] %v11682_v24  ;;  %16365 = vst [vmem:[#allocation184_spill] sm:$0xff] %v11686_v46 }
 0x21f   : > { %16366 = vst [vmem:[#allocation185_spill] sm:$0xff] %v11690_v15  ;;  %16367 = vst [vmem:[#allocation186_spill] sm:$0xff] %v11694_v26  ;;  %v2987_v47 = vpop.f32.mrb[92].mxu0  ;;  %v3040_v51 = vpop.f32.mrb[92].mxu1 }
 0x220   : > { %v4347_v20 = vmul.f32 %v10571_v49, %v2987_v47  ;;  %v2989_v34 = vpop.f32.mrb[93].mxu0  ;;  %v4349_v37 = vmul.f32 %v10571_v49, %v3040_v51  ;;  %v3042_v2 = vpop.f32.mrb[93].mxu1 }
 0x221   : > { %v4348_v18 = vmul.f32 %v10571_v49, %v2989_v34  ;;  %v2991_v16 = vpop.f32.mrb[94].mxu0  ;;  %v4350_v5 = vmul.f32 %v10571_v49, %v3042_v2  ;;  %v3044_v30 = vpop.f32.mrb[94].mxu1 }
 0x222   : > { %v11705_v8 = vadd.f32 %v10656_v32, %v4347_v20  ;;  %v4434_v56 = vmul.f32 %v10582_v52, %v2991_v16  ;;  %v2993_v46 = vpop.f32.mrb[95].mxu0  ;;  %v11709_v21 = vadd.f32 %v10656_v32, %v4349_v37  ;;  %v4436_v47 = vmul.f32 %v10582_v52, %v3044_v30  ;;  %v3046_v26 = vpop.f32.mrb[95].mxu1 }
 0x223   : > { %v11713_v51 = vadd.f32 %v10656_v32, %v4348_v18  ;;  %v4435_v34 = vmul.f32 %v10582_v52, %v2993_v46  ;;  %v11717_v2 = vadd.f32 %v10656_v32, %v4350_v5  ;;  %v4437_v20 = vmul.f32 %v10582_v52, %v3046_v26 }
 0x224   : > { %16368 = vst [vmem:[#allocation187_spill] sm:$0xff] %v11705_v8  ;;  %16369 = vst [vmem:[#allocation188_spill] sm:$0xff] %v11709_v21  ;;  %v11722_v16 = vadd.f32 %v10658_v33, %v4434_v56  ;;  %v11726_v30 = vadd.f32 %v10658_v33, %v4436_v47 }
 0x225   : > { %16370 = vst [vmem:[#allocation189_spill] sm:$0xff] %v11713_v51  ;;  %16371 = vst [vmem:[#allocation190_spill] sm:$0xff] %v11717_v2  ;;  %v11730_v24 = vadd.f32 %v10658_v33, %v4435_v34  ;;  %v11734_v46 = vadd.f32 %v10658_v33, %v4437_v20 }
 0x226   : > { %16372 = vst [vmem:[#allocation191_spill] sm:$0xff] %v11722_v16  ;;  %16373 = vst [vmem:[#allocation192_spill] sm:$0xff] %v11726_v30 }
 0x227   : > { %16374 = vst [vmem:[#allocation193_spill] sm:$0xff] %v11730_v24  ;;  %16375 = vst [vmem:[#allocation194_spill] sm:$0xff] %v11734_v46  ;;  %v3083_v37 = vpop.f32.mrb[96].mxu0  ;;  %v3136_v21 = vpop.f32.mrb[96].mxu1 }
 0x228   : > { %v4177_v18 = vmul.f32 %v10569_v48, %v3083_v37  ;;  %v3085_v51 = vpop.f32.mrb[97].mxu0  ;;  %v4179_v34 = vmul.f32 %v10569_v48, %v3136_v21  ;;  %v3138_v8 = vpop.f32.mrb[97].mxu1 }
 0x229   : > { %v4178_v5 = vmul.f32 %v10569_v48, %v3085_v51  ;;  %v3087_v20 = vpop.f32.mrb[98].mxu0  ;;  %v4180_v2 = vmul.f32 %v10569_v48, %v3138_v8  ;;  %v3140_v26 = vpop.f32.mrb[98].mxu1 }
 0x22a   : > { %v11745_v56 = vadd.f32 %v10599_v59, %v4177_v18  ;;  %v4264_v15 = vmul.f32 %v10580_v50, %v3087_v20  ;;  %v3089_v30 = vpop.f32.mrb[99].mxu0  ;;  %v11749_v47 = vadd.f32 %v10599_v59, %v4179_v34  ;;  %v4266_v37 = vmul.f32 %v10580_v50, %v3140_v26  ;;  %v3142_v46 = vpop.f32.mrb[99].mxu1 }
 0x22b   : > { %v11753_v21 = vadd.f32 %v10599_v59, %v4178_v5  ;;  %v4265_v51 = vmul.f32 %v10580_v50, %v3089_v30  ;;  %v11757_v8 = vadd.f32 %v10599_v59, %v4180_v2  ;;  %v4267_v18 = vmul.f32 %v10580_v50, %v3142_v46 }
 0x22c   : > { %16376 = vst [vmem:[#allocation195_spill] sm:$0xff] %v11745_v56  ;;  %16377 = vst [vmem:[#allocation196_spill] sm:$0xff] %v11749_v47  ;;  %v11762_v20 = vadd.f32 %v10601_v60, %v4264_v15  ;;  %v11766_v26 = vadd.f32 %v10601_v60, %v4266_v37 }
 0x22d   : > { %16378 = vst [vmem:[#allocation197_spill] sm:$0xff] %v11753_v21  ;;  %16379 = vst [vmem:[#allocation198_spill] sm:$0xff] %v11757_v8  ;;  %v11770_v16 = vadd.f32 %v10601_v60, %v4265_v51  ;;  %v11774_v30 = vadd.f32 %v10601_v60, %v4267_v18 }
 0x22e   : > { %16380 = vst [vmem:[#allocation199_spill] sm:$0xff] %v11762_v20  ;;  %16381 = vst [vmem:[#allocation200_spill] sm:$0xff] %v11766_v26 }
 0x22f   : > { %16382 = vst [vmem:[#allocation201_spill] sm:$0xff] %v11770_v16  ;;  %16383 = vst [vmem:[#allocation202_spill] sm:$0xff] %v11774_v30  ;;  %v3093_v34 = vpop.f32.mrb[100].mxu0  ;;  %v3146_v47 = vpop.f32.mrb[100].mxu1 }
 0x230   : > { %v4351_v5 = vmul.f32 %v10571_v49, %v3093_v34  ;;  %v3095_v21 = vpop.f32.mrb[101].mxu0  ;;  %v4353_v51 = vmul.f32 %v10571_v49, %v3146_v47  ;;  %v3148_v56 = vpop.f32.mrb[101].mxu1 }
 0x231   : > { %v4352_v2 = vmul.f32 %v10571_v49, %v3095_v21  ;;  %v3097_v18 = vpop.f32.mrb[102].mxu0  ;;  %v4354_v8 = vmul.f32 %v10571_v49, %v3148_v56  ;;  %v3150_v46 = vpop.f32.mrb[102].mxu1 }
 0x232   : > { %v11785_v15 = vadd.f32 %v10656_v32, %v4351_v5  ;;  %v4438_v24 = vmul.f32 %v10582_v52, %v3097_v18  ;;  %v3099_v26 = vpop.f32.mrb[103].mxu0  ;;  %v11789_v37 = vadd.f32 %v10656_v32, %v4353_v51  ;;  %v4440_v34 = vmul.f32 %v10582_v52, %v3150_v46  ;;  %v3152_v30 = vpop.f32.mrb[103].mxu1 }
 0x233   : > { %v11793_v47 = vadd.f32 %v10656_v32, %v4352_v2  ;;  %v4439_v21 = vmul.f32 %v10582_v52, %v3099_v26  ;;  %v11797_v56 = vadd.f32 %v10656_v32, %v4354_v8  ;;  %v4441_v5 = vmul.f32 %v10582_v52, %v3152_v30 }
 0x234   : > { %16384 = vst [vmem:[#allocation203_spill] sm:$0xff] %v11785_v15  ;;  %16385 = vst [vmem:[#allocation204_spill] sm:$0xff] %v11789_v37  ;;  %v11802_v18 = vadd.f32 %v10658_v33, %v4438_v24  ;;  %v11806_v46 = vadd.f32 %v10658_v33, %v4440_v34 }
 0x235   : > { %16386 = vst [vmem:[#allocation205_spill] sm:$0xff] %v11793_v47  ;;  %16387 = vst [vmem:[#allocation206_spill] sm:$0xff] %v11797_v56  ;;  %v11810_v20 = vadd.f32 %v10658_v33, %v4439_v21  ;;  %v11814_v26 = vadd.f32 %v10658_v33, %v4441_v5 }
 0x236   : > { %16388 = vst [vmem:[#allocation207_spill] sm:$0xff] %v11802_v18  ;;  %16389 = vst [vmem:[#allocation208_spill] sm:$0xff] %v11806_v46 }
 0x237   : > { %16390 = vst [vmem:[#allocation209_spill] sm:$0xff] %v11810_v20  ;;  %16391 = vst [vmem:[#allocation210_spill] sm:$0xff] %v11814_v26  ;;  %v3189_v51 = vpop.f32.mrb[104].mxu0  ;;  %v3242_v37 = vpop.f32.mrb[104].mxu1 }
 0x238   : > { %v4181_v2 = vmul.f32 %v10569_v48, %v3189_v51  ;;  %v3191_v47 = vpop.f32.mrb[105].mxu0  ;;  %v4183_v21 = vmul.f32 %v10569_v48, %v3242_v37  ;;  %v3244_v15 = vpop.f32.mrb[105].mxu1 }
 0x239   : > { %v4182_v8 = vmul.f32 %v10569_v48, %v3191_v47  ;;  %v3193_v5 = vpop.f32.mrb[106].mxu0  ;;  %v4184_v56 = vmul.f32 %v10569_v48, %v3244_v15  ;;  %v3246_v30 = vpop.f32.mrb[106].mxu1 }
 0x23a   : > { %v11825_v24 = vadd.f32 %v10599_v59, %v4181_v2  ;;  %v4268_v16 = vmul.f32 %v10580_v50, %v3193_v5  ;;  %v3195_v46 = vpop.f32.mrb[107].mxu0  ;;  %v11829_v34 = vadd.f32 %v10599_v59, %v4183_v21  ;;  %v4270_v51 = vmul.f32 %v10580_v50, %v3246_v30  ;;  %v3248_v26 = vpop.f32.mrb[107].mxu1 }
 0x23b   : > { %v11833_v37 = vadd.f32 %v10599_v59, %v4182_v8  ;;  %v4269_v47 = vmul.f32 %v10580_v50, %v3195_v46  ;;  %v11837_v15 = vadd.f32 %v10599_v59, %v4184_v56  ;;  %v4271_v2 = vmul.f32 %v10580_v50, %v3248_v26 }
 0x23c   : > { %16392 = vst [vmem:[#allocation211_spill] sm:$0xff] %v11825_v24  ;;  %16393 = vst [vmem:[#allocation212_spill] sm:$0xff] %v11829_v34  ;;  %v11842_v5 = vadd.f32 %v10601_v60, %v4268_v16  ;;  %v11846_v30 = vadd.f32 %v10601_v60, %v4270_v51 }
 0x23d   : > { %16394 = vst [vmem:[#allocation213_spill] sm:$0xff] %v11833_v37  ;;  %16395 = vst [vmem:[#allocation214_spill] sm:$0xff] %v11837_v15  ;;  %v11850_v18 = vadd.f32 %v10601_v60, %v4269_v47  ;;  %v11854_v46 = vadd.f32 %v10601_v60, %v4271_v2 }
 0x23e   : > { %16396 = vst [vmem:[#allocation215_spill] sm:$0xff] %v11842_v5  ;;  %16397 = vst [vmem:[#allocation216_spill] sm:$0xff] %v11846_v30 }
 0x23f   : > { %16398 = vst [vmem:[#allocation217_spill] sm:$0xff] %v11850_v18  ;;  %16399 = vst [vmem:[#allocation218_spill] sm:$0xff] %v11854_v46  ;;  %v3199_v21 = vpop.f32.mrb[108].mxu0  ;;  %v3252_v34 = vpop.f32.mrb[108].mxu1 }
 0x240   : > { %v4355_v8 = vmul.f32 %v10571_v49, %v3199_v21  ;;  %v3201_v37 = vpop.f32.mrb[109].mxu0  ;;  %v4357_v47 = vmul.f32 %v10571_v49, %v3252_v34  ;;  %v3254_v24 = vpop.f32.mrb[109].mxu1 }
 0x241   : > { %v4356_v56 = vmul.f32 %v10571_v49, %v3201_v37  ;;  %v3203_v2 = vpop.f32.mrb[110].mxu0  ;;  %v4358_v15 = vmul.f32 %v10571_v49, %v3254_v24  ;;  %v3256_v26 = vpop.f32.mrb[110].mxu1 }
 0x242   : > { %v11865_v16 = vadd.f32 %v10656_v32, %v4355_v8  ;;  %v4442_v20 = vmul.f32 %v10582_v52, %v3203_v2  ;;  %v3205_v30 = vpop.f32.mrb[111].mxu0  ;;  %v11869_v51 = vadd.f32 %v10656_v32, %v4357_v47  ;;  %v4444_v21 = vmul.f32 %v10582_v52, %v3256_v26  ;;  %v3258_v46 = vpop.f32.mrb[111].mxu1 }
 0x243   : > { %v11873_v34 = vadd.f32 %v10656_v32, %v4356_v56  ;;  %v4443_v37 = vmul.f32 %v10582_v52, %v3205_v30  ;;  %v11877_v24 = vadd.f32 %v10656_v32, %v4358_v15  ;;  %v4445_v8 = vmul.f32 %v10582_v52, %v3258_v46 }
 0x244   : > { %16400 = vst [vmem:[#allocation219_spill] sm:$0xff] %v11865_v16  ;;  %16401 = vst [vmem:[#allocation220_spill] sm:$0xff] %v11869_v51  ;;  %v11882_v2 = vadd.f32 %v10658_v33, %v4442_v20  ;;  %v11886_v26 = vadd.f32 %v10658_v33, %v4444_v21 }
 0x245   : > { %16402 = vst [vmem:[#allocation221_spill] sm:$0xff] %v11873_v34  ;;  %16403 = vst [vmem:[#allocation222_spill] sm:$0xff] %v11877_v24  ;;  %v11890_v5 = vadd.f32 %v10658_v33, %v4443_v37  ;;  %v11894_v30 = vadd.f32 %v10658_v33, %v4445_v8 }
 0x246   : > { %16404 = vst [vmem:[#allocation223_spill] sm:$0xff] %v11882_v2  ;;  %16405 = vst [vmem:[#allocation224_spill] sm:$0xff] %v11886_v26 }
 0x247   : > { %16406 = vst [vmem:[#allocation225_spill] sm:$0xff] %v11890_v5  ;;  %16407 = vst [vmem:[#allocation226_spill] sm:$0xff] %v11894_v30  ;;  %v3295_v47 = vpop.f32.mrb[112].mxu0  ;;  %v3348_v51 = vpop.f32.mrb[112].mxu1 }
 0x248   : > { %v4185_v56 = vmul.f32 %v10569_v48, %v3295_v47  ;;  %v3297_v34 = vpop.f32.mrb[113].mxu0  ;;  %v4187_v37 = vmul.f32 %v10569_v48, %v3348_v51  ;;  %v3350_v16 = vpop.f32.mrb[113].mxu1 }
 0x249   : > { %v4186_v15 = vmul.f32 %v10569_v48, %v3297_v34  ;;  %v3299_v8 = vpop.f32.mrb[114].mxu0  ;;  %v4188_v24 = vmul.f32 %v10569_v48, %v3350_v16  ;;  %v3352_v46 = vpop.f32.mrb[114].mxu1 }
 0x24a   : > { %v11905_v20 = vadd.f32 %v10599_v59, %v4185_v56  ;;  %v4272_v18 = vmul.f32 %v10580_v50, %v3299_v8  ;;  %v3301_v26 = vpop.f32.mrb[115].mxu0  ;;  %v11909_v21 = vadd.f32 %v10599_v59, %v4187_v37  ;;  %v4274_v47 = vmul.f32 %v10580_v50, %v3352_v46  ;;  %v3354_v30 = vpop.f32.mrb[115].mxu1 }
 0x24b   : > { %v11913_v51 = vadd.f32 %v10599_v59, %v4186_v15  ;;  %v4273_v34 = vmul.f32 %v10580_v50, %v3301_v26  ;;  %v11917_v16 = vadd.f32 %v10599_v59, %v4188_v24  ;;  %v4275_v56 = vmul.f32 %v10580_v50, %v3354_v30 }
 0x24c   : > { %16408 = vst [vmem:[#allocation227_spill] sm:$0xff] %v11905_v20  ;;  %16409 = vst [vmem:[#allocation228_spill] sm:$0xff] %v11909_v21  ;;  %v11922_v8 = vadd.f32 %v10601_v60, %v4272_v18  ;;  %v11926_v46 = vadd.f32 %v10601_v60, %v4274_v47 }
 0x24d   : > { %16410 = vst [vmem:[#allocation229_spill] sm:$0xff] %v11913_v51  ;;  %16411 = vst [vmem:[#allocation230_spill] sm:$0xff] %v11917_v16  ;;  %v11930_v2 = vadd.f32 %v10601_v60, %v4273_v34  ;;  %v11934_v26 = vadd.f32 %v10601_v60, %v4275_v56 }
 0x24e   : > { %16412 = vst [vmem:[#allocation231_spill] sm:$0xff] %v11922_v8  ;;  %16413 = vst [vmem:[#allocation232_spill] sm:$0xff] %v11926_v46 }
 0x24f   : > { %16414 = vst [vmem:[#allocation233_spill] sm:$0xff] %v11930_v2  ;;  %16415 = vst [vmem:[#allocation234_spill] sm:$0xff] %v11934_v26  ;;  %v3305_v37 = vpop.f32.mrb[116].mxu0  ;;  %v3358_v21 = vpop.f32.mrb[116].mxu1 }
 0x250   : > { %v4359_v15 = vmul.f32 %v10571_v49, %v3305_v37  ;;  %v3307_v51 = vpop.f32.mrb[117].mxu0  ;;  %v4361_v34 = vmul.f32 %v10571_v49, %v3358_v21  ;;  %v3360_v20 = vpop.f32.mrb[117].mxu1 }
 0x251   : > { %v4360_v24 = vmul.f32 %v10571_v49, %v3307_v51  ;;  %v3309_v56 = vpop.f32.mrb[118].mxu0  ;;  %v4362_v16 = vmul.f32 %v10571_v49, %v3360_v20  ;;  %v3362_v30 = vpop.f32.mrb[118].mxu1 }
 0x252   : > { %v11945_v18 = vadd.f32 %v10656_v32, %v4359_v15  ;;  %v4446_v5 = vmul.f32 %v10582_v52, %v3309_v56  ;;  %v3311_v46 = vpop.f32.mrb[119].mxu0  ;;  %v11949_v47 = vadd.f32 %v10656_v32, %v4361_v34  ;;  %v4448_v37 = vmul.f32 %v10582_v52, %v3362_v30  ;;  %v3364_v26 = vpop.f32.mrb[119].mxu1 }
 0x253   : > { %v11953_v21 = vadd.f32 %v10656_v32, %v4360_v24  ;;  %v4447_v51 = vmul.f32 %v10582_v52, %v3311_v46  ;;  %v11957_v20 = vadd.f32 %v10656_v32, %v4362_v16  ;;  %v4449_v15 = vmul.f32 %v10582_v52, %v3364_v26 }
 0x254   : > { %16416 = vst [vmem:[#allocation235_spill] sm:$0xff] %v11945_v18  ;;  %16417 = vst [vmem:[#allocation236_spill] sm:$0xff] %v11949_v47  ;;  %v11962_v56 = vadd.f32 %v10658_v33, %v4446_v5  ;;  %v11966_v30 = vadd.f32 %v10658_v33, %v4448_v37 }
 0x255   : > { %16418 = vst [vmem:[#allocation237_spill] sm:$0xff] %v11953_v21  ;;  %16419 = vst [vmem:[#allocation238_spill] sm:$0xff] %v11957_v20  ;;  %v11970_v8 = vadd.f32 %v10658_v33, %v4447_v51  ;;  %v11974_v46 = vadd.f32 %v10658_v33, %v4449_v15 }
 0x256   : > { %16420 = vst [vmem:[#allocation239_spill] sm:$0xff] %v11962_v56  ;;  %16421 = vst [vmem:[#allocation240_spill] sm:$0xff] %v11966_v30 }
 0x257   : > { %16422 = vst [vmem:[#allocation241_spill] sm:$0xff] %v11970_v8  ;;  %16423 = vst [vmem:[#allocation242_spill] sm:$0xff] %v11974_v46  ;;  %v3401_v34 = vpop.f32.mrb[120].mxu0  ;;  %v3454_v47 = vpop.f32.mrb[120].mxu1 }
 0x258   : > { %v4189_v24 = vmul.f32 %v10569_v48, %v3401_v34  ;;  %v3403_v21 = vpop.f32.mrb[121].mxu0  ;;  %v4191_v51 = vmul.f32 %v10569_v48, %v3454_v47  ;;  %v3456_v18 = vpop.f32.mrb[121].mxu1 }
 0x259   : > { %v4190_v16 = vmul.f32 %v10569_v48, %v3403_v21  ;;  %v3405_v15 = vpop.f32.mrb[122].mxu0  ;;  %v4192_v20 = vmul.f32 %v10569_v48, %v3456_v18  ;;  %v3458_v26 = vpop.f32.mrb[122].mxu1 }
 0x25a   : > { %v11985_v5 = vadd.f32 %v10599_v59, %v4189_v24  ;;  %v4276_v2 = vmul.f32 %v10580_v50, %v3405_v15  ;;  %v3407_v30 = vpop.f32.mrb[123].mxu0  ;;  %v11989_v37 = vadd.f32 %v10599_v59, %v4191_v51  ;;  %v4278_v34 = vmul.f32 %v10580_v50, %v3458_v26  ;;  %v3460_v46 = vpop.f32.mrb[123].mxu1 }
 0x25b   : > { %v11993_v47 = vadd.f32 %v10599_v59, %v4190_v16  ;;  %v4277_v21 = vmul.f32 %v10580_v50, %v3407_v30  ;;  %v11997_v18 = vadd.f32 %v10599_v59, %v4192_v20  ;;  %v4279_v24 = vmul.f32 %v10580_v50, %v3460_v46 }
 0x25c   : > { %16424 = vst [vmem:[#allocation243_spill] sm:$0xff] %v11985_v5  ;;  %16425 = vst [vmem:[#allocation244_spill] sm:$0xff] %v11989_v37  ;;  %v12002_v15 = vadd.f32 %v10601_v60, %v4276_v2  ;;  %v12006_v26 = vadd.f32 %v10601_v60, %v4278_v34 }
 0x25d   : > { %16426 = vst [vmem:[#allocation245_spill] sm:$0xff] %v11993_v47  ;;  %16427 = vst [vmem:[#allocation246_spill] sm:$0xff] %v11997_v18  ;;  %v12010_v56 = vadd.f32 %v10601_v60, %v4277_v21  ;;  %v12014_v30 = vadd.f32 %v10601_v60, %v4279_v24 }
 0x25e   : > { %16428 = vst [vmem:[#allocation247_spill] sm:$0xff] %v12002_v15  ;;  %16429 = vst [vmem:[#allocation248_spill] sm:$0xff] %v12006_v26 }
 0x25f   : > { %16430 = vst [vmem:[#allocation249_spill] sm:$0xff] %v12010_v56  ;;  %16431 = vst [vmem:[#allocation250_spill] sm:$0xff] %v12014_v30  ;;  %v3411_v51 = vpop.f32.mrb[124].mxu0  ;;  %v3464_v37 = vpop.f32.mrb[124].mxu1 }
 0x260   : > { %v4363_v16 = vmul.f32 %v10571_v49, %v3411_v51  ;;  %v3413_v47 = vpop.f32.mrb[125].mxu0  ;;  %v4365_v21 = vmul.f32 %v10571_v49, %v3464_v37  ;;  %v3466_v5 = vpop.f32.mrb[125].mxu1 }
 0x261   : > { %v4364_v20 = vmul.f32 %v10571_v49, %v3413_v47  ;;  %v3415_v24 = vpop.f32.mrb[126].mxu0  ;;  %v4366_v18 = vmul.f32 %v10571_v49, %v3466_v5  ;;  %v3468_v46 = vpop.f32.mrb[126].mxu1 }
 0x262   : > { %v12025_v2 = vadd.f32 %v10656_v32, %v4363_v16  ;;  %v4450_v8 = vmul.f32 %v10582_v52, %v3415_v24  ;;  %v3417_v26 = vpop.f32.mrb[127].mxu0  ;;  %v12029_v34 = vadd.f32 %v10656_v32, %v4365_v21  ;;  %v4452_v51 = vmul.f32 %v10582_v52, %v3468_v46  ;;  %v3470_v30 = vpop.f32.mrb[127].mxu1 }
 0x263   : > { %v12033_v37 = vadd.f32 %v10656_v32, %v4364_v20  ;;  %v4451_v47 = vmul.f32 %v10582_v52, %v3417_v26  ;;  %v12037_v5 = vadd.f32 %v10656_v32, %v4366_v18  ;;  %v4453_v16 = vmul.f32 %v10582_v52, %v3470_v30 }
 0x264   : > { %16432 = vst [vmem:[#allocation251_spill] sm:$0xff] %v12025_v2  ;;  %16433 = vst [vmem:[#allocation252_spill] sm:$0xff] %v12029_v34  ;;  %v12042_v24 = vadd.f32 %v10658_v33, %v4450_v8  ;;  %v12046_v46 = vadd.f32 %v10658_v33, %v4452_v51 }
 0x265   : > { %16434 = vst [vmem:[#allocation253_spill] sm:$0xff] %v12033_v37  ;;  %16435 = vst [vmem:[#allocation254_spill] sm:$0xff] %v12037_v5  ;;  %v12050_v15 = vadd.f32 %v10658_v33, %v4451_v47  ;;  %v12054_v26 = vadd.f32 %v10658_v33, %v4453_v16 }
 0x266   : > { %16436 = vst [vmem:[#allocation255_spill] sm:$0xff] %v12042_v24  ;;  %16437 = vst [vmem:[#allocation256_spill] sm:$0xff] %v12046_v46 }
 0x267   : > { %16438 = vst [vmem:[#allocation257_spill] sm:$0xff] %v12050_v15  ;;  %16439 = vst [vmem:[#allocation258_spill] sm:$0xff] %v12054_v26  ;;  %v3507_v21 = vpop.f32.mrb[128].mxu0  ;;  %v3560_v34 = vpop.f32.mrb[128].mxu1 }
 0x268   : > { %v4193_v20 = vmul.f32 %v10569_v48, %v3507_v21  ;;  %v3509_v37 = vpop.f32.mrb[129].mxu0  ;;  %v4195_v47 = vmul.f32 %v10569_v48, %v3560_v34  ;;  %v3562_v2 = vpop.f32.mrb[129].mxu1 }
 0x269   : > { %v4194_v18 = vmul.f32 %v10569_v48, %v3509_v37  ;;  %v3511_v16 = vpop.f32.mrb[130].mxu0  ;;  %v4196_v5 = vmul.f32 %v10569_v48, %v3562_v2  ;;  %v3564_v30 = vpop.f32.mrb[130].mxu1 }
 0x26a   : > { %v12065_v8 = vadd.f32 %v10599_v59, %v4193_v20  ;;  %v4280_v56 = vmul.f32 %v10580_v50, %v3511_v16  ;;  %v3513_v46 = vpop.f32.mrb[131].mxu0  ;;  %v12069_v51 = vadd.f32 %v10599_v59, %v4195_v47  ;;  %v4282_v21 = vmul.f32 %v10580_v50, %v3564_v30  ;;  %v3566_v26 = vpop.f32.mrb[131].mxu1 }
 0x26b   : > { %v12073_v34 = vadd.f32 %v10599_v59, %v4194_v18  ;;  %v4281_v37 = vmul.f32 %v10580_v50, %v3513_v46  ;;  %v12077_v2 = vadd.f32 %v10599_v59, %v4196_v5  ;;  %v4283_v20 = vmul.f32 %v10580_v50, %v3566_v26 }
 0x26c   : > { %16440 = vst [vmem:[#allocation259_spill] sm:$0xff] %v12065_v8  ;;  %16441 = vst [vmem:[#allocation260_spill] sm:$0xff] %v12069_v51  ;;  %v12082_v16 = vadd.f32 %v10601_v60, %v4280_v56  ;;  %v12086_v30 = vadd.f32 %v10601_v60, %v4282_v21 }
 0x26d   : > { %16442 = vst [vmem:[#allocation261_spill] sm:$0xff] %v12073_v34  ;;  %16443 = vst [vmem:[#allocation262_spill] sm:$0xff] %v12077_v2  ;;  %v12090_v24 = vadd.f32 %v10601_v60, %v4281_v37  ;;  %v12094_v46 = vadd.f32 %v10601_v60, %v4283_v20 }
 0x26e   : > { %16444 = vst [vmem:[#allocation263_spill] sm:$0xff] %v12082_v16  ;;  %16445 = vst [vmem:[#allocation264_spill] sm:$0xff] %v12086_v30 }
 0x26f   : > { %16446 = vst [vmem:[#allocation265_spill] sm:$0xff] %v12090_v24  ;;  %16447 = vst [vmem:[#allocation266_spill] sm:$0xff] %v12094_v46  ;;  %v3517_v47 = vpop.f32.mrb[132].mxu0  ;;  %v3570_v51 = vpop.f32.mrb[132].mxu1 }
 0x270   : > { %v4367_v18 = vmul.f32 %v10571_v49, %v3517_v47  ;;  %v3519_v34 = vpop.f32.mrb[133].mxu0  ;;  %v4369_v37 = vmul.f32 %v10571_v49, %v3570_v51  ;;  %v3572_v8 = vpop.f32.mrb[133].mxu1 }
 0x271   : > { %v4368_v5 = vmul.f32 %v10571_v49, %v3519_v34  ;;  %v3521_v20 = vpop.f32.mrb[134].mxu0  ;;  %v4370_v2 = vmul.f32 %v10571_v49, %v3572_v8  ;;  %v3574_v26 = vpop.f32.mrb[134].mxu1 }
 0x272   : > { %v12105_v56 = vadd.f32 %v10656_v32, %v4367_v18  ;;  %v4454_v15 = vmul.f32 %v10582_v52, %v3521_v20  ;;  %v3523_v30 = vpop.f32.mrb[135].mxu0  ;;  %v12109_v21 = vadd.f32 %v10656_v32, %v4369_v37  ;;  %v4456_v47 = vmul.f32 %v10582_v52, %v3574_v26  ;;  %v3576_v46 = vpop.f32.mrb[135].mxu1 }
 0x273   : > { %v12113_v51 = vadd.f32 %v10656_v32, %v4368_v5  ;;  %v4455_v34 = vmul.f32 %v10582_v52, %v3523_v30  ;;  %v12117_v8 = vadd.f32 %v10656_v32, %v4370_v2  ;;  %v4457_v18 = vmul.f32 %v10582_v52, %v3576_v46 }
 0x274   : > { %16448 = vst [vmem:[#allocation267_spill] sm:$0xff] %v12105_v56  ;;  %16449 = vst [vmem:[#allocation268_spill] sm:$0xff] %v12109_v21  ;;  %v12122_v20 = vadd.f32 %v10658_v33, %v4454_v15  ;;  %v12126_v26 = vadd.f32 %v10658_v33, %v4456_v47 }
 0x275   : > { %16450 = vst [vmem:[#allocation269_spill] sm:$0xff] %v12113_v51  ;;  %16451 = vst [vmem:[#allocation270_spill] sm:$0xff] %v12117_v8  ;;  %v12130_v16 = vadd.f32 %v10658_v33, %v4455_v34  ;;  %v12134_v30 = vadd.f32 %v10658_v33, %v4457_v18 }
 0x276   : > { %16452 = vst [vmem:[#allocation271_spill] sm:$0xff] %v12122_v20  ;;  %16453 = vst [vmem:[#allocation272_spill] sm:$0xff] %v12126_v26 }
 0x277   : > { %16454 = vst [vmem:[#allocation273_spill] sm:$0xff] %v12130_v16  ;;  %16455 = vst [vmem:[#allocation274_spill] sm:$0xff] %v12134_v30  ;;  %v3613_v37 = vpop.f32.mrb[136].mxu0  ;;  %v3666_v21 = vpop.f32.mrb[136].mxu1 }
 0x278   : > { %v4197_v5 = vmul.f32 %v10569_v48, %v3613_v37  ;;  %v3615_v51 = vpop.f32.mrb[137].mxu0  ;;  %v4199_v34 = vmul.f32 %v10569_v48, %v3666_v21  ;;  %v3668_v56 = vpop.f32.mrb[137].mxu1 }
 0x279   : > { %v4198_v2 = vmul.f32 %v10569_v48, %v3615_v51  ;;  %v3617_v18 = vpop.f32.mrb[138].mxu0  ;;  %v4200_v8 = vmul.f32 %v10569_v48, %v3668_v56  ;;  %v3670_v46 = vpop.f32.mrb[138].mxu1 }
 0x27a   : > { %v12145_v15 = vadd.f32 %v10599_v59, %v4197_v5  ;;  %v4284_v24 = vmul.f32 %v10580_v50, %v3617_v18  ;;  %v3619_v26 = vpop.f32.mrb[139].mxu0  ;;  %v12149_v47 = vadd.f32 %v10599_v59, %v4199_v34  ;;  %v4286_v37 = vmul.f32 %v10580_v50, %v3670_v46  ;;  %v3672_v30 = vpop.f32.mrb[139].mxu1 }
 0x27b   : > { %v12153_v21 = vadd.f32 %v10599_v59, %v4198_v2  ;;  %v4285_v51 = vmul.f32 %v10580_v50, %v3619_v26  ;;  %v12157_v56 = vadd.f32 %v10599_v59, %v4200_v8  ;;  %v4287_v5 = vmul.f32 %v10580_v50, %v3672_v30 }
 0x27c   : > { %16456 = vst [vmem:[#allocation275_spill] sm:$0xff] %v12145_v15  ;;  %16457 = vst [vmem:[#allocation276_spill] sm:$0xff] %v12149_v47  ;;  %v12162_v18 = vadd.f32 %v10601_v60, %v4284_v24  ;;  %v12166_v46 = vadd.f32 %v10601_v60, %v4286_v37 }
 0x27d   : > { %16458 = vst [vmem:[#allocation277_spill] sm:$0xff] %v12153_v21  ;;  %16459 = vst [vmem:[#allocation278_spill] sm:$0xff] %v12157_v56  ;;  %v12170_v20 = vadd.f32 %v10601_v60, %v4285_v51  ;;  %v12174_v26 = vadd.f32 %v10601_v60, %v4287_v5 }
 0x27e   : > { %16460 = vst [vmem:[#allocation279_spill] sm:$0xff] %v12162_v18  ;;  %16461 = vst [vmem:[#allocation280_spill] sm:$0xff] %v12166_v46 }
 0x27f   : > { %16462 = vst [vmem:[#allocation281_spill] sm:$0xff] %v12170_v20  ;;  %16463 = vst [vmem:[#allocation282_spill] sm:$0xff] %v12174_v26  ;;  %v3623_v34 = vpop.f32.mrb[140].mxu0  ;;  %v3676_v47 = vpop.f32.mrb[140].mxu1 }
 0x280   : > { %v4371_v2 = vmul.f32 %v10571_v49, %v3623_v34  ;;  %v3625_v21 = vpop.f32.mrb[141].mxu0  ;;  %v4373_v51 = vmul.f32 %v10571_v49, %v3676_v47  ;;  %v3678_v15 = vpop.f32.mrb[141].mxu1 }
 0x281   : > { %v4372_v8 = vmul.f32 %v10571_v49, %v3625_v21  ;;  %v3627_v5 = vpop.f32.mrb[142].mxu0  ;;  %v4374_v56 = vmul.f32 %v10571_v49, %v3678_v15  ;;  %v3680_v30 = vpop.f32.mrb[142].mxu1 }
 0x282   : > { %v12185_v24 = vadd.f32 %v10656_v32, %v4371_v2  ;;  %v4458_v16 = vmul.f32 %v10582_v52, %v3627_v5  ;;  %v3629_v46 = vpop.f32.mrb[143].mxu0  ;;  %v12189_v37 = vadd.f32 %v10656_v32, %v4373_v51  ;;  %v4460_v34 = vmul.f32 %v10582_v52, %v3680_v30  ;;  %v3682_v26 = vpop.f32.mrb[143].mxu1 }
 0x283   : > { %v12193_v47 = vadd.f32 %v10656_v32, %v4372_v8  ;;  %v4459_v21 = vmul.f32 %v10582_v52, %v3629_v46  ;;  %v12197_v15 = vadd.f32 %v10656_v32, %v4374_v56  ;;  %v4461_v2 = vmul.f32 %v10582_v52, %v3682_v26 }
 0x284   : > { %16464 = vst [vmem:[#allocation283_spill] sm:$0xff] %v12185_v24  ;;  %16465 = vst [vmem:[#allocation284_spill] sm:$0xff] %v12189_v37  ;;  %v12202_v5 = vadd.f32 %v10658_v33, %v4458_v16  ;;  %v12206_v30 = vadd.f32 %v10658_v33, %v4460_v34 }
 0x285   : > { %16466 = vst [vmem:[#allocation285_spill] sm:$0xff] %v12193_v47  ;;  %16467 = vst [vmem:[#allocation286_spill] sm:$0xff] %v12197_v15  ;;  %v12210_v18 = vadd.f32 %v10658_v33, %v4459_v21  ;;  %v12214_v46 = vadd.f32 %v10658_v33, %v4461_v2 }
 0x286   : > { %16468 = vst [vmem:[#allocation287_spill] sm:$0xff] %v12202_v5  ;;  %16469 = vst [vmem:[#allocation288_spill] sm:$0xff] %v12206_v30 }
 0x287   : > { %16470 = vst [vmem:[#allocation289_spill] sm:$0xff] %v12210_v18  ;;  %16471 = vst [vmem:[#allocation290_spill] sm:$0xff] %v12214_v46  ;;  %v3719_v51 = vpop.f32.mrb[144].mxu0  ;;  %v3772_v37 = vpop.f32.mrb[144].mxu1 }
 0x288   : > { %v4201_v8 = vmul.f32 %v10569_v48, %v3719_v51  ;;  %v3721_v47 = vpop.f32.mrb[145].mxu0  ;;  %v4203_v21 = vmul.f32 %v10569_v48, %v3772_v37  ;;  %v3774_v24 = vpop.f32.mrb[145].mxu1 }
 0x289   : > { %v4202_v56 = vmul.f32 %v10569_v48, %v3721_v47  ;;  %v3723_v2 = vpop.f32.mrb[146].mxu0  ;;  %v4204_v15 = vmul.f32 %v10569_v48, %v3774_v24  ;;  %v3776_v26 = vpop.f32.mrb[146].mxu1 }
 0x28a   : > { %v12225_v16 = vadd.f32 %v10599_v59, %v4201_v8  ;;  %v4288_v20 = vmul.f32 %v10580_v50, %v3723_v2  ;;  %v3725_v30 = vpop.f32.mrb[147].mxu0  ;;  %v12229_v34 = vadd.f32 %v10599_v59, %v4203_v21  ;;  %v4290_v51 = vmul.f32 %v10580_v50, %v3776_v26  ;;  %v3778_v46 = vpop.f32.mrb[147].mxu1 }
 0x28b   : > { %v12233_v37 = vadd.f32 %v10599_v59, %v4202_v56  ;;  %v4289_v47 = vmul.f32 %v10580_v50, %v3725_v30  ;;  %v12237_v24 = vadd.f32 %v10599_v59, %v4204_v15  ;;  %v4291_v8 = vmul.f32 %v10580_v50, %v3778_v46 }
 0x28c   : > { %16472 = vst [vmem:[#allocation291_spill] sm:$0xff] %v12225_v16  ;;  %16473 = vst [vmem:[#allocation292_spill] sm:$0xff] %v12229_v34  ;;  %v12242_v2 = vadd.f32 %v10601_v60, %v4288_v20  ;;  %v12246_v26 = vadd.f32 %v10601_v60, %v4290_v51 }
 0x28d   : > { %16474 = vst [vmem:[#allocation293_spill] sm:$0xff] %v12233_v37  ;;  %16475 = vst [vmem:[#allocation294_spill] sm:$0xff] %v12237_v24  ;;  %v12250_v5 = vadd.f32 %v10601_v60, %v4289_v47  ;;  %v12254_v30 = vadd.f32 %v10601_v60, %v4291_v8 }
 0x28e   : > { %16476 = vst [vmem:[#allocation295_spill] sm:$0xff] %v12242_v2  ;;  %16477 = vst [vmem:[#allocation296_spill] sm:$0xff] %v12246_v26 }
 0x28f   : > { %16478 = vst [vmem:[#allocation297_spill] sm:$0xff] %v12250_v5  ;;  %16479 = vst [vmem:[#allocation298_spill] sm:$0xff] %v12254_v30  ;;  %v3729_v21 = vpop.f32.mrb[148].mxu0  ;;  %v3782_v34 = vpop.f32.mrb[148].mxu1 }
 0x290   : > { %v4375_v56 = vmul.f32 %v10571_v49, %v3729_v21  ;;  %v3731_v37 = vpop.f32.mrb[149].mxu0  ;;  %v4377_v47 = vmul.f32 %v10571_v49, %v3782_v34  ;;  %v3784_v16 = vpop.f32.mrb[149].mxu1 }
 0x291   : > { %v4376_v15 = vmul.f32 %v10571_v49, %v3731_v37  ;;  %v3733_v8 = vpop.f32.mrb[150].mxu0  ;;  %v4378_v24 = vmul.f32 %v10571_v49, %v3784_v16  ;;  %v3786_v46 = vpop.f32.mrb[150].mxu1 }
 0x292   : > { %v12265_v20 = vadd.f32 %v10656_v32, %v4375_v56  ;;  %v4462_v18 = vmul.f32 %v10582_v52, %v3733_v8  ;;  %v3735_v26 = vpop.f32.mrb[151].mxu0  ;;  %v12269_v51 = vadd.f32 %v10656_v32, %v4377_v47  ;;  %v4464_v21 = vmul.f32 %v10582_v52, %v3786_v46  ;;  %v3788_v30 = vpop.f32.mrb[151].mxu1 }
 0x293   : > { %v12273_v34 = vadd.f32 %v10656_v32, %v4376_v15  ;;  %v4463_v37 = vmul.f32 %v10582_v52, %v3735_v26  ;;  %v12277_v16 = vadd.f32 %v10656_v32, %v4378_v24  ;;  %v4465_v56 = vmul.f32 %v10582_v52, %v3788_v30 }
 0x294   : > { %16480 = vst [vmem:[#allocation299_spill] sm:$0xff] %v12265_v20  ;;  %16481 = vst [vmem:[#allocation300_spill] sm:$0xff] %v12269_v51  ;;  %v12282_v8 = vadd.f32 %v10658_v33, %v4462_v18  ;;  %v12286_v46 = vadd.f32 %v10658_v33, %v4464_v21 }
 0x295   : > { %16482 = vst [vmem:[#allocation301_spill] sm:$0xff] %v12273_v34  ;;  %16483 = vst [vmem:[#allocation302_spill] sm:$0xff] %v12277_v16  ;;  %v12290_v2 = vadd.f32 %v10658_v33, %v4463_v37  ;;  %v12294_v26 = vadd.f32 %v10658_v33, %v4465_v56 }
 0x296   : > { %16484 = vst [vmem:[#allocation303_spill] sm:$0xff] %v12282_v8  ;;  %16485 = vst [vmem:[#allocation304_spill] sm:$0xff] %v12286_v46 }
 0x297   : > { %16486 = vst [vmem:[#allocation305_spill] sm:$0xff] %v12290_v2  ;;  %16487 = vst [vmem:[#allocation306_spill] sm:$0xff] %v12294_v26  ;;  %v3825_v47 = vpop.f32.mrb[152].mxu0  ;;  %v3878_v51 = vpop.f32.mrb[152].mxu1 }
 0x298   : > { %v4205_v15 = vmul.f32 %v10569_v48, %v3825_v47  ;;  %v3827_v34 = vpop.f32.mrb[153].mxu0  ;;  %v4207_v37 = vmul.f32 %v10569_v48, %v3878_v51  ;;  %v3880_v20 = vpop.f32.mrb[153].mxu1 }
 0x299   : > { %v4206_v24 = vmul.f32 %v10569_v48, %v3827_v34  ;;  %v3829_v56 = vpop.f32.mrb[154].mxu0  ;;  %v4208_v16 = vmul.f32 %v10569_v48, %v3880_v20  ;;  %v3882_v30 = vpop.f32.mrb[154].mxu1 }
 0x29a   : > { %v12305_v18 = vadd.f32 %v10599_v59, %v4205_v15  ;;  %v4292_v5 = vmul.f32 %v10580_v50, %v3829_v56  ;;  %v3831_v46 = vpop.f32.mrb[155].mxu0  ;;  %v12309_v21 = vadd.f32 %v10599_v59, %v4207_v37  ;;  %v4294_v47 = vmul.f32 %v10580_v50, %v3882_v30  ;;  %v3884_v26 = vpop.f32.mrb[155].mxu1 }
 0x29b   : > { %v12313_v51 = vadd.f32 %v10599_v59, %v4206_v24  ;;  %v4293_v34 = vmul.f32 %v10580_v50, %v3831_v46  ;;  %v12317_v20 = vadd.f32 %v10599_v59, %v4208_v16  ;;  %v4295_v15 = vmul.f32 %v10580_v50, %v3884_v26 }
 0x29c   : > { %16488 = vst [vmem:[#allocation307_spill] sm:$0xff] %v12305_v18  ;;  %16489 = vst [vmem:[#allocation308_spill] sm:$0xff] %v12309_v21  ;;  %v12322_v56 = vadd.f32 %v10601_v60, %v4292_v5  ;;  %v12326_v30 = vadd.f32 %v10601_v60, %v4294_v47 }
 0x29d   : > { %16490 = vst [vmem:[#allocation309_spill] sm:$0xff] %v12313_v51  ;;  %16491 = vst [vmem:[#allocation310_spill] sm:$0xff] %v12317_v20  ;;  %v12330_v8 = vadd.f32 %v10601_v60, %v4293_v34  ;;  %v12334_v46 = vadd.f32 %v10601_v60, %v4295_v15 }
 0x29e   : > { %16492 = vst [vmem:[#allocation311_spill] sm:$0xff] %v12322_v56  ;;  %16493 = vst [vmem:[#allocation312_spill] sm:$0xff] %v12326_v30 }
 0x29f   : > { %16494 = vst [vmem:[#allocation313_spill] sm:$0xff] %v12330_v8  ;;  %16495 = vst [vmem:[#allocation314_spill] sm:$0xff] %v12334_v46  ;;  %v3835_v37 = vpop.f32.mrb[156].mxu0  ;;  %v3888_v21 = vpop.f32.mrb[156].mxu1 }
 0x2a0   : > { %v4379_v24 = vmul.f32 %v10571_v49, %v3835_v37  ;;  %v3837_v51 = vpop.f32.mrb[157].mxu0  ;;  %v4381_v34 = vmul.f32 %v10571_v49, %v3888_v21  ;;  %v3890_v18 = vpop.f32.mrb[157].mxu1 }
 0x2a1   : > { %v4380_v16 = vmul.f32 %v10571_v49, %v3837_v51  ;;  %v3839_v15 = vpop.f32.mrb[158].mxu0  ;;  %v4382_v20 = vmul.f32 %v10571_v49, %v3890_v18  ;;  %v3892_v26 = vpop.f32.mrb[158].mxu1 }
 0x2a2   : > { %v12345_v5 = vadd.f32 %v10656_v32, %v4379_v24  ;;  %v4466_v2 = vmul.f32 %v10582_v52, %v3839_v15  ;;  %v3841_v30 = vpop.f32.mrb[159].mxu0  ;;  %v12349_v47 = vadd.f32 %v10656_v32, %v4381_v34  ;;  %v4468_v37 = vmul.f32 %v10582_v52, %v3892_v26  ;;  %v3894_v46 = vpop.f32.mrb[159].mxu1 }
 0x2a3   : > { %v12353_v21 = vadd.f32 %v10656_v32, %v4380_v16  ;;  %v4467_v51 = vmul.f32 %v10582_v52, %v3841_v30  ;;  %v12357_v18 = vadd.f32 %v10656_v32, %v4382_v20  ;;  %v4469_v24 = vmul.f32 %v10582_v52, %v3894_v46 }
 0x2a4   : > { %16496 = vst [vmem:[#allocation315_spill] sm:$0xff] %v12345_v5  ;;  %16497 = vst [vmem:[#allocation316_spill] sm:$0xff] %v12349_v47  ;;  %v12362_v15 = vadd.f32 %v10658_v33, %v4466_v2  ;;  %v12366_v26 = vadd.f32 %v10658_v33, %v4468_v37 }
 0x2a5   : > { %16498 = vst [vmem:[#allocation317_spill] sm:$0xff] %v12353_v21  ;;  %16499 = vst [vmem:[#allocation318_spill] sm:$0xff] %v12357_v18  ;;  %v12370_v56 = vadd.f32 %v10658_v33, %v4467_v51  ;;  %v12374_v30 = vadd.f32 %v10658_v33, %v4469_v24 }
 0x2a6   : > { %16500 = vst [vmem:[#allocation319_spill] sm:$0xff] %v12362_v15  ;;  %16501 = vst [vmem:[#allocation320_spill] sm:$0xff] %v12366_v26 }
 0x2a7   : > { %16502 = vst [vmem:[#allocation321_spill] sm:$0xff] %v12370_v56  ;;  %16503 = vst [vmem:[#allocation322_spill] sm:$0xff] %v12374_v30  ;;  %v3931_v34 = vpop.f32.mrb[160].mxu0  ;;  %v3984_v47 = vpop.f32.mrb[160].mxu1 }
 0x2a8   : > { %v4209_v16 = vmul.f32 %v10569_v48, %v3931_v34  ;;  %v3933_v21 = vpop.f32.mrb[161].mxu0  ;;  %v4211_v51 = vmul.f32 %v10569_v48, %v3984_v47  ;;  %v3986_v5 = vpop.f32.mrb[161].mxu1 }
 0x2a9   : > { %v4210_v20 = vmul.f32 %v10569_v48, %v3933_v21  ;;  %v3935_v24 = vpop.f32.mrb[162].mxu0  ;;  %v4212_v18 = vmul.f32 %v10569_v48, %v3986_v5  ;;  %v3988_v46 = vpop.f32.mrb[162].mxu1 }
 0x2aa   : > { %v12385_v2 = vadd.f32 %v10599_v59, %v4209_v16  ;;  %v4296_v8 = vmul.f32 %v10580_v50, %v3935_v24  ;;  %v3937_v26 = vpop.f32.mrb[163].mxu0  ;;  %v12389_v37 = vadd.f32 %v10599_v59, %v4211_v51  ;;  %v4298_v34 = vmul.f32 %v10580_v50, %v3988_v46  ;;  %v3990_v30 = vpop.f32.mrb[163].mxu1 }
 0x2ab   : > { %v12393_v47 = vadd.f32 %v10599_v59, %v4210_v20  ;;  %v4297_v21 = vmul.f32 %v10580_v50, %v3937_v26  ;;  %v12397_v5 = vadd.f32 %v10599_v59, %v4212_v18  ;;  %v4299_v16 = vmul.f32 %v10580_v50, %v3990_v30 }
 0x2ac   : > { %16504 = vst [vmem:[#allocation323_spill] sm:$0xff] %v12385_v2  ;;  %16505 = vst [vmem:[#allocation324_spill] sm:$0xff] %v12389_v37  ;;  %v12402_v24 = vadd.f32 %v10601_v60, %v4296_v8  ;;  %v12406_v46 = vadd.f32 %v10601_v60, %v4298_v34 }
 0x2ad   : > { %16506 = vst [vmem:[#allocation325_spill] sm:$0xff] %v12393_v47  ;;  %16507 = vst [vmem:[#allocation326_spill] sm:$0xff] %v12397_v5  ;;  %v12410_v15 = vadd.f32 %v10601_v60, %v4297_v21  ;;  %v12414_v26 = vadd.f32 %v10601_v60, %v4299_v16 }
 0x2ae   : > { %16508 = vst [vmem:[#allocation327_spill] sm:$0xff] %v12402_v24  ;;  %16509 = vst [vmem:[#allocation328_spill] sm:$0xff] %v12406_v46 }
 0x2af   : > { %16510 = vst [vmem:[#allocation329_spill] sm:$0xff] %v12410_v15  ;;  %16511 = vst [vmem:[#allocation330_spill] sm:$0xff] %v12414_v26  ;;  %v3941_v51 = vpop.f32.mrb[164].mxu0  ;;  %v3994_v37 = vpop.f32.mrb[164].mxu1 }
 0x2b0   : > { %v4383_v20 = vmul.f32 %v10571_v49, %v3941_v51  ;;  %v3943_v47 = vpop.f32.mrb[165].mxu0  ;;  %v4385_v21 = vmul.f32 %v10571_v49, %v3994_v37  ;;  %v3996_v2 = vpop.f32.mrb[165].mxu1 }
 0x2b1   : > { %v4384_v18 = vmul.f32 %v10571_v49, %v3943_v47  ;;  %v3945_v16 = vpop.f32.mrb[166].mxu0  ;;  %v4386_v5 = vmul.f32 %v10571_v49, %v3996_v2  ;;  %v3998_v30 = vpop.f32.mrb[166].mxu1 }
 0x2b2   : > { %v12425_v8 = vadd.f32 %v10656_v32, %v4383_v20  ;;  %v4470_v56 = vmul.f32 %v10582_v52, %v3945_v16  ;;  %v3947_v46 = vpop.f32.mrb[167].mxu0  ;;  %v12429_v34 = vadd.f32 %v10656_v32, %v4385_v21  ;;  %v4472_v51 = vmul.f32 %v10582_v52, %v3998_v30  ;;  %v4000_v26 = vpop.f32.mrb[167].mxu1 }
 0x2b3   : > { %v12433_v37 = vadd.f32 %v10656_v32, %v4384_v18  ;;  %v4471_v47 = vmul.f32 %v10582_v52, %v3947_v46  ;;  %v12437_v2 = vadd.f32 %v10656_v32, %v4386_v5  ;;  %v4473_v20 = vmul.f32 %v10582_v52, %v4000_v26 }
 0x2b4   : > { %16512 = vst [vmem:[#allocation331_spill] sm:$0xff] %v12425_v8  ;;  %16513 = vst [vmem:[#allocation332_spill] sm:$0xff] %v12429_v34  ;;  %v12442_v16 = vadd.f32 %v10658_v33, %v4470_v56  ;;  %v12446_v30 = vadd.f32 %v10658_v33, %v4472_v51 }
 0x2b5   : > { %16514 = vst [vmem:[#allocation333_spill] sm:$0xff] %v12433_v37  ;;  %16515 = vst [vmem:[#allocation334_spill] sm:$0xff] %v12437_v2  ;;  %v12450_v24 = vadd.f32 %v10658_v33, %v4471_v47  ;;  %v12454_v46 = vadd.f32 %v10658_v33, %v4473_v20 }
 0x2b6   : > { %16516 = vst [vmem:[#allocation335_spill] sm:$0xff] %v12442_v16  ;;  %16517 = vst [vmem:[#allocation336_spill] sm:$0xff] %v12446_v30 }
 0x2b7   : > { %16518 = vst [vmem:[#allocation337_spill] sm:$0xff] %v12450_v24  ;;  %16519 = vst [vmem:[#allocation338_spill] sm:$0xff] %v12454_v46  ;;  %v4037_v51 = vpop.f32.mrb[168].mxu0  ;;  %v9273_v34 = vpop.f32.mrb[168].mxu1 }
 0x2b8   : > { %v4213_v18 = vmul.f32 %v10569_v48, %v4037_v51  ;;  %v4389_v47 = vmul.f32 %v9273_v34, %v10571_v49  ;;  %v4039_v37 = vpop.f32.mrb[169].mxu0  ;;  %v4090_v8 = vpop.f32.mrb[169].mxu1 }
 0x2b9   : > { %v4214_v5 = vmul.f32 %v10569_v48, %v4039_v37  ;;  %v4215_v20 = vmul.f32 %v10569_v48, %v4090_v8  ;;  %v4041_v2 = vpop.f32.mrb[170].mxu0  ;;  %v9274_v26 = vpop.f32.mrb[170].mxu1 }
 0x2ba   : > { %v12465_v56 = vadd.f32 %v10599_v59, %v4213_v18  ;;  %v12468_v15 = vadd.f32 %v10656_v32, %v4389_v47  ;;  %v4300_v21 = vmul.f32 %v10580_v50, %v4041_v2  ;;  %v4476_v51 = vmul.f32 %v9274_v26, %v10582_v52  ;;  %v4043_v46 = vpop.f32.mrb[171].mxu0  ;;  %v4093_v34 = vpop.f32.mrb[171].mxu1 }
 0x2bb   : > { %v12473_v30 = vadd.f32 %v10599_v59, %v4214_v5  ;;  %v12476_v37 = vadd.f32 %v10599_v59, %v4215_v20  ;;  %v4301_v48 = vmul.f32 %v10580_v50, %v4043_v46  ;;  %v4302_v8 = vmul.f32 %v10580_v50, %v4093_v34 }
 0x2bc   : > { %16520 = vst [vmem:[#allocation339_spill] sm:$0xff] %v12465_v56  ;;  %16521 = vst [vmem:[#allocation340_spill] sm:$0xff] %v12468_v15  ;;  %v12483_v2 = vadd.f32 %v10601_v60, %v4300_v21  ;;  %v12486_v26 = vadd.f32 %v10658_v33, %v4476_v51 }
 0x2bd   : > { %16522 = vst [vmem:[#allocation341_spill] sm:$0xff] %v12473_v30  ;;  %16523 = vst [vmem:[#allocation342_spill] sm:$0xff] %v12476_v37  ;;  %v12491_v59 = vadd.f32 %v10601_v60, %v4301_v48  ;;  %v12494_v46 = vadd.f32 %v10601_v60, %v4302_v8 }
 0x2be   : > { %16524 = vst [vmem:[#allocation343_spill] sm:$0xff] %v12483_v2  ;;  %16525 = vst [vmem:[#allocation344_spill] sm:$0xff] %v12486_v26 }
 0x2bf   : > { %16526 = vst [vmem:[#allocation345_spill] sm:$0xff] %v12491_v59  ;;  %16527 = vst [vmem:[#allocation346_spill] sm:$0xff] %v12494_v46  ;;  %v4047_v51 = vpop.f32.mrb[172].mxu0 }
 0x2c0   : > { %v4387_v47 = vmul.f32 %v10571_v49, %v4047_v51  ;;  %v4049_v5 = vpop.f32.mrb[173].mxu0 }
 0x2c1   : > { %v4388_v24 = vmul.f32 %v10571_v49, %v4049_v5  ;;  %v4051_v18 = vpop.f32.mrb[174].mxu0  ;;  %5200 = sbr.rel (%p8915_p12) target bundleno = 1031 (0x407), region = 86  ;;  %v16534_v5 = vmax.f32 (!%p8915_p12), %v10612_v11, 0.0 }
 0x2c2   : > { %v12503_v48 = vadd.f32 %v10656_v32, %v4387_v47  ;;  %v4474_v60 = vmul.f32 %v10582_v52, %v4051_v18  ;;  %v4053_v8 = vpop.f32.mrb[175].mxu0  ;;  %v16538_v18 = vmax.f32 (!%p8915_p12), %v10629_v22, 0.0  ;;  %v16539_v47 = vmax.f32 (!%p8915_p12), %v10646_v27, 0.0 }
 0x2c3   : > { %v12507_v50 = vadd.f32 %v10656_v32, %v4388_v24  ;;  %v4475_v20 = vmul.f32 %v10582_v52, %v4053_v8  ;;  %v16532_v32 = vmax.f32 (!%p8915_p12), %v10669_v58, 0.0  ;;  %v16533_v52 = vmax.f32 (!%p8915_p12), %v10677_v61, 0.0 }
 0x2c4   : > { %16528 = vst [vmem:[#allocation347_spill] sm:$0xff] %v12503_v48  ;;  %v12512_v21 = vadd.f32 %v10658_v33, %v4474_v60  ;;  %v16535_v60 = vmax.f32 (!%p8915_p12), %v10620_v17, 0.0  ;;  %v5293_v34 = vadd.f32 (!%p8915_p12), %v16539_v47, %v16538_v18  ;;  %v16540_v58 = vmax.f32 (!%p8915_p12), %v10672_v54, 0.0 }
 0x2c5   : > { %16529 = vst [vmem:[#allocation348_spill] sm:$0xff] %v12507_v50  ;;  %v12516_v49 = vadd.f32 %v10658_v33, %v4475_v20  ;;  %v5381_v24 = vadd.f32 (!%p8915_p12), %v16533_v52, %v16532_v32  ;;  %v16536_v33 = vmax.f32 (!%p8915_p12), %v10687_v4, 0.0  ;;  %v16537_v20 = vmax.f32 (!%p8915_p12), %v10700_v9, 0.0 }
 0x2c6   : > { %16530 = vst [vmem:[#allocation349_spill] sm:$0xff] %v12512_v21  ;;  %v5205_v8 = vadd.f32 (!%p8915_p12), %v16535_v60, %v16534_v5  ;;  %v16541_v32 = vmax.f32 (!%p8915_p12), %v10615_v13, 0.0  ;;  %v16542_v61 = vmax.f32 (!%p8915_p12), %v10695_v6, 0.0  ;;  %v16543_v5 = vmax.f32 (!%p8915_p12), %v10642_v25, 0.0  ;;  %v16577_v6 = vld [vmem:[#allocation44_spill] sm:$0xff] (!%p8915_p12) }
 0x2c7   : > { %16531 = vst [vmem:[#allocation350_spill] sm:$0xff] %v12516_v49  ;;  %v5469_v51 = vadd.f32 (!%p8915_p12), %v16537_v20, %v16536_v33  ;;  %v5382_v46 = vadd.f32 (!%p8915_p12), %v5381_v24, %v16540_v58  ;;  %v16544_v9 = vmax.f32 (!%p8915_p12), %v10681_v63, 0.0  ;;  %v16545_v20 = vmax.f32 (!%p8915_p12), %v10624_v19, 0.0 }
 0x2c8   : > { %v5206_v52 = vadd.f32 %v5205_v8, %v16541_v32  ;;  %v5294_v60 = vadd.f32 %v5293_v34, %v16543_v5  ;;  %v16546_v47 = vmax.f32 %v10704_v12, 0.0  ;;  %v16547_v58 = vmax.f32 %v10650_v29, 0.0  ;;  %v16575_v12 = vld [vmem:[#allocation41_spill] sm:$0xff] }
 0x2c9   : > { %v5470_v17 = vadd.f32 %v5469_v51, %v16542_v61  ;;  %v5383_v33 = vadd.f32 %v5382_v46, %v16544_v9  ;;  %v16548_v8 = vmax.f32 %v10768_v55, 0.0  ;;  %v16549_v61 = vmax.f32 %v10720_v53, 0.0 }
 0x2ca   : > { %v5207_v4 = vadd.f32 %v5206_v52, %v16545_v20  ;;  %v5295_v24 = vadd.f32 %v5294_v60, %v16547_v58  ;;  %v16550_v34 = vmax.f32 %v10787_v44, 0.0  ;;  %v16551_v9 = vmax.f32 %v10738_v41, 0.0  ;;  %v16573_v44 = vld [vmem:[#allocation49_spill] sm:$0xff] }
 0x2cb   : > { %v5471_v18 = vadd.f32 %v5470_v17, %v16546_v47  ;;  %v5384_v32 = vadd.f32 %v5383_v33, %v16548_v8  ;;  %v16552_v52 = vmax.f32 %v10777_v28, 0.0  ;;  %v16553_v17 = vmax.f32 %v10729_v7, 0.0 }
 0x2cc   : > { %v5208_v51 = vadd.f32 %v5207_v4, %v16549_v61  ;;  %v5296_v46 = vadd.f32 %v5295_v24, %v16551_v9  ;;  %v16554_v60 = vmax.f32 %v10800_v1, 0.0  ;;  %v16555_v33 = vmax.f32 %v10750_v39, 0.0  ;;  %v16569_v1 = vld [vmem:[#allocation45_spill] sm:$0xff] }
 0x2cd   : > { %v5472_v5 = vadd.f32 %v5471_v18, %v16550_v34  ;;  %v5385_v20 = vadd.f32 %v5384_v32, %v16552_v52  ;;  %v16556_v4 = vmax.f32 %v10772_v3, 0.0  ;;  %v16557_v18 = vmax.f32 %v10724_v57, 0.0 }
 0x2ce   : > { %v5209_v47 = vadd.f32 %v5208_v51, %v16553_v17  ;;  %v5297_v8 = vadd.f32 %v5296_v46, %v16555_v33  ;;  %v16558_v24 = vmax.f32 %v10795_v43, 0.0  ;;  %v16559_v32 = vmax.f32 %v10746_v42, 0.0  ;;  %v16567_v43 = vld [vmem:[#allocation39_spill] sm:$0xff] }
 0x2cf   : > { %v5473_v58 = vadd.f32 %v5472_v5, %v16554_v60  ;;  %v5386_v61 = vadd.f32 %v5385_v20, %v16556_v4  ;;  %v16560_v51 = vmax.f32 %v10781_v10, 0.0  ;;  %v16561_v5 = vmax.f32 %v10733_v35, 0.0 }
 0x2d0   : > { %v5210_v34 = vadd.f32 %v5209_v47, %v16557_v18  ;;  %v5298_v52 = vadd.f32 %v5297_v8, %v16559_v32  ;;  %v16562_v46 = vmax.f32 %v10804_v31, 0.0  ;;  %v16563_v20 = vmax.f32 %v10754_v45, 0.0  ;;  %v16571_v31 = vld [vmem:[#allocation37_spill] sm:$0xff] }
 0x2d1   : > { %v5474_v9 = vadd.f32 %v5473_v58, %v16558_v24  ;;  %v5387_v17 = vadd.f32 %v5386_v61, %v16560_v51  ;;  %v16564_v47 = vmax.f32 %v10868_v62, 0.0  ;;  %v16565_v58 = vmax.f32 %v10820_v40, 0.0 }
 0x2d2   : > { %v5211_v60 = vadd.f32 %v5210_v34, %v16561_v5  ;;  %v5299_v4 = vadd.f32 %v5298_v52, %v16563_v20  ;;  %v16566_v8 = vmax.f32 %v10887_v38, 0.0  ;;  %v16568_v61 = vmax.f32 %v16567_v43, 0.0  ;;  %v16579_v38 = vld [vmem:[#allocation36_spill] sm:$0xff] }
 0x2d3   : > { %v5475_v33 = vadd.f32 %v5474_v9, %v16562_v46  ;;  %v5388_v18 = vadd.f32 %v5387_v17, %v16564_v47  ;;  %v16570_v34 = vmax.f32 %v16569_v1, 0.0  ;;  %v16572_v9 = vmax.f32 %v16571_v31, 0.0  ;;  %v16581_v43 = vld [vmem:[#allocation48_spill] sm:$0xff]  ;;  %v16585_v31 = vld [vmem:[#allocation46_spill] sm:$0xff] }
 0x2d4   : > { %v5212_v24 = vadd.f32 %v5211_v60, %v16565_v58  ;;  %v5300_v51 = vadd.f32 %v5299_v4, %v16568_v61  ;;  %v16574_v52 = vmax.f32 %v16573_v44, 0.0  ;;  %v16576_v17 = vmax.f32 %v16575_v12, 0.0  ;;  %v16583_v1 = vld [vmem:[#allocation40_spill] sm:$0xff]  ;;  %v16587_v44 = vld [vmem:[#allocation38_spill] sm:$0xff] }
 0x2d5   : > { %v5476_v32 = vadd.f32 %v5475_v33, %v16566_v8  ;;  %v5389_v5 = vadd.f32 %v5388_v18, %v16570_v34  ;;  %v16578_v60 = vmax.f32 %v16577_v6, 0.0  ;;  %v16580_v33 = vmax.f32 %v16579_v38, 0.0  ;;  %v16589_v12 = vld [vmem:[#allocation50_spill] sm:$0xff]  ;;  %v16593_v38 = vld [vmem:[#allocation59_spill] sm:$0xff] }
 0x2d6   : > { %v5213_v46 = vadd.f32 %v5212_v24, %v16572_v9  ;;  %v5301_v47 = vadd.f32 %v5300_v51, %v16576_v17  ;;  %v16582_v4 = vmax.f32 %v16581_v43, 0.0  ;;  %v16584_v18 = vmax.f32 %v16583_v1, 0.0  ;;  %v16591_v6 = vld [vmem:[#allocation42_spill] sm:$0xff]  ;;  %v16595_v43 = vld [vmem:[#allocation51_spill] sm:$0xff] }
 0x2d7   : > { %v5477_v20 = vadd.f32 %v5476_v32, %v16574_v52  ;;  %v5390_v58 = vadd.f32 %v5389_v5, %v16578_v60  ;;  %v16586_v24 = vmax.f32 %v16585_v31, 0.0  ;;  %v16588_v32 = vmax.f32 %v16587_v44, 0.0  ;;  %v16597_v1 = vld [vmem:[#allocation63_spill] sm:$0xff]  ;;  %v16601_v44 = vld [vmem:[#allocation61_spill] sm:$0xff] }
 0x2d8   : > { %v5214_v8 = vadd.f32 %v5213_v46, %v16580_v33  ;;  %v5302_v34 = vadd.f32 %v5301_v47, %v16584_v18  ;;  %v16590_v51 = vmax.f32 %v16589_v12, 0.0  ;;  %v16592_v5 = vmax.f32 %v16591_v6, 0.0  ;;  %v16599_v31 = vld [vmem:[#allocation55_spill] sm:$0xff]  ;;  %v16603_v12 = vld [vmem:[#allocation53_spill] sm:$0xff] }
 0x2d9   : > { %v5478_v61 = vadd.f32 %v5477_v20, %v16582_v4  ;;  %v5391_v9 = vadd.f32 %v5390_v58, %v16586_v24  ;;  %v16594_v46 = vmax.f32 %v16593_v38, 0.0  ;;  %v16596_v20 = vmax.f32 %v16595_v43, 0.0  ;;  %v16605_v6 = vld [vmem:[#allocation65_spill] sm:$0xff]  ;;  %v16609_v43 = vld [vmem:[#allocation60_spill] sm:$0xff] }
 0x2da   : > { %v5215_v52 = vadd.f32 %v5214_v8, %v16588_v32  ;;  %v5303_v60 = vadd.f32 %v5302_v34, %v16592_v5  ;;  %v16598_v47 = vmax.f32 %v16597_v1, 0.0  ;;  %v16600_v58 = vmax.f32 %v16599_v31, 0.0  ;;  %v16607_v38 = vld [vmem:[#allocation57_spill] sm:$0xff]  ;;  %v16611_v1 = vld [vmem:[#allocation52_spill] sm:$0xff] }
 0x2db   : > { %v5479_v17 = vadd.f32 %v5478_v61, %v16590_v51  ;;  %v5392_v33 = vadd.f32 %v5391_v9, %v16594_v46  ;;  %v16602_v8 = vmax.f32 %v16601_v44, 0.0  ;;  %v16604_v61 = vmax.f32 %v16603_v12, 0.0  ;;  %v16613_v31 = vld [vmem:[#allocation64_spill] sm:$0xff]  ;;  %v16617_v12 = vld [vmem:[#allocation62_spill] sm:$0xff] }
 0x2dc   : > { %v5216_v4 = vadd.f32 %v5215_v52, %v16596_v20  ;;  %v5304_v24 = vadd.f32 %v5303_v60, %v16600_v58  ;;  %v16606_v34 = vmax.f32 %v16605_v6, 0.0  ;;  %v16608_v9 = vmax.f32 %v16607_v38, 0.0  ;;  %v16615_v44 = vld [vmem:[#allocation56_spill] sm:$0xff]  ;;  %v16619_v6 = vld [vmem:[#allocation54_spill] sm:$0xff] }
 0x2dd   : > { %v5480_v18 = vadd.f32 %v5479_v17, %v16598_v47  ;;  %v5393_v32 = vadd.f32 %v5392_v33, %v16602_v8  ;;  %v16610_v52 = vmax.f32 %v16609_v43, 0.0  ;;  %v16612_v17 = vmax.f32 %v16611_v1, 0.0  ;;  %v16621_v38 = vld [vmem:[#allocation66_spill] sm:$0xff]  ;;  %v16625_v1 = vld [vmem:[#allocation75_spill] sm:$0xff] }
 0x2de   : > { %v5217_v51 = vadd.f32 %v5216_v4, %v16604_v61  ;;  %v5305_v46 = vadd.f32 %v5304_v24, %v16608_v9  ;;  %v16614_v60 = vmax.f32 %v16613_v31, 0.0  ;;  %v16616_v33 = vmax.f32 %v16615_v44, 0.0  ;;  %v16623_v43 = vld [vmem:[#allocation58_spill] sm:$0xff]  ;;  %v16627_v31 = vld [vmem:[#allocation67_spill] sm:$0xff] }
 0x2df   : > { %v5481_v5 = vadd.f32 %v5480_v18, %v16606_v34  ;;  %v5394_v20 = vadd.f32 %v5393_v32, %v16610_v52  ;;  %v16618_v4 = vmax.f32 %v16617_v12, 0.0  ;;  %v16620_v18 = vmax.f32 %v16619_v6, 0.0  ;;  %v16629_v44 = vld [vmem:[#allocation79_spill] sm:$0xff]  ;;  %v16633_v6 = vld [vmem:[#allocation77_spill] sm:$0xff] }
 0x2e0   : > { %v5218_v47 = vadd.f32 %v5217_v51, %v16612_v17  ;;  %v5306_v8 = vadd.f32 %v5305_v46, %v16616_v33  ;;  %v16622_v24 = vmax.f32 %v16621_v38, 0.0  ;;  %v16624_v32 = vmax.f32 %v16623_v43, 0.0  ;;  %v16631_v12 = vld [vmem:[#allocation71_spill] sm:$0xff]  ;;  %v16635_v38 = vld [vmem:[#allocation69_spill] sm:$0xff] }
 0x2e1   : > { %v5482_v58 = vadd.f32 %v5481_v5, %v16614_v60  ;;  %v5395_v61 = vadd.f32 %v5394_v20, %v16618_v4  ;;  %v16626_v51 = vmax.f32 %v16625_v1, 0.0  ;;  %v16628_v5 = vmax.f32 %v16627_v31, 0.0  ;;  %v16637_v43 = vld [vmem:[#allocation81_spill] sm:$0xff]  ;;  %v16641_v31 = vld [vmem:[#allocation76_spill] sm:$0xff] }
 0x2e2   : > { %v5219_v34 = vadd.f32 %v5218_v47, %v16620_v18  ;;  %v5307_v52 = vadd.f32 %v5306_v8, %v16624_v32  ;;  %v16630_v46 = vmax.f32 %v16629_v44, 0.0  ;;  %v16632_v20 = vmax.f32 %v16631_v12, 0.0  ;;  %v16639_v1 = vld [vmem:[#allocation73_spill] sm:$0xff]  ;;  %v16643_v44 = vld [vmem:[#allocation68_spill] sm:$0xff] }
 0x2e3   : > { %v5483_v9 = vadd.f32 %v5482_v58, %v16622_v24  ;;  %v5396_v17 = vadd.f32 %v5395_v61, %v16626_v51  ;;  %v16634_v47 = vmax.f32 %v16633_v6, 0.0  ;;  %v16636_v58 = vmax.f32 %v16635_v38, 0.0  ;;  %v16645_v12 = vld [vmem:[#allocation80_spill] sm:$0xff]  ;;  %v16649_v38 = vld [vmem:[#allocation78_spill] sm:$0xff] }
 0x2e4   : > { %v5220_v60 = vadd.f32 %v5219_v34, %v16628_v5  ;;  %v5308_v4 = vadd.f32 %v5307_v52, %v16632_v20  ;;  %v16638_v8 = vmax.f32 %v16637_v43, 0.0  ;;  %v16640_v61 = vmax.f32 %v16639_v1, 0.0  ;;  %v16647_v6 = vld [vmem:[#allocation72_spill] sm:$0xff]  ;;  %v16651_v43 = vld [vmem:[#allocation70_spill] sm:$0xff] }
 0x2e5   : > { %v5484_v33 = vadd.f32 %v5483_v9, %v16630_v46  ;;  %v5397_v18 = vadd.f32 %v5396_v17, %v16634_v47  ;;  %v16642_v34 = vmax.f32 %v16641_v31, 0.0  ;;  %v16644_v9 = vmax.f32 %v16643_v44, 0.0  ;;  %v16653_v1 = vld [vmem:[#allocation82_spill] sm:$0xff]  ;;  %v16657_v44 = vld [vmem:[#allocation91_spill] sm:$0xff] }
 0x2e6   : > { %v5221_v24 = vadd.f32 %v5220_v60, %v16636_v58  ;;  %v5309_v51 = vadd.f32 %v5308_v4, %v16640_v61  ;;  %v16646_v52 = vmax.f32 %v16645_v12, 0.0  ;;  %v16648_v17 = vmax.f32 %v16647_v6, 0.0  ;;  %v16655_v31 = vld [vmem:[#allocation74_spill] sm:$0xff]  ;;  %v16659_v12 = vld [vmem:[#allocation83_spill] sm:$0xff] }
 0x2e7   : > { %v5485_v32 = vadd.f32 %v5484_v33, %v16638_v8  ;;  %v5398_v5 = vadd.f32 %v5397_v18, %v16642_v34  ;;  %v16650_v60 = vmax.f32 %v16649_v38, 0.0  ;;  %v16652_v33 = vmax.f32 %v16651_v43, 0.0  ;;  %v16661_v6 = vld [vmem:[#allocation95_spill] sm:$0xff]  ;;  %v16665_v43 = vld [vmem:[#allocation93_spill] sm:$0xff] }
 0x2e8   : > { %v5222_v46 = vadd.f32 %v5221_v24, %v16644_v9  ;;  %v5310_v47 = vadd.f32 %v5309_v51, %v16648_v17  ;;  %v16654_v4 = vmax.f32 %v16653_v1, 0.0  ;;  %v16656_v18 = vmax.f32 %v16655_v31, 0.0  ;;  %v16663_v38 = vld [vmem:[#allocation87_spill] sm:$0xff]  ;;  %v16667_v1 = vld [vmem:[#allocation85_spill] sm:$0xff] }
 0x2e9   : > { %v5486_v20 = vadd.f32 %v5485_v32, %v16646_v52  ;;  %v5399_v58 = vadd.f32 %v5398_v5, %v16650_v60  ;;  %v16658_v24 = vmax.f32 %v16657_v44, 0.0  ;;  %v16660_v32 = vmax.f32 %v16659_v12, 0.0  ;;  %v16669_v31 = vld [vmem:[#allocation97_spill] sm:$0xff]  ;;  %v16673_v12 = vld [vmem:[#allocation92_spill] sm:$0xff] }
 0x2ea   : > { %v5223_v8 = vadd.f32 %v5222_v46, %v16652_v33  ;;  %v5311_v34 = vadd.f32 %v5310_v47, %v16656_v18  ;;  %v16662_v51 = vmax.f32 %v16661_v6, 0.0  ;;  %v16664_v5 = vmax.f32 %v16663_v38, 0.0  ;;  %v16671_v44 = vld [vmem:[#allocation89_spill] sm:$0xff]  ;;  %v16675_v6 = vld [vmem:[#allocation84_spill] sm:$0xff] }
 0x2eb   : > { %v5487_v61 = vadd.f32 %v5486_v20, %v16654_v4  ;;  %v5400_v9 = vadd.f32 %v5399_v58, %v16658_v24  ;;  %v16666_v46 = vmax.f32 %v16665_v43, 0.0  ;;  %v16668_v20 = vmax.f32 %v16667_v1, 0.0  ;;  %v16677_v38 = vld [vmem:[#allocation96_spill] sm:$0xff]  ;;  %v16681_v1 = vld [vmem:[#allocation94_spill] sm:$0xff] }
 0x2ec   : > { %v5224_v52 = vadd.f32 %v5223_v8, %v16660_v32  ;;  %v5312_v60 = vadd.f32 %v5311_v34, %v16664_v5  ;;  %v16670_v47 = vmax.f32 %v16669_v31, 0.0  ;;  %v16672_v58 = vmax.f32 %v16671_v44, 0.0  ;;  %v16679_v43 = vld [vmem:[#allocation88_spill] sm:$0xff]  ;;  %v16683_v31 = vld [vmem:[#allocation86_spill] sm:$0xff] }
 0x2ed   : > { %v5488_v17 = vadd.f32 %v5487_v61, %v16662_v51  ;;  %v5401_v33 = vadd.f32 %v5400_v9, %v16666_v46  ;;  %v16674_v8 = vmax.f32 %v16673_v12, 0.0  ;;  %v16676_v61 = vmax.f32 %v16675_v6, 0.0  ;;  %v16685_v44 = vld [vmem:[#allocation98_spill] sm:$0xff]  ;;  %v16689_v6 = vld [vmem:[#allocation107_spill] sm:$0xff] }
 0x2ee   : > { %v5225_v4 = vadd.f32 %v5224_v52, %v16668_v20  ;;  %v5313_v24 = vadd.f32 %v5312_v60, %v16672_v58  ;;  %v16678_v34 = vmax.f32 %v16677_v38, 0.0  ;;  %v16680_v9 = vmax.f32 %v16679_v43, 0.0  ;;  %v16687_v12 = vld [vmem:[#allocation90_spill] sm:$0xff]  ;;  %v16691_v38 = vld [vmem:[#allocation99_spill] sm:$0xff] }
 0x2ef   : > { %v5489_v18 = vadd.f32 %v5488_v17, %v16670_v47  ;;  %v5402_v32 = vadd.f32 %v5401_v33, %v16674_v8  ;;  %v16682_v52 = vmax.f32 %v16681_v1, 0.0  ;;  %v16684_v17 = vmax.f32 %v16683_v31, 0.0 }
 0x2f0   : > { %v5226_v51 = vadd.f32 %v5225_v4, %v16676_v61  ;;  %v5314_v46 = vadd.f32 %v5313_v24, %v16680_v9  ;;  %v16686_v60 = vmax.f32 %v16685_v44, 0.0  ;;  %v16688_v33 = vmax.f32 %v16687_v12, 0.0  ;;  %v16694_v9 = vld [vmem:[#allocation103_spill] sm:$0xff] }
 0x2f1   : > { %v5490_v5 = vadd.f32 %v5489_v18, %v16678_v34  ;;  %v5403_v20 = vadd.f32 %v5402_v32, %v16682_v52  ;;  %v16690_v4 = vmax.f32 %v16689_v6, 0.0  ;;  %v16692_v18 = vmax.f32 %v16691_v38, 0.0  ;;  %v16696_v52 = vld [vmem:[#allocation109_spill] sm:$0xff] }
 0x2f2   : > { %v5227_v47 = vadd.f32 %v5226_v51, %v16684_v17  ;;  %v5315_v8 = vadd.f32 %v5314_v46, %v16688_v33  ;;  %v16693_v24 = vmax.f32 %v11299_v14, 0.0  ;;  %v16695_v32 = vmax.f32 %v16694_v9, 0.0  ;;  %v16698_v17 = vld [vmem:[#allocation101_spill] sm:$0xff]  ;;  %v16708_v9 = vld [vmem:[#allocation112_spill] sm:$0xff] }
 0x2f3   : > { %v5491_v58 = vadd.f32 %v5490_v5, %v16686_v60  ;;  %v5404_v61 = vadd.f32 %v5403_v20, %v16690_v4  ;;  %v16697_v51 = vmax.f32 %v16696_v52, 0.0  ;;  %v16699_v5 = vmax.f32 %v16698_v17, 0.0  ;;  %v16700_v60 = vld [vmem:[#allocation113_spill] sm:$0xff]  ;;  %v16704_v4 = vld [vmem:[#allocation108_spill] sm:$0xff]  ;;  %v16712_v17 = vld [vmem:[#allocation110_spill] sm:$0xff] }
 0x2f4   : > { %v5228_v34 = vadd.f32 %v5227_v47, %v16692_v18  ;;  %v5316_v1 = vadd.f32 %v5315_v8, %v16695_v32  ;;  %v16701_v46 = vmax.f32 %v16700_v60, 0.0  ;;  %v16702_v33 = vld [vmem:[#allocation105_spill] sm:$0xff]  ;;  %v16705_v47 = vmax.f32 %v16704_v4, 0.0  ;;  %v16706_v18 = vld [vmem:[#allocation100_spill] sm:$0xff]  ;;  %v16714_v60 = vld [vmem:[#allocation102_spill] sm:$0xff] }
 0x2f5   : > { %v5492_v43 = vadd.f32 %v5491_v58, %v16693_v24  ;;  %v5405_v31 = vadd.f32 %v5404_v61, %v16697_v51  ;;  %v16703_v20 = vmax.f32 %v16702_v33, 0.0  ;;  %v16707_v58 = vmax.f32 %v16706_v18, 0.0  ;;  %v16710_v52 = vld [vmem:[#allocation104_spill] sm:$0xff]  ;;  %v16716_v33 = vld [vmem:[#allocation114_spill] sm:$0xff] }
 0x2f6   : > { %v5229_v44 = vadd.f32 %v5228_v34, %v16699_v5  ;;  %v16709_v8 = vmax.f32 %v16708_v9, 0.0  ;;  %v16711_v61 = vmax.f32 %v16710_v52, 0.0  ;;  %v16713_v34 = vmax.f32 %v16712_v17, 0.0  ;;  %v16718_v4 = vld [vmem:[#allocation106_spill] sm:$0xff] }
 0x2f7   : > { %v5493_v12 = vadd.f32 %v5492_v43, %v16701_v46  ;;  %v5317_v6 = vadd.f32 %v5316_v1, %v16703_v20  ;;  %v5406_v38 = vadd.f32 %v5405_v31, %v16705_v47  ;;  %v16715_v43 = vmax.f32 %v16714_v60, 0.0 }
 0x2f8   : > { %v5230_v24 = vadd.f32 %v5229_v44, %v16707_v58  ;;  %v16717_v1 = vmax.f32 %v16716_v33, 0.0  ;;  %v16719_v31 = vmax.f32 %v16718_v4, 0.0  ;;  %v16720_v44 = vmax.f32 %v11378_v0, 0.0  ;;  %v16721_v58 = vld [vmem:[#allocation115_spill] sm:$0xff] }
 0x2f9   : > { %v5494_v32 = vadd.f32 %v5493_v12, %v16709_v8  ;;  %v5318_v51 = vadd.f32 %v5317_v6, %v16711_v61  ;;  %v5407_v5 = vadd.f32 %v5406_v38, %v16713_v34  ;;  %v16722_v12 = vmax.f32 %v16721_v58, 0.0  ;;  %v16725_v61 = vld [vmem:[#allocation125_spill] sm:$0xff]  ;;  %v16735_v58 = vld [vmem:[#allocation116_spill] sm:$0xff] }
 0x2fa   : > { %v5231_v46 = vadd.f32 %v5230_v24, %v16715_v43  ;;  %v16723_v6 = vmax.f32 %v11395_v36, 0.0  ;;  %v16724_v38 = vmax.f32 %v11348_v23, 0.0  ;;  %v16726_v24 = vmax.f32 %v16725_v61, 0.0  ;;  %v16727_v34 = vld [vmem:[#allocation117_spill] sm:$0xff]  ;;  %v16739_v61 = vld [vmem:[#allocation120_spill] sm:$0xff] }
 0x2fb   : > { %v5495_v20 = vadd.f32 %v5494_v32, %v16717_v1  ;;  %v5319_v47 = vadd.f32 %v5318_v51, %v16719_v31  ;;  %v5408_v18 = vadd.f32 %v5407_v5, %v16720_v44  ;;  %v16728_v32 = vmax.f32 %v16727_v34, 0.0  ;;  %v16729_v43 = vld [vmem:[#allocation129_spill] sm:$0xff]  ;;  %v16733_v31 = vld [vmem:[#allocation124_spill] sm:$0xff]  ;;  %v16741_v34 = vld [vmem:[#allocation126_spill] sm:$0xff] }
 0x2fc   : > { %v5232_v9 = vadd.f32 %v5231_v46, %v16722_v12  ;;  %v16730_v51 = vmax.f32 %v16729_v43, 0.0  ;;  %v16731_v1 = vld [vmem:[#allocation121_spill] sm:$0xff]  ;;  %v16734_v46 = vmax.f32 %v16733_v31, 0.0  ;;  %v16743_v43 = vld [vmem:[#allocation118_spill] sm:$0xff] }
 0x2fd   : > { %v5496_v8 = vadd.f32 %v5495_v20, %v16723_v6  ;;  %v5320_v52 = vadd.f32 %v5319_v47, %v16724_v38  ;;  %v5409_v17 = vadd.f32 %v5408_v18, %v16726_v24  ;;  %v16732_v5 = vmax.f32 %v16731_v1, 0.0  ;;  %v16737_v6 = vld [vmem:[#allocation128_spill] sm:$0xff]  ;;  %v16745_v1 = vld [vmem:[#allocation130_spill] sm:$0xff] }
 0x2fe   : > { %v5233_v60 = vadd.f32 %v5232_v9, %v16728_v32  ;;  %v16736_v20 = vmax.f32 %v16735_v58, 0.0  ;;  %v16738_v47 = vmax.f32 %v16737_v6, 0.0  ;;  %v16740_v18 = vmax.f32 %v16739_v61, 0.0  ;;  %v16747_v31 = vld [vmem:[#allocation122_spill] sm:$0xff]  ;;  %v16749_v58 = vld [vmem:[#allocation139_spill] sm:$0xff] }
 0x2ff   : > { %v5497_v33 = vadd.f32 %v5496_v8, %v16730_v51  ;;  %v5321_v4 = vadd.f32 %v5320_v52, %v16732_v5  ;;  %v5410_v44 = vadd.f32 %v5409_v17, %v16734_v46  ;;  %v16742_v9 = vmax.f32 %v16741_v34, 0.0  ;;  %v16751_v6 = vld [vmem:[#allocation131_spill] sm:$0xff] }
 0x300   : > { %v5234_v12 = vadd.f32 %v5233_v60, %v16736_v20  ;;  %v16744_v8 = vmax.f32 %v16743_v43, 0.0  ;;  %v16746_v52 = vmax.f32 %v16745_v1, 0.0  ;;  %v16748_v17 = vmax.f32 %v16747_v31, 0.0  ;;  %v16753_v61 = vld [vmem:[#allocation143_spill] sm:$0xff]  ;;  %v16757_v43 = vld [vmem:[#allocation141_spill] sm:$0xff] }
 0x301   : > { %v5498_v38 = vadd.f32 %v5497_v33, %v16738_v47  ;;  %v5322_v24 = vadd.f32 %v5321_v4, %v16740_v18  ;;  %v5411_v32 = vadd.f32 %v5410_v44, %v16742_v9  ;;  %v16750_v60 = vmax.f32 %v16749_v58, 0.0  ;;  %v16755_v34 = vld [vmem:[#allocation135_spill] sm:$0xff]  ;;  %v16759_v1 = vld [vmem:[#allocation133_spill] sm:$0xff] }
 0x302   : > { %v5235_v51 = vadd.f32 %v5234_v12, %v16744_v8  ;;  %v16752_v33 = vmax.f32 %v16751_v6, 0.0  ;;  %v16754_v4 = vmax.f32 %v16753_v61, 0.0  ;;  %v16756_v44 = vmax.f32 %v16755_v34, 0.0  ;;  %v16761_v31 = vld [vmem:[#allocation145_spill] sm:$0xff]  ;;  %v16765_v6 = vld [vmem:[#allocation140_spill] sm:$0xff] }
 0x303   : > { %v5499_v5 = vadd.f32 %v5498_v38, %v16746_v52  ;;  %v5323_v46 = vadd.f32 %v5322_v24, %v16748_v17  ;;  %v5412_v20 = vadd.f32 %v5411_v32, %v16750_v60  ;;  %v16758_v12 = vmax.f32 %v16757_v43, 0.0  ;;  %v16763_v58 = vld [vmem:[#allocation137_spill] sm:$0xff]  ;;  %v16767_v61 = vld [vmem:[#allocation132_spill] sm:$0xff] }
 0x304   : > { %v5236_v47 = vadd.f32 %v5235_v51, %v16752_v33  ;;  %v16760_v38 = vmax.f32 %v16759_v1, 0.0  ;;  %v16762_v24 = vmax.f32 %v16761_v31, 0.0  ;;  %v16764_v32 = vmax.f32 %v16763_v58, 0.0  ;;  %v16769_v34 = vld [vmem:[#allocation144_spill] sm:$0xff]  ;;  %v16773_v1 = vld [vmem:[#allocation142_spill] sm:$0xff] }
 0x305   : > { %v5500_v18 = vadd.f32 %v5499_v5, %v16754_v4  ;;  %v5324_v9 = vadd.f32 %v5323_v46, %v16756_v44  ;;  %v5413_v8 = vadd.f32 %v5412_v20, %v16758_v12  ;;  %v16766_v51 = vmax.f32 %v16765_v6, 0.0  ;;  %v16771_v43 = vld [vmem:[#allocation136_spill] sm:$0xff]  ;;  %v16775_v31 = vld [vmem:[#allocation134_spill] sm:$0xff] }
 0x306   : > { %v5237_v52 = vadd.f32 %v5236_v47, %v16760_v38  ;;  %v16768_v5 = vmax.f32 %v16767_v61, 0.0  ;;  %v16770_v46 = vmax.f32 %v16769_v34, 0.0  ;;  %v16772_v20 = vmax.f32 %v16771_v43, 0.0  ;;  %v16777_v58 = vld [vmem:[#allocation146_spill] sm:$0xff]  ;;  %v16781_v61 = vld [vmem:[#allocation155_spill] sm:$0xff] }
 0x307   : > { %v5501_v17 = vadd.f32 %v5500_v18, %v16762_v24  ;;  %v5325_v60 = vadd.f32 %v5324_v9, %v16764_v32  ;;  %v5414_v33 = vadd.f32 %v5413_v8, %v16766_v51  ;;  %v16774_v47 = vmax.f32 %v16773_v1, 0.0  ;;  %v16779_v6 = vld [vmem:[#allocation138_spill] sm:$0xff]  ;;  %v16783_v34 = vld [vmem:[#allocation147_spill] sm:$0xff] }
 0x308   : > { %v5238_v4 = vadd.f32 %v5237_v52, %v16768_v5  ;;  %v16776_v18 = vmax.f32 %v16775_v31, 0.0  ;;  %v16778_v9 = vmax.f32 %v16777_v58, 0.0  ;;  %v16780_v8 = vmax.f32 %v16779_v6, 0.0  ;;  %v16785_v43 = vld [vmem:[#allocation159_spill] sm:$0xff]  ;;  %v16789_v31 = vld [vmem:[#allocation157_spill] sm:$0xff] }
 0x309   : > { %v5502_v44 = vadd.f32 %v5501_v17, %v16770_v46  ;;  %v5326_v12 = vadd.f32 %v5325_v60, %v16772_v20  ;;  %v5415_v38 = vadd.f32 %v5414_v33, %v16774_v47  ;;  %v16782_v52 = vmax.f32 %v16781_v61, 0.0  ;;  %v16787_v1 = vld [vmem:[#allocation151_spill] sm:$0xff]  ;;  %v16791_v58 = vld [vmem:[#allocation149_spill] sm:$0xff] }
 0x30a   : > { %v5239_v24 = vadd.f32 %v5238_v4, %v16776_v18  ;;  %v16784_v17 = vmax.f32 %v16783_v34, 0.0  ;;  %v16786_v60 = vmax.f32 %v16785_v43, 0.0  ;;  %v16788_v33 = vmax.f32 %v16787_v1, 0.0  ;;  %v16793_v6 = vld [vmem:[#allocation161_spill] sm:$0xff]  ;;  %v16797_v34 = vld [vmem:[#allocation156_spill] sm:$0xff] }
 0x30b   : > { %v5503_v32 = vadd.f32 %v5502_v44, %v16778_v9  ;;  %v5327_v51 = vadd.f32 %v5326_v12, %v16780_v8  ;;  %v5416_v5 = vadd.f32 %v5415_v38, %v16782_v52  ;;  %v16790_v4 = vmax.f32 %v16789_v31, 0.0  ;;  %v16795_v61 = vld [vmem:[#allocation153_spill] sm:$0xff]  ;;  %v16799_v43 = vld [vmem:[#allocation148_spill] sm:$0xff] }
 0x30c   : > { %v5240_v46 = vadd.f32 %v5239_v24, %v16784_v17  ;;  %v16792_v44 = vmax.f32 %v16791_v58, 0.0  ;;  %v16794_v12 = vmax.f32 %v16793_v6, 0.0  ;;  %v16796_v38 = vmax.f32 %v16795_v61, 0.0  ;;  %v16801_v1 = vld [vmem:[#allocation160_spill] sm:$0xff]  ;;  %v16805_v58 = vld [vmem:[#allocation158_spill] sm:$0xff] }
 0x30d   : > { %v5504_v20 = vadd.f32 %v5503_v32, %v16786_v60  ;;  %v5328_v47 = vadd.f32 %v5327_v51, %v16788_v33  ;;  %v5417_v18 = vadd.f32 %v5416_v5, %v16790_v4  ;;  %v16798_v24 = vmax.f32 %v16797_v34, 0.0  ;;  %v16803_v31 = vld [vmem:[#allocation152_spill] sm:$0xff]  ;;  %v16807_v6 = vld [vmem:[#allocation150_spill] sm:$0xff] }
 0x30e   : > { %v5241_v9 = vadd.f32 %v5240_v46, %v16792_v44  ;;  %v16800_v32 = vmax.f32 %v16799_v43, 0.0  ;;  %v16802_v51 = vmax.f32 %v16801_v1, 0.0  ;;  %v16804_v5 = vmax.f32 %v16803_v31, 0.0  ;;  %v16809_v61 = vld [vmem:[#allocation162_spill] sm:$0xff]  ;;  %v16813_v43 = vld [vmem:[#allocation171_spill] sm:$0xff] }
 0x30f   : > { %v5505_v8 = vadd.f32 %v5504_v20, %v16794_v12  ;;  %v5329_v52 = vadd.f32 %v5328_v47, %v16796_v38  ;;  %v5418_v17 = vadd.f32 %v5417_v18, %v16798_v24  ;;  %v16806_v46 = vmax.f32 %v16805_v58, 0.0  ;;  %v16811_v34 = vld [vmem:[#allocation154_spill] sm:$0xff]  ;;  %v16815_v1 = vld [vmem:[#allocation163_spill] sm:$0xff] }
 0x310   : > { %v5242_v60 = vadd.f32 %v5241_v9, %v16800_v32  ;;  %v16808_v20 = vmax.f32 %v16807_v6, 0.0  ;;  %v16810_v47 = vmax.f32 %v16809_v61, 0.0  ;;  %v16812_v18 = vmax.f32 %v16811_v34, 0.0  ;;  %v16817_v31 = vld [vmem:[#allocation175_spill] sm:$0xff]  ;;  %v16821_v6 = vld [vmem:[#allocation173_spill] sm:$0xff] }
 0x311   : > { %v5506_v33 = vadd.f32 %v5505_v8, %v16802_v51  ;;  %v5330_v4 = vadd.f32 %v5329_v52, %v16804_v5  ;;  %v5419_v44 = vadd.f32 %v5418_v17, %v16806_v46  ;;  %v16814_v9 = vmax.f32 %v16813_v43, 0.0  ;;  %v16819_v58 = vld [vmem:[#allocation167_spill] sm:$0xff]  ;;  %v16823_v61 = vld [vmem:[#allocation165_spill] sm:$0xff] }
 0x312   : > { %v5243_v12 = vadd.f32 %v5242_v60, %v16808_v20  ;;  %v16816_v8 = vmax.f32 %v16815_v1, 0.0  ;;  %v16818_v52 = vmax.f32 %v16817_v31, 0.0  ;;  %v16820_v17 = vmax.f32 %v16819_v58, 0.0  ;;  %v16825_v34 = vld [vmem:[#allocation177_spill] sm:$0xff]  ;;  %v16829_v1 = vld [vmem:[#allocation172_spill] sm:$0xff] }
 0x313   : > { %v5507_v38 = vadd.f32 %v5506_v33, %v16810_v47  ;;  %v5331_v24 = vadd.f32 %v5330_v4, %v16812_v18  ;;  %v5420_v32 = vadd.f32 %v5419_v44, %v16814_v9  ;;  %v16822_v60 = vmax.f32 %v16821_v6, 0.0  ;;  %v16827_v43 = vld [vmem:[#allocation169_spill] sm:$0xff]  ;;  %v16831_v31 = vld [vmem:[#allocation164_spill] sm:$0xff] }
 0x314   : > { %v5244_v51 = vadd.f32 %v5243_v12, %v16816_v8  ;;  %v16824_v33 = vmax.f32 %v16823_v61, 0.0  ;;  %v16826_v4 = vmax.f32 %v16825_v34, 0.0  ;;  %v16828_v44 = vmax.f32 %v16827_v43, 0.0  ;;  %v16833_v58 = vld [vmem:[#allocation176_spill] sm:$0xff]  ;;  %v16837_v61 = vld [vmem:[#allocation174_spill] sm:$0xff] }
 0x315   : > { %v5508_v5 = vadd.f32 %v5507_v38, %v16818_v52  ;;  %v5332_v46 = vadd.f32 %v5331_v24, %v16820_v17  ;;  %v5421_v20 = vadd.f32 %v5420_v32, %v16822_v60  ;;  %v16830_v12 = vmax.f32 %v16829_v1, 0.0  ;;  %v16835_v6 = vld [vmem:[#allocation168_spill] sm:$0xff]  ;;  %v16839_v34 = vld [vmem:[#allocation166_spill] sm:$0xff] }
 0x316   : > { %v5245_v47 = vadd.f32 %v5244_v51, %v16824_v33  ;;  %v16832_v38 = vmax.f32 %v16831_v31, 0.0  ;;  %v16834_v24 = vmax.f32 %v16833_v58, 0.0  ;;  %v16836_v32 = vmax.f32 %v16835_v6, 0.0  ;;  %v16841_v43 = vld [vmem:[#allocation178_spill] sm:$0xff]  ;;  %v16845_v31 = vld [vmem:[#allocation187_spill] sm:$0xff] }
 0x317   : > { %v5509_v18 = vadd.f32 %v5508_v5, %v16826_v4  ;;  %v5333_v9 = vadd.f32 %v5332_v46, %v16828_v44  ;;  %v5422_v8 = vadd.f32 %v5421_v20, %v16830_v12  ;;  %v16838_v51 = vmax.f32 %v16837_v61, 0.0  ;;  %v16843_v1 = vld [vmem:[#allocation170_spill] sm:$0xff]  ;;  %v16847_v58 = vld [vmem:[#allocation179_spill] sm:$0xff] }
 0x318   : > { %v5246_v52 = vadd.f32 %v5245_v47, %v16832_v38  ;;  %v16840_v5 = vmax.f32 %v16839_v34, 0.0  ;;  %v16842_v46 = vmax.f32 %v16841_v43, 0.0  ;;  %v16844_v20 = vmax.f32 %v16843_v1, 0.0  ;;  %v16849_v6 = vld [vmem:[#allocation191_spill] sm:$0xff]  ;;  %v16853_v34 = vld [vmem:[#allocation189_spill] sm:$0xff] }
 0x319   : > { %v5510_v17 = vadd.f32 %v5509_v18, %v16834_v24  ;;  %v5334_v60 = vadd.f32 %v5333_v9, %v16836_v32  ;;  %v5423_v33 = vadd.f32 %v5422_v8, %v16838_v51  ;;  %v16846_v47 = vmax.f32 %v16845_v31, 0.0  ;;  %v16851_v61 = vld [vmem:[#allocation183_spill] sm:$0xff]  ;;  %v16855_v43 = vld [vmem:[#allocation181_spill] sm:$0xff] }
 0x31a   : > { %v5247_v4 = vadd.f32 %v5246_v52, %v16840_v5  ;;  %v16848_v18 = vmax.f32 %v16847_v58, 0.0  ;;  %v16850_v9 = vmax.f32 %v16849_v6, 0.0  ;;  %v16852_v8 = vmax.f32 %v16851_v61, 0.0  ;;  %v16857_v1 = vld [vmem:[#allocation193_spill] sm:$0xff]  ;;  %v16861_v58 = vld [vmem:[#allocation188_spill] sm:$0xff] }
 0x31b   : > { %v5511_v44 = vadd.f32 %v5510_v17, %v16842_v46  ;;  %v5335_v12 = vadd.f32 %v5334_v60, %v16844_v20  ;;  %v5424_v38 = vadd.f32 %v5423_v33, %v16846_v47  ;;  %v16854_v52 = vmax.f32 %v16853_v34, 0.0  ;;  %v16859_v31 = vld [vmem:[#allocation185_spill] sm:$0xff]  ;;  %v16863_v6 = vld [vmem:[#allocation180_spill] sm:$0xff] }
 0x31c   : > { %v5248_v24 = vadd.f32 %v5247_v4, %v16848_v18  ;;  %v16856_v17 = vmax.f32 %v16855_v43, 0.0  ;;  %v16858_v60 = vmax.f32 %v16857_v1, 0.0  ;;  %v16860_v33 = vmax.f32 %v16859_v31, 0.0  ;;  %v16865_v61 = vld [vmem:[#allocation192_spill] sm:$0xff]  ;;  %v16869_v43 = vld [vmem:[#allocation190_spill] sm:$0xff] }
 0x31d   : > { %v5512_v32 = vadd.f32 %v5511_v44, %v16850_v9  ;;  %v5336_v51 = vadd.f32 %v5335_v12, %v16852_v8  ;;  %v5425_v5 = vadd.f32 %v5424_v38, %v16854_v52  ;;  %v16862_v4 = vmax.f32 %v16861_v58, 0.0  ;;  %v16867_v34 = vld [vmem:[#allocation184_spill] sm:$0xff]  ;;  %v16871_v1 = vld [vmem:[#allocation182_spill] sm:$0xff] }
 0x31e   : > { %v5249_v46 = vadd.f32 %v5248_v24, %v16856_v17  ;;  %v16864_v44 = vmax.f32 %v16863_v6, 0.0  ;;  %v16866_v12 = vmax.f32 %v16865_v61, 0.0  ;;  %v16868_v38 = vmax.f32 %v16867_v34, 0.0  ;;  %v16873_v31 = vld [vmem:[#allocation194_spill] sm:$0xff]  ;;  %v16877_v6 = vld [vmem:[#allocation203_spill] sm:$0xff] }
 0x31f   : > { %v5513_v20 = vadd.f32 %v5512_v32, %v16858_v60  ;;  %v5337_v47 = vadd.f32 %v5336_v51, %v16860_v33  ;;  %v5426_v18 = vadd.f32 %v5425_v5, %v16862_v4  ;;  %v16870_v24 = vmax.f32 %v16869_v43, 0.0  ;;  %v16875_v58 = vld [vmem:[#allocation186_spill] sm:$0xff]  ;;  %v16879_v61 = vld [vmem:[#allocation195_spill] sm:$0xff] }
 0x320   : > { %v5250_v9 = vadd.f32 %v5249_v46, %v16864_v44  ;;  %v16872_v32 = vmax.f32 %v16871_v1, 0.0  ;;  %v16874_v51 = vmax.f32 %v16873_v31, 0.0  ;;  %v16876_v5 = vmax.f32 %v16875_v58, 0.0  ;;  %v16881_v34 = vld [vmem:[#allocation207_spill] sm:$0xff]  ;;  %v16885_v1 = vld [vmem:[#allocation205_spill] sm:$0xff] }
 0x321   : > { %v5514_v8 = vadd.f32 %v5513_v20, %v16866_v12  ;;  %v5338_v52 = vadd.f32 %v5337_v47, %v16868_v38  ;;  %v5427_v17 = vadd.f32 %v5426_v18, %v16870_v24  ;;  %v16878_v46 = vmax.f32 %v16877_v6, 0.0  ;;  %v16883_v43 = vld [vmem:[#allocation199_spill] sm:$0xff]  ;;  %v16887_v31 = vld [vmem:[#allocation197_spill] sm:$0xff] }
 0x322   : > { %v5251_v60 = vadd.f32 %v5250_v9, %v16872_v32  ;;  %v16880_v20 = vmax.f32 %v16879_v61, 0.0  ;;  %v16882_v47 = vmax.f32 %v16881_v34, 0.0  ;;  %v16884_v18 = vmax.f32 %v16883_v43, 0.0  ;;  %v16889_v58 = vld [vmem:[#allocation209_spill] sm:$0xff]  ;;  %v16893_v61 = vld [vmem:[#allocation204_spill] sm:$0xff] }
 0x323   : > { %v5515_v33 = vadd.f32 %v5514_v8, %v16874_v51  ;;  %v5339_v4 = vadd.f32 %v5338_v52, %v16876_v5  ;;  %v5428_v44 = vadd.f32 %v5427_v17, %v16878_v46  ;;  %v16886_v9 = vmax.f32 %v16885_v1, 0.0  ;;  %v16891_v6 = vld [vmem:[#allocation201_spill] sm:$0xff]  ;;  %v16895_v34 = vld [vmem:[#allocation196_spill] sm:$0xff] }
 0x324   : > { %v5252_v12 = vadd.f32 %v5251_v60, %v16880_v20  ;;  %v16888_v8 = vmax.f32 %v16887_v31, 0.0  ;;  %v16890_v52 = vmax.f32 %v16889_v58, 0.0  ;;  %v16892_v17 = vmax.f32 %v16891_v6, 0.0  ;;  %v16897_v43 = vld [vmem:[#allocation208_spill] sm:$0xff]  ;;  %v16901_v31 = vld [vmem:[#allocation206_spill] sm:$0xff] }
 0x325   : > { %v5516_v38 = vadd.f32 %v5515_v33, %v16882_v47  ;;  %v5340_v24 = vadd.f32 %v5339_v4, %v16884_v18  ;;  %v5429_v32 = vadd.f32 %v5428_v44, %v16886_v9  ;;  %v16894_v60 = vmax.f32 %v16893_v61, 0.0  ;;  %v16899_v1 = vld [vmem:[#allocation200_spill] sm:$0xff]  ;;  %v16903_v58 = vld [vmem:[#allocation198_spill] sm:$0xff] }
 0x326   : > { %v5253_v51 = vadd.f32 %v5252_v12, %v16888_v8  ;;  %v16896_v33 = vmax.f32 %v16895_v34, 0.0  ;;  %v16898_v4 = vmax.f32 %v16897_v43, 0.0  ;;  %v16900_v44 = vmax.f32 %v16899_v1, 0.0  ;;  %v16905_v6 = vld [vmem:[#allocation210_spill] sm:$0xff]  ;;  %v16909_v34 = vld [vmem:[#allocation219_spill] sm:$0xff] }
 0x327   : > { %v5517_v5 = vadd.f32 %v5516_v38, %v16890_v52  ;;  %v5341_v46 = vadd.f32 %v5340_v24, %v16892_v17  ;;  %v5430_v20 = vadd.f32 %v5429_v32, %v16894_v60  ;;  %v16902_v12 = vmax.f32 %v16901_v31, 0.0  ;;  %v16907_v61 = vld [vmem:[#allocation202_spill] sm:$0xff]  ;;  %v16911_v43 = vld [vmem:[#allocation211_spill] sm:$0xff] }
 0x328   : > { %v5254_v47 = vadd.f32 %v5253_v51, %v16896_v33  ;;  %v16904_v38 = vmax.f32 %v16903_v58, 0.0  ;;  %v16906_v24 = vmax.f32 %v16905_v6, 0.0  ;;  %v16908_v32 = vmax.f32 %v16907_v61, 0.0  ;;  %v16913_v1 = vld [vmem:[#allocation223_spill] sm:$0xff]  ;;  %v16917_v58 = vld [vmem:[#allocation221_spill] sm:$0xff] }
 0x329   : > { %v5518_v18 = vadd.f32 %v5517_v5, %v16898_v4  ;;  %v5342_v9 = vadd.f32 %v5341_v46, %v16900_v44  ;;  %v5431_v8 = vadd.f32 %v5430_v20, %v16902_v12  ;;  %v16910_v51 = vmax.f32 %v16909_v34, 0.0  ;;  %v16915_v31 = vld [vmem:[#allocation215_spill] sm:$0xff]  ;;  %v16919_v6 = vld [vmem:[#allocation213_spill] sm:$0xff] }
 0x32a   : > { %v5255_v52 = vadd.f32 %v5254_v47, %v16904_v38  ;;  %v16912_v5 = vmax.f32 %v16911_v43, 0.0  ;;  %v16914_v46 = vmax.f32 %v16913_v1, 0.0  ;;  %v16916_v20 = vmax.f32 %v16915_v31, 0.0  ;;  %v16921_v61 = vld [vmem:[#allocation225_spill] sm:$0xff]  ;;  %v16925_v43 = vld [vmem:[#allocation220_spill] sm:$0xff] }
 0x32b   : > { %v5519_v17 = vadd.f32 %v5518_v18, %v16906_v24  ;;  %v5343_v60 = vadd.f32 %v5342_v9, %v16908_v32  ;;  %v5432_v33 = vadd.f32 %v5431_v8, %v16910_v51  ;;  %v16918_v47 = vmax.f32 %v16917_v58, 0.0  ;;  %v16923_v34 = vld [vmem:[#allocation217_spill] sm:$0xff]  ;;  %v16927_v1 = vld [vmem:[#allocation212_spill] sm:$0xff] }
 0x32c   : > { %v5256_v4 = vadd.f32 %v5255_v52, %v16912_v5  ;;  %v16920_v18 = vmax.f32 %v16919_v6, 0.0  ;;  %v16922_v9 = vmax.f32 %v16921_v61, 0.0  ;;  %v16924_v8 = vmax.f32 %v16923_v34, 0.0  ;;  %v16929_v31 = vld [vmem:[#allocation224_spill] sm:$0xff]  ;;  %v16933_v6 = vld [vmem:[#allocation222_spill] sm:$0xff] }
 0x32d   : > { %v5520_v44 = vadd.f32 %v5519_v17, %v16914_v46  ;;  %v5344_v12 = vadd.f32 %v5343_v60, %v16916_v20  ;;  %v5433_v38 = vadd.f32 %v5432_v33, %v16918_v47  ;;  %v16926_v52 = vmax.f32 %v16925_v43, 0.0  ;;  %v16931_v58 = vld [vmem:[#allocation216_spill] sm:$0xff]  ;;  %v16935_v61 = vld [vmem:[#allocation214_spill] sm:$0xff] }
 0x32e   : > { %v5257_v24 = vadd.f32 %v5256_v4, %v16920_v18  ;;  %v16928_v17 = vmax.f32 %v16927_v1, 0.0  ;;  %v16930_v60 = vmax.f32 %v16929_v31, 0.0  ;;  %v16932_v33 = vmax.f32 %v16931_v58, 0.0  ;;  %v16937_v34 = vld [vmem:[#allocation226_spill] sm:$0xff]  ;;  %v16941_v1 = vld [vmem:[#allocation235_spill] sm:$0xff] }
 0x32f   : > { %v5521_v32 = vadd.f32 %v5520_v44, %v16922_v9  ;;  %v5345_v51 = vadd.f32 %v5344_v12, %v16924_v8  ;;  %v5434_v5 = vadd.f32 %v5433_v38, %v16926_v52  ;;  %v16934_v4 = vmax.f32 %v16933_v6, 0.0  ;;  %v16939_v43 = vld [vmem:[#allocation218_spill] sm:$0xff]  ;;  %v16943_v31 = vld [vmem:[#allocation227_spill] sm:$0xff] }
 0x330   : > { %v5258_v46 = vadd.f32 %v5257_v24, %v16928_v17  ;;  %v16936_v44 = vmax.f32 %v16935_v61, 0.0  ;;  %v16938_v12 = vmax.f32 %v16937_v34, 0.0  ;;  %v16940_v38 = vmax.f32 %v16939_v43, 0.0  ;;  %v16945_v58 = vld [vmem:[#allocation239_spill] sm:$0xff]  ;;  %v16949_v61 = vld [vmem:[#allocation237_spill] sm:$0xff] }
 0x331   : > { %v5522_v20 = vadd.f32 %v5521_v32, %v16930_v60  ;;  %v5346_v47 = vadd.f32 %v5345_v51, %v16932_v33  ;;  %v5435_v18 = vadd.f32 %v5434_v5, %v16934_v4  ;;  %v16942_v24 = vmax.f32 %v16941_v1, 0.0  ;;  %v16947_v6 = vld [vmem:[#allocation231_spill] sm:$0xff]  ;;  %v16951_v34 = vld [vmem:[#allocation229_spill] sm:$0xff] }
 0x332   : > { %v5259_v9 = vadd.f32 %v5258_v46, %v16936_v44  ;;  %v16944_v32 = vmax.f32 %v16943_v31, 0.0  ;;  %v16946_v51 = vmax.f32 %v16945_v58, 0.0  ;;  %v16948_v5 = vmax.f32 %v16947_v6, 0.0  ;;  %v16953_v43 = vld [vmem:[#allocation241_spill] sm:$0xff]  ;;  %v16957_v31 = vld [vmem:[#allocation236_spill] sm:$0xff] }
 0x333   : > { %v5523_v8 = vadd.f32 %v5522_v20, %v16938_v12  ;;  %v5347_v52 = vadd.f32 %v5346_v47, %v16940_v38  ;;  %v5436_v17 = vadd.f32 %v5435_v18, %v16942_v24  ;;  %v16950_v46 = vmax.f32 %v16949_v61, 0.0  ;;  %v16955_v1 = vld [vmem:[#allocation233_spill] sm:$0xff]  ;;  %v16959_v58 = vld [vmem:[#allocation228_spill] sm:$0xff] }
 0x334   : > { %v5260_v60 = vadd.f32 %v5259_v9, %v16944_v32  ;;  %v16952_v20 = vmax.f32 %v16951_v34, 0.0  ;;  %v16954_v47 = vmax.f32 %v16953_v43, 0.0  ;;  %v16956_v18 = vmax.f32 %v16955_v1, 0.0  ;;  %v16961_v6 = vld [vmem:[#allocation240_spill] sm:$0xff]  ;;  %v16965_v34 = vld [vmem:[#allocation238_spill] sm:$0xff] }
 0x335   : > { %v5524_v33 = vadd.f32 %v5523_v8, %v16946_v51  ;;  %v5348_v4 = vadd.f32 %v5347_v52, %v16948_v5  ;;  %v5437_v44 = vadd.f32 %v5436_v17, %v16950_v46  ;;  %v16958_v9 = vmax.f32 %v16957_v31, 0.0  ;;  %v16963_v61 = vld [vmem:[#allocation232_spill] sm:$0xff]  ;;  %v16967_v43 = vld [vmem:[#allocation230_spill] sm:$0xff] }
 0x336   : > { %v5261_v12 = vadd.f32 %v5260_v60, %v16952_v20  ;;  %v16960_v8 = vmax.f32 %v16959_v58, 0.0  ;;  %v16962_v52 = vmax.f32 %v16961_v6, 0.0  ;;  %v16964_v17 = vmax.f32 %v16963_v61, 0.0  ;;  %v16969_v1 = vld [vmem:[#allocation242_spill] sm:$0xff]  ;;  %v16973_v58 = vld [vmem:[#allocation251_spill] sm:$0xff] }
 0x337   : > { %v5525_v38 = vadd.f32 %v5524_v33, %v16954_v47  ;;  %v5349_v24 = vadd.f32 %v5348_v4, %v16956_v18  ;;  %v5438_v32 = vadd.f32 %v5437_v44, %v16958_v9  ;;  %v16966_v60 = vmax.f32 %v16965_v34, 0.0  ;;  %v16971_v31 = vld [vmem:[#allocation234_spill] sm:$0xff]  ;;  %v16975_v6 = vld [vmem:[#allocation243_spill] sm:$0xff] }
 0x338   : > { %v5262_v51 = vadd.f32 %v5261_v12, %v16960_v8  ;;  %v16968_v33 = vmax.f32 %v16967_v43, 0.0  ;;  %v16970_v4 = vmax.f32 %v16969_v1, 0.0  ;;  %v16972_v44 = vmax.f32 %v16971_v31, 0.0  ;;  %v16977_v61 = vld [vmem:[#allocation255_spill] sm:$0xff]  ;;  %v16981_v43 = vld [vmem:[#allocation253_spill] sm:$0xff] }
 0x339   : > { %v5526_v5 = vadd.f32 %v5525_v38, %v16962_v52  ;;  %v5350_v46 = vadd.f32 %v5349_v24, %v16964_v17  ;;  %v5439_v20 = vadd.f32 %v5438_v32, %v16966_v60  ;;  %v16974_v12 = vmax.f32 %v16973_v58, 0.0  ;;  %v16979_v34 = vld [vmem:[#allocation247_spill] sm:$0xff]  ;;  %v16983_v1 = vld [vmem:[#allocation245_spill] sm:$0xff] }
 0x33a   : > { %v5263_v47 = vadd.f32 %v5262_v51, %v16968_v33  ;;  %v16976_v38 = vmax.f32 %v16975_v6, 0.0  ;;  %v16978_v24 = vmax.f32 %v16977_v61, 0.0  ;;  %v16980_v32 = vmax.f32 %v16979_v34, 0.0  ;;  %v16985_v31 = vld [vmem:[#allocation257_spill] sm:$0xff]  ;;  %v16989_v6 = vld [vmem:[#allocation252_spill] sm:$0xff] }
 0x33b   : > { %v5527_v18 = vadd.f32 %v5526_v5, %v16970_v4  ;;  %v5351_v9 = vadd.f32 %v5350_v46, %v16972_v44  ;;  %v5440_v8 = vadd.f32 %v5439_v20, %v16974_v12  ;;  %v16982_v51 = vmax.f32 %v16981_v43, 0.0  ;;  %v16987_v58 = vld [vmem:[#allocation249_spill] sm:$0xff]  ;;  %v16991_v61 = vld [vmem:[#allocation244_spill] sm:$0xff] }
 0x33c   : > { %v5264_v52 = vadd.f32 %v5263_v47, %v16976_v38  ;;  %v16984_v5 = vmax.f32 %v16983_v1, 0.0  ;;  %v16986_v46 = vmax.f32 %v16985_v31, 0.0  ;;  %v16988_v20 = vmax.f32 %v16987_v58, 0.0  ;;  %v16993_v34 = vld [vmem:[#allocation256_spill] sm:$0xff]  ;;  %v16997_v1 = vld [vmem:[#allocation254_spill] sm:$0xff] }
 0x33d   : > { %v5528_v17 = vadd.f32 %v5527_v18, %v16978_v24  ;;  %v5352_v60 = vadd.f32 %v5351_v9, %v16980_v32  ;;  %v5441_v33 = vadd.f32 %v5440_v8, %v16982_v51  ;;  %v16990_v47 = vmax.f32 %v16989_v6, 0.0  ;;  %v16995_v43 = vld [vmem:[#allocation248_spill] sm:$0xff]  ;;  %v16999_v31 = vld [vmem:[#allocation246_spill] sm:$0xff] }
 0x33e   : > { %v5265_v4 = vadd.f32 %v5264_v52, %v16984_v5  ;;  %v16992_v18 = vmax.f32 %v16991_v61, 0.0  ;;  %v16994_v9 = vmax.f32 %v16993_v34, 0.0  ;;  %v16996_v8 = vmax.f32 %v16995_v43, 0.0  ;;  %v17001_v58 = vld [vmem:[#allocation258_spill] sm:$0xff]  ;;  %v17005_v61 = vld [vmem:[#allocation267_spill] sm:$0xff] }
 0x33f   : > { %v5529_v44 = vadd.f32 %v5528_v17, %v16986_v46  ;;  %v5353_v12 = vadd.f32 %v5352_v60, %v16988_v20  ;;  %v5442_v38 = vadd.f32 %v5441_v33, %v16990_v47  ;;  %v16998_v52 = vmax.f32 %v16997_v1, 0.0  ;;  %v17003_v6 = vld [vmem:[#allocation250_spill] sm:$0xff]  ;;  %v17007_v34 = vld [vmem:[#allocation259_spill] sm:$0xff] }
 0x340   : > { %v5266_v24 = vadd.f32 %v5265_v4, %v16992_v18  ;;  %v17000_v17 = vmax.f32 %v16999_v31, 0.0  ;;  %v17002_v60 = vmax.f32 %v17001_v58, 0.0  ;;  %v17004_v33 = vmax.f32 %v17003_v6, 0.0  ;;  %v17009_v43 = vld [vmem:[#allocation271_spill] sm:$0xff]  ;;  %v17013_v31 = vld [vmem:[#allocation269_spill] sm:$0xff] }
 0x341   : > { %v5530_v32 = vadd.f32 %v5529_v44, %v16994_v9  ;;  %v5354_v51 = vadd.f32 %v5353_v12, %v16996_v8  ;;  %v5443_v5 = vadd.f32 %v5442_v38, %v16998_v52  ;;  %v17006_v4 = vmax.f32 %v17005_v61, 0.0  ;;  %v17011_v1 = vld [vmem:[#allocation263_spill] sm:$0xff]  ;;  %v17015_v58 = vld [vmem:[#allocation261_spill] sm:$0xff] }
 0x342   : > { %v5267_v46 = vadd.f32 %v5266_v24, %v17000_v17  ;;  %v17008_v44 = vmax.f32 %v17007_v34, 0.0  ;;  %v17010_v12 = vmax.f32 %v17009_v43, 0.0  ;;  %v17012_v38 = vmax.f32 %v17011_v1, 0.0  ;;  %v17017_v6 = vld [vmem:[#allocation273_spill] sm:$0xff]  ;;  %v17021_v34 = vld [vmem:[#allocation268_spill] sm:$0xff] }
 0x343   : > { %v5531_v20 = vadd.f32 %v5530_v32, %v17002_v60  ;;  %v5355_v47 = vadd.f32 %v5354_v51, %v17004_v33  ;;  %v5444_v18 = vadd.f32 %v5443_v5, %v17006_v4  ;;  %v17014_v24 = vmax.f32 %v17013_v31, 0.0  ;;  %v17019_v61 = vld [vmem:[#allocation265_spill] sm:$0xff]  ;;  %v17023_v43 = vld [vmem:[#allocation260_spill] sm:$0xff] }
 0x344   : > { %v5268_v9 = vadd.f32 %v5267_v46, %v17008_v44  ;;  %v17016_v32 = vmax.f32 %v17015_v58, 0.0  ;;  %v17018_v51 = vmax.f32 %v17017_v6, 0.0  ;;  %v17020_v5 = vmax.f32 %v17019_v61, 0.0  ;;  %v17025_v1 = vld [vmem:[#allocation272_spill] sm:$0xff]  ;;  %v17029_v58 = vld [vmem:[#allocation270_spill] sm:$0xff] }
 0x345   : > { %v5532_v8 = vadd.f32 %v5531_v20, %v17010_v12  ;;  %v5356_v52 = vadd.f32 %v5355_v47, %v17012_v38  ;;  %v5445_v17 = vadd.f32 %v5444_v18, %v17014_v24  ;;  %v17022_v46 = vmax.f32 %v17021_v34, 0.0  ;;  %v17027_v31 = vld [vmem:[#allocation264_spill] sm:$0xff]  ;;  %v17031_v6 = vld [vmem:[#allocation262_spill] sm:$0xff] }
 0x346   : > { %v5269_v60 = vadd.f32 %v5268_v9, %v17016_v32  ;;  %v17024_v20 = vmax.f32 %v17023_v43, 0.0  ;;  %v17026_v47 = vmax.f32 %v17025_v1, 0.0  ;;  %v17028_v18 = vmax.f32 %v17027_v31, 0.0  ;;  %v17033_v61 = vld [vmem:[#allocation274_spill] sm:$0xff]  ;;  %v17037_v43 = vld [vmem:[#allocation283_spill] sm:$0xff] }
 0x347   : > { %v5533_v33 = vadd.f32 %v5532_v8, %v17018_v51  ;;  %v5357_v4 = vadd.f32 %v5356_v52, %v17020_v5  ;;  %v5446_v44 = vadd.f32 %v5445_v17, %v17022_v46  ;;  %v17030_v9 = vmax.f32 %v17029_v58, 0.0  ;;  %v17035_v34 = vld [vmem:[#allocation266_spill] sm:$0xff]  ;;  %v17039_v1 = vld [vmem:[#allocation275_spill] sm:$0xff] }
 0x348   : > { %v5270_v12 = vadd.f32 %v5269_v60, %v17024_v20  ;;  %v17032_v8 = vmax.f32 %v17031_v6, 0.0  ;;  %v17034_v52 = vmax.f32 %v17033_v61, 0.0  ;;  %v17036_v17 = vmax.f32 %v17035_v34, 0.0  ;;  %v17041_v31 = vld [vmem:[#allocation287_spill] sm:$0xff]  ;;  %v17045_v6 = vld [vmem:[#allocation285_spill] sm:$0xff] }
 0x349   : > { %v5534_v38 = vadd.f32 %v5533_v33, %v17026_v47  ;;  %v5358_v24 = vadd.f32 %v5357_v4, %v17028_v18  ;;  %v5447_v32 = vadd.f32 %v5446_v44, %v17030_v9  ;;  %v17038_v60 = vmax.f32 %v17037_v43, 0.0  ;;  %v17043_v58 = vld [vmem:[#allocation279_spill] sm:$0xff]  ;;  %v17047_v61 = vld [vmem:[#allocation277_spill] sm:$0xff] }
 0x34a   : > { %v5271_v51 = vadd.f32 %v5270_v12, %v17032_v8  ;;  %v17040_v33 = vmax.f32 %v17039_v1, 0.0  ;;  %v17042_v4 = vmax.f32 %v17041_v31, 0.0  ;;  %v17044_v44 = vmax.f32 %v17043_v58, 0.0  ;;  %v17049_v34 = vld [vmem:[#allocation289_spill] sm:$0xff]  ;;  %v17053_v1 = vld [vmem:[#allocation284_spill] sm:$0xff] }
 0x34b   : > { %v5535_v5 = vadd.f32 %v5534_v38, %v17034_v52  ;;  %v5359_v46 = vadd.f32 %v5358_v24, %v17036_v17  ;;  %v5448_v20 = vadd.f32 %v5447_v32, %v17038_v60  ;;  %v17046_v12 = vmax.f32 %v17045_v6, 0.0  ;;  %v17051_v43 = vld [vmem:[#allocation281_spill] sm:$0xff]  ;;  %v17055_v31 = vld [vmem:[#allocation276_spill] sm:$0xff] }
 0x34c   : > { %v5272_v47 = vadd.f32 %v5271_v51, %v17040_v33  ;;  %v17048_v38 = vmax.f32 %v17047_v61, 0.0  ;;  %v17050_v24 = vmax.f32 %v17049_v34, 0.0  ;;  %v17052_v32 = vmax.f32 %v17051_v43, 0.0  ;;  %v17057_v58 = vld [vmem:[#allocation288_spill] sm:$0xff]  ;;  %v17061_v61 = vld [vmem:[#allocation286_spill] sm:$0xff] }
 0x34d   : > { %v5536_v18 = vadd.f32 %v5535_v5, %v17042_v4  ;;  %v5360_v9 = vadd.f32 %v5359_v46, %v17044_v44  ;;  %v5449_v8 = vadd.f32 %v5448_v20, %v17046_v12  ;;  %v17054_v51 = vmax.f32 %v17053_v1, 0.0  ;;  %v17059_v6 = vld [vmem:[#allocation280_spill] sm:$0xff]  ;;  %v17063_v34 = vld [vmem:[#allocation278_spill] sm:$0xff] }
 0x34e   : > { %v5273_v52 = vadd.f32 %v5272_v47, %v17048_v38  ;;  %v17056_v5 = vmax.f32 %v17055_v31, 0.0  ;;  %v17058_v46 = vmax.f32 %v17057_v58, 0.0  ;;  %v17060_v20 = vmax.f32 %v17059_v6, 0.0  ;;  %v17065_v43 = vld [vmem:[#allocation290_spill] sm:$0xff]  ;;  %v17069_v31 = vld [vmem:[#allocation299_spill] sm:$0xff] }
 0x34f   : > { %v5537_v17 = vadd.f32 %v5536_v18, %v17050_v24  ;;  %v5361_v60 = vadd.f32 %v5360_v9, %v17052_v32  ;;  %v5450_v33 = vadd.f32 %v5449_v8, %v17054_v51  ;;  %v17062_v47 = vmax.f32 %v17061_v61, 0.0  ;;  %v17067_v1 = vld [vmem:[#allocation282_spill] sm:$0xff]  ;;  %v17071_v58 = vld [vmem:[#allocation291_spill] sm:$0xff] }
 0x350   : > { %v5274_v4 = vadd.f32 %v5273_v52, %v17056_v5  ;;  %v17064_v18 = vmax.f32 %v17063_v34, 0.0  ;;  %v17066_v9 = vmax.f32 %v17065_v43, 0.0  ;;  %v17068_v8 = vmax.f32 %v17067_v1, 0.0  ;;  %v17073_v6 = vld [vmem:[#allocation303_spill] sm:$0xff]  ;;  %v17077_v34 = vld [vmem:[#allocation301_spill] sm:$0xff] }
 0x351   : > { %v5538_v44 = vadd.f32 %v5537_v17, %v17058_v46  ;;  %v5362_v12 = vadd.f32 %v5361_v60, %v17060_v20  ;;  %v5451_v38 = vadd.f32 %v5450_v33, %v17062_v47  ;;  %v17070_v52 = vmax.f32 %v17069_v31, 0.0  ;;  %v17075_v61 = vld [vmem:[#allocation295_spill] sm:$0xff]  ;;  %v17079_v43 = vld [vmem:[#allocation293_spill] sm:$0xff] }
 0x352   : > { %v5275_v24 = vadd.f32 %v5274_v4, %v17064_v18  ;;  %v17072_v17 = vmax.f32 %v17071_v58, 0.0  ;;  %v17074_v60 = vmax.f32 %v17073_v6, 0.0  ;;  %v17076_v33 = vmax.f32 %v17075_v61, 0.0  ;;  %v17081_v1 = vld [vmem:[#allocation305_spill] sm:$0xff]  ;;  %v17085_v58 = vld [vmem:[#allocation300_spill] sm:$0xff] }
 0x353   : > { %v5539_v32 = vadd.f32 %v5538_v44, %v17066_v9  ;;  %v5363_v51 = vadd.f32 %v5362_v12, %v17068_v8  ;;  %v5452_v5 = vadd.f32 %v5451_v38, %v17070_v52  ;;  %v17078_v4 = vmax.f32 %v17077_v34, 0.0  ;;  %v17083_v31 = vld [vmem:[#allocation297_spill] sm:$0xff]  ;;  %v17087_v6 = vld [vmem:[#allocation292_spill] sm:$0xff] }
 0x354   : > { %v5276_v46 = vadd.f32 %v5275_v24, %v17072_v17  ;;  %v17080_v44 = vmax.f32 %v17079_v43, 0.0  ;;  %v17082_v12 = vmax.f32 %v17081_v1, 0.0  ;;  %v17084_v38 = vmax.f32 %v17083_v31, 0.0  ;;  %v17089_v61 = vld [vmem:[#allocation304_spill] sm:$0xff]  ;;  %v17093_v43 = vld [vmem:[#allocation302_spill] sm:$0xff] }
 0x355   : > { %v5540_v20 = vadd.f32 %v5539_v32, %v17074_v60  ;;  %v5364_v47 = vadd.f32 %v5363_v51, %v17076_v33  ;;  %v5453_v18 = vadd.f32 %v5452_v5, %v17078_v4  ;;  %v17086_v24 = vmax.f32 %v17085_v58, 0.0  ;;  %v17091_v34 = vld [vmem:[#allocation296_spill] sm:$0xff]  ;;  %v17095_v1 = vld [vmem:[#allocation294_spill] sm:$0xff] }
 0x356   : > { %v5277_v9 = vadd.f32 %v5276_v46, %v17080_v44  ;;  %v17088_v32 = vmax.f32 %v17087_v6, 0.0  ;;  %v17090_v51 = vmax.f32 %v17089_v61, 0.0  ;;  %v17092_v5 = vmax.f32 %v17091_v34, 0.0  ;;  %v17097_v31 = vld [vmem:[#allocation306_spill] sm:$0xff]  ;;  %v17101_v6 = vld [vmem:[#allocation315_spill] sm:$0xff] }
 0x357   : > { %v5541_v8 = vadd.f32 %v5540_v20, %v17082_v12  ;;  %v5365_v52 = vadd.f32 %v5364_v47, %v17084_v38  ;;  %v5454_v17 = vadd.f32 %v5453_v18, %v17086_v24  ;;  %v17094_v46 = vmax.f32 %v17093_v43, 0.0  ;;  %v17099_v58 = vld [vmem:[#allocation298_spill] sm:$0xff]  ;;  %v17103_v61 = vld [vmem:[#allocation307_spill] sm:$0xff] }
 0x358   : > { %v5278_v60 = vadd.f32 %v5277_v9, %v17088_v32  ;;  %v17096_v20 = vmax.f32 %v17095_v1, 0.0  ;;  %v17098_v47 = vmax.f32 %v17097_v31, 0.0  ;;  %v17100_v18 = vmax.f32 %v17099_v58, 0.0  ;;  %v17105_v34 = vld [vmem:[#allocation319_spill] sm:$0xff]  ;;  %v17109_v1 = vld [vmem:[#allocation317_spill] sm:$0xff] }
 0x359   : > { %v5542_v33 = vadd.f32 %v5541_v8, %v17090_v51  ;;  %v5366_v4 = vadd.f32 %v5365_v52, %v17092_v5  ;;  %v5455_v44 = vadd.f32 %v5454_v17, %v17094_v46  ;;  %v17102_v9 = vmax.f32 %v17101_v6, 0.0  ;;  %v17107_v43 = vld [vmem:[#allocation311_spill] sm:$0xff]  ;;  %v17111_v31 = vld [vmem:[#allocation309_spill] sm:$0xff] }
 0x35a   : > { %v5279_v12 = vadd.f32 %v5278_v60, %v17096_v20  ;;  %v17104_v8 = vmax.f32 %v17103_v61, 0.0  ;;  %v17106_v52 = vmax.f32 %v17105_v34, 0.0  ;;  %v17108_v17 = vmax.f32 %v17107_v43, 0.0  ;;  %v17113_v58 = vld [vmem:[#allocation321_spill] sm:$0xff]  ;;  %v17117_v61 = vld [vmem:[#allocation316_spill] sm:$0xff] }
 0x35b   : > { %v5543_v38 = vadd.f32 %v5542_v33, %v17098_v47  ;;  %v5367_v24 = vadd.f32 %v5366_v4, %v17100_v18  ;;  %v5456_v32 = vadd.f32 %v5455_v44, %v17102_v9  ;;  %v17110_v60 = vmax.f32 %v17109_v1, 0.0  ;;  %v17115_v6 = vld [vmem:[#allocation313_spill] sm:$0xff]  ;;  %v17119_v34 = vld [vmem:[#allocation308_spill] sm:$0xff] }
 0x35c   : > { %v5280_v51 = vadd.f32 %v5279_v12, %v17104_v8  ;;  %v17112_v33 = vmax.f32 %v17111_v31, 0.0  ;;  %v17114_v4 = vmax.f32 %v17113_v58, 0.0  ;;  %v17116_v44 = vmax.f32 %v17115_v6, 0.0  ;;  %v17121_v43 = vld [vmem:[#allocation320_spill] sm:$0xff]  ;;  %v17125_v31 = vld [vmem:[#allocation318_spill] sm:$0xff] }
 0x35d   : > { %v5544_v5 = vadd.f32 %v5543_v38, %v17106_v52  ;;  %v5368_v46 = vadd.f32 %v5367_v24, %v17108_v17  ;;  %v5457_v20 = vadd.f32 %v5456_v32, %v17110_v60  ;;  %v17118_v12 = vmax.f32 %v17117_v61, 0.0  ;;  %v17123_v1 = vld [vmem:[#allocation312_spill] sm:$0xff]  ;;  %v17127_v58 = vld [vmem:[#allocation310_spill] sm:$0xff] }
 0x35e   : > { %v5281_v47 = vadd.f32 %v5280_v51, %v17112_v33  ;;  %v17120_v38 = vmax.f32 %v17119_v34, 0.0  ;;  %v17122_v24 = vmax.f32 %v17121_v43, 0.0  ;;  %v17124_v32 = vmax.f32 %v17123_v1, 0.0  ;;  %v17129_v6 = vld [vmem:[#allocation322_spill] sm:$0xff]  ;;  %v17133_v34 = vld [vmem:[#allocation331_spill] sm:$0xff] }
 0x35f   : > { %v5545_v18 = vadd.f32 %v5544_v5, %v17114_v4  ;;  %v5369_v9 = vadd.f32 %v5368_v46, %v17116_v44  ;;  %v5458_v8 = vadd.f32 %v5457_v20, %v17118_v12  ;;  %v17126_v51 = vmax.f32 %v17125_v31, 0.0  ;;  %v17131_v61 = vld [vmem:[#allocation314_spill] sm:$0xff]  ;;  %v17135_v43 = vld [vmem:[#allocation323_spill] sm:$0xff] }
 0x360   : > { %v5282_v52 = vadd.f32 %v5281_v47, %v17120_v38  ;;  %v17128_v5 = vmax.f32 %v17127_v58, 0.0  ;;  %v17130_v46 = vmax.f32 %v17129_v6, 0.0  ;;  %v17132_v20 = vmax.f32 %v17131_v61, 0.0 }
 0x361   : > { %v5546_v17 = vadd.f32 %v5545_v18, %v17122_v24  ;;  %v5370_v60 = vadd.f32 %v5369_v9, %v17124_v32  ;;  %v5459_v33 = vadd.f32 %v5458_v8, %v17126_v51  ;;  %v17134_v47 = vmax.f32 %v17133_v34, 0.0  ;;  %v17138_v32 = vld [vmem:[#allocation327_spill] sm:$0xff]  ;;  %v17140_v51 = vld [vmem:[#allocation333_spill] sm:$0xff] }
 0x362   : > { %v5283_v4 = vadd.f32 %v5282_v52, %v17128_v5  ;;  %v17136_v18 = vmax.f32 %v17135_v43, 0.0  ;;  %v17137_v9 = vmax.f32 %v12442_v16, 0.0  ;;  %v17139_v8 = vmax.f32 %v17138_v32, 0.0  ;;  %v17142_v5 = vld [vmem:[#allocation325_spill] sm:$0xff]  ;;  %v17152_v32 = vld [vmem:[#allocation336_spill] sm:$0xff] }
 0x363   : > { %v5547_v44 = vadd.f32 %v5546_v17, %v17130_v46  ;;  %v5371_v12 = vadd.f32 %v5370_v60, %v17132_v20  ;;  %v5460_v38 = vadd.f32 %v5459_v33, %v17134_v47  ;;  %v17141_v52 = vmax.f32 %v17140_v51, 0.0  ;;  %v17144_v46 = vld [vmem:[#allocation337_spill] sm:$0xff]  ;;  %v17148_v47 = vld [vmem:[#allocation332_spill] sm:$0xff] }
 0x364   : > { %v5284_v24 = vadd.f32 %v5283_v4, %v17136_v18  ;;  %v17143_v17 = vmax.f32 %v17142_v5, 0.0  ;;  %v17145_v60 = vmax.f32 %v17144_v46, 0.0  ;;  %v17146_v20 = vld [vmem:[#allocation329_spill] sm:$0xff]  ;;  %v17149_v4 = vmax.f32 %v17148_v47, 0.0  ;;  %v17150_v18 = vld [vmem:[#allocation324_spill] sm:$0xff]  ;;  %v17156_v5 = vld [vmem:[#allocation334_spill] sm:$0xff] }
 0x365   : > { %v5548_v1 = vadd.f32 %v5547_v44, %v17137_v9  ;;  %v5372_v31 = vadd.f32 %v5371_v12, %v17139_v8  ;;  %v5461_v58 = vadd.f32 %v5460_v38, %v17141_v52  ;;  %v17147_v33 = vmax.f32 %v17146_v20, 0.0  ;;  %v17154_v51 = vld [vmem:[#allocation328_spill] sm:$0xff]  ;;  %v17158_v46 = vld [vmem:[#allocation326_spill] sm:$0xff] }
 0x366   : > { %v5285_v6 = vadd.f32 %v5284_v24, %v17143_v17  ;;  %v17151_v44 = vmax.f32 %v17150_v18, 0.0  ;;  %v17153_v12 = vmax.f32 %v17152_v32, 0.0  ;;  %v17155_v38 = vmax.f32 %v17154_v51, 0.0  ;;  %v17160_v20 = vld [vmem:[#allocation338_spill] sm:$0xff] }
 0x367   : > { %v5549_v61 = vadd.f32 %v5548_v1, %v17145_v60  ;;  %v5373_v34 = vadd.f32 %v5372_v31, %v17147_v33  ;;  %v5462_v43 = vadd.f32 %v5461_v58, %v17149_v4  ;;  %v17157_v24 = vmax.f32 %v17156_v5, 0.0  ;;  %v17162_v47 = vld [vmem:[#allocation330_spill] sm:$0xff] }
 0x368   : > { %v5286_v9 = vadd.f32 %v5285_v6, %v17151_v44  ;;  %v17159_v1 = vmax.f32 %v17158_v46, 0.0  ;;  %v17161_v31 = vmax.f32 %v17160_v20, 0.0  ;;  %v17163_v58 = vmax.f32 %v17162_v47, 0.0  ;;  %v17175_v47 = vld [vmem:[#allocation346_spill] sm:$0xff] }
 0x369   : > { %v5550_v8 = vadd.f32 %v5549_v61, %v17153_v12  ;;  %v5374_v52 = vadd.f32 %v5373_v34, %v17155_v38  ;;  %v5463_v17 = vadd.f32 %v5462_v43, %v17157_v24  ;;  %v17164_v6 = vmax.f32 %v12503_v48, 0.0 }
 0x36a   : > { %v5287_v60 = vadd.f32 %v5286_v9, %v17159_v1  ;;  %v17165_v61 = vmax.f32 %v12465_v56, 0.0  ;;  %v17166_v34 = vmax.f32 %v12512_v21, 0.0  ;;  %v17167_v43 = vmax.f32 %v12483_v2, 0.0 }
 0x36b   : > { %v5551_v33 = vadd.f32 %v5550_v8, %v17161_v31  ;;  %v5375_v4 = vadd.f32 %v5374_v52, %v17163_v58  ;;  %v5464_v18 = vadd.f32 %v5463_v17, %v17164_v6  ;;  %v17168_v9 = vmax.f32 %v12507_v50, 0.0  ;;  %v5203_v6 = vld [vmem:[#allocation2 + $0x10] sm:$0xff] }
 0x36c   : > { %v5288_v44 = vadd.f32 %v5287_v60, %v17165_v61  ;;  %v17169_v8 = vmax.f32 %v12473_v30, 0.0  ;;  %v17170_v52 = vmax.f32 %v12516_v49, 0.0  ;;  %v17171_v24 = vmax.f32 %v12491_v59, 0.0 }
 0x36d   : > { %v5552_v32 = vadd.f32 %v5551_v33, %v17166_v34  ;;  %v5376_v12 = vadd.f32 %v5375_v4, %v17167_v43  ;;  %v5465_v51 = vadd.f32 %v5464_v18, %v17168_v9  ;;  %v17172_v46 = vmax.f32 %v12468_v15, 0.0  ;;  %v5201_v18 = vld [vmem:[#allocation2] sm:$0xff]  ;;  %v5204_v43 = vld [vmem:[#allocation2 + $0x18] sm:$0xff] }
 0x36e   : > { %v5289_v38 = vadd.f32 %v5288_v44, %v17169_v8  ;;  %v17173_v60 = vmax.f32 %v12476_v37, 0.0  ;;  %v17174_v31 = vmax.f32 %v12486_v26, 0.0  ;;  %v17176_v58 = vmax.f32 %v17175_v47, 0.0 }
 0x36f   : > { %v5553_v5 = vadd.f32 %v5552_v32, %v17170_v52  ;;  %v5377_v17 = vadd.f32 %v5376_v12, %v17171_v24  ;;  %v5466_v1 = vadd.f32 %v5465_v51, %v17172_v46  ;;  %v5202_v12 = vld [vmem:[#allocation2 + $0x8] sm:$0xff] }
 0x370   : > { %v5290_v20 = vadd.f32 %v5289_v38, %v17173_v60 }
 0x371   : > { %5467 = vadd.xlane.f32.xlu1 %v5466_v1  ;;  %v5554_v33 = vadd.f32 %v5553_v5, %v17174_v31  ;;  %v5378_v4 = vadd.f32 %v5377_v17, %v17176_v58 }
 0x372   : > { %5291 = vadd.xlane.f32.xlu0 %v5290_v20 }
 0x375   : > { %5555 = vadd.xlane.f32.xlu1 %v5554_v33 }
 0x376   : > { %5379 = vadd.xlane.f32.xlu0 %v5378_v4 }
 0x3fe   : > { %v5468_v61 = vpop.xlane.xlu1 %5467 }
 0x3ff   : > { %v5292_v44 = vpop.xlane.xlu0 %5291  ;;  %v5559_v34 = vadd.f32 %v5468_v61, %v5203_v6 }
 0x400   : > { %v5557_v32 = vadd.f32 %v5292_v44, %v5201_v18 }
 0x401   : > { %5564 = vst.msk [vmem:[#allocation2 + $0x10] sm:$0xff] %vm5561_vm2, %v5559_v34 }
 0x402   : > { %5562 = vst.msk [vmem:[#allocation2] sm:$0xff] %vm5561_vm2, %v5557_v32  ;;  %v5556_v9 = vpop.xlane.xlu1 %5555 }
 0x403   : > { %v5380_v51 = vpop.xlane.xlu0 %5379  ;;  %v5560_v8 = vadd.f32 %v5556_v9, %v5204_v43 }
 0x404   : > { %v5558_v38 = vadd.f32 %v5380_v51, %v5202_v12 }
 0x405   : > { %5565 = vst.msk [vmem:[#allocation2 + $0x18] sm:$0xff] %vm5561_vm2, %v5560_v8 }
 0x406   : > { %5563 = vst.msk [vmem:[#allocation2 + $0x8] sm:$0xff] %vm5561_vm2, %v5558_v38 }
 0x407 PF: > { %p8916_p13 = scmp.ne.s32.totalorder %s9772_s29, 1 }
 0x409   : > { %5569 = sbr.rel (%p8916_p13) target bundleno = 2249 (0x8c9), region = 90 }
 0x410   : > { %v15992_v52 = vlaneseq  ;;  %s5570_s22 = smul.u32 11136, %s9772_s29 }
 0x412   : > { %v13219_v5 = vand.u32 127, %v15992_v52  ;;  %v13278_v22 = vstv %s5570_s22 }
 0x414   : > { %v5605_v24 = vadd.s32 4224, %v13219_v5  ;;  %v5606_v17 = vadd.s32 4352, %v13219_v5  ;;  %v5607_v46 = vadd.s32 4480, %v13219_v5  ;;  %v5608_v1 = vadd.s32 4608, %v13219_v5 }
 0x415   : > { %v5609_v60 = vadd.s32 4736, %v13219_v5  ;;  %v5610_v20 = vadd.s32 4864, %v13219_v5  ;;  %v5611_v31 = vadd.s32 4992, %v13219_v5  ;;  %v5612_v33 = vadd.s32 5120, %v13219_v5 }
 0x416   : > { %v5613_v47 = vadd.s32 5248, %v13219_v5  ;;  %v5614_v58 = vadd.s32 5376, %v13219_v5  ;;  %v5615_v4 = vadd.s32 5504, %v13219_v5  ;;  %v5616_v6 = vadd.s32 5632, %v13219_v5 }
 0x417   : > { %v5617_v18 = vadd.s32 5760, %v13219_v5  ;;  %v5618_v61 = vadd.s32 5888, %v13219_v5  ;;  %v5619_v44 = vadd.s32 6016, %v13219_v5  ;;  %v5620_v34 = vadd.s32 6144, %v13219_v5 }
 0x418   : > { %v5621_v32 = vadd.s32 6272, %v13219_v5  ;;  %v5622_v43 = vadd.s32 6400, %v13219_v5  ;;  %v5623_v12 = vadd.s32 6528, %v13219_v5  ;;  %v5624_v9 = vadd.s32 6656, %v13219_v5 }
 0x419   : > { %v5625_v51 = vadd.s32 6784, %v13219_v5  ;;  %v5626_v8 = vadd.s32 6912, %v13219_v5  ;;  %v5627_v38 = vadd.s32 7040, %v13219_v5  ;;  %v5628_v52 = vadd.s32 7168, %v13219_v5 }
 0x41a   : > { %v5629_v26 = vadd.s32 7296, %v13219_v5  ;;  %v5630_v49 = vadd.s32 7424, %v13219_v5  ;;  %v5631_v21 = vadd.s32 7552, %v13219_v5  ;;  %v5632_v16 = vadd.s32 7680, %v13219_v5 }
 0x41b   : > { %v5633_v15 = vadd.s32 7808, %v13219_v5  ;;  %v5634_v50 = vadd.s32 7936, %v13219_v5  ;;  %v5635_v48 = vadd.s32 8064, %v13219_v5  ;;  %v5636_v59 = vadd.s32 8192, %v13219_v5 }
 0x41c   : > { %v5637_v2 = vadd.s32 8320, %v13219_v5  ;;  %v5638_v37 = vadd.s32 8448, %v13219_v5  ;;  %v5639_v30 = vadd.s32 8576, %v13219_v5  ;;  %v5640_v56 = vadd.s32 8704, %v13219_v5 }
 0x41d   : > { %v5641_v36 = vadd.s32 8832, %v13219_v5  ;;  %v5642_v14 = vadd.s32 8960, %v13219_v5  ;;  %v5643_v0 = vadd.s32 9088, %v13219_v5  ;;  %v5644_v23 = vadd.s32 9216, %v13219_v5 }
 0x41e   : > { %v5645_v62 = vadd.s32 9344, %v13219_v5  ;;  %v5646_v10 = vadd.s32 9472, %v13219_v5  ;;  %v5647_v3 = vadd.s32 9600, %v13219_v5  ;;  %v5648_v28 = vadd.s32 9728, %v13219_v5 }
 0x41f   : > { %v5649_v55 = vadd.s32 9856, %v13219_v5  ;;  %v5650_v63 = vadd.s32 9984, %v13219_v5  ;;  %v5651_v54 = vadd.s32 10112, %v13219_v5  ;;  %v5652_v45 = vadd.s32 10240, %v13219_v5 }
 0x420   : > { %v5653_v42 = vadd.s32 10368, %v13219_v5  ;;  %v5654_v39 = vadd.s32 10496, %v13219_v5  ;;  %v5655_v41 = vadd.s32 10624, %v13219_v5  ;;  %v5656_v29 = vadd.s32 10752, %v13219_v5 }
 0x421   : > { %v5657_v25 = vadd.s32 10880, %v13219_v5  ;;  %v5658_v27 = vadd.s32 11008, %v13219_v5  ;;  %v13281_v40 = vadd.s32 %v13278_v22, %v5605_v24  ;;  %v13284_v35 = vadd.s32 %v13278_v22, %v5606_v17 }
 0x422   : > { %v13287_v57 = vadd.s32 %v13278_v22, %v5607_v46  ;;  %v13290_v7 = vadd.s32 %v13278_v22, %v5608_v1  ;;  %v13293_v53 = vadd.s32 %v13278_v22, %v5609_v60  ;;  %v13296_v19 = vadd.s32 %v13278_v22, %v5610_v20 }
 0x423   : > { %17177 = vst [vmem:[#allocation351_spill] sm:$0xff] %v13281_v40  ;;  %17178 = vst [vmem:[#allocation352_spill] sm:$0xff] %v13284_v35  ;;  %v13299_v13 = vadd.s32 %v13278_v22, %v5611_v31  ;;  %v13302_v24 = vadd.s32 %v13278_v22, %v5612_v33  ;;  %v13305_v17 = vadd.s32 %v13278_v22, %v5613_v47 }
 0x424   : > { %17179 = vst [vmem:[#allocation353_spill] sm:$0xff] %v13287_v57  ;;  %17180 = vst [vmem:[#allocation354_spill] sm:$0xff] %v13290_v7  ;;  %v13308_v46 = vadd.s32 %v13278_v22, %v5614_v58  ;;  %v13311_v1 = vadd.s32 %v13278_v22, %v5615_v4  ;;  %v13314_v60 = vadd.s32 %v13278_v22, %v5616_v6 }
 0x425   : > { %17181 = vst [vmem:[#allocation355_spill] sm:$0xff] %v13293_v53  ;;  %v13317_v20 = vadd.s32 %v13278_v22, %v5617_v18  ;;  %v13320_v31 = vadd.s32 %v13278_v22, %v5618_v61  ;;  %v13323_v33 = vadd.s32 %v13278_v22, %v5619_v44  ;;  %v13326_v47 = vadd.s32 %v13278_v22, %v5620_v34 }
 0x426   : > { %17182 = vst [vmem:[#allocation356_spill] sm:$0xff] %v13314_v60  ;;  %v13329_v58 = vadd.s32 %v13278_v22, %v5621_v32  ;;  %v13332_v4 = vadd.s32 %v13278_v22, %v5622_v43  ;;  %v13335_v6 = vadd.s32 %v13278_v22, %v5623_v12  ;;  %v13338_v18 = vadd.s32 %v13278_v22, %v5624_v9 }
 0x427   : > { %17183 = vst [vmem:[#allocation357_spill] sm:$0xff] %v13317_v20  ;;  %17184 = vst [vmem:[#allocation358_spill] sm:$0xff] %v13320_v31  ;;  %v13341_v61 = vadd.s32 %v13278_v22, %v5625_v51  ;;  %v13344_v44 = vadd.s32 %v13278_v22, %v5626_v8  ;;  %v13347_v34 = vadd.s32 %v13278_v22, %v5627_v38  ;;  %v17327_v20 = vld [vmem:[#allocation11_spill] sm:$0xff] }
 0x428   : > { %17185 = vst [vmem:[#allocation359_spill] sm:$0xff] %v13323_v33  ;;  %17186 = vst [vmem:[#allocation360_spill] sm:$0xff] %v13326_v47  ;;  %v13350_v32 = vadd.s32 %v13278_v22, %v5628_v52  ;;  %v13353_v43 = vadd.s32 %v13278_v22, %v5629_v26  ;;  %v13356_v12 = vadd.s32 %v13278_v22, %v5630_v49 }
 0x429   : > { %17187 = vst [vmem:[#allocation361_spill] sm:$0xff] %v13329_v58  ;;  %17188 = vst [vmem:[#allocation362_spill] sm:$0xff] %v13332_v4  ;;  %v13359_v9 = vadd.s32 %v13278_v22, %v5631_v21  ;;  %v13362_v51 = vadd.s32 %v13278_v22, %v5632_v16  ;;  %v13365_v8 = vadd.s32 %v13278_v22, %v5633_v15 }
 0x42a   : > { %17189 = vst [vmem:[#allocation363_spill] sm:$0xff] %v13335_v6  ;;  %17190 = vst [vmem:[#allocation364_spill] sm:$0xff] %v13338_v18  ;;  %v13368_v38 = vadd.s32 %v13278_v22, %v5634_v50  ;;  %v13371_v52 = vadd.s32 %v13278_v22, %v5635_v48  ;;  %v13374_v26 = vadd.s32 %v13278_v22, %v5636_v59 }
 0x42b   : > { %17191 = vst [vmem:[#allocation365_spill] sm:$0xff] %v13341_v61  ;;  %17192 = vst [vmem:[#allocation366_spill] sm:$0xff] %v13344_v44  ;;  %v13377_v49 = vadd.s32 %v13278_v22, %v5637_v2  ;;  %v13380_v21 = vadd.s32 %v13278_v22, %v5638_v37  ;;  %v13383_v16 = vadd.s32 %v13278_v22, %v5639_v30 }
 0x42c   : > { %17193 = vst [vmem:[#allocation367_spill] sm:$0xff] %v13347_v34  ;;  %17194 = vst [vmem:[#allocation368_spill] sm:$0xff] %v13350_v32  ;;  %v13386_v15 = vadd.s32 %v13278_v22, %v5640_v56  ;;  %v13389_v50 = vadd.s32 %v13278_v22, %v5641_v36  ;;  %v13392_v48 = vadd.s32 %v13278_v22, %v5642_v14 }
 0x42d   : > { %17195 = vst [vmem:[#allocation369_spill] sm:$0xff] %v13353_v43  ;;  %17196 = vst [vmem:[#allocation370_spill] sm:$0xff] %v13356_v12  ;;  %v13395_v59 = vadd.s32 %v13278_v22, %v5643_v0  ;;  %v13398_v2 = vadd.s32 %v13278_v22, %v5644_v23  ;;  %v13401_v37 = vadd.s32 %v13278_v22, %v5645_v62 }
 0x42e   : > { %17197 = vst [vmem:[#allocation371_spill] sm:$0xff] %v13359_v9  ;;  %17198 = vst [vmem:[#allocation372_spill] sm:$0xff] %v13362_v51  ;;  %v13404_v30 = vadd.s32 %v13278_v22, %v5646_v10  ;;  %v13407_v56 = vadd.s32 %v13278_v22, %v5647_v3  ;;  %v13410_v36 = vadd.s32 %v13278_v22, %v5648_v28 }
 0x42f   : > { %17199 = vst [vmem:[#allocation373_spill] sm:$0xff] %v13365_v8  ;;  %17200 = vst [vmem:[#allocation374_spill] sm:$0xff] %v13368_v38  ;;  %v13413_v14 = vadd.s32 %v13278_v22, %v5649_v55  ;;  %v13416_v0 = vadd.s32 %v13278_v22, %v5650_v63  ;;  %v13419_v23 = vadd.s32 %v13278_v22, %v5651_v54 }
 0x430   : > { %17201 = vst [vmem:[#allocation375_spill] sm:$0xff] %v13371_v52  ;;  %17202 = vst [vmem:[#allocation376_spill] sm:$0xff] %v13374_v26  ;;  %v13422_v62 = vadd.s32 %v13278_v22, %v5652_v45  ;;  %v13425_v10 = vadd.s32 %v13278_v22, %v5653_v42  ;;  %v13428_v3 = vadd.s32 %v13278_v22, %v5654_v39  ;;  %v5573_v45 = vadd.s32 128, %v13219_v5  ;;  %v17255_v26 = vld [vmem:[#allocation7_spill] sm:$0xff] }
 0x431   : > { %17203 = vst [vmem:[#allocation377_spill] sm:$0xff] %v13377_v49  ;;  %17204 = vst [vmem:[#allocation378_spill] sm:$0xff] %v13380_v21  ;;  %v13431_v28 = vadd.s32 %v13278_v22, %v5655_v41  ;;  %v13434_v55 = vadd.s32 %v13278_v22, %v5656_v29  ;;  %v13437_v63 = vadd.s32 %v13278_v22, %v5657_v25  ;;  %v5574_v42 = vadd.s32 256, %v13219_v5 }
 0x432   : > { %17205 = vst [vmem:[#allocation379_spill] sm:$0xff] %v13383_v16  ;;  %17206 = vst [vmem:[#allocation380_spill] sm:$0xff] %v13386_v15  ;;  %v13440_v54 = vadd.s32 %v13278_v22, %v5658_v27  ;;  %v13447_v39 = vadd.s32 %v13278_v22, %v13219_v5  ;;  %v13450_v41 = vadd.s32 %v13278_v22, %v5573_v45  ;;  %v5576_v29 = vadd.s32 512, %v13219_v5 }
 0x433   : > { %17207 = vst [vmem:[#allocation381_spill] sm:$0xff] %v13389_v50  ;;  %17208 = vst [vmem:[#allocation382_spill] sm:$0xff] %v13392_v48  ;;  %v13454_v25 = vadd.s32 %v13278_v22, %v5574_v42  ;;  %v5577_v27 = vadd.s32 640, %v13219_v5  ;;  %v17227_v45 = vmax.f32 %v10612_v11, 0.0 }
 0x434   : > { %17209 = vst [vmem:[#allocation383_spill] sm:$0xff] %v13395_v59  ;;  %17210 = vst [vmem:[#allocation384_spill] sm:$0xff] %v13398_v2  ;;  %vm16088_vm3 = vcmp.lt.s32.totalorder %v13447_v39, 22201  ;;  %vm16089_vm4 = vcmp.lt.s32.totalorder %v13450_v41, 22201 }
 0x435   : > { %17211 = vst [vmem:[#allocation385_spill] sm:$0xff] %v13401_v37  ;;  %17212 = vst [vmem:[#allocation386_spill] sm:$0xff] %v13404_v30  ;;  %vm16061_vm5 = vcmp.lt.s32.totalorder %v13454_v25, 22201  ;;  %v5834_v42 = vsel %vm16088_vm3, %v17227_v45, 0.0  ;;  %v17234_v30 = vld [vmem:[#allocation19_spill] sm:$0xff] }
 0x436   : > { %17213 = vst [vmem:[#allocation387_spill] sm:$0xff] %v13407_v56  ;;  %17214 = vst [vmem:[#allocation388_spill] sm:$0xff] %v13410_v36  ;;  %v5581_v56 = vadd.s32 1152, %v13219_v5  ;;  %v17235_v37 = vmax.f32 %v17234_v30, 0.0 }
 0x437   : > { %17215 = vst [vmem:[#allocation389_spill] sm:$0xff] %v13413_v14  ;;  %17216 = vst [vmem:[#allocation390_spill] sm:$0xff] %v13416_v0  ;;  %v5580_v14 = vadd.s32 1024, %v13219_v5 }
 0x438   : > { %17217 = vst [vmem:[#allocation391_spill] sm:$0xff] %v13419_v23  ;;  %17218 = vst [vmem:[#allocation392_spill] sm:$0xff] %v13422_v62  ;;  %v5579_v62 = vadd.s32 896, %v13219_v5  ;;  %v13477_v23 = vadd.s32 %v13278_v22, %v5577_v27  ;;  %v13513_v30 = vadd.s32 %v13278_v22, %v5581_v56 }
 0x439   : > { %17219 = vst [vmem:[#allocation393_spill] sm:$0xff] %v13425_v10  ;;  %17220 = vst [vmem:[#allocation394_spill] sm:$0xff] %v13428_v3  ;;  %v5575_v10 = vadd.s32 384, %v13219_v5 }
 0x43a   : > { %17221 = vst [vmem:[#allocation395_spill] sm:$0xff] %v13431_v28  ;;  %17222 = vst [vmem:[#allocation396_spill] sm:$0xff] %v13434_v55  ;;  %v13464_v55 = vadd.s32 %v13278_v22, %v5576_v29  ;;  %v17228_v28 = vld [vmem:[#allocation5_spill] sm:$0xff]  ;;  %v17230_v29 = vld [vmem:[#allocation4_spill] sm:$0xff]  ;;  %vm16067_vm8 = vcmp.lt.s32.totalorder %v13477_v23, 22201  ;;  %vm16075_vm12 = vcmp.lt.s32.totalorder %v13513_v30, 22201 }
 0x43b   : > { %17223 = vst [vmem:[#allocation397_spill] sm:$0xff] %v13437_v63  ;;  %17224 = vst [vmem:[#allocation398_spill] sm:$0xff] %v13440_v54  ;;  %v13458_v54 = vadd.s32 %v13278_v22, %v5575_v10  ;;  %v5578_v63 = vadd.s32 768, %v13219_v5  ;;  %v17229_v3 = vmax.f32 %v17228_v28, 0.0  ;;  %v17231_v0 = vmax.f32 %v17230_v29, 0.0  ;;  %v17232_v28 = vld [vmem:[#allocation6_spill] sm:$0xff] }
 0x43c   : > { %17225 = vst [vmem:[#allocation399_spill] sm:$0xff] %v13450_v41  ;;  %17226 = vst [vmem:[#allocation400_spill] sm:$0xff] %v13454_v25  ;;  %vm16065_vm7 = vcmp.lt.s32.totalorder %v13464_v55, 22201  ;;  %v17233_v36 = vmax.f32 %v17232_v28, 0.0  ;;  %v13495_v29 = vadd.s32 %v13278_v22, %v5579_v62  ;;  %v17236_v28 = vld [vmem:[#allocation21_spill] sm:$0xff] }
 0x43d   : > { %v5835_v10 = vsel %vm16089_vm4, %v17229_v3, 0.0  ;;  %vm16063_vm6 = vcmp.lt.s32.totalorder %v13458_v54, 22201  ;;  %v5836_v11 = vsel %vm16061_vm5, %v17231_v0, 0.0  ;;  %v13486_v45 = vadd.s32 %v13278_v22, %v5578_v63 }
 0x43e   : > { %v6186_v3 = vadd.f32 %v5835_v10, %v5834_v42  ;;  %v5837_v27 = vsel %vm16063_vm6, %v17233_v36, 0.0  ;;  %v5838_v63 = vsel %vm16065_vm7, %v17235_v37, 0.0  ;;  %v5582_v42 = vadd.s32 1280, %v13219_v5 }
 0x43f   : > { %v13504_v10 = vadd.s32 %v13278_v22, %v5580_v14  ;;  %vm16069_vm9 = vcmp.lt.s32.totalorder %v13486_v45, 22201  ;;  %v17237_v2 = vmax.f32 %v17236_v28, 0.0  ;;  %vm16071_vm10 = vcmp.lt.s32.totalorder %v13495_v29, 22201  ;;  %v17240_v28 = vld [vmem:[#allocation22_spill] sm:$0xff] }
 0x440   : > { %v6187_v0 = vadd.f32 %v6186_v3, %v5836_v11  ;;  %v5583_v11 = vadd.s32 1408, %v13219_v5  ;;  %v17238_v3 = vld [vmem:[#allocation20_spill] sm:$0xff]  ;;  %v17241_v48 = vmax.f32 %v17240_v28, 0.0  ;;  %v17244_v28 = vld [vmem:[#allocation37_spill] sm:$0xff] }
 0x441   : > { %v5839_v62 = vsel %vm16067_vm8, %v17237_v2, 0.0  ;;  %v17239_v59 = vmax.f32 %v17238_v3, 0.0  ;;  %vm16073_vm11 = vcmp.lt.s32.totalorder %v13504_v10, 22201  ;;  %v17242_v3 = vld [vmem:[#allocation35_spill] sm:$0xff]  ;;  %v17245_v15 = vmax.f32 %v17244_v28, 0.0  ;;  %v17250_v28 = vld [vmem:[#allocation38_spill] sm:$0xff] }
 0x442   : > { %v6188_v36 = vadd.f32 %v6187_v0, %v5837_v27  ;;  %v5584_v27 = vadd.s32 1536, %v13219_v5  ;;  %v13522_v0 = vadd.s32 %v13278_v22, %v5582_v42  ;;  %v5841_v56 = vsel %vm16071_vm10, %v17241_v48, 0.0 }
 0x443   : > { %v5840_v14 = vsel %vm16069_vm9, %v17239_v59, 0.0  ;;  %v17243_v50 = vmax.f32 %v17242_v3, 0.0  ;;  %v17247_v3 = vld [vmem:[#allocation36_spill] sm:$0xff]  ;;  %v17251_v21 = vmax.f32 %v17250_v28, 0.0  ;;  %v17257_v28 = vld [vmem:[#allocation9_spill] sm:$0xff] }
 0x444   : > { %v6189_v37 = vadd.f32 %v6188_v36, %v5838_v63  ;;  %v5585_v63 = vadd.s32 1664, %v13219_v5  ;;  %v13531_v36 = vadd.s32 %v13278_v22, %v5583_v11  ;;  %vm16077_vm13 = vcmp.lt.s32.totalorder %v13522_v0, 22201 }
 0x445   : > { %v5842_v42 = vsel %vm16073_vm11, %v17243_v50, 0.0  ;;  %v5843_v11 = vsel %vm16075_vm12, %v17245_v15, 0.0  ;;  %v17248_v16 = vmax.f32 %v17247_v3, 0.0  ;;  %v17253_v3 = vld [vmem:[#allocation51_spill] sm:$0xff] }
 0x446   : > { %v6190_v2 = vadd.f32 %v6189_v37, %v5839_v62  ;;  %v5586_v62 = vadd.s32 1792, %v13219_v5  ;;  %v13540_v37 = vadd.s32 %v13278_v22, %v5584_v27  ;;  %vm16079_vm14 = vcmp.lt.s32.totalorder %v13531_v36, 22201 }
 0x447   : > { %v5844_v27 = vsel %vm16077_vm13, %v17248_v16, 0.0  ;;  %v17254_v49 = vmax.f32 %v17253_v3, 0.0 }
 0x448   : > { %v6191_v59 = vadd.f32 %v6190_v2, %v5840_v14  ;;  %v5587_v14 = vadd.s32 1920, %v13219_v5  ;;  %v13549_v2 = vadd.s32 %v13278_v22, %v5585_v63  ;;  %vm16081_vm15 = vcmp.lt.s32.totalorder %v13540_v37, 22201 }
 0x449   : > { %v5845_v63 = vsel %vm16079_vm14, %v17251_v21, 0.0  ;;  %v17258_v21 = vmax.f32 %v17257_v28, 0.0 }
 0x44a   : > { %v6192_v48 = vadd.f32 %v6191_v59, %v5841_v56  ;;  %17246 = vst [vmem:[#allocation401_spill] sm:$0xff] %v13549_v2  ;;  %v5588_v56 = vadd.s32 2048, %v13219_v5  ;;  %v13558_v59 = vadd.s32 %v13278_v22, %v5586_v62  ;;  %vm16083_vm0 = vcmp.lt.s32.totalorder %v13549_v2, 22201 }
 0x44b   : > { %v5846_v62 = vsel %vm16081_vm15, %v17254_v49, 0.0  ;;  %v5922_v52 = vsel %vm16089_vm4, %v17258_v21, 0.0  ;;  %v5591_v49 = vadd.s32 2432, %v13219_v5 }
 0x44c   : > { %v6193_v50 = vadd.f32 %v6192_v48, %v5842_v42  ;;  %17249 = vst [vmem:[#allocation402_spill] sm:$0xff] %v13558_v59  ;;  %v5589_v42 = vadd.s32 2176, %v13219_v5  ;;  %v13567_v48 = vadd.s32 %v13278_v22, %v5587_v14  ;;  %v5590_v14 = vadd.s32 2304, %v13219_v5 }
 0x44d   : > { %v13584_v38 = vadd.s32 %v13278_v22, %v5588_v56  ;;  %vm16085_vm2 = vcmp.lt.s32.totalorder %v13558_v59, 22201 }
 0x44e   : > { %v6194_v15 = vadd.f32 %v6193_v50, %v5843_v11  ;;  %17252 = vst [vmem:[#allocation403_spill] sm:$0xff] %v13567_v48  ;;  %v17256_v11 = vmax.f32 %v17255_v26, 0.0  ;;  %v13597_v8 = vadd.s32 %v13278_v22, %v5589_v42  ;;  %vm16108_vm1 = vcmp.lt.s32.totalorder %v13567_v48, 22201 }
 0x44f   : > { %17259 = vst [vmem:[#allocation404_spill] sm:$0xff] %v13584_v38 }
 0x450   : > { %v6195_v16 = vadd.f32 %v6194_v15, %v5844_v27  ;;  %v5921_v50 = vsel %vm16088_vm3, %v17256_v11, 0.0  ;;  %v17260_v15 = vld [vmem:[#allocation53_spill] sm:$0xff]  ;;  %v17262_v11 = vld [vmem:[#allocation8_spill] sm:$0xff]  ;;  %17264 = vst [vmem:[#allocation405_spill] sm:$0xff] %v13597_v8 }
 0x451   : > { %v17261_v26 = vmax.f32 %v17260_v15, 0.0  ;;  %v17263_v28 = vmax.f32 %v17262_v11, 0.0  ;;  %v6274_v51 = vadd.f32 %v5922_v52, %v5921_v50  ;;  %v5593_v52 = vadd.s32 2688, %v13219_v5  ;;  %v17270_v50 = vld [vmem:[#allocation54_spill] sm:$0xff] }
 0x452   : > { %v6196_v27 = vadd.f32 %v6195_v16, %v5845_v63  ;;  %v5592_v63 = vadd.s32 2560, %v13219_v5  ;;  %v17265_v16 = vld [vmem:[#allocation52_spill] sm:$0xff] }
 0x453   : > { %v5847_v3 = vsel %vm16083_vm0, %v17261_v26, 0.0  ;;  %v5923_v21 = vsel %vm16061_vm5, %v17263_v28, 0.0  ;;  %v17266_v9 = vmax.f32 %v17265_v16, 0.0  ;;  %v17267_v26 = vld [vmem:[#allocation10_spill] sm:$0xff]  ;;  %v13610_v28 = vadd.s32 %v13278_v22, %v5590_v14 }
 0x454   : > { %v6197_v56 = vadd.f32 %v6196_v27, %v5846_v62  ;;  %v17268_v12 = vmax.f32 %v17267_v26, 0.0  ;;  %vm16092_vm5 = vcmp.lt.s32.totalorder %v13584_v38, 22201  ;;  %v6275_v62 = vadd.f32 %v6274_v51, %v5923_v21  ;;  %v17275_v21 = vld [vmem:[#allocation67_spill] sm:$0xff] }
 0x455   : > { %v5848_v15 = vsel %vm16085_vm2, %v17266_v9, 0.0  ;;  %17269 = vst [vmem:[#allocation406_spill] sm:$0xff] %v13610_v28  ;;  %v17271_v27 = vmax.f32 %v17270_v50, 0.0  ;;  %v17272_v9 = vld [vmem:[#allocation23_spill] sm:$0xff]  ;;  %v5594_v51 = vadd.s32 2816, %v13219_v5 }
 0x456   : > { %v5924_v11 = vsel %vm16063_vm6, %v17268_v12, 0.0  ;;  %v6198_v42 = vadd.f32 %v6197_v56, %v5847_v3  ;;  %v17273_v43 = vmax.f32 %v17272_v9, 0.0  ;;  %v13623_v12 = vadd.s32 %v13278_v22, %v5591_v49 }
 0x457   : > { %v5849_v16 = vsel %vm16108_vm1, %v17271_v27, 0.0  ;;  %vm16091_vm6 = vcmp.lt.s32.totalorder %v13597_v8, 22201  ;;  %v6276_v3 = vadd.f32 %v6275_v62, %v5924_v11  ;;  %v17276_v56 = vmax.f32 %v17275_v21, 0.0  ;;  %v17277_v27 = vld [vmem:[#allocation25_spill] sm:$0xff] }
 0x458   : > { %v5925_v26 = vsel %vm16065_vm7, %v17273_v43, 0.0  ;;  %17274 = vst [vmem:[#allocation407_spill] sm:$0xff] %v13623_v12  ;;  %v6199_v14 = vadd.f32 %v6198_v42, %v5848_v15  ;;  %v17278_v32 = vmax.f32 %v17277_v27, 0.0  ;;  %v13636_v43 = vadd.s32 %v13278_v22, %v5592_v63  ;;  %v17280_v42 = vld [vmem:[#allocation69_spill] sm:$0xff] }
 0x459   : > { %v5850_v50 = vsel %vm16092_vm5, %v17276_v56, 0.0  ;;  %vm16094_vm7 = vcmp.lt.s32.totalorder %v13610_v28, 22201  ;;  %v6277_v15 = vadd.f32 %v6276_v3, %v5925_v26  ;;  %v5595_v11 = vadd.s32 2944, %v13219_v5  ;;  %v17282_v56 = vld [vmem:[#allocation24_spill] sm:$0xff] }
 0x45a   : > { %v5926_v9 = vsel %vm16067_vm8, %v17278_v32, 0.0  ;;  %17279 = vst [vmem:[#allocation408_spill] sm:$0xff] %v13636_v43  ;;  %v6200_v49 = vadd.f32 %v6199_v14, %v5849_v16  ;;  %v17281_v62 = vmax.f32 %v17280_v42, 0.0  ;;  %v17283_v34 = vmax.f32 %v17282_v56, 0.0  ;;  %v17284_v14 = vld [vmem:[#allocation68_spill] sm:$0xff] }
 0x45b   : > { %v13649_v32 = vadd.s32 %v13278_v22, %v5593_v52  ;;  %vm16095_vm8 = vcmp.lt.s32.totalorder %v13623_v12, 22201  ;;  %v6278_v16 = vadd.f32 %v6277_v15, %v5926_v9  ;;  %v5596_v26 = vadd.s32 3072, %v13219_v5 }
 0x45c   : > { %v5851_v21 = vsel %vm16091_vm6, %v17281_v62, 0.0  ;;  %v5927_v27 = vsel %vm16069_vm9, %v17283_v34, 0.0  ;;  %v6201_v63 = vadd.f32 %v6200_v49, %v5850_v50  ;;  %v17285_v3 = vmax.f32 %v17284_v14, 0.0  ;;  %v17286_v62 = vld [vmem:[#allocation26_spill] sm:$0xff] }
 0x45d   : > { %v17287_v44 = vmax.f32 %v17286_v62, 0.0  ;;  %v13662_v34 = vadd.s32 %v13278_v22, %v5594_v51  ;;  %vm16096_vm9 = vcmp.lt.s32.totalorder %v13636_v43, 22201  ;;  %v6279_v50 = vadd.f32 %v6278_v16, %v5927_v27  ;;  %v17288_v49 = vld [vmem:[#allocation70_spill] sm:$0xff] }
 0x45e   : > { %v5852_v42 = vsel %vm16094_vm7, %v17285_v3, 0.0  ;;  %v6202_v52 = vadd.f32 %v6201_v63, %v5851_v21  ;;  %v5597_v9 = vadd.s32 3200, %v13219_v5  ;;  %v17289_v15 = vmax.f32 %v17288_v49, 0.0  ;;  %v17290_v3 = vld [vmem:[#allocation39_spill] sm:$0xff] }
 0x45f   : > { %v5928_v56 = vsel %vm16071_vm10, %v17287_v44, 0.0  ;;  %v17291_v61 = vmax.f32 %v17290_v3, 0.0  ;;  %v13675_v44 = vadd.s32 %v13278_v22, %v5595_v11  ;;  %vm16097_vm10 = vcmp.lt.s32.totalorder %v13649_v32, 22201  ;;  %v17292_v63 = vld [vmem:[#allocation83_spill] sm:$0xff] }
 0x460   : > { %v5853_v14 = vsel %vm16095_vm8, %v17289_v15, 0.0  ;;  %v6203_v51 = vadd.f32 %v6202_v52, %v5852_v42  ;;  %v6280_v21 = vadd.f32 %v6279_v50, %v5928_v56  ;;  %v5598_v27 = vadd.s32 3328, %v13219_v5  ;;  %v17294_v15 = vld [vmem:[#allocation41_spill] sm:$0xff] }
 0x461   : > { %v5929_v62 = vsel %vm16073_vm11, %v17291_v61, 0.0  ;;  %v17293_v16 = vmax.f32 %v17292_v63, 0.0  ;;  %v17295_v18 = vmax.f32 %v17294_v15, 0.0  ;;  %v13688_v61 = vadd.s32 %v13278_v22, %v5596_v26  ;;  %v17296_v52 = vld [vmem:[#allocation85_spill] sm:$0xff] }
 0x462   : > { %vm16098_vm11 = vcmp.lt.s32.totalorder %v13662_v34, 22201  ;;  %v6204_v11 = vadd.f32 %v6203_v51, %v5853_v14  ;;  %v6281_v42 = vadd.f32 %v6280_v21, %v5929_v62  ;;  %v5599_v56 = vadd.s32 3456, %v13219_v5  ;;  %v17300_v51 = vld [vmem:[#allocation84_spill] sm:$0xff] }
 0x463   : > { %v5854_v49 = vsel %vm16096_vm9, %v17293_v16, 0.0  ;;  %v5930_v3 = vsel %vm16075_vm12, %v17295_v18, 0.0  ;;  %v17297_v50 = vmax.f32 %v17296_v52, 0.0  ;;  %v17298_v16 = vld [vmem:[#allocation40_spill] sm:$0xff]  ;;  %v13701_v18 = vadd.s32 %v13278_v22, %v5597_v9 }
 0x464   : > { %v17299_v6 = vmax.f32 %v17298_v16, 0.0  ;;  %vm16099_vm12 = vcmp.lt.s32.totalorder %v13675_v44, 22201  ;;  %v6205_v26 = vadd.f32 %v6204_v11, %v5854_v49  ;;  %v6282_v14 = vadd.f32 %v6281_v42, %v5930_v3  ;;  %v17304_v11 = vld [vmem:[#allocation86_spill] sm:$0xff] }
 0x465   : > { %v5855_v63 = vsel %vm16097_vm10, %v17297_v50, 0.0  ;;  %v5600_v62 = vadd.s32 3584, %v13219_v5  ;;  %v17301_v21 = vmax.f32 %v17300_v51, 0.0  ;;  %v17302_v50 = vld [vmem:[#allocation42_spill] sm:$0xff]  ;;  %v5601_v3 = vadd.s32 3712, %v13219_v5 }
 0x466   : > { %v5931_v15 = vsel %vm16077_vm13, %v17299_v6, 0.0  ;;  %v17303_v4 = vmax.f32 %v17302_v50, 0.0  ;;  %v13714_v6 = vadd.s32 %v13278_v22, %v5598_v27  ;;  %vm16100_vm13 = vcmp.lt.s32.totalorder %v13688_v61, 22201 }
 0x467   : > { %v5856_v52 = vsel %vm16098_vm11, %v17301_v21, 0.0  ;;  %v6206_v9 = vadd.f32 %v6205_v26, %v5855_v63  ;;  %v6283_v49 = vadd.f32 %v6282_v14, %v5931_v15  ;;  %v17305_v42 = vmax.f32 %v17304_v11, 0.0  ;;  %v17306_v21 = vld [vmem:[#allocation55_spill] sm:$0xff] }
 0x468   : > { %v5932_v16 = vsel %vm16079_vm14, %v17303_v4, 0.0  ;;  %v17307_v58 = vmax.f32 %v17306_v21, 0.0  ;;  %v13727_v4 = vadd.s32 %v13278_v22, %v5599_v56  ;;  %vm16086_vm14 = vcmp.lt.s32.totalorder %v13701_v18, 22201  ;;  %v17308_v26 = vld [vmem:[#allocation99_spill] sm:$0xff] }
 0x469   : > { %v5857_v51 = vsel %vm16099_vm12, %v17305_v42, 0.0  ;;  %v6207_v27 = vadd.f32 %v6206_v9, %v5856_v52  ;;  %v6284_v63 = vadd.f32 %v6283_v49, %v5932_v16  ;;  %v5602_v15 = vadd.s32 3840, %v13219_v5  ;;  %v17310_v42 = vld [vmem:[#allocation57_spill] sm:$0xff] }
 0x46a   : > { %v5933_v50 = vsel %vm16081_vm15, %v17307_v58, 0.0  ;;  %v17309_v14 = vmax.f32 %v17308_v26, 0.0  ;;  %v17311_v47 = vmax.f32 %v17310_v42, 0.0  ;;  %v13740_v58 = vadd.s32 %v13278_v22, %v5600_v62  ;;  %v17313_v49 = vld [vmem:[#allocation101_spill] sm:$0xff]  ;;  %v17315_v42 = vld [vmem:[#allocation56_spill] sm:$0xff] }
 0x46b   : > { %vm16102_vm15 = vcmp.lt.s32.totalorder %v13714_v6, 22201  ;;  %v6208_v56 = vadd.f32 %v6207_v27, %v5857_v51  ;;  %v6285_v52 = vadd.f32 %v6284_v63, %v5933_v50  ;;  %v5603_v16 = vadd.s32 3968, %v13219_v5  ;;  %v17317_v27 = vld [vmem:[#allocation100_spill] sm:$0xff] }
 0x46c   : > { %v5858_v11 = vsel %vm16100_vm13, %v17309_v14, 0.0  ;;  %v5934_v21 = vsel %vm16083_vm0, %v17311_v47, 0.0  ;;  %v13745_v9 = vadd.s32 %v13278_v22, %v5601_v3  ;;  %v17314_v26 = vmax.f32 %v17313_v49, 0.0  ;;  %v17319_v49 = vld [vmem:[#allocation58_spill] sm:$0xff] }
 0x46d   : > { %v17316_v33 = vmax.f32 %v17315_v42, 0.0  ;;  %vm16103_vm0 = vcmp.lt.s32.totalorder %v13727_v4, 22201  ;;  %v6209_v62 = vadd.f32 %v6208_v56, %v5858_v11  ;;  %v6286_v51 = vadd.f32 %v6285_v52, %v5934_v21 }
 0x46e   : > { %17312 = vst [vmem:[#allocation409_spill] sm:$0xff] %v13745_v9  ;;  %v5859_v14 = vsel %vm16086_vm14, %v17314_v26, 0.0  ;;  %v5604_v50 = vadd.s32 4096, %v13219_v5  ;;  %v17318_v63 = vmax.f32 %v17317_v27, 0.0  ;;  %v17320_v31 = vmax.f32 %v17319_v49, 0.0  ;;  %v17323_v5 = vld [vmem:[#allocation102_spill] sm:$0xff] }
 0x46f   : > { %v5935_v47 = vsel %vm16085_vm2, %v17316_v33, 0.0  ;;  %v13766_v42 = vadd.s32 %v13278_v22, %v5602_v15  ;;  %vm16104_vm2 = vcmp.lt.s32.totalorder %v13740_v58, 22201  ;;  %v6210_v33 = vadd.f32 %v6209_v62, %v5859_v14  ;;  %v17325_v27 = vld [vmem:[#allocation71_spill] sm:$0xff] }
 0x470   : > { %v5860_v3 = vsel %vm16102_vm15, %v17318_v63, 0.0  ;;  %v5936_v26 = vsel %vm16108_vm1, %v17320_v31, 0.0  ;;  %v6287_v11 = vadd.f32 %v6286_v51, %v5935_v47  ;;  %v13770_v21 = vadd.s32 %v13278_v22, %v5603_v16  ;;  %v17329_v47 = vld [vmem:[#allocation13_spill] sm:$0xff] }
 0x471   : > { %17321 = vst [vmem:[#allocation410_spill] sm:$0xff] %v13766_v42  ;;  %vm16105_vm14 = vcmp.lt.s32.totalorder %v13745_v9, 22201  ;;  %v17324_v56 = vmax.f32 %v17323_v5, 0.0  ;;  %v17326_v63 = vmax.f32 %v17325_v27, 0.0  ;;  %v6211_v15 = vadd.f32 %v6210_v33, %v5860_v3  ;;  %v17334_v3 = vld [vmem:[#allocation73_spill] sm:$0xff] }
 0x472   : > { %17322 = vst [vmem:[#allocation411_spill] sm:$0xff] %v13770_v21  ;;  %v6288_v49 = vadd.f32 %v6287_v11, %v5936_v26  ;;  %v17328_v14 = vmax.f32 %v17327_v20, 0.0  ;;  %v17330_v62 = vmax.f32 %v17329_v47, 0.0  ;;  %v13790_v5 = vadd.s32 %v13278_v22, %v5604_v50  ;;  %v17339_v50 = vld [vmem:[#allocation117_spill] sm:$0xff] }
 0x473   : > { %v5861_v52 = vsel %vm16103_vm0, %v17324_v56, 0.0  ;;  %v5937_v31 = vsel %vm16092_vm5, %v17326_v63, 0.0  ;;  %v17332_v56 = vld [vmem:[#allocation115_spill] sm:$0xff]  ;;  %v17335_v26 = vmax.f32 %v17334_v3, 0.0  ;;  %vm17345_vm5 = vcmp.lt.s32.totalorder %v13458_v54, 22201 }
 0x474   : > { %v6008_v16 = vsel %vm16088_vm3, %v17328_v14, 0.0  ;;  %v6009_v51 = vsel %vm16089_vm4, %v17330_v62, 0.0  ;;  %17331 = vst [vmem:[#allocation412_spill] sm:$0xff] %v13790_v5  ;;  %v17333_v27 = vmax.f32 %v17332_v56, 0.0  ;;  %vm16107_vm3 = vcmp.lt.s32.totalorder %v13766_v42, 22201  ;;  %v17336_v14 = vld [vmem:[#allocation12_spill] sm:$0xff] }
 0x475   : > { %v5938_v20 = vsel %vm16091_vm6, %v17335_v26, 0.0  ;;  %v6212_v33 = vadd.f32 %v6211_v15, %v5861_v52  ;;  %v6289_v11 = vadd.f32 %v6288_v49, %v5937_v31  ;;  %v17337_v47 = vmax.f32 %v17336_v14, 0.0  ;;  %v17343_v15 = vld [vmem:[#allocation14_spill] sm:$0xff] }
 0x476   : > { %v5862_v63 = vsel %vm16104_vm2, %v17333_v27, 0.0  ;;  %vm17338_vm4 = vcmp.lt.s32.totalorder %v13454_v25, 22201  ;;  %v17340_v62 = vmax.f32 %v17339_v50, 0.0  ;;  %v17341_v27 = vld [vmem:[#allocation72_spill] sm:$0xff]  ;;  %v6362_v26 = vadd.f32 %v6009_v51, %v6008_v16  ;;  %v17348_v25 = vld [vmem:[#allocation74_spill] sm:$0xff] }
 0x477   : > { %v6010_v22 = vsel %vm17338_vm4, %v17337_v47, 0.0  ;;  %v17342_v41 = vmax.f32 %v17341_v27, 0.0  ;;  %vm16112_vm6 = vcmp.lt.s32.totalorder %v13770_v21, 22201  ;;  %v6213_v52 = vadd.f32 %v6212_v33, %v5862_v63  ;;  %v17346_v47 = vld [vmem:[#allocation116_spill] sm:$0xff] }
 0x478   : > { %v5863_v56 = vsel %vm16105_vm14, %v17340_v62, 0.0  ;;  %v6290_v31 = vadd.f32 %v6289_v11, %v5938_v20  ;;  %v17344_v49 = vmax.f32 %v17343_v15, 0.0  ;;  %v17347_v50 = vmax.f32 %v17346_v47, 0.0  ;;  %v17350_v20 = vld [vmem:[#allocation27_spill] sm:$0xff]  ;;  %v17353_v15 = vld [vmem:[#allocation118_spill] sm:$0xff] }
 0x479   : > { %v5939_v3 = vsel %vm16094_vm7, %v17342_v41, 0.0  ;;  %v17349_v27 = vmax.f32 %v17348_v25, 0.0  ;;  %v6363_v16 = vadd.f32 %v6362_v26, %v6010_v22  ;;  %vm16117_vm4 = vcmp.lt.s32.totalorder %v13790_v5, 22201  ;;  %v17357_v26 = vld [vmem:[#allocation29_spill] sm:$0xff] }
 0x47a   : > { %v6011_v14 = vsel %vm17345_vm5, %v17344_v49, 0.0  ;;  %v5864_v62 = vsel %vm16107_vm3, %v17347_v50, 0.0  ;;  %v6214_v51 = vadd.f32 %v6213_v52, %v5863_v56  ;;  %v6291_v63 = vadd.f32 %v6290_v31, %v5939_v3  ;;  %v17355_v50 = vld [vmem:[#allocation87_spill] sm:$0xff] }
 0x47b   : > { %v5940_v41 = vsel %vm16095_vm8, %v17349_v27, 0.0  ;;  %v17351_v33 = vmax.f32 %v17350_v20, 0.0  ;;  %vm17352_vm7 = vcmp.lt.s32.totalorder %v13464_v55, 22201  ;;  %v17354_v49 = vmax.f32 %v17353_v15, 0.0  ;;  %v17360_v20 = vld [vmem:[#allocation131_spill] sm:$0xff] }
 0x47c   : > { %v17356_v25 = vmax.f32 %v17355_v50, 0.0  ;;  %v6364_v22 = vadd.f32 %v6363_v16, %v6011_v14  ;;  %vm16119_vm5 = vcmp.lt.s32.totalorder %v13281_v40, 22201  ;;  %v6215_v56 = vadd.f32 %v6214_v51, %v5864_v62  ;;  %v17364_v16 = vld [vmem:[#allocation28_spill] sm:$0xff]  ;;  %v17469_v40 = vld [vmem:[#allocation399_spill] sm:$0xff] }
 0x47d   : > { %v6012_v11 = vsel %vm17352_vm7, %v17351_v33, 0.0  ;;  %v5865_v47 = vsel %vm16112_vm6, %v17354_v49, 0.0  ;;  %v6292_v3 = vadd.f32 %v6291_v63, %v5940_v41  ;;  %v17358_v52 = vmax.f32 %v17357_v26, 0.0  ;;  %v17362_v49 = vld [vmem:[#allocation89_spill] sm:$0xff] }
 0x47e   : > { %v5941_v27 = vsel %vm16096_vm9, %v17356_v25, 0.0  ;;  %vm17359_vm8 = vcmp.lt.s32.totalorder %v13477_v23, 22201  ;;  %v17361_v33 = vmax.f32 %v17360_v20, 0.0  ;;  %v17363_v50 = vmax.f32 %v17362_v49, 0.0  ;;  %v17367_v26 = vld [vmem:[#allocation133_spill] sm:$0xff] }
 0x47f   : > { %v6013_v31 = vsel %vm17359_vm8, %v17358_v52, 0.0  ;;  %v6365_v14 = vadd.f32 %v6364_v22, %v6012_v11  ;;  %vm16126_vm7 = vcmp.lt.s32.totalorder %v13284_v35, 22201  ;;  %v6216_v62 = vadd.f32 %v6215_v56, %v5865_v47  ;;  %v17371_v22 = vld [vmem:[#allocation30_spill] sm:$0xff]  ;;  %v17471_v35 = vld [vmem:[#allocation363_spill] sm:$0xff] }
 0x480   : > { %v5866_v15 = vsel %vm16117_vm4, %v17361_v33, 0.0  ;;  %v5942_v25 = vsel %vm16097_vm10, %v17363_v50, 0.0  ;;  %v6293_v41 = vadd.f32 %v6292_v3, %v5941_v27  ;;  %v17365_v51 = vmax.f32 %v17364_v16, 0.0  ;;  %v17369_v33 = vld [vmem:[#allocation88_spill] sm:$0xff] }
 0x481   : > { %vm17366_vm9 = vcmp.lt.s32.totalorder %v13486_v45, 22201  ;;  %v17368_v52 = vmax.f32 %v17367_v26, 0.0  ;;  %v17370_v49 = vmax.f32 %v17369_v33, 0.0  ;;  %v6366_v11 = vadd.f32 %v6365_v14, %v6013_v31  ;;  %v17374_v16 = vld [vmem:[#allocation132_spill] sm:$0xff]  ;;  %v17378_v14 = vld [vmem:[#allocation43_spill] sm:$0xff] }
 0x482   : > { %v6014_v63 = vsel %vm17366_vm9, %v17365_v51, 0.0  ;;  %vm16101_vm8 = vcmp.lt.s32.totalorder %v13287_v57, 22201  ;;  %v6217_v47 = vadd.f32 %v6216_v62, %v5866_v15  ;;  %v6294_v27 = vadd.f32 %v6293_v41, %v5942_v25 }
 0x483   : > { %v5867_v20 = vsel %vm16119_vm5, %v17368_v52, 0.0  ;;  %v5943_v50 = vsel %vm16098_vm11, %v17370_v49, 0.0  ;;  %v17372_v56 = vmax.f32 %v17371_v22, 0.0  ;;  %vm17373_vm10 = vcmp.lt.s32.totalorder %v13495_v29, 22201  ;;  %v17376_v52 = vld [vmem:[#allocation90_spill] sm:$0xff] }
 0x484   : > { %v17375_v51 = vmax.f32 %v17374_v16, 0.0  ;;  %v17377_v33 = vmax.f32 %v17376_v52, 0.0  ;;  %v6367_v31 = vadd.f32 %v6366_v11, %v6014_v63  ;;  %vm16132_vm9 = vcmp.lt.s32.totalorder %v13290_v7, 22201  ;;  %v17381_v22 = vld [vmem:[#allocation134_spill] sm:$0xff]  ;;  %v17385_v11 = vld [vmem:[#allocation45_spill] sm:$0xff] }
 0x485   : > { %v6015_v3 = vsel %vm17373_vm10, %v17372_v56, 0.0  ;;  %v6218_v15 = vadd.f32 %v6217_v47, %v5867_v20  ;;  %v6295_v25 = vadd.f32 %v6294_v27, %v5943_v50  ;;  %v17379_v62 = vmax.f32 %v17378_v14, 0.0  ;;  %v17388_v14 = vld [vmem:[#allocation147_spill] sm:$0xff] }
 0x486   : > { %v5868_v26 = vsel %vm16126_vm7, %v17375_v51, 0.0  ;;  %v5944_v49 = vsel %vm16099_vm12, %v17377_v33, 0.0  ;;  %vm17380_vm11 = vcmp.lt.s32.totalorder %v13504_v10, 22201  ;;  %v17382_v56 = vmax.f32 %v17381_v22, 0.0  ;;  %v17383_v51 = vld [vmem:[#allocation103_spill] sm:$0xff] }
 0x487   : > { %v6016_v41 = vsel %vm17380_vm11, %v17379_v62, 0.0  ;;  %v17384_v52 = vmax.f32 %v17383_v51, 0.0  ;;  %v6368_v63 = vadd.f32 %v6367_v31, %v6015_v3  ;;  %vm16133_vm10 = vcmp.lt.s32.totalorder %v13293_v53, 22201  ;;  %v17393_v31 = vld [vmem:[#allocation44_spill] sm:$0xff] }
 0x488   : > { %v5869_v16 = vsel %vm16101_vm8, %v17382_v56, 0.0  ;;  %v6219_v20 = vadd.f32 %v6218_v15, %v5868_v26  ;;  %v6296_v50 = vadd.f32 %v6295_v25, %v5944_v49  ;;  %v17386_v47 = vmax.f32 %v17385_v11, 0.0  ;;  %v17390_v56 = vld [vmem:[#allocation105_spill] sm:$0xff] }
 0x489   : > { %v5945_v33 = vsel %vm16100_vm13, %v17384_v52, 0.0  ;;  %vm17387_vm12 = vcmp.lt.s32.totalorder %v13513_v30, 22201  ;;  %v17389_v62 = vmax.f32 %v17388_v14, 0.0  ;;  %v17391_v51 = vmax.f32 %v17390_v56, 0.0  ;;  %v17396_v11 = vld [vmem:[#allocation149_spill] sm:$0xff] }
 0x48a   : > { %v6017_v27 = vsel %vm17387_vm12, %v17386_v47, 0.0  ;;  %vm17392_vm11 = vcmp.lt.s32.totalorder %v13701_v18, 22201  ;;  %v6369_v3 = vadd.f32 %v6368_v63, %v6016_v41  ;;  %vm16134_vm13 = vcmp.lt.s32.totalorder %v13296_v19, 22201  ;;  %v17400_v63 = vld [vmem:[#allocation46_spill] sm:$0xff] }
 0x48b   : > { %v5870_v22 = vsel %vm16132_vm9, %v17389_v62, 0.0  ;;  %v5946_v52 = vsel %vm17392_vm11, %v17391_v51, 0.0  ;;  %v6220_v26 = vadd.f32 %v6219_v20, %v5869_v16  ;;  %v6297_v49 = vadd.f32 %v6296_v50, %v5945_v33  ;;  %v17398_v62 = vld [vmem:[#allocation104_spill] sm:$0xff] }
 0x48c   : > { %v17394_v15 = vmax.f32 %v17393_v31, 0.0  ;;  %vm17395_vm8 = vcmp.lt.s32.totalorder %v13522_v0, 22201  ;;  %v17397_v47 = vmax.f32 %v17396_v11, 0.0  ;;  %v17399_v56 = vmax.f32 %v17398_v62, 0.0  ;;  %v17403_v31 = vld [vmem:[#allocation148_spill] sm:$0xff] }
 0x48d   : > { %v6370_v41 = vadd.f32 %v6369_v3, %v6017_v27  ;;  %vm16135_vm12 = vcmp.lt.s32.totalorder %v13299_v13, 22201  ;;  %v6221_v16 = vadd.f32 %v6220_v26, %v5870_v22  ;;  %v6298_v33 = vadd.f32 %v6297_v49, %v5946_v52  ;;  %v17407_v3 = vld [vmem:[#allocation59_spill] sm:$0xff] }
 0x48e   : > { %v6018_v25 = vsel %vm17395_vm8, %v17394_v15, 0.0  ;;  %v5871_v14 = vsel %vm16133_vm10, %v17397_v47, 0.0  ;;  %v5947_v51 = vsel %vm16102_vm15, %v17399_v56, 0.0  ;;  %v17401_v20 = vmax.f32 %v17400_v63, 0.0  ;;  %v17405_v47 = vld [vmem:[#allocation106_spill] sm:$0xff] }
 0x48f   : > { %vm17402_vm11 = vcmp.lt.s32.totalorder %v13531_v36, 22201  ;;  %v17404_v15 = vmax.f32 %v17403_v31, 0.0  ;;  %v17406_v62 = vmax.f32 %v17405_v47, 0.0  ;;  %v6371_v27 = vadd.f32 %v6370_v41, %v6018_v25  ;;  %v17410_v63 = vld [vmem:[#allocation150_spill] sm:$0xff]  ;;  %v17414_v41 = vld [vmem:[#allocation61_spill] sm:$0xff] }
 0x490   : > { %v6019_v50 = vsel %vm17402_vm11, %v17401_v20, 0.0  ;;  %vm16136_vm8 = vcmp.lt.s32.totalorder %v13302_v24, 22201  ;;  %v6222_v22 = vadd.f32 %v6221_v16, %v5871_v14  ;;  %v6299_v52 = vadd.f32 %v6298_v33, %v5947_v51 }
 0x491   : > { %v5872_v11 = vsel %vm16134_vm13, %v17404_v15, 0.0  ;;  %v5948_v56 = vsel %vm16103_vm0, %v17406_v62, 0.0  ;;  %v17408_v26 = vmax.f32 %v17407_v3, 0.0  ;;  %vm17409_vm15 = vcmp.lt.s32.totalorder %v13540_v37, 22201  ;;  %v17412_v15 = vld [vmem:[#allocation119_spill] sm:$0xff] }
 0x492   : > { %v17411_v20 = vmax.f32 %v17410_v63, 0.0  ;;  %v17413_v47 = vmax.f32 %v17412_v15, 0.0  ;;  %v6372_v25 = vadd.f32 %v6371_v27, %v6019_v50  ;;  %vm16109_vm11 = vcmp.lt.s32.totalorder %v13305_v17, 22201  ;;  %v17417_v3 = vld [vmem:[#allocation163_spill] sm:$0xff]  ;;  %v17421_v27 = vld [vmem:[#allocation60_spill] sm:$0xff] }
 0x493   : > { %v6020_v49 = vsel %vm17409_vm15, %v17408_v26, 0.0  ;;  %v6223_v14 = vadd.f32 %v6222_v22, %v5872_v11  ;;  %v6300_v51 = vadd.f32 %v6299_v52, %v5948_v56  ;;  %v17415_v16 = vmax.f32 %v17414_v41, 0.0  ;;  %v17424_v41 = vld [vmem:[#allocation165_spill] sm:$0xff] }
 0x494   : > { %v5873_v31 = vsel %vm16135_vm12, %v17411_v20, 0.0  ;;  %v5949_v62 = vsel %vm16104_vm2, %v17413_v47, 0.0  ;;  %vm17416_vm0 = vcmp.lt.s32.totalorder %v13549_v2, 22201  ;;  %v17418_v26 = vmax.f32 %v17417_v3, 0.0  ;;  %v17419_v20 = vld [vmem:[#allocation121_spill] sm:$0xff] }
 0x495   : > { %v6021_v33 = vsel %vm17416_vm0, %v17415_v16, 0.0  ;;  %v17420_v15 = vmax.f32 %v17419_v20, 0.0  ;;  %v6373_v50 = vadd.f32 %v6372_v25, %v6020_v49  ;;  %vm16113_vm15 = vcmp.lt.s32.totalorder %v13308_v46, 22201 }
 0x496   : > { %v5874_v63 = vsel %vm16136_vm8, %v17418_v26, 0.0  ;;  %v6224_v11 = vadd.f32 %v6223_v14, %v5873_v31  ;;  %v6301_v56 = vadd.f32 %v6300_v51, %v5949_v62  ;;  %v17422_v22 = vmax.f32 %v17421_v27, 0.0  ;;  %v17426_v26 = vld [vmem:[#allocation120_spill] sm:$0xff]  ;;  %v17428_v14 = vld [vmem:[#allocation62_spill] sm:$0xff]  ;;  %v17430_v27 = vld [vmem:[#allocation357_spill] sm:$0xff] }
 0x497   : > { %v5950_v47 = vsel %vm16105_vm14, %v17420_v15, 0.0  ;;  %vm17423_vm2 = vcmp.lt.s32.totalorder %v13558_v59, 22201  ;;  %vm16139_vm0 = vcmp.lt.s32.totalorder %v13311_v1, 22201  ;;  %v17425_v16 = vmax.f32 %v17424_v41, 0.0 }
 0x498   : > { %v6022_v52 = vsel %vm17423_vm2, %v17422_v22, 0.0  ;;  %v17427_v20 = vmax.f32 %v17426_v26, 0.0  ;;  %v6374_v25 = vadd.f32 %v6373_v50, %v6021_v33  ;;  %vm16127_vm14 = vcmp.lt.s32.totalorder %v13314_v60, 22201  ;;  %v17431_v22 = vld [vmem:[#allocation164_spill] sm:$0xff]  ;;  %v17433_v26 = vld [vmem:[#allocation122_spill] sm:$0xff] }
 0x499   : > { %v5875_v3 = vsel %vm16109_vm11, %v17425_v16, 0.0  ;;  %v6225_v31 = vadd.f32 %v6224_v11, %v5874_v63  ;;  %v6302_v62 = vadd.f32 %v6301_v56, %v5950_v47  ;;  %v17429_v51 = vmax.f32 %v17428_v14, 0.0  ;;  %v17435_v63 = vld [vmem:[#allocation358_spill] sm:$0xff]  ;;  %v17436_v56 = vld [vmem:[#allocation75_spill] sm:$0xff] }
 0x49a   : > { %v5951_v49 = vsel %vm16107_vm3, %v17427_v20, 0.0  ;;  %vm16123_vm2 = vcmp.lt.s32.totalorder %v17430_v27, 22201  ;;  %v17432_v41 = vmax.f32 %v17431_v22, 0.0  ;;  %v17434_v59 = vmax.f32 %v17433_v26, 0.0  ;;  %v17440_v22 = vld [vmem:[#allocation166_spill] sm:$0xff]  ;;  %v17442_v26 = vld [vmem:[#allocation135_spill] sm:$0xff] }
 0x49b   : > { %v6023_v15 = vsel %vm16108_vm1, %v17429_v51, 0.0  ;;  %v6375_v50 = vadd.f32 %v6374_v25, %v6022_v52  ;;  %vm16143_vm3 = vcmp.lt.s32.totalorder %v17435_v63, 22201  ;;  %v6226_v47 = vadd.f32 %v6225_v31, %v5875_v3  ;;  %v17439_v51 = vld [vmem:[#allocation359_spill] sm:$0xff]  ;;  %v17444_v3 = vld [vmem:[#allocation360_spill] sm:$0xff]  ;;  %v17445_v31 = vld [vmem:[#allocation77_spill] sm:$0xff] }
 0x49c   : > { %v5876_v16 = vsel %vm16113_vm15, %v17432_v41, 0.0  ;;  %v5952_v33 = vsel %vm16112_vm6, %v17434_v59, 0.0  ;;  %v6303_v11 = vadd.f32 %v6302_v62, %v5951_v49  ;;  %v17437_v20 = vmax.f32 %v17436_v56, 0.0 }
 0x49d   : > { %vm17438_vm1 = vcmp.lt.s32.totalorder %v13584_v38, 22201  ;;  %vm16146_vm11 = vcmp.lt.s32.totalorder %v17439_v51, 22201  ;;  %v17441_v48 = vmax.f32 %v17440_v22, 0.0  ;;  %v17443_v2 = vmax.f32 %v17442_v26, 0.0  ;;  %v17449_v22 = vld [vmem:[#allocation179_spill] sm:$0xff]  ;;  %v17451_v26 = vld [vmem:[#allocation137_spill] sm:$0xff] }
 0x49e   : > { %v6024_v14 = vsel %vm17438_vm1, %v17437_v20, 0.0  ;;  %v6376_v52 = vadd.f32 %v6375_v50, %v6023_v15  ;;  %vm16148_vm6 = vcmp.lt.s32.totalorder %v17444_v3, 22201  ;;  %v6227_v49 = vadd.f32 %v6226_v47, %v5876_v16  ;;  %v17448_v20 = vld [vmem:[#allocation361_spill] sm:$0xff]  ;;  %v17453_v16 = vld [vmem:[#allocation362_spill] sm:$0xff]  ;;  %v17454_v47 = vld [vmem:[#allocation76_spill] sm:$0xff] }
 0x49f   : > { %v5877_v41 = vsel %vm16139_vm0, %v17441_v48, 0.0  ;;  %v5953_v59 = vsel %vm16117_vm4, %v17443_v2, 0.0  ;;  %v6304_v25 = vadd.f32 %v6303_v11, %v5952_v33  ;;  %v17446_v62 = vmax.f32 %v17445_v31, 0.0 }
 0x4a0   : > { %vm17447_vm1 = vcmp.lt.s32.totalorder %v13597_v8, 22201  ;;  %vm16150_vm15 = vcmp.lt.s32.totalorder %v17448_v20, 22201  ;;  %v17450_v38 = vmax.f32 %v17449_v22, 0.0  ;;  %v17452_v5 = vmax.f32 %v17451_v26, 0.0  ;;  %v17459_v8 = vld [vmem:[#allocation136_spill] sm:$0xff] }
 0x4a1   : > { %v6025_v56 = vsel %vm17447_vm1, %v17446_v62, 0.0  ;;  %v6377_v15 = vadd.f32 %v6376_v52, %v6024_v14  ;;  %vm16152_vm4 = vcmp.lt.s32.totalorder %v17453_v16, 22201  ;;  %v6228_v33 = vadd.f32 %v6227_v49, %v5877_v41  ;;  %v17457_v62 = vld [vmem:[#allocation181_spill] sm:$0xff]  ;;  %v17461_v14 = vld [vmem:[#allocation78_spill] sm:$0xff] }
 0x4a2   : > { %v5878_v48 = vsel %vm16127_vm14, %v17450_v38, 0.0  ;;  %v5954_v2 = vsel %vm16119_vm5, %v17452_v5, 0.0  ;;  %v6305_v50 = vadd.f32 %v6304_v25, %v5953_v59  ;;  %v17455_v11 = vmax.f32 %v17454_v47, 0.0  ;;  %v17464_v47 = vld [vmem:[#allocation15_spill] sm:$0xff] }
 0x4a3   : > { %vm17456_vm1 = vcmp.lt.s32.totalorder %v13610_v28, 22201  ;;  %v17458_v22 = vmax.f32 %v17457_v62, 0.0  ;;  %v17460_v26 = vmax.f32 %v17459_v8, 0.0  ;;  %v17462_v52 = vmax.f32 %v17461_v14, 0.0  ;;  %v17467_v28 = vld [vmem:[#allocation17_spill] sm:$0xff] }
 0x4a4   : > { %v6026_v31 = vsel %vm17456_vm1, %v17455_v11, 0.0  ;;  %vm17463_vm5 = vcmp.lt.s32.totalorder %v13623_v12, 22201  ;;  %v6378_v59 = vadd.f32 %v6377_v15, %v6025_v56  ;;  %v6229_v49 = vadd.f32 %v6228_v33, %v5878_v48  ;;  %v17474_v56 = vld [vmem:[#allocation138_spill] sm:$0xff] }
 0x4a5   : > { %v5879_v38 = vsel %vm16123_vm2, %v17458_v22, 0.0  ;;  %v5955_v5 = vsel %vm16126_vm7, %v17460_v26, 0.0  ;;  %v6027_v41 = vsel %vm17463_vm5, %v17462_v52, 0.0  ;;  %v6306_v25 = vadd.f32 %v6305_v50, %v5954_v2  ;;  %v17472_v26 = vld [vmem:[#allocation180_spill] sm:$0xff]  ;;  %v17478_v50 = vld [vmem:[#allocation91_spill] sm:$0xff]  ;;  %v17485_v12 = vld [vmem:[#allocation182_spill] sm:$0xff] }
 0x4a6   : > { %v17465_v11 = vmax.f32 %v17464_v47, 0.0  ;;  %vm17466_vm1 = vcmp.lt.s32.totalorder %v13447_v39, 22201  ;;  %v17468_v22 = vmax.f32 %v17467_v28, 0.0  ;;  %vm17470_vm2 = vcmp.lt.s32.totalorder %v17469_v40, 22201  ;;  %v17477_v39 = vld [vmem:[#allocation364_spill] sm:$0xff] }
 0x4a7   : > { %vm16137_vm7 = vcmp.lt.s32.totalorder %v17471_v35, 22201  ;;  %v17473_v14 = vmax.f32 %v17472_v26, 0.0  ;;  %v17475_v48 = vmax.f32 %v17474_v56, 0.0  ;;  %vm17476_vm5 = vcmp.lt.s32.totalorder %v13287_v57, 22201  ;;  %v17483_v26 = vld [vmem:[#allocation400_spill] sm:$0xff] }
 0x4a8   : > { %v6095_v62 = vsel %vm17466_vm1, %v17465_v11, 0.0  ;;  %v6096_v8 = vsel %vm17470_vm2, %v17468_v22, 0.0  ;;  %v6379_v15 = vadd.f32 %v6378_v59, %v6026_v31  ;;  %vm16138_vm1 = vcmp.lt.s32.totalorder %v17477_v39, 22201  ;;  %v17481_v11 = vld [vmem:[#allocation16_spill] sm:$0xff]  ;;  %v17487_v31 = vld [vmem:[#allocation151_spill] sm:$0xff] }
 0x4a9   : > { %v5880_v52 = vsel %vm16143_vm3, %v17473_v14, 0.0  ;;  %v5956_v2 = vsel %vm17476_vm5, %v17475_v48, 0.0  ;;  %v6230_v33 = vadd.f32 %v6229_v49, %v5879_v38  ;;  %v6307_v28 = vadd.f32 %v6306_v25, %v5955_v5  ;;  %v17489_v25 = vld [vmem:[#allocation365_spill] sm:$0xff] }
 0x4aa   : > { %v17479_v40 = vmax.f32 %v17478_v50, 0.0  ;;  %vm17480_vm2 = vcmp.lt.s32.totalorder %v13636_v43, 22201  ;;  %v17482_v22 = vmax.f32 %v17481_v11, 0.0  ;;  %vm17484_vm14 = vcmp.lt.s32.totalorder %v17483_v26, 22201  ;;  %v17490_v11 = vld [vmem:[#allocation93_spill] sm:$0xff] }
 0x4ab   : > { %v17486_v56 = vmax.f32 %v17485_v12, 0.0  ;;  %v17488_v59 = vmax.f32 %v17487_v31, 0.0  ;;  %v6380_v5 = vadd.f32 %v6379_v15, %v6027_v41  ;;  %v6450_v49 = vadd.f32 %v6096_v8, %v6095_v62  ;;  %v17493_v12 = vld [vmem:[#allocation18_spill] sm:$0xff]  ;;  %v17496_v31 = vld [vmem:[#allocation195_spill] sm:$0xff]  ;;  %v17498_v62 = vld [vmem:[#allocation153_spill] sm:$0xff] }
 0x4ac   : > { %v6028_v47 = vsel %vm17480_vm2, %v17479_v40, 0.0  ;;  %v6097_v14 = vsel %vm17484_vm14, %v17482_v22, 0.0  ;;  %vm16157_vm5 = vcmp.lt.s32.totalorder %v17489_v25, 22201  ;;  %v6231_v50 = vadd.f32 %v6230_v33, %v5880_v52  ;;  %v17500_v33 = vld [vmem:[#allocation366_spill] sm:$0xff] }
 0x4ad   : > { %v5881_v48 = vsel %vm16146_vm11, %v17486_v56, 0.0  ;;  %v5957_v38 = vsel %vm16132_vm9, %v17488_v59, 0.0  ;;  %v6308_v40 = vadd.f32 %v6307_v28, %v5956_v2  ;;  %v17491_v43 = vmax.f32 %v17490_v11, 0.0  ;;  %v17501_v59 = vld [vmem:[#allocation92_spill] sm:$0xff] }
 0x4ae   : > { %vm17492_vm14 = vcmp.lt.s32.totalorder %v13649_v32, 22201  ;;  %v17494_v26 = vmax.f32 %v17493_v12, 0.0  ;;  %vm17495_vm2 = vcmp.lt.s32.totalorder %v13458_v54, 22201  ;;  %v17497_v57 = vmax.f32 %v17496_v31, 0.0  ;;  %v17504_v12 = vld [vmem:[#allocation31_spill] sm:$0xff]  ;;  %v17507_v31 = vld [vmem:[#allocation197_spill] sm:$0xff] }
 0x4af   : > { %v6029_v22 = vsel %vm17492_vm14, %v17491_v43, 0.0  ;;  %v17499_v8 = vmax.f32 %v17498_v62, 0.0  ;;  %v6381_v2 = vadd.f32 %v6380_v5, %v6028_v47  ;;  %v6451_v15 = vadd.f32 %v6450_v49, %v6097_v14  ;;  %v17509_v14 = vld [vmem:[#allocation152_spill] sm:$0xff] }
 0x4b0   : > { %v6098_v56 = vsel %vm17495_vm2, %v17494_v26, 0.0  ;;  %v5882_v41 = vsel %vm16148_vm6, %v17497_v57, 0.0  ;;  %vm16140_vm9 = vcmp.lt.s32.totalorder %v17500_v33, 22201  ;;  %v6232_v43 = vadd.f32 %v6231_v50, %v5881_v48  ;;  %v17511_v50 = vld [vmem:[#allocation367_spill] sm:$0xff] }
 0x4b1   : > { %v5958_v52 = vsel %vm16133_vm10, %v17499_v8, 0.0  ;;  %v6309_v28 = vadd.f32 %v6308_v40, %v5957_v38  ;;  %v17502_v11 = vmax.f32 %v17501_v59, 0.0  ;;  %vm17503_vm14 = vcmp.lt.s32.totalorder %v13662_v34, 22201  ;;  %v17512_v59 = vld [vmem:[#allocation94_spill] sm:$0xff] }
 0x4b2   : > { %v17505_v26 = vmax.f32 %v17504_v12, 0.0  ;;  %vm17506_vm2 = vcmp.lt.s32.totalorder %v13464_v55, 22201  ;;  %v17508_v62 = vmax.f32 %v17507_v31, 0.0  ;;  %v17510_v5 = vmax.f32 %v17509_v14, 0.0  ;;  %v17515_v12 = vld [vmem:[#allocation33_spill] sm:$0xff] }
 0x4b3   : > { %v6030_v54 = vsel %vm17503_vm14, %v17502_v11, 0.0  ;;  %v6382_v38 = vadd.f32 %v6381_v2, %v6029_v22  ;;  %v6452_v49 = vadd.f32 %v6451_v15, %v6098_v56  ;;  %vm16141_vm10 = vcmp.lt.s32.totalorder %v17511_v50, 22201  ;;  %v17520_v56 = vld [vmem:[#allocation154_spill] sm:$0xff] }
 0x4b4   : > { %v6099_v57 = vsel %vm17506_vm2, %v17505_v26, 0.0  ;;  %v5883_v47 = vsel %vm16150_vm15, %v17508_v62, 0.0  ;;  %v5959_v48 = vsel %vm16134_vm13, %v17510_v5, 0.0  ;;  %v6233_v40 = vadd.f32 %v6232_v43, %v5882_v41  ;;  %v17518_v62 = vld [vmem:[#allocation196_spill] sm:$0xff] }
 0x4b5   : > { %v6310_v8 = vadd.f32 %v6309_v28, %v5958_v52  ;;  %v17513_v11 = vmax.f32 %v17512_v59, 0.0  ;;  %vm17514_vm14 = vcmp.lt.s32.totalorder %v13675_v44, 22201  ;;  %v17516_v26 = vmax.f32 %v17515_v12, 0.0  ;;  %v17522_v43 = vld [vmem:[#allocation368_spill] sm:$0xff]  ;;  %v17523_v59 = vld [vmem:[#allocation107_spill] sm:$0xff] }
 0x4b6   : > { %vm17517_vm2 = vcmp.lt.s32.totalorder %v13477_v23, 22201  ;;  %v17519_v14 = vmax.f32 %v17518_v62, 0.0  ;;  %v17521_v2 = vmax.f32 %v17520_v56, 0.0  ;;  %v6383_v52 = vadd.f32 %v6382_v38, %v6030_v54  ;;  %v17526_v12 = vld [vmem:[#allocation32_spill] sm:$0xff] }
 0x4b7   : > { %v6031_v55 = vsel %vm17514_vm14, %v17513_v11, 0.0  ;;  %v6100_v31 = vsel %vm17517_vm2, %v17516_v26, 0.0  ;;  %v6453_v15 = vadd.f32 %v6452_v49, %v6099_v57  ;;  %vm16160_vm13 = vcmp.lt.s32.totalorder %v17522_v43, 22201  ;;  %v17531_v57 = vld [vmem:[#allocation167_spill] sm:$0xff] }
 0x4b8   : > { %v5884_v22 = vsel %vm16152_vm4, %v17519_v14, 0.0  ;;  %v5960_v41 = vsel %vm16135_vm12, %v17521_v2, 0.0  ;;  %v6234_v28 = vadd.f32 %v6233_v40, %v5883_v47  ;;  %v6311_v5 = vadd.f32 %v6310_v8, %v5959_v48  ;;  %v17529_v14 = vld [vmem:[#allocation198_spill] sm:$0xff]  ;;  %v17533_v40 = vld [vmem:[#allocation369_spill] sm:$0xff] }
 0x4b9   : > { %v17524_v11 = vmax.f32 %v17523_v59, 0.0  ;;  %vm17525_vm14 = vcmp.lt.s32.totalorder %v13688_v61, 22201  ;;  %v17527_v26 = vmax.f32 %v17526_v12, 0.0  ;;  %vm17528_vm2 = vcmp.lt.s32.totalorder %v13486_v45, 22201  ;;  %v17534_v59 = vld [vmem:[#allocation109_spill] sm:$0xff]  ;;  %v17537_v12 = vld [vmem:[#allocation34_spill] sm:$0xff] }
 0x4ba   : > { %v17530_v56 = vmax.f32 %v17529_v14, 0.0  ;;  %v17532_v38 = vmax.f32 %v17531_v57, 0.0  ;;  %v6384_v48 = vadd.f32 %v6383_v52, %v6031_v55  ;;  %v6454_v49 = vadd.f32 %v6453_v15, %v6100_v31  ;;  %v17542_v31 = vld [vmem:[#allocation169_spill] sm:$0xff] }
 0x4bb   : > { %v6032_v23 = vsel %vm17525_vm14, %v17524_v11, 0.0  ;;  %v6101_v62 = vsel %vm17528_vm2, %v17527_v26, 0.0  ;;  %vm16161_vm12 = vcmp.lt.s32.totalorder %v17533_v40, 22201  ;;  %v6235_v8 = vadd.f32 %v6234_v28, %v5884_v22  ;;  %v17545_v28 = vld [vmem:[#allocation370_spill] sm:$0xff] }
 0x4bc   : > { %v5885_v54 = vsel %vm16137_vm7, %v17530_v56, 0.0  ;;  %v5961_v47 = vsel %vm16136_vm8, %v17532_v38, 0.0  ;;  %v6312_v2 = vadd.f32 %v6311_v5, %v5960_v41  ;;  %v17535_v11 = vmax.f32 %v17534_v59, 0.0  ;;  %v17540_v56 = vld [vmem:[#allocation211_spill] sm:$0xff]  ;;  %v17546_v59 = vld [vmem:[#allocation108_spill] sm:$0xff] }
 0x4bd   : > { %vm17536_vm14 = vcmp.lt.s32.totalorder %v13701_v18, 22201  ;;  %v17538_v26 = vmax.f32 %v17537_v12, 0.0  ;;  %vm17539_vm2 = vcmp.lt.s32.totalorder %v13495_v29, 22201  ;;  %v17541_v57 = vmax.f32 %v17540_v56, 0.0  ;;  %v17549_v12 = vld [vmem:[#allocation47_spill] sm:$0xff] }
 0x4be   : > { %v6033_v45 = vsel %vm17536_vm14, %v17535_v11, 0.0  ;;  %v17543_v52 = vmax.f32 %v17542_v31, 0.0  ;;  %vm17544_vm8 = vcmp.lt.s32.totalorder %v13305_v17, 22201  ;;  %v6385_v41 = vadd.f32 %v6384_v48, %v6032_v23 }
 0x4bf   : > { %v6102_v14 = vsel %vm17539_vm2, %v17538_v26, 0.0  ;;  %v5886_v55 = vsel %vm16138_vm1, %v17541_v57, 0.0  ;;  %v6455_v15 = vadd.f32 %v6454_v49, %v6101_v62  ;;  %vm16162_vm7 = vcmp.lt.s32.totalorder %v17545_v28, 22201  ;;  %v17552_v57 = vld [vmem:[#allocation213_spill] sm:$0xff]  ;;  %v17554_v62 = vld [vmem:[#allocation168_spill] sm:$0xff] }
 0x4c0   : > { %v5962_v22 = vsel %vm17544_vm8, %v17543_v52, 0.0  ;;  %v6236_v5 = vadd.f32 %v6235_v8, %v5885_v54  ;;  %v6313_v38 = vadd.f32 %v6312_v2, %v5961_v47  ;;  %v17547_v11 = vmax.f32 %v17546_v59, 0.0  ;;  %v17557_v8 = vld [vmem:[#allocation371_spill] sm:$0xff]  ;;  %v17558_v59 = vld [vmem:[#allocation110_spill] sm:$0xff] }
 0x4c1   : > { %vm17548_vm14 = vcmp.lt.s32.totalorder %v13714_v6, 22201  ;;  %v17550_v26 = vmax.f32 %v17549_v12, 0.0  ;;  %vm17551_vm2 = vcmp.lt.s32.totalorder %v13504_v10, 22201  ;;  %v17553_v31 = vmax.f32 %v17552_v57, 0.0  ;;  %v17561_v12 = vld [vmem:[#allocation49_spill] sm:$0xff] }
 0x4c2   : > { %v6034_v29 = vsel %vm17548_vm14, %v17547_v11, 0.0  ;;  %v17555_v48 = vmax.f32 %v17554_v62, 0.0  ;;  %vm17556_vm8 = vcmp.lt.s32.totalorder %v13308_v46, 22201  ;;  %v6386_v47 = vadd.f32 %v6385_v41, %v6033_v45 }
 0x4c3   : > { %v6103_v56 = vsel %vm17551_vm2, %v17550_v26, 0.0  ;;  %v5887_v23 = vsel %vm16157_vm5, %v17553_v31, 0.0  ;;  %v6456_v49 = vadd.f32 %v6455_v15, %v6102_v14  ;;  %vm16163_vm1 = vcmp.lt.s32.totalorder %v17557_v8, 22201  ;;  %v17564_v31 = vld [vmem:[#allocation212_spill] sm:$0xff]  ;;  %v17566_v14 = vld [vmem:[#allocation170_spill] sm:$0xff] }
 0x4c4   : > { %v5963_v54 = vsel %vm17556_vm8, %v17555_v48, 0.0  ;;  %v6237_v2 = vadd.f32 %v6236_v5, %v5886_v55  ;;  %v6314_v52 = vadd.f32 %v6313_v38, %v5962_v22  ;;  %v17559_v11 = vmax.f32 %v17558_v59, 0.0  ;;  %v17568_v5 = vld [vmem:[#allocation372_spill] sm:$0xff]  ;;  %v17569_v59 = vld [vmem:[#allocation123_spill] sm:$0xff] }
 0x4c5   : > { %vm17560_vm14 = vcmp.lt.s32.totalorder %v13727_v4, 22201  ;;  %v17562_v26 = vmax.f32 %v17561_v12, 0.0  ;;  %vm17563_vm2 = vcmp.lt.s32.totalorder %v13513_v30, 22201  ;;  %v17565_v62 = vmax.f32 %v17564_v31, 0.0  ;;  %v17572_v12 = vld [vmem:[#allocation48_spill] sm:$0xff] }
 0x4c6   : > { %v6035_v10 = vsel %vm17560_vm14, %v17559_v11, 0.0  ;;  %v17567_v41 = vmax.f32 %v17566_v14, 0.0  ;;  %v6387_v22 = vadd.f32 %v6386_v47, %v6034_v29  ;;  %v6457_v15 = vadd.f32 %v6456_v49, %v6103_v56  ;;  %v17577_v56 = vld [vmem:[#allocation183_spill] sm:$0xff] }
 0x4c7   : > { %v6104_v57 = vsel %vm17563_vm2, %v17562_v26, 0.0  ;;  %v5888_v45 = vsel %vm16140_vm9, %v17565_v62, 0.0  ;;  %vm16164_vm8 = vcmp.lt.s32.totalorder %v17568_v5, 22201  ;;  %v6238_v38 = vadd.f32 %v6237_v2, %v5887_v23  ;;  %v17575_v62 = vld [vmem:[#allocation214_spill] sm:$0xff]  ;;  %v17580_v2 = vld [vmem:[#allocation373_spill] sm:$0xff] }
 0x4c8   : > { %v5964_v55 = vsel %vm16139_vm0, %v17567_v41, 0.0  ;;  %v6315_v48 = vadd.f32 %v6314_v52, %v5963_v54  ;;  %v17570_v11 = vmax.f32 %v17569_v59, 0.0  ;;  %vm17571_vm14 = vcmp.lt.s32.totalorder %v13740_v58, 22201  ;;  %v17581_v59 = vld [vmem:[#allocation125_spill] sm:$0xff] }
 0x4c9   : > { %v17573_v26 = vmax.f32 %v17572_v12, 0.0  ;;  %vm17574_vm2 = vcmp.lt.s32.totalorder %v13522_v0, 22201  ;;  %v17576_v14 = vmax.f32 %v17575_v62, 0.0  ;;  %v17578_v47 = vmax.f32 %v17577_v56, 0.0  ;;  %v17584_v12 = vld [vmem:[#allocation50_spill] sm:$0xff] }
 0x4ca   : > { %v6036_v30 = vsel %vm17571_vm14, %v17570_v11, 0.0  ;;  %vm17579_vm0 = vcmp.lt.s32.totalorder %v13314_v60, 22201  ;;  %v6388_v54 = vadd.f32 %v6387_v22, %v6035_v10  ;;  %v6458_v49 = vadd.f32 %v6457_v15, %v6104_v57  ;;  %v17589_v57 = vld [vmem:[#allocation185_spill] sm:$0xff] }
 0x4cb   : > { %v6105_v31 = vsel %vm17574_vm2, %v17573_v26, 0.0  ;;  %v5889_v29 = vsel %vm16141_vm10, %v17576_v14, 0.0  ;;  %v5965_v23 = vsel %vm17579_vm0, %v17578_v47, 0.0  ;;  %vm16153_vm9 = vcmp.lt.s32.totalorder %v17580_v2, 22201  ;;  %v17587_v14 = vld [vmem:[#allocation227_spill] sm:$0xff] }
 0x4cc   : > { %v6239_v52 = vadd.f32 %v6238_v38, %v5888_v45  ;;  %v6316_v41 = vadd.f32 %v6315_v48, %v5964_v55  ;;  %v17582_v11 = vmax.f32 %v17581_v59, 0.0  ;;  %vm17583_vm14 = vcmp.lt.s32.totalorder %v13745_v9, 22201  ;;  %v17592_v38 = vld [vmem:[#allocation374_spill] sm:$0xff]  ;;  %v17593_v59 = vld [vmem:[#allocation124_spill] sm:$0xff] }
 0x4cd   : > { %v17585_v26 = vmax.f32 %v17584_v12, 0.0  ;;  %vm17586_vm2 = vcmp.lt.s32.totalorder %v13531_v36, 22201  ;;  %v17588_v56 = vmax.f32 %v17587_v14, 0.0  ;;  %v17590_v22 = vmax.f32 %v17589_v57, 0.0  ;;  %v17596_v12 = vld [vmem:[#allocation63_spill] sm:$0xff] }
 0x4ce   : > { %v6037_v0 = vsel %vm17583_vm14, %v17582_v11, 0.0  ;;  %vm17591_vm0 = vcmp.lt.s32.totalorder %v17430_v27, 22201  ;;  %v6389_v55 = vadd.f32 %v6388_v54, %v6036_v30  ;;  %v6459_v15 = vadd.f32 %v6458_v49, %v6105_v31  ;;  %v17601_v31 = vld [vmem:[#allocation184_spill] sm:$0xff] }
 0x4cf   : > { %v6106_v62 = vsel %vm17586_vm2, %v17585_v26, 0.0  ;;  %v5890_v10 = vsel %vm16160_vm13, %v17588_v56, 0.0  ;;  %v5966_v45 = vsel %vm17591_vm0, %v17590_v22, 0.0  ;;  %vm16154_vm10 = vcmp.lt.s32.totalorder %v17592_v38, 22201  ;;  %v17599_v56 = vld [vmem:[#allocation229_spill] sm:$0xff] }
 0x4d0   : > { %v6240_v48 = vadd.f32 %v6239_v52, %v5889_v29  ;;  %v6317_v47 = vadd.f32 %v6316_v41, %v5965_v23  ;;  %v17594_v11 = vmax.f32 %v17593_v59, 0.0  ;;  %vm17595_vm14 = vcmp.lt.s32.totalorder %v13766_v42, 22201  ;;  %v17603_v52 = vld [vmem:[#allocation375_spill] sm:$0xff]  ;;  %v17604_v59 = vld [vmem:[#allocation126_spill] sm:$0xff] }
 0x4d1   : > { %v17597_v26 = vmax.f32 %v17596_v12, 0.0  ;;  %vm17598_vm2 = vcmp.lt.s32.totalorder %v13540_v37, 22201  ;;  %v17600_v57 = vmax.f32 %v17599_v56, 0.0  ;;  %v17602_v54 = vmax.f32 %v17601_v31, 0.0  ;;  %v17607_v12 = vld [vmem:[#allocation65_spill] sm:$0xff]  ;;  %v17611_v31 = vld [vmem:[#allocation228_spill] sm:$0xff] }
 0x4d2   : > { %v6038_v36 = vsel %vm17595_vm14, %v17594_v11, 0.0  ;;  %v6390_v23 = vadd.f32 %v6389_v55, %v6037_v0  ;;  %v6460_v49 = vadd.f32 %v6459_v15, %v6106_v62  ;;  %vm16170_vm0 = vcmp.lt.s32.totalorder %v17603_v52, 22201  ;;  %v17609_v56 = vld [vmem:[#allocation401_spill] sm:$0xff]  ;;  %v17613_v62 = vld [vmem:[#allocation186_spill] sm:$0xff] }
 0x4d3   : > { %v6107_v14 = vsel %vm17598_vm2, %v17597_v26, 0.0  ;;  %v5891_v30 = vsel %vm16161_vm12, %v17600_v57, 0.0  ;;  %v5967_v29 = vsel %vm16143_vm3, %v17602_v54, 0.0  ;;  %v6241_v41 = vadd.f32 %v6240_v48, %v5890_v10  ;;  %v17615_v48 = vld [vmem:[#allocation376_spill] sm:$0xff] }
 0x4d4   : > { %v6318_v22 = vadd.f32 %v6317_v47, %v5966_v45  ;;  %v17605_v11 = vmax.f32 %v17604_v59, 0.0  ;;  %vm17606_vm14 = vcmp.lt.s32.totalorder %v13770_v21, 22201  ;;  %v17608_v26 = vmax.f32 %v17607_v12, 0.0  ;;  %v17616_v59 = vld [vmem:[#allocation139_spill] sm:$0xff]  ;;  %v17618_v12 = vld [vmem:[#allocation412_spill] sm:$0xff]  ;;  %v17622_v21 = vld [vmem:[#allocation402_spill] sm:$0xff] }
 0x4d5   : > { %vm17610_vm2 = vcmp.lt.s32.totalorder %v17609_v56, 22201  ;;  %v17612_v42 = vmax.f32 %v17611_v31, 0.0  ;;  %v17614_v55 = vmax.f32 %v17613_v62, 0.0  ;;  %v6391_v45 = vadd.f32 %v6390_v23, %v6038_v36  ;;  %v17620_v56 = vld [vmem:[#allocation64_spill] sm:$0xff]  ;;  %v17624_v62 = vld [vmem:[#allocation230_spill] sm:$0xff] }
 0x4d6   : > { %v6039_v37 = vsel %vm17606_vm14, %v17605_v11, 0.0  ;;  %v6108_v57 = vsel %vm17610_vm2, %v17608_v26, 0.0  ;;  %v6461_v15 = vadd.f32 %v6460_v49, %v6107_v14  ;;  %vm16158_vm3 = vcmp.lt.s32.totalorder %v17615_v48, 22201  ;;  %v17626_v14 = vld [vmem:[#allocation199_spill] sm:$0xff] }
 0x4d7   : > { %v5892_v0 = vsel %vm16162_vm7, %v17612_v42, 0.0  ;;  %v5968_v10 = vsel %vm16146_vm11, %v17614_v55, 0.0  ;;  %v6242_v47 = vadd.f32 %v6241_v41, %v5891_v30  ;;  %v6319_v54 = vadd.f32 %v6318_v22, %v5967_v29  ;;  %v17628_v41 = vld [vmem:[#allocation377_spill] sm:$0xff] }
 0x4d8   : > { %v17617_v11 = vmax.f32 %v17616_v59, 0.0  ;;  %vm17619_vm14 = vcmp.lt.s32.totalorder %v17618_v12, 22201  ;;  %v17621_v31 = vmax.f32 %v17620_v56, 0.0  ;;  %vm17623_vm2 = vcmp.lt.s32.totalorder %v17622_v21, 22201  ;;  %v17629_v59 = vld [vmem:[#allocation141_spill] sm:$0xff]  ;;  %v17631_v21 = vld [vmem:[#allocation351_spill] sm:$0xff] }
 0x4d9   : > { %v17625_v9 = vmax.f32 %v17624_v62, 0.0  ;;  %v17627_v23 = vmax.f32 %v17626_v14, 0.0  ;;  %v6392_v29 = vadd.f32 %v6391_v45, %v6039_v37  ;;  %v6462_v49 = vadd.f32 %v6461_v15, %v6108_v57  ;;  %v17635_v12 = vld [vmem:[#allocation403_spill] sm:$0xff]  ;;  %v17639_v57 = vld [vmem:[#allocation201_spill] sm:$0xff] }
 0x4da   : > { %v6040_v26 = vsel %vm17619_vm14, %v17617_v11, 0.0  ;;  %v6109_v42 = vsel %vm17623_vm2, %v17621_v31, 0.0  ;;  %vm16159_vm11 = vcmp.lt.s32.totalorder %v17628_v41, 22201  ;;  %v6243_v22 = vadd.f32 %v6242_v47, %v5892_v0  ;;  %v17633_v31 = vld [vmem:[#allocation66_spill] sm:$0xff]  ;;  %v17637_v14 = vld [vmem:[#allocation243_spill] sm:$0xff] }
 0x4db   : > { %v5893_v36 = vsel %vm16163_vm1, %v17625_v9, 0.0  ;;  %v5969_v30 = vsel %vm16148_vm6, %v17627_v23, 0.0  ;;  %v6320_v55 = vadd.f32 %v6319_v54, %v5968_v10  ;;  %v17630_v11 = vmax.f32 %v17629_v59, 0.0  ;;  %v17641_v47 = vld [vmem:[#allocation378_spill] sm:$0xff]  ;;  %v17642_v59 = vld [vmem:[#allocation140_spill] sm:$0xff] }
 0x4dc   : > { %vm17632_vm14 = vcmp.lt.s32.totalorder %v17631_v21, 22201  ;;  %v17634_v62 = vmax.f32 %v17633_v31, 0.0  ;;  %vm17636_vm2 = vcmp.lt.s32.totalorder %v17635_v12, 22201  ;;  %v17638_v51 = vmax.f32 %v17637_v14, 0.0  ;;  %v17644_v12 = vld [vmem:[#allocation352_spill] sm:$0xff] }
 0x4dd   : > { %v6041_v56 = vsel %vm17632_vm14, %v17630_v11, 0.0  ;;  %v17640_v45 = vmax.f32 %v17639_v57, 0.0  ;;  %v6393_v10 = vadd.f32 %v6392_v29, %v6040_v26  ;;  %v6463_v15 = vadd.f32 %v6462_v49, %v6109_v42  ;;  %v17648_v21 = vld [vmem:[#allocation404_spill] sm:$0xff]  ;;  %v17650_v57 = vld [vmem:[#allocation245_spill] sm:$0xff] }
 0x4de   : > { %v6110_v9 = vsel %vm17636_vm2, %v17634_v62, 0.0  ;;  %v5894_v37 = vsel %vm16164_vm8, %v17638_v51, 0.0  ;;  %vm16175_vm6 = vcmp.lt.s32.totalorder %v17641_v47, 22201  ;;  %v6244_v54 = vadd.f32 %v6243_v22, %v5893_v36  ;;  %v17646_v62 = vld [vmem:[#allocation79_spill] sm:$0xff]  ;;  %v17652_v42 = vld [vmem:[#allocation200_spill] sm:$0xff] }
 0x4df   : > { %v5970_v0 = vsel %vm16150_vm15, %v17640_v45, 0.0  ;;  %v6321_v23 = vadd.f32 %v6320_v55, %v5969_v30  ;;  %v17643_v11 = vmax.f32 %v17642_v59, 0.0  ;;  %vm17645_vm14 = vcmp.lt.s32.totalorder %v17644_v12, 22201  ;;  %v17654_v22 = vld [vmem:[#allocation379_spill] sm:$0xff]  ;;  %v17655_v59 = vld [vmem:[#allocation142_spill] sm:$0xff]  ;;  %v17661_v12 = vld [vmem:[#allocation405_spill] sm:$0xff] }
 0x4e0   : > { %v17647_v14 = vmax.f32 %v17646_v62, 0.0  ;;  %vm17649_vm2 = vcmp.lt.s32.totalorder %v17648_v21, 22201  ;;  %v17651_v3 = vmax.f32 %v17650_v57, 0.0  ;;  %v17653_v29 = vmax.f32 %v17652_v42, 0.0  ;;  %v17657_v21 = vld [vmem:[#allocation353_spill] sm:$0xff]  ;;  %v17663_v42 = vld [vmem:[#allocation244_spill] sm:$0xff] }
 0x4e1   : > { %v6042_v31 = vsel %vm17645_vm14, %v17643_v11, 0.0  ;;  %v6394_v30 = vadd.f32 %v6393_v10, %v6041_v56  ;;  %v6464_v49 = vadd.f32 %v6463_v15, %v6110_v9  ;;  %vm16177_vm15 = vcmp.lt.s32.totalorder %v17654_v22, 22201  ;;  %v17665_v9 = vld [vmem:[#allocation202_spill] sm:$0xff] }
 0x4e2   : > { %v6111_v51 = vsel %vm17649_vm2, %v17647_v14, 0.0  ;;  %v5895_v26 = vsel %vm16153_vm9, %v17651_v3, 0.0  ;;  %v5971_v36 = vsel %vm16152_vm4, %v17653_v29, 0.0  ;;  %v6245_v55 = vadd.f32 %v6244_v54, %v5894_v37  ;;  %v17659_v14 = vld [vmem:[#allocation81_spill] sm:$0xff]  ;;  %v17668_v54 = vld [vmem:[#allocation380_spill] sm:$0xff] }
 0x4e3   : > { %v6322_v45 = vadd.f32 %v6321_v23, %v5970_v0  ;;  %v17656_v11 = vmax.f32 %v17655_v59, 0.0  ;;  %vm17658_vm14 = vcmp.lt.s32.totalorder %v17657_v21, 22201  ;;  %v17660_v57 = vmax.f32 %v17659_v14, 0.0  ;;  %v17669_v59 = vld [vmem:[#allocation155_spill] sm:$0xff]  ;;  %v17672_v14 = vld [vmem:[#allocation80_spill] sm:$0xff] }
 0x4e4   : > { %vm17662_vm2 = vcmp.lt.s32.totalorder %v17661_v12, 22201  ;;  %v17664_v20 = vmax.f32 %v17663_v42, 0.0  ;;  %v17666_v10 = vmax.f32 %v17665_v9, 0.0  ;;  %vm17667_vm4 = vcmp.lt.s32.totalorder %v17471_v35, 22201  ;;  %v17674_v42 = vld [vmem:[#allocation406_spill] sm:$0xff] }
 0x4e5   : > { %v6043_v62 = vsel %vm17658_vm14, %v17656_v11, 0.0  ;;  %v6112_v3 = vsel %vm17662_vm2, %v17660_v57, 0.0  ;;  %v6395_v0 = vadd.f32 %v6394_v30, %v6042_v31  ;;  %v6465_v15 = vadd.f32 %v6464_v49, %v6111_v51  ;;  %v17676_v9 = vld [vmem:[#allocation246_spill] sm:$0xff]  ;;  %v17678_v51 = vld [vmem:[#allocation215_spill] sm:$0xff] }
 0x4e6   : > { %v5896_v56 = vsel %vm16154_vm10, %v17664_v20, 0.0  ;;  %v5972_v37 = vsel %vm17667_vm4, %v17666_v10, 0.0  ;;  %vm16179_vm9 = vcmp.lt.s32.totalorder %v17668_v54, 22201  ;;  %v6246_v23 = vadd.f32 %v6245_v55, %v5895_v26  ;;  %v17681_v55 = vld [vmem:[#allocation381_spill] sm:$0xff] }
 0x4e7   : > { %v6323_v29 = vadd.f32 %v6322_v45, %v5971_v36  ;;  %v17670_v11 = vmax.f32 %v17669_v59, 0.0  ;;  %vm17671_vm14 = vcmp.lt.s32.totalorder %v13290_v7, 22201  ;;  %v17673_v57 = vmax.f32 %v17672_v14, 0.0  ;;  %v17682_v59 = vld [vmem:[#allocation157_spill] sm:$0xff] }
 0x4e8   : > { %vm17675_vm2 = vcmp.lt.s32.totalorder %v17674_v42, 22201  ;;  %v17677_v21 = vmax.f32 %v17676_v9, 0.0  ;;  %v17679_v30 = vmax.f32 %v17678_v51, 0.0  ;;  %vm17680_vm4 = vcmp.lt.s32.totalorder %v17477_v39, 22201  ;;  %v17687_v9 = vld [vmem:[#allocation407_spill] sm:$0xff] }
 0x4e9   : > { %v6044_v12 = vsel %vm17671_vm14, %v17670_v11, 0.0  ;;  %v6113_v20 = vsel %vm17675_vm2, %v17673_v57, 0.0  ;;  %v6396_v36 = vadd.f32 %v6395_v0, %v6043_v62  ;;  %v6466_v49 = vadd.f32 %v6465_v15, %v6112_v3  ;;  %v17685_v57 = vld [vmem:[#allocation82_spill] sm:$0xff]  ;;  %v17689_v51 = vld [vmem:[#allocation259_spill] sm:$0xff]  ;;  %v17691_v3 = vld [vmem:[#allocation217_spill] sm:$0xff] }
 0x4ea   : > { %v5897_v31 = vsel %vm16170_vm0, %v17677_v21, 0.0  ;;  %v5973_v26 = vsel %vm17680_vm4, %v17679_v30, 0.0  ;;  %vm16183_vm10 = vcmp.lt.s32.totalorder %v17681_v55, 22201  ;;  %v6247_v45 = vadd.f32 %v6246_v23, %v5896_v56  ;;  %v17693_v23 = vld [vmem:[#allocation382_spill] sm:$0xff] }
 0x4eb   : > { %v6324_v10 = vadd.f32 %v6323_v29, %v5972_v37  ;;  %v17683_v11 = vmax.f32 %v17682_v59, 0.0  ;;  %vm17684_vm14 = vcmp.lt.s32.totalorder %v13293_v53, 22201  ;;  %v17686_v42 = vmax.f32 %v17685_v57, 0.0  ;;  %v17694_v59 = vld [vmem:[#allocation156_spill] sm:$0xff] }
 0x4ec   : > { %vm17688_vm2 = vcmp.lt.s32.totalorder %v17687_v9, 22201  ;;  %v17690_v7 = vmax.f32 %v17689_v51, 0.0  ;;  %v17692_v0 = vmax.f32 %v17691_v3, 0.0  ;;  %v6397_v37 = vadd.f32 %v6396_v36, %v6044_v12  ;;  %v17699_v51 = vld [vmem:[#allocation408_spill] sm:$0xff]  ;;  %v17701_v3 = vld [vmem:[#allocation261_spill] sm:$0xff] }
 0x4ed   : > { %v6045_v14 = vsel %vm17684_vm14, %v17683_v11, 0.0  ;;  %v6114_v21 = vsel %vm17688_vm2, %v17686_v42, 0.0  ;;  %v6467_v15 = vadd.f32 %v6466_v49, %v6113_v20  ;;  %vm16182_vm4 = vcmp.lt.s32.totalorder %v17693_v23, 22201  ;;  %v17697_v42 = vld [vmem:[#allocation95_spill] sm:$0xff]  ;;  %v17703_v20 = vld [vmem:[#allocation216_spill] sm:$0xff] }
 0x4ee   : > { %v5898_v62 = vsel %vm16158_vm3, %v17690_v7, 0.0  ;;  %v5974_v56 = vsel %vm16157_vm5, %v17692_v0, 0.0  ;;  %v6248_v29 = vadd.f32 %v6247_v45, %v5897_v31  ;;  %v6325_v30 = vadd.f32 %v6324_v10, %v5973_v26  ;;  %v17706_v45 = vld [vmem:[#allocation383_spill] sm:$0xff] }
 0x4ef   : > { %v17695_v11 = vmax.f32 %v17694_v59, 0.0  ;;  %vm17696_vm14 = vcmp.lt.s32.totalorder %v13296_v19, 22201  ;;  %v17698_v9 = vmax.f32 %v17697_v42, 0.0  ;;  %vm17700_vm2 = vcmp.lt.s32.totalorder %v17699_v51, 22201  ;;  %v17707_v59 = vld [vmem:[#allocation158_spill] sm:$0xff] }
 0x4f0   : > { %v17702_v53 = vmax.f32 %v17701_v3, 0.0  ;;  %v17704_v36 = vmax.f32 %v17703_v20, 0.0  ;;  %vm17705_vm5 = vcmp.lt.s32.totalorder %v17500_v33, 22201  ;;  %v6398_v26 = vadd.f32 %v6397_v37, %v6045_v14  ;;  %v17713_v3 = vld [vmem:[#allocation260_spill] sm:$0xff] }
 0x4f1   : > { %v6046_v57 = vsel %vm17696_vm14, %v17695_v11, 0.0  ;;  %v6115_v7 = vsel %vm17700_vm2, %v17698_v9, 0.0  ;;  %v6468_v49 = vadd.f32 %v6467_v15, %v6114_v21  ;;  %vm16165_vm3 = vcmp.lt.s32.totalorder %v17706_v45, 22201  ;;  %v17710_v9 = vld [vmem:[#allocation97_spill] sm:$0xff]  ;;  %v17715_v21 = vld [vmem:[#allocation218_spill] sm:$0xff] }
 0x4f2   : > { %v5899_v12 = vsel %vm16159_vm11, %v17702_v53, 0.0  ;;  %v5975_v31 = vsel %vm17705_vm5, %v17704_v36, 0.0  ;;  %v6249_v10 = vadd.f32 %v6248_v29, %v5898_v62  ;;  %v6326_v0 = vadd.f32 %v6325_v30, %v5974_v56  ;;  %v17718_v29 = vld [vmem:[#allocation384_spill] sm:$0xff] }
 0x4f3   : > { %v17708_v11 = vmax.f32 %v17707_v59, 0.0  ;;  %vm17709_vm14 = vcmp.lt.s32.totalorder %v13299_v13, 22201  ;;  %v17711_v51 = vmax.f32 %v17710_v9, 0.0  ;;  %vm17712_vm2 = vcmp.lt.s32.totalorder %v13649_v32, 22201  ;;  %v17719_v59 = vld [vmem:[#allocation171_spill] sm:$0xff]  ;;  %v17722_v9 = vld [vmem:[#allocation96_spill] sm:$0xff] }
 0x4f4   : > { %v17714_v20 = vmax.f32 %v17713_v3, 0.0  ;;  %v17716_v37 = vmax.f32 %v17715_v21, 0.0  ;;  %vm17717_vm5 = vcmp.lt.s32.totalorder %v17511_v50, 22201  ;;  %v6399_v56 = vadd.f32 %v6398_v26, %v6046_v57 }
 0x4f5   : > { %v6047_v42 = vsel %vm17709_vm14, %v17708_v11, 0.0  ;;  %v6116_v53 = vsel %vm17712_vm2, %v17711_v51, 0.0  ;;  %v6469_v15 = vadd.f32 %v6468_v49, %v6115_v7  ;;  %vm16166_vm11 = vcmp.lt.s32.totalorder %v17718_v29, 22201  ;;  %v17727_v7 = vld [vmem:[#allocation231_spill] sm:$0xff] }
 0x4f6   : > { %v5900_v14 = vsel %vm16175_vm6, %v17714_v20, 0.0  ;;  %v5976_v62 = vsel %vm17717_vm5, %v17716_v37, 0.0  ;;  %v6250_v30 = vadd.f32 %v6249_v10, %v5899_v12  ;;  %v6327_v36 = vadd.f32 %v6326_v0, %v5975_v31  ;;  %v17725_v20 = vld [vmem:[#allocation262_spill] sm:$0xff]  ;;  %v17729_v10 = vld [vmem:[#allocation385_spill] sm:$0xff] }
 0x4f7   : > { %v17720_v11 = vmax.f32 %v17719_v59, 0.0  ;;  %vm17721_vm14 = vcmp.lt.s32.totalorder %v13302_v24, 22201  ;;  %v17723_v51 = vmax.f32 %v17722_v9, 0.0  ;;  %vm17724_vm2 = vcmp.lt.s32.totalorder %v13662_v34, 22201  ;;  %v17730_v59 = vld [vmem:[#allocation173_spill] sm:$0xff]  ;;  %v17733_v9 = vld [vmem:[#allocation98_spill] sm:$0xff] }
 0x4f8   : > { %v17726_v21 = vmax.f32 %v17725_v20, 0.0  ;;  %v17728_v26 = vmax.f32 %v17727_v7, 0.0  ;;  %v6400_v31 = vadd.f32 %v6399_v56, %v6047_v42  ;;  %v6470_v49 = vadd.f32 %v6469_v15, %v6116_v53  ;;  %v17738_v53 = vld [vmem:[#allocation233_spill] sm:$0xff] }
 0x4f9   : > { %v6048_v32 = vsel %vm17721_vm14, %v17720_v11, 0.0  ;;  %v6117_v3 = vsel %vm17724_vm2, %v17723_v51, 0.0  ;;  %vm5820_vm5 = vcmp.lt.s32.totalorder %v17729_v10, 22201  ;;  %v6251_v0 = vadd.f32 %v6250_v30, %v5900_v14  ;;  %v17740_v30 = vld [vmem:[#allocation386_spill] sm:$0xff] }
 0x4fa   : > { %v5901_v57 = vsel %vm16177_vm15, %v17726_v21, 0.0  ;;  %v5977_v12 = vsel %vm16160_vm13, %v17728_v26, 0.0  ;;  %v6328_v37 = vadd.f32 %v6327_v36, %v5976_v62  ;;  %v17731_v11 = vmax.f32 %v17730_v59, 0.0  ;;  %v17736_v21 = vld [vmem:[#allocation275_spill] sm:$0xff]  ;;  %v17741_v59 = vld [vmem:[#allocation172_spill] sm:$0xff] }
 0x4fb   : > { %vm17732_vm14 = vcmp.lt.s32.totalorder %v13305_v17, 22201  ;;  %v17734_v51 = vmax.f32 %v17733_v9, 0.0  ;;  %vm17735_vm2 = vcmp.lt.s32.totalorder %v13675_v44, 22201  ;;  %v17737_v7 = vmax.f32 %v17736_v21, 0.0  ;;  %v17744_v9 = vld [vmem:[#allocation111_spill] sm:$0xff] }
 0x4fc   : > { %v6049_v34 = vsel %vm17732_vm14, %v17731_v11, 0.0  ;;  %v17739_v56 = vmax.f32 %v17738_v53, 0.0  ;;  %v6401_v62 = vadd.f32 %v6400_v31, %v6048_v32  ;;  %v6471_v15 = vadd.f32 %v6470_v49, %v6117_v3  ;;  %v17749_v3 = vld [vmem:[#allocation232_spill] sm:$0xff] }
 0x4fd   : > { %v6118_v20 = vsel %vm17735_vm2, %v17734_v51, 0.0  ;;  %v5902_v42 = vsel %vm16179_vm9, %v17737_v7, 0.0  ;;  %vm16171_vm13 = vcmp.lt.s32.totalorder %v17740_v30, 22201  ;;  %v6252_v36 = vadd.f32 %v6251_v0, %v5901_v57  ;;  %v17747_v7 = vld [vmem:[#allocation277_spill] sm:$0xff]  ;;  %v17751_v0 = vld [vmem:[#allocation387_spill] sm:$0xff] }
 0x4fe   : > { %v5978_v14 = vsel %vm16161_vm12, %v17739_v56, 0.0  ;;  %v6329_v26 = vadd.f32 %v6328_v37, %v5977_v12  ;;  %v17742_v11 = vmax.f32 %v17741_v59, 0.0  ;;  %vm17743_vm14 = vcmp.lt.s32.totalorder %v13308_v46, 22201  ;;  %v17752_v59 = vld [vmem:[#allocation174_spill] sm:$0xff] }
 0x4ff   : > { %v17745_v51 = vmax.f32 %v17744_v9, 0.0  ;;  %vm17746_vm2 = vcmp.lt.s32.totalorder %v13688_v61, 22201  ;;  %v17748_v53 = vmax.f32 %v17747_v7, 0.0  ;;  %v17750_v31 = vmax.f32 %v17749_v3, 0.0  ;;  %v17755_v9 = vld [vmem:[#allocation113_spill] sm:$0xff] }
 0x500   : > { %v6050_v44 = vsel %vm17743_vm14, %v17742_v11, 0.0  ;;  %v6402_v12 = vadd.f32 %v6401_v62, %v6049_v34  ;;  %v6472_v49 = vadd.f32 %v6471_v15, %v6118_v20  ;;  %vm16173_vm12 = vcmp.lt.s32.totalorder %v17751_v0, 22201  ;;  %v17760_v20 = vld [vmem:[#allocation234_spill] sm:$0xff] }
 0x501   : > { %v6119_v21 = vsel %vm17746_vm2, %v17745_v51, 0.0  ;;  %v5903_v32 = vsel %vm16183_vm10, %v17748_v53, 0.0  ;;  %v5979_v57 = vsel %vm16162_vm7, %v17750_v31, 0.0  ;;  %v6253_v37 = vadd.f32 %v6252_v36, %v5902_v42  ;;  %v17758_v53 = vld [vmem:[#allocation276_spill] sm:$0xff] }
 0x502   : > { %v6330_v56 = vadd.f32 %v6329_v26, %v5978_v14  ;;  %v17753_v11 = vmax.f32 %v17752_v59, 0.0  ;;  %vm17754_vm14 = vcmp.lt.s32.totalorder %v13311_v1, 22201  ;;  %v17756_v51 = vmax.f32 %v17755_v9, 0.0  ;;  %v17762_v36 = vld [vmem:[#allocation388_spill] sm:$0xff]  ;;  %v17763_v59 = vld [vmem:[#allocation187_spill] sm:$0xff] }
 0x503   : > { %vm17757_vm2 = vcmp.lt.s32.totalorder %v13701_v18, 22201  ;;  %v17759_v3 = vmax.f32 %v17758_v53, 0.0  ;;  %v17761_v62 = vmax.f32 %v17760_v20, 0.0  ;;  %v6403_v14 = vadd.f32 %v6402_v12, %v6050_v44  ;;  %v17766_v9 = vld [vmem:[#allocation112_spill] sm:$0xff] }
 0x504   : > { %v6051_v61 = vsel %vm17754_vm14, %v17753_v11, 0.0  ;;  %v6120_v7 = vsel %vm17757_vm2, %v17756_v51, 0.0  ;;  %v6473_v15 = vadd.f32 %v6472_v49, %v6119_v21  ;;  %vm5823_vm7 = vcmp.lt.s32.totalorder %v17762_v36, 22201  ;;  %v17771_v21 = vld [vmem:[#allocation247_spill] sm:$0xff] }
 0x505   : > { %v5904_v34 = vsel %vm16182_vm4, %v17759_v3, 0.0  ;;  %v5980_v42 = vsel %vm16163_vm1, %v17761_v62, 0.0  ;;  %v6254_v26 = vadd.f32 %v6253_v37, %v5903_v32  ;;  %v6331_v31 = vadd.f32 %v6330_v56, %v5979_v57  ;;  %v17769_v3 = vld [vmem:[#allocation278_spill] sm:$0xff]  ;;  %v17773_v37 = vld [vmem:[#allocation389_spill] sm:$0xff] }
 0x506   : > { %v17764_v11 = vmax.f32 %v17763_v59, 0.0  ;;  %vm17765_vm14 = vcmp.lt.s32.totalorder %v13314_v60, 22201  ;;  %v17767_v51 = vmax.f32 %v17766_v9, 0.0  ;;  %vm17768_vm2 = vcmp.lt.s32.totalorder %v13714_v6, 22201  ;;  %v17774_v59 = vld [vmem:[#allocation189_spill] sm:$0xff]  ;;  %v17777_v9 = vld [vmem:[#allocation114_spill] sm:$0xff] }
 0x507   : > { %v17770_v20 = vmax.f32 %v17769_v3, 0.0  ;;  %v17772_v12 = vmax.f32 %v17771_v21, 0.0  ;;  %v6404_v57 = vadd.f32 %v6403_v14, %v6051_v61  ;;  %v6474_v49 = vadd.f32 %v6473_v15, %v6120_v7  ;;  %v17782_v7 = vld [vmem:[#allocation249_spill] sm:$0xff] }
 0x508   : > { %v6052_v18 = vsel %vm17765_vm14, %v17764_v11, 0.0  ;;  %v6121_v53 = vsel %vm17768_vm2, %v17767_v51, 0.0  ;;  %vm5824_vm1 = vcmp.lt.s32.totalorder %v17773_v37, 22201  ;;  %v6255_v56 = vadd.f32 %v6254_v26, %v5904_v34  ;;  %v17785_v26 = vld [vmem:[#allocation390_spill] sm:$0xff] }
 0x509   : > { %v5905_v44 = vsel %vm16165_vm3, %v17770_v20, 0.0  ;;  %v5981_v32 = vsel %vm16164_vm8, %v17772_v12, 0.0  ;;  %v6332_v62 = vadd.f32 %v6331_v31, %v5980_v42  ;;  %v17775_v11 = vmax.f32 %v17774_v59, 0.0  ;;  %v17780_v20 = vld [vmem:[#allocation291_spill] sm:$0xff]  ;;  %v17786_v59 = vld [vmem:[#allocation188_spill] sm:$0xff] }
 0x50a   : > { %vm17776_vm14 = vcmp.lt.s32.totalorder %v17430_v27, 22201  ;;  %v17778_v51 = vmax.f32 %v17777_v9, 0.0  ;;  %vm17779_vm2 = vcmp.lt.s32.totalorder %v13727_v4, 22201  ;;  %v17781_v21 = vmax.f32 %v17780_v20, 0.0  ;;  %v17789_v9 = vld [vmem:[#allocation127_spill] sm:$0xff] }
 0x50b   : > { %v6053_v6 = vsel %vm17776_vm14, %v17775_v11, 0.0  ;;  %v17783_v14 = vmax.f32 %v17782_v7, 0.0  ;;  %vm17784_vm8 = vcmp.lt.s32.totalorder %v17580_v2, 22201  ;;  %v6405_v42 = vadd.f32 %v6404_v57, %v6052_v18 }
 0x50c   : > { %v6122_v3 = vsel %vm17779_vm2, %v17778_v51, 0.0  ;;  %v5906_v61 = vsel %vm16166_vm11, %v17781_v21, 0.0  ;;  %v6475_v15 = vadd.f32 %v6474_v49, %v6121_v53  ;;  %vm5825_vm3 = vcmp.lt.s32.totalorder %v17785_v26, 22201  ;;  %v17792_v21 = vld [vmem:[#allocation293_spill] sm:$0xff]  ;;  %v17794_v53 = vld [vmem:[#allocation248_spill] sm:$0xff] }
 0x50d   : > { %v5982_v34 = vsel %vm17784_vm8, %v17783_v14, 0.0  ;;  %v6256_v31 = vadd.f32 %v6255_v56, %v5905_v44  ;;  %v6333_v12 = vadd.f32 %v6332_v62, %v5981_v32  ;;  %v17787_v11 = vmax.f32 %v17786_v59, 0.0  ;;  %v17797_v56 = vld [vmem:[#allocation391_spill] sm:$0xff]  ;;  %v17798_v59 = vld [vmem:[#allocation190_spill] sm:$0xff] }
 0x50e   : > { %vm17788_vm14 = vcmp.lt.s32.totalorder %v17435_v63, 22201  ;;  %v17790_v51 = vmax.f32 %v17789_v9, 0.0  ;;  %vm17791_vm2 = vcmp.lt.s32.totalorder %v13740_v58, 22201  ;;  %v17793_v7 = vmax.f32 %v17792_v21, 0.0  ;;  %v17800_v58 = vld [vmem:[#allocation359_spill] sm:$0xff]  ;;  %v17804_v63 = vld [vmem:[#allocation409_spill] sm:$0xff] }
 0x50f   : > { %v6054_v4 = vsel %vm17788_vm14, %v17787_v11, 0.0  ;;  %v17795_v57 = vmax.f32 %v17794_v53, 0.0  ;;  %vm17796_vm8 = vcmp.lt.s32.totalorder %v17592_v38, 22201  ;;  %v6406_v32 = vadd.f32 %v6405_v42, %v6053_v6  ;;  %v17806_v53 = vld [vmem:[#allocation292_spill] sm:$0xff] }
 0x510   : > { %v6123_v20 = vsel %vm17791_vm2, %v17790_v51, 0.0  ;;  %v5907_v18 = vsel %vm5820_vm5, %v17793_v7, 0.0  ;;  %v6476_v49 = vadd.f32 %v6475_v15, %v6122_v3  ;;  %vm5826_vm11 = vcmp.lt.s32.totalorder %v17797_v56, 22201  ;;  %v17802_v51 = vld [vmem:[#allocation129_spill] sm:$0xff]  ;;  %v17808_v3 = vld [vmem:[#allocation250_spill] sm:$0xff] }
 0x511   : > { %v5983_v44 = vsel %vm17796_vm8, %v17795_v57, 0.0  ;;  %v6257_v62 = vadd.f32 %v6256_v31, %v5906_v61  ;;  %v6334_v14 = vadd.f32 %v6333_v12, %v5982_v34  ;;  %v17799_v11 = vmax.f32 %v17798_v59, 0.0  ;;  %v17810_v31 = vld [vmem:[#allocation392_spill] sm:$0xff]  ;;  %v17811_v59 = vld [vmem:[#allocation203_spill] sm:$0xff] }
 0x512   : > { %vm17801_vm14 = vcmp.lt.s32.totalorder %v17800_v58, 22201  ;;  %v17803_v21 = vmax.f32 %v17802_v51, 0.0  ;;  %vm17805_vm2 = vcmp.lt.s32.totalorder %v17804_v63, 22201  ;;  %v17807_v27 = vmax.f32 %v17806_v53, 0.0  ;;  %v17813_v63 = vld [vmem:[#allocation360_spill] sm:$0xff]  ;;  %v17817_v58 = vld [vmem:[#allocation410_spill] sm:$0xff] }
 0x513   : > { %v6055_v9 = vsel %vm17801_vm14, %v17799_v11, 0.0  ;;  %v17809_v42 = vmax.f32 %v17808_v3, 0.0  ;;  %v6407_v34 = vadd.f32 %v6406_v32, %v6054_v4  ;;  %v6477_v15 = vadd.f32 %v6476_v49, %v6123_v20  ;;  %v17819_v3 = vld [vmem:[#allocation294_spill] sm:$0xff]  ;;  %v17821_v20 = vld [vmem:[#allocation263_spill] sm:$0xff] }
 0x514   : > { %v6124_v7 = vsel %vm17805_vm2, %v17803_v21, 0.0  ;;  %v5908_v6 = vsel %vm16171_vm13, %v17807_v27, 0.0  ;;  %vm5827_vm8 = vcmp.lt.s32.totalorder %v17810_v31, 22201  ;;  %v6258_v12 = vadd.f32 %v6257_v62, %v5907_v18  ;;  %v17815_v21 = vld [vmem:[#allocation128_spill] sm:$0xff]  ;;  %v17824_v62 = vld [vmem:[#allocation393_spill] sm:$0xff] }
 0x515   : > { %v5984_v61 = vsel %vm16170_vm0, %v17809_v42, 0.0  ;;  %v6335_v57 = vadd.f32 %v6334_v14, %v5983_v44  ;;  %v17812_v11 = vmax.f32 %v17811_v59, 0.0  ;;  %vm17814_vm14 = vcmp.lt.s32.totalorder %v17813_v63, 22201  ;;  %v17825_v59 = vld [vmem:[#allocation205_spill] sm:$0xff]  ;;  %v17831_v63 = vld [vmem:[#allocation411_spill] sm:$0xff] }
 0x516   : > { %v17816_v53 = vmax.f32 %v17815_v21, 0.0  ;;  %vm17818_vm2 = vcmp.lt.s32.totalorder %v17817_v58, 22201  ;;  %v17820_v60 = vmax.f32 %v17819_v3, 0.0  ;;  %v17822_v32 = vmax.f32 %v17821_v20, 0.0  ;;  %v17827_v58 = vld [vmem:[#allocation361_spill] sm:$0xff]  ;;  %v17833_v20 = vld [vmem:[#allocation307_spill] sm:$0xff] }
 0x517   : > { %v6056_v51 = vsel %vm17814_vm14, %v17812_v11, 0.0  ;;  %vm17823_vm0 = vcmp.lt.s32.totalorder %v17615_v48, 22201  ;;  %v6408_v44 = vadd.f32 %v6407_v34, %v6055_v9  ;;  %v6478_v49 = vadd.f32 %v6477_v15, %v6124_v7  ;;  %v17835_v7 = vld [vmem:[#allocation265_spill] sm:$0xff] }
 0x518   : > { %v6125_v27 = vsel %vm17818_vm2, %v17816_v53, 0.0  ;;  %v5909_v4 = vsel %vm16173_vm12, %v17820_v60, 0.0  ;;  %v5985_v18 = vsel %vm17823_vm0, %v17822_v32, 0.0  ;;  %vm5828_vm13 = vcmp.lt.s32.totalorder %v17824_v62, 22201  ;;  %v17829_v53 = vld [vmem:[#allocation130_spill] sm:$0xff] }
 0x519   : > { %v6259_v14 = vadd.f32 %v6258_v12, %v5908_v6  ;;  %v6336_v42 = vadd.f32 %v6335_v57, %v5984_v61  ;;  %v17826_v11 = vmax.f32 %v17825_v59, 0.0  ;;  %vm17828_vm14 = vcmp.lt.s32.totalorder %v17827_v58, 22201  ;;  %v17838_v12 = vld [vmem:[#allocation394_spill] sm:$0xff]  ;;  %v17839_v59 = vld [vmem:[#allocation204_spill] sm:$0xff] }
 0x51a   : > { %v17830_v3 = vmax.f32 %v17829_v53, 0.0  ;;  %vm17832_vm2 = vcmp.lt.s32.totalorder %v17831_v63, 22201  ;;  %v17834_v52 = vmax.f32 %v17833_v20, 0.0  ;;  %v17836_v34 = vmax.f32 %v17835_v7, 0.0  ;;  %v17842_v53 = vld [vmem:[#allocation143_spill] sm:$0xff]  ;;  %v17844_v20 = vld [vmem:[#allocation412_spill] sm:$0xff] }
 0x51b   : > { %v6057_v21 = vsel %vm17828_vm14, %v17826_v11, 0.0  ;;  %vm17837_vm0 = vcmp.lt.s32.totalorder %v17628_v41, 22201  ;;  %v6409_v61 = vadd.f32 %v6408_v44, %v6056_v51  ;;  %v6479_v15 = vadd.f32 %v6478_v49, %v6125_v27  ;;  %v17846_v7 = vld [vmem:[#allocation309_spill] sm:$0xff]  ;;  %v17848_v27 = vld [vmem:[#allocation264_spill] sm:$0xff] }
 0x51c   : > { %v6126_v60 = vsel %vm17832_vm2, %v17830_v3, 0.0  ;;  %v5910_v9 = vsel %vm5823_vm7, %v17834_v52, 0.0  ;;  %v5986_v6 = vsel %vm17837_vm0, %v17836_v34, 0.0  ;;  %vm5829_vm12 = vcmp.lt.s32.totalorder %v17838_v12, 22201 }
 0x51d   : > { %v6260_v57 = vadd.f32 %v6259_v14, %v5909_v4  ;;  %v6337_v32 = vadd.f32 %v6336_v42, %v5985_v18  ;;  %v17840_v11 = vmax.f32 %v17839_v59, 0.0  ;;  %vm17841_vm14 = vcmp.lt.s32.totalorder %v17453_v16, 22201  ;;  %v17850_v14 = vld [vmem:[#allocation395_spill] sm:$0xff]  ;;  %v17851_v59 = vld [vmem:[#allocation206_spill] sm:$0xff] }
 0x51e   : > { %v17843_v3 = vmax.f32 %v17842_v53, 0.0  ;;  %vm17845_vm2 = vcmp.lt.s32.totalorder %v17844_v20, 22201  ;;  %v17847_v58 = vmax.f32 %v17846_v7, 0.0  ;;  %v17849_v44 = vmax.f32 %v17848_v27, 0.0  ;;  %v17856_v7 = vld [vmem:[#allocation351_spill] sm:$0xff]  ;;  %v17858_v27 = vld [vmem:[#allocation308_spill] sm:$0xff] }
 0x51f   : > { %v6058_v63 = vsel %vm17841_vm14, %v17840_v11, 0.0  ;;  %v6410_v18 = vadd.f32 %v6409_v61, %v6057_v21  ;;  %v6480_v49 = vadd.f32 %v6479_v15, %v6126_v60  ;;  %vm5830_vm0 = vcmp.lt.s32.totalorder %v17850_v14, 22201  ;;  %v17860_v60 = vld [vmem:[#allocation266_spill] sm:$0xff] }
 0x520   : > { %v6127_v52 = vsel %vm17845_vm2, %v17843_v3, 0.0  ;;  %v5911_v51 = vsel %vm5824_vm1, %v17847_v58, 0.0  ;;  %v5987_v4 = vsel %vm16175_vm6, %v17849_v44, 0.0  ;;  %v6261_v42 = vadd.f32 %v6260_v57, %v5910_v9  ;;  %v17854_v3 = vld [vmem:[#allocation145_spill] sm:$0xff]  ;;  %v17862_v57 = vld [vmem:[#allocation396_spill] sm:$0xff] }
 0x521   : > { %v6338_v34 = vadd.f32 %v6337_v32, %v5986_v6  ;;  %v17852_v11 = vmax.f32 %v17851_v59, 0.0  ;;  %vm17853_vm14 = vcmp.lt.s32.totalorder %v17471_v35, 22201  ;;  %v17855_v20 = vmax.f32 %v17854_v3, 0.0  ;;  %v17863_v59 = vld [vmem:[#allocation219_spill] sm:$0xff] }
 0x522   : > { %vm17857_vm2 = vcmp.lt.s32.totalorder %v17856_v7, 22201  ;;  %v17859_v16 = vmax.f32 %v17858_v27, 0.0  ;;  %v17861_v61 = vmax.f32 %v17860_v60, 0.0  ;;  %v6411_v6 = vadd.f32 %v6410_v18, %v6058_v63  ;;  %v17868_v27 = vld [vmem:[#allocation352_spill] sm:$0xff]  ;;  %v17870_v60 = vld [vmem:[#allocation310_spill] sm:$0xff] }
 0x523   : > { %v6059_v53 = vsel %vm17853_vm14, %v17852_v11, 0.0  ;;  %v6128_v58 = vsel %vm17857_vm2, %v17855_v20, 0.0  ;;  %v6481_v15 = vadd.f32 %v6480_v49, %v6127_v52  ;;  %vm5831_vm6 = vcmp.lt.s32.totalorder %v17862_v57, 22201  ;;  %v17866_v20 = vld [vmem:[#allocation144_spill] sm:$0xff]  ;;  %v17872_v52 = vld [vmem:[#allocation279_spill] sm:$0xff] }
 0x524   : > { %v5912_v21 = vsel %vm5825_vm3, %v17859_v16, 0.0  ;;  %v5988_v9 = vsel %vm16177_vm15, %v17861_v61, 0.0  ;;  %v6262_v32 = vadd.f32 %v6261_v42, %v5911_v51  ;;  %v6339_v44 = vadd.f32 %v6338_v34, %v5987_v4  ;;  %v17874_v42 = vld [vmem:[#allocation397_spill] sm:$0xff]  ;;  %v6579_v57 = vld [vmem:[%s15676_s4] sm:$0xff] }
 0x525   : > { %v17864_v11 = vmax.f32 %v17863_v59, 0.0  ;;  %vm17865_vm14 = vcmp.lt.s32.totalorder %v17477_v39, 22201  ;;  %v17867_v7 = vmax.f32 %v17866_v20, 0.0  ;;  %vm17869_vm2 = vcmp.lt.s32.totalorder %v17868_v27, 22201  ;;  %v17875_v59 = vld [vmem:[#allocation221_spill] sm:$0xff] }
 0x526   : > { %v17871_v35 = vmax.f32 %v17870_v60, 0.0  ;;  %v17873_v18 = vmax.f32 %v17872_v52, 0.0  ;;  %v6412_v4 = vadd.f32 %v6411_v6, %v6059_v53  ;;  %v6482_v49 = vadd.f32 %v6481_v15, %v6128_v58  ;;  %v17880_v60 = vld [vmem:[#allocation353_spill] sm:$0xff]  ;;  %v17882_v52 = vld [vmem:[#allocation323_spill] sm:$0xff] }
 0x527   : > { %v6060_v3 = vsel %vm17865_vm14, %v17864_v11, 0.0  ;;  %v6129_v16 = vsel %vm17869_vm2, %v17867_v7, 0.0  ;;  %vm5832_vm15 = vcmp.lt.s32.totalorder %v17874_v42, 22201  ;;  %v6263_v34 = vadd.f32 %v6262_v32, %v5912_v21  ;;  %v17878_v7 = vld [vmem:[#allocation146_spill] sm:$0xff]  ;;  %v17884_v58 = vld [vmem:[#allocation281_spill] sm:$0xff] }
 0x528   : > { %v5913_v63 = vsel %vm5826_vm11, %v17871_v35, 0.0  ;;  %v5989_v51 = vsel %vm16179_vm9, %v17873_v18, 0.0  ;;  %v6340_v61 = vadd.f32 %v6339_v44, %v5988_v9  ;;  %v17876_v11 = vmax.f32 %v17875_v59, 0.0  ;;  %v17886_v32 = vld [vmem:[#allocation398_spill] sm:$0xff]  ;;  %v17887_v59 = vld [vmem:[#allocation220_spill] sm:$0xff]  ;;  %v6580_v42 = vld [vmem:[%s15676_s4 + $0x8] sm:$0xff] }
 0x529   : > { %vm17877_vm14 = vcmp.lt.s32.totalorder %v17489_v25, 22201  ;;  %v17879_v27 = vmax.f32 %v17878_v7, 0.0  ;;  %vm17881_vm2 = vcmp.lt.s32.totalorder %v17880_v60, 22201  ;;  %v17883_v39 = vmax.f32 %v17882_v52, 0.0  ;;  %v17892_v52 = vld [vmem:[#allocation354_spill] sm:$0xff] }
 0x52a   : > { %v6061_v20 = vsel %vm17877_vm14, %v17876_v11, 0.0  ;;  %v17885_v6 = vmax.f32 %v17884_v58, 0.0  ;;  %v6413_v9 = vadd.f32 %v6412_v4, %v6060_v3  ;;  %v6483_v15 = vadd.f32 %v6482_v49, %v6129_v16  ;;  %v17894_v58 = vld [vmem:[#allocation325_spill] sm:$0xff]  ;;  %v17896_v16 = vld [vmem:[#allocation280_spill] sm:$0xff] }
 0x52b   : > { %v6130_v35 = vsel %vm17881_vm2, %v17879_v27, 0.0  ;;  %v5914_v53 = vsel %vm5827_vm8, %v17883_v39, 0.0  ;;  %vm5833_vm9 = vcmp.lt.s32.totalorder %v17886_v32, 22201  ;;  %v6264_v44 = vadd.f32 %v6263_v34, %v5913_v63  ;;  %v17890_v27 = vld [vmem:[#allocation159_spill] sm:$0xff]  ;;  %v6588_v32 = vld [vmem:[%s15676_s4 + $0x48] sm:$0xff] }
 0x52c   : > { %v5990_v21 = vsel %vm16183_vm10, %v17885_v6, 0.0  ;;  %v6341_v18 = vadd.f32 %v6340_v61, %v5989_v51  ;;  %v17888_v11 = vmax.f32 %v17887_v59, 0.0  ;;  %vm17889_vm14 = vcmp.lt.s32.totalorder %v17500_v33, 22201  ;;  %v17898_v6 = vld [vmem:[#allocation222_spill] sm:$0xff] }
 0x52d   : > { %v17891_v60 = vmax.f32 %v17890_v27, 0.0  ;;  %vm17893_vm2 = vcmp.lt.s32.totalorder %v17892_v52, 22201  ;;  %v17895_v25 = vmax.f32 %v17894_v58, 0.0  ;;  %v17897_v4 = vmax.f32 %v17896_v16, 0.0  ;;  %v17901_v27 = vld [vmem:[#allocation161_spill] sm:$0xff]  ;;  %v17903_v52 = vld [vmem:[#allocation355_spill] sm:$0xff] }
 0x52e   : > { %v6062_v7 = vsel %vm17889_vm14, %v17888_v11, 0.0  ;;  %v6414_v51 = vadd.f32 %v6413_v9, %v6061_v20  ;;  %v6484_v49 = vadd.f32 %v6483_v15, %v6130_v35  ;;  %v6265_v34 = vadd.f32 %v6264_v44, %v5914_v53  ;;  %v17910_v44 = vld [vmem:[#allocation235_spill] sm:$0xff] }
 0x52f   : > { %v6131_v39 = vsel %vm17893_vm2, %v17891_v60, 0.0  ;;  %v5915_v3 = vsel %vm5828_vm13, %v17895_v25, 0.0  ;;  %v5991_v63 = vsel %vm16182_vm4, %v17897_v4, 0.0  ;;  %v6342_v61 = vadd.f32 %v6341_v18, %v5990_v21  ;;  %v17905_v25 = vld [vmem:[#allocation324_spill] sm:$0xff]  ;;  %v17907_v4 = vld [vmem:[#allocation282_spill] sm:$0xff] }
 0x530   : > { %v17899_v59 = vmax.f32 %v17898_v6, 0.0  ;;  %vm17900_vm14 = vcmp.lt.s32.totalorder %v17511_v50, 22201  ;;  %v17902_v60 = vmax.f32 %v17901_v27, 0.0  ;;  %vm17904_vm2 = vcmp.lt.s32.totalorder %v17903_v52, 22201 }
 0x531   : > { %v17906_v33 = vmax.f32 %v17905_v25, 0.0  ;;  %v17908_v20 = vmax.f32 %v17907_v4, 0.0  ;;  %vm17909_vm4 = vcmp.lt.s32.totalorder %v17706_v45, 22201  ;;  %v6415_v53 = vadd.f32 %v6414_v51, %v6062_v7  ;;  %v17918_v4 = vld [vmem:[#allocation295_spill] sm:$0xff] }
 0x532   : > { %v6063_v11 = vsel %vm17900_vm14, %v17899_v59, 0.0  ;;  %v6132_v58 = vsel %vm17904_vm2, %v17902_v60, 0.0  ;;  %v6485_v21 = vadd.f32 %v6484_v49, %v6131_v39  ;;  %v6266_v9 = vadd.f32 %v6265_v34, %v5915_v3  ;;  %v17913_v59 = vld [vmem:[#allocation160_spill] sm:$0xff]  ;;  %v17921_v34 = vld [vmem:[#allocation237_spill] sm:$0xff] }
 0x533   : > { %v5916_v16 = vsel %vm5829_vm12, %v17906_v33, 0.0  ;;  %v5992_v35 = vsel %vm17909_vm4, %v17908_v20, 0.0  ;;  %v6343_v15 = vadd.f32 %v6342_v61, %v5991_v63  ;;  %v17911_v18 = vmax.f32 %v17910_v44, 0.0  ;;  %v17916_v33 = vld [vmem:[#allocation326_spill] sm:$0xff] }
 0x534   : > { %vm17912_vm14 = vcmp.lt.s32.totalorder %v17522_v43, 22201  ;;  %v17914_v27 = vmax.f32 %v17913_v59, 0.0  ;;  %vm17915_vm2 = vcmp.lt.s32.totalorder %v13296_v19, 22201  ;;  %v17917_v52 = vmax.f32 %v17916_v33, 0.0  ;;  %v17924_v20 = vld [vmem:[#allocation162_spill] sm:$0xff]  ;;  %v17927_v59 = vld [vmem:[#allocation339_spill] sm:$0xff] }
 0x535   : > { %v6064_v6 = vsel %vm17912_vm14, %v17911_v18, 0.0  ;;  %v17919_v7 = vmax.f32 %v17918_v4, 0.0  ;;  %vm17920_vm4 = vcmp.lt.s32.totalorder %v17718_v29, 22201  ;;  %v6416_v3 = vadd.f32 %v6415_v53, %v6063_v11  ;;  %v17934_v4 = vld [vmem:[#allocation175_spill] sm:$0xff] }
 0x536   : > { %v6133_v60 = vsel %vm17915_vm2, %v17914_v27, 0.0  ;;  %v5917_v25 = vsel %vm5830_vm0, %v17917_v52, 0.0  ;;  %v6486_v63 = vadd.f32 %v6485_v21, %v6132_v58  ;;  %v6267_v51 = vadd.f32 %v6266_v9, %v5916_v16  ;;  %v17929_v52 = vld [vmem:[#allocation297_spill] sm:$0xff]  ;;  %v17931_v9 = vld [vmem:[#allocation236_spill] sm:$0xff] }
 0x537   : > { %v5993_v39 = vsel %vm17920_vm4, %v17919_v7, 0.0  ;;  %v6344_v49 = vadd.f32 %v6343_v15, %v5992_v35  ;;  %v17922_v61 = vmax.f32 %v17921_v34, 0.0  ;;  %vm17923_vm14 = vcmp.lt.s32.totalorder %v17533_v40, 22201 }
 0x538   : > { %v17925_v44 = vmax.f32 %v17924_v20, 0.0  ;;  %vm17926_vm2 = vcmp.lt.s32.totalorder %v13299_v13, 22201  ;;  %v17928_v27 = vmax.f32 %v17927_v59, 0.0  ;;  %v17930_v11 = vmax.f32 %v17929_v52, 0.0  ;;  %v17939_v59 = vld [vmem:[#allocation296_spill] sm:$0xff] }
 0x539   : > { %v6065_v19 = vsel %vm17923_vm14, %v17922_v61, 0.0  ;;  %v6417_v16 = vadd.f32 %v6416_v3, %v6064_v6  ;;  %v6487_v35 = vadd.f32 %v6486_v63, %v6133_v60  ;;  %v6268_v53 = vadd.f32 %v6267_v51, %v5917_v25  ;;  %v17937_v61 = vld [vmem:[#allocation341_spill] sm:$0xff]  ;;  %v17942_v51 = vld [vmem:[#allocation238_spill] sm:$0xff] }
 0x53a   : > { %v6134_v18 = vsel %vm17926_vm2, %v17925_v44, 0.0  ;;  %v5918_v33 = vsel %vm5831_vm6, %v17928_v27, 0.0  ;;  %v5994_v58 = vsel %vm5820_vm5, %v17930_v11, 0.0  ;;  %v6345_v21 = vadd.f32 %v6344_v49, %v5993_v39  ;;  %v17945_v27 = vld [vmem:[#allocation177_spill] sm:$0xff] }
 0x53b   : > { %v17932_v15 = vmax.f32 %v17931_v9, 0.0  ;;  %vm17933_vm4 = vcmp.lt.s32.totalorder %v17545_v28, 22201  ;;  %v17935_v7 = vmax.f32 %v17934_v4, 0.0  ;;  %vm17936_vm14 = vcmp.lt.s32.totalorder %v13302_v24, 22201  ;;  %v17948_v9 = vld [vmem:[#allocation342_spill] sm:$0xff] }
 0x53c   : > { %v17938_v20 = vmax.f32 %v17937_v61, 0.0  ;;  %v17940_v6 = vmax.f32 %v17939_v59, 0.0  ;;  %vm17941_vm2 = vcmp.lt.s32.totalorder %v17740_v30, 22201  ;;  %v6418_v25 = vadd.f32 %v6417_v16, %v6065_v19  ;;  %v17956_v61 = vld [vmem:[#allocation176_spill] sm:$0xff] }
 0x53d   : > { %v6066_v13 = vsel %vm17933_vm4, %v17932_v15, 0.0  ;;  %v6135_v34 = vsel %vm17936_vm14, %v17935_v7, 0.0  ;;  %v6488_v39 = vadd.f32 %v6487_v35, %v6134_v18  ;;  %v6269_v3 = vadd.f32 %v6268_v53, %v5918_v33  ;;  %v17950_v7 = vld [vmem:[#allocation298_spill] sm:$0xff]  ;;  %v17953_v53 = vld [vmem:[#allocation251_spill] sm:$0xff] }
 0x53e   : > { %v5919_v44 = vsel %vm5832_vm15, %v17938_v20, 0.0  ;;  %v5995_v60 = vsel %vm17941_vm2, %v17940_v6, 0.0  ;;  %v6346_v63 = vadd.f32 %v6345_v21, %v5994_v58  ;;  %v17943_v49 = vmax.f32 %v17942_v51, 0.0  ;;  %v17959_v6 = vld [vmem:[#allocation311_spill] sm:$0xff] }
 0x53f   : > { %vm17944_vm4 = vcmp.lt.s32.totalorder %v17557_v8, 22201  ;;  %v17946_v52 = vmax.f32 %v17945_v27, 0.0  ;;  %vm17947_vm14 = vcmp.lt.s32.totalorder %v13305_v17, 22201  ;;  %v17949_v15 = vmax.f32 %v17948_v9, 0.0 }
 0x540   : > { %v6067_v24 = vsel %vm17944_vm4, %v17943_v49, 0.0  ;;  %v17951_v19 = vmax.f32 %v17950_v7, 0.0  ;;  %vm17952_vm2 = vcmp.lt.s32.totalorder %v17751_v0, 22201  ;;  %v6419_v33 = vadd.f32 %v6418_v25, %v6066_v13 }
 0x541   : > { %v6136_v11 = vsel %vm17947_vm14, %v17946_v52, 0.0  ;;  %v5920_v4 = vsel %vm5833_vm9, %v17949_v15, 0.0  ;;  %v6489_v58 = vadd.f32 %v6488_v39, %v6135_v34  ;;  %v6270_v16 = vadd.f32 %v6269_v3, %v5919_v44  ;;  %v17964_v3 = vld [vmem:[#allocation178_spill] sm:$0xff]  ;;  %v17967_v52 = vld [vmem:[#allocation313_spill] sm:$0xff] }
 0x542   : > { %v5996_v18 = vsel %vm17952_vm2, %v17951_v19, 0.0  ;;  %v6347_v35 = vadd.f32 %v6346_v63, %v5995_v60  ;;  %v17954_v21 = vmax.f32 %v17953_v53, 0.0  ;;  %vm17955_vm4 = vcmp.lt.s32.totalorder %v17568_v5, 22201  ;;  %v17961_v60 = vld [vmem:[#allocation253_spill] sm:$0xff] }
 0x543   : > { %v17957_v20 = vmax.f32 %v17956_v61, 0.0  ;;  %vm17958_vm14 = vcmp.lt.s32.totalorder %v13308_v46, 22201  ;;  %v17960_v51 = vmax.f32 %v17959_v6, 0.0  ;;  %v6420_v27 = vadd.f32 %v6419_v33, %v6067_v24  ;;  %v17972_v33 = vld [vmem:[#allocation191_spill] sm:$0xff] }
 0x544   : > { %v6068_v17 = vsel %vm17955_vm4, %v17954_v21, 0.0  ;;  %v6490_v13 = vadd.f32 %v6489_v58, %v6136_v11  ;;  %v6271_v34 = vadd.f32 %v6270_v16, %v5920_v4  ;;  %v6348_v44 = vadd.f32 %v6347_v35, %v5996_v18  ;;  %v17969_v4 = vld [vmem:[#allocation252_spill] sm:$0xff] }
 0x545   : > { %v6137_v59 = vsel %vm17958_vm14, %v17957_v20, 0.0  ;;  %v5997_v49 = vsel %vm5823_vm7, %v17960_v51, 0.0  ;;  %v17962_v25 = vmax.f32 %v17961_v60, 0.0  ;;  %vm17963_vm2 = vcmp.lt.s32.totalorder %v17580_v2, 22201  ;;  %v17974_v16 = vld [vmem:[#allocation356_spill] sm:$0xff]  ;;  %v17980_v51 = vld [vmem:[#allocation375_spill] sm:$0xff] }
 0x546   : > { %v17965_v63 = vmax.f32 %v17964_v3, 0.0  ;;  %vm17966_vm4 = vcmp.lt.s32.totalorder %v13311_v1, 22201  ;;  %v17968_v9 = vmax.f32 %v17967_v52, 0.0  ;;  %v6421_v7 = vadd.f32 %v6420_v27, %v6068_v17  ;;  %6272 = vadd.xlane.f32.xlu0 %v6271_v34  ;;  %v17976_v35 = vld [vmem:[#allocation312_spill] sm:$0xff]  ;;  %v17982_v27 = vld [vmem:[#allocation193_spill] sm:$0xff]  ;;  %v17986_v60 = vld [vmem:[#allocation314_spill] sm:$0xff] }
 0x547   : > { %v6069_v39 = vsel %vm17963_vm2, %v17962_v25, 0.0  ;;  %v6491_v24 = vadd.f32 %v6490_v13, %v6137_v59  ;;  %v6349_v11 = vadd.f32 %v6348_v44, %v5997_v49  ;;  %v17970_v19 = vmax.f32 %v17969_v4, 0.0  ;;  %v17978_v59 = vld [vmem:[#allocation254_spill] sm:$0xff]  ;;  %v17984_v34 = vld [vmem:[#allocation357_spill] sm:$0xff] }
 0x548   : > { %v6138_v46 = vsel %vm17966_vm4, %v17965_v63, 0.0  ;;  %v5998_v15 = vsel %vm5824_vm1, %v17968_v9, 0.0  ;;  %vm17971_vm14 = vcmp.lt.s32.totalorder %v17592_v38, 22201  ;;  %v17973_v58 = vmax.f32 %v17972_v33, 0.0 }
 0x549   : > { %v6070_v18 = vsel %vm17971_vm14, %v17970_v19, 0.0  ;;  %vm17975_vm2 = vcmp.lt.s32.totalorder %v17974_v16, 22201  ;;  %v17977_v53 = vmax.f32 %v17976_v35, 0.0  ;;  %v6422_v61 = vadd.f32 %v6421_v7, %v6069_v39  ;;  %v17991_v7 = vld [vmem:[#allocation192_spill] sm:$0xff]  ;;  %v17995_v19 = vld [vmem:[#allocation327_spill] sm:$0xff] }
 0x54a   : > { %v6139_v1 = vsel %vm17975_vm2, %v17973_v58, 0.0  ;;  %v6492_v17 = vadd.f32 %v6491_v24, %v6138_v46  ;;  %v6350_v20 = vadd.f32 %v6349_v11, %v5998_v15  ;;  %v17979_v6 = vmax.f32 %v17978_v59, 0.0  ;;  %v17988_v46 = vld [vmem:[#allocation267_spill] sm:$0xff]  ;;  %v17993_v11 = vld [vmem:[#allocation358_spill] sm:$0xff] }
 0x54b   : > { %v5999_v21 = vsel %vm5825_vm3, %v17977_v53, 0.0  ;;  %vm17981_vm4 = vcmp.lt.s32.totalorder %v17980_v51, 22201  ;;  %v17983_v13 = vmax.f32 %v17982_v27, 0.0  ;;  %vm17985_vm14 = vcmp.lt.s32.totalorder %v17984_v34, 22201 }
 0x54c   : > { %v6071_v49 = vsel %vm17981_vm4, %v17979_v6, 0.0  ;;  %v17987_v25 = vmax.f32 %v17986_v60, 0.0  ;;  %v6423_v63 = vadd.f32 %v6422_v61, %v6070_v18  ;;  %v6493_v52 = vadd.f32 %v6492_v17, %v6139_v1  ;;  %v17997_v1 = vld [vmem:[#allocation269_spill] sm:$0xff]  ;;  %v18000_v61 = vld [vmem:[#allocation194_spill] sm:$0xff] }
 0x54d   : > { %v6140_v44 = vsel %vm17985_vm14, %v17983_v13, 0.0  ;;  %v6351_v39 = vadd.f32 %v6350_v20, %v5999_v21  ;;  %v17989_v9 = vmax.f32 %v17988_v46, 0.0  ;;  %vm17990_vm2 = vcmp.lt.s32.totalorder %v17615_v48, 22201  ;;  %v18002_v20 = vld [vmem:[#allocation359_spill] sm:$0xff]  ;;  %v18004_v6 = vld [vmem:[#allocation329_spill] sm:$0xff] }
 0x54e   : > { %v6000_v3 = vsel %vm5826_vm11, %v17987_v25, 0.0  ;;  %v17992_v24 = vmax.f32 %v17991_v7, 0.0  ;;  %vm17994_vm4 = vcmp.lt.s32.totalorder %v17993_v11, 22201  ;;  %v17996_v33 = vmax.f32 %v17995_v19, 0.0 }
 0x54f   : > { %v6072_v15 = vsel %vm17990_vm2, %v17989_v9, 0.0  ;;  %v6424_v16 = vadd.f32 %v6423_v63, %v6071_v49  ;;  %v6494_v35 = vadd.f32 %v6493_v52, %v6140_v44  ;;  %v6352_v18 = vadd.f32 %v6351_v39, %v6000_v3  ;;  %v18006_v44 = vld [vmem:[#allocation268_spill] sm:$0xff]  ;;  %v18009_v63 = vld [vmem:[#allocation207_spill] sm:$0xff] }
 0x550   : > { %v6141_v4 = vsel %vm17994_vm4, %v17992_v24, 0.0  ;;  %v6001_v58 = vsel %vm5827_vm8, %v17996_v33, 0.0  ;;  %v17998_v53 = vmax.f32 %v17997_v1, 0.0  ;;  %vm17999_vm14 = vcmp.lt.s32.totalorder %v17628_v41, 22201  ;;  %v18011_v39 = vld [vmem:[#allocation360_spill] sm:$0xff] }
 0x551   : > { %v18001_v17 = vmax.f32 %v18000_v61, 0.0  ;;  %vm18003_vm2 = vcmp.lt.s32.totalorder %v18002_v20, 22201  ;;  %v18005_v27 = vmax.f32 %v18004_v6, 0.0  ;;  %v6425_v34 = vadd.f32 %v6424_v16, %v6072_v15  ;;  %v18013_v9 = vld [vmem:[#allocation328_spill] sm:$0xff]  ;;  %v18018_v16 = vld [vmem:[#allocation209_spill] sm:$0xff] }
 0x552   : > { %v6073_v21 = vsel %vm17999_vm14, %v17998_v53, 0.0  ;;  %v6495_v60 = vadd.f32 %v6494_v35, %v6141_v4  ;;  %v6353_v49 = vadd.f32 %v6352_v18, %v6001_v58  ;;  %v18007_v25 = vmax.f32 %v18006_v44, 0.0  ;;  %v18015_v4 = vld [vmem:[#allocation270_spill] sm:$0xff]  ;;  %v18020_v18 = vld [vmem:[#allocation361_spill] sm:$0xff] }
 0x553   : > { %v6142_v59 = vsel %vm18003_vm2, %v18001_v17, 0.0  ;;  %v6002_v13 = vsel %vm5828_vm13, %v18005_v27, 0.0  ;;  %vm18008_vm4 = vcmp.lt.s32.totalorder %v17641_v47, 22201  ;;  %v18010_v52 = vmax.f32 %v18009_v63, 0.0  ;;  %v18022_v53 = vld [vmem:[#allocation330_spill] sm:$0xff] }
 0x554   : > { %v6074_v3 = vsel %vm18008_vm4, %v18007_v25, 0.0  ;;  %vm18012_vm14 = vcmp.lt.s32.totalorder %v18011_v39, 22201  ;;  %v18014_v7 = vmax.f32 %v18013_v9, 0.0  ;;  %v6426_v11 = vadd.f32 %v6425_v34, %v6073_v21  ;;  %v18027_v34 = vld [vmem:[#allocation208_spill] sm:$0xff]  ;;  %v18031_v25 = vld [vmem:[#allocation343_spill] sm:$0xff] }
 0x555   : > { %v6143_v46 = vsel %vm18012_vm14, %v18010_v52, 0.0  ;;  %v6496_v19 = vadd.f32 %v6495_v60, %v6142_v59  ;;  %v6354_v15 = vadd.f32 %v6353_v49, %v6002_v13  ;;  %v18016_v33 = vmax.f32 %v18015_v4, 0.0  ;;  %v18024_v59 = vld [vmem:[#allocation283_spill] sm:$0xff]  ;;  %v18029_v49 = vld [vmem:[#allocation362_spill] sm:$0xff] }
 0x556   : > { %v6003_v24 = vsel %vm5829_vm12, %v18014_v7, 0.0  ;;  %vm18017_vm2 = vcmp.lt.s32.totalorder %v17654_v22, 22201  ;;  %v18019_v35 = vmax.f32 %v18018_v16, 0.0  ;;  %vm18021_vm4 = vcmp.lt.s32.totalorder %v18020_v18, 22201 }
 0x557   : > { %v6075_v58 = vsel %vm18017_vm2, %v18016_v33, 0.0  ;;  %v18023_v61 = vmax.f32 %v18022_v53, 0.0  ;;  %v6427_v20 = vadd.f32 %v6426_v11, %v6074_v3  ;;  %v6497_v6 = vadd.f32 %v6496_v19, %v6143_v46  ;;  %v18033_v46 = vld [vmem:[#allocation285_spill] sm:$0xff]  ;;  %v18035_v11 = vld [vmem:[#allocation210_spill] sm:$0xff] }
 0x558   : > { %v6144_v1 = vsel %vm18021_vm4, %v18019_v35, 0.0  ;;  %v6355_v21 = vadd.f32 %v6354_v15, %v6003_v24  ;;  %v18025_v27 = vmax.f32 %v18024_v59, 0.0  ;;  %vm18026_vm14 = vcmp.lt.s32.totalorder %v17668_v54, 22201  ;;  %v18037_v15 = vld [vmem:[#allocation363_spill] sm:$0xff]  ;;  %v18039_v33 = vld [vmem:[#allocation345_spill] sm:$0xff] }
 0x559   : > { %v6004_v17 = vsel %vm5830_vm0, %v18023_v61, 0.0  ;;  %v18028_v60 = vmax.f32 %v18027_v34, 0.0  ;;  %vm18030_vm2 = vcmp.lt.s32.totalorder %v18029_v49, 22201  ;;  %v18032_v63 = vmax.f32 %v18031_v25, 0.0 }
 0x55a   : > { %v6076_v13 = vsel %vm18026_vm14, %v18025_v27, 0.0  ;;  %v6428_v39 = vadd.f32 %v6427_v20, %v6075_v58  ;;  %v6498_v9 = vadd.f32 %v6497_v6, %v6144_v1  ;;  %v6356_v3 = vadd.f32 %v6355_v21, %v6004_v17  ;;  %v18041_v1 = vld [vmem:[#allocation284_spill] sm:$0xff]  ;;  %v18044_v20 = vld [vmem:[#allocation223_spill] sm:$0xff]  ;;  %v18048_v27 = vld [vmem:[#allocation346_spill] sm:$0xff] }
 0x55b   : > { %v6145_v44 = vsel %vm18030_vm2, %v18028_v60, 0.0  ;;  %v6005_v52 = vsel %vm5831_vm6, %v18032_v63, 0.0  ;;  %v18034_v7 = vmax.f32 %v18033_v46, 0.0  ;;  %v18036_v19 = vmax.f32 %v18035_v11, 0.0  ;;  %v18046_v21 = vld [vmem:[#allocation364_spill] sm:$0xff] }
 0x55c   : > { %vm18038_vm4 = vcmp.lt.s32.totalorder %v18037_v15, 22201  ;;  %v18040_v16 = vmax.f32 %v18039_v33, 0.0  ;;  %v6429_v18 = vadd.f32 %v6428_v39, %v6076_v13  ;;  %v6499_v53 = vadd.f32 %v6498_v9, %v6145_v44  ;;  %v18050_v44 = vld [vmem:[#allocation286_spill] sm:$0xff]  ;;  %v18053_v39 = vld [vmem:[#allocation225_spill] sm:$0xff]  ;;  %v18057_v15 = vld [vmem:[#allocation299_spill] sm:$0xff] }
 0x55d   : > { %v6077_v24 = vsel %vm16183_vm10, %v18034_v7, 0.0  ;;  %v6146_v4 = vsel %vm18038_vm4, %v18036_v19, 0.0  ;;  %v6357_v58 = vadd.f32 %v6356_v3, %v6005_v52  ;;  %v18042_v61 = vmax.f32 %v18041_v1, 0.0  ;;  %v18055_v3 = vld [vmem:[#allocation365_spill] sm:$0xff] }
 0x55e   : > { %v6006_v35 = vsel %vm5832_vm15, %v18040_v16, 0.0  ;;  %vm18043_vm14 = vcmp.lt.s32.totalorder %v17693_v23, 22201  ;;  %v18045_v6 = vmax.f32 %v18044_v20, 0.0  ;;  %vm18047_vm2 = vcmp.lt.s32.totalorder %v18046_v21, 22201  ;;  %v18064_v1 = vld [vmem:[#allocation301_spill] sm:$0xff]  ;;  %v18066_v20 = vld [vmem:[#allocation226_spill] sm:$0xff] }
 0x55f   : > { %v6078_v17 = vsel %vm18043_vm14, %v18042_v61, 0.0  ;;  %v18049_v34 = vmax.f32 %v18048_v27, 0.0  ;;  %v6430_v49 = vadd.f32 %v6429_v18, %v6077_v24  ;;  %v6500_v25 = vadd.f32 %v6499_v53, %v6146_v4  ;;  %v18060_v4 = vld [vmem:[#allocation224_spill] sm:$0xff] }
 0x560   : > { %v6147_v59 = vsel %vm18047_vm2, %v18045_v6, 0.0  ;;  %v6358_v13 = vadd.f32 %v6357_v58, %v6006_v35  ;;  %v18051_v63 = vmax.f32 %v18050_v44, 0.0  ;;  %vm18052_vm4 = vcmp.lt.s32.totalorder %v17706_v45, 22201  ;;  %v18062_v35 = vld [vmem:[#allocation366_spill] sm:$0xff] }
 0x561   : > { %v6007_v60 = vsel %vm5833_vm9, %v18049_v34, 0.0  ;;  %v18054_v9 = vmax.f32 %v18053_v39, 0.0  ;;  %vm18056_vm14 = vcmp.lt.s32.totalorder %v18055_v3, 22201  ;;  %v6431_v7 = vadd.f32 %v6430_v49, %v6078_v17  ;;  %v18069_v34 = vld [vmem:[#allocation300_spill] sm:$0xff]  ;;  %v18075_v39 = vld [vmem:[#allocation302_spill] sm:$0xff]  ;;  %v18078_v3 = vld [vmem:[#allocation241_spill] sm:$0xff] }
 0x562   : > { %v6079_v52 = vsel %vm18052_vm4, %v18051_v63, 0.0  ;;  %v6501_v11 = vadd.f32 %v6500_v25, %v6147_v59  ;;  %v6359_v19 = vadd.f32 %v6358_v13, %v6007_v60  ;;  %v18058_v33 = vmax.f32 %v18057_v15, 0.0  ;;  %v18072_v25 = vld [vmem:[#allocation239_spill] sm:$0xff] }
 0x563   : > { %v6148_v46 = vsel %vm18056_vm14, %v18054_v9, 0.0  ;;  %vm18059_vm2 = vcmp.lt.s32.totalorder %v17718_v29, 22201  ;;  %v18061_v16 = vmax.f32 %v18060_v4, 0.0  ;;  %vm18063_vm10 = vcmp.lt.s32.totalorder %v18062_v35, 22201  ;;  %v18081_v15 = vld [vmem:[#allocation315_spill] sm:$0xff] }
 0x564   : > { %v6080_v24 = vsel %vm18059_vm2, %v18058_v33, 0.0  ;;  %v6432_v53 = vadd.f32 %v6431_v7, %v6079_v52  ;;  %v6502_v58 = vadd.f32 %v6501_v11, %v6148_v46  ;;  %6360 = vadd.xlane.f32.xlu0 %v6359_v19  ;;  %v18065_v61 = vmax.f32 %v18064_v1, 0.0  ;;  %v18088_v1 = vld [vmem:[#allocation242_spill] sm:$0xff] }
 0x565   : > { %v6149_v18 = vsel %vm18063_vm10, %v18061_v16, 0.0  ;;  %v18067_v6 = vmax.f32 %v18066_v20, 0.0  ;;  %vm18068_vm4 = vcmp.lt.s32.totalorder %v17511_v50, 22201  ;;  %v18070_v60 = vmax.f32 %v18069_v34, 0.0 }
 0x566   : > { %v6081_v17 = vsel %vm5820_vm5, %v18065_v61, 0.0  ;;  %v6433_v59 = vadd.f32 %v6432_v53, %v6080_v24  ;;  %v6503_v27 = vadd.f32 %v6502_v58, %v6149_v18  ;;  %vm18071_vm14 = vcmp.lt.s32.totalorder %v17740_v30, 22201  ;;  %v18083_v24 = vld [vmem:[#allocation240_spill] sm:$0xff]  ;;  %v18086_v53 = vld [vmem:[#allocation317_spill] sm:$0xff] }
 0x567   : > { %v6150_v21 = vsel %vm18068_vm4, %v18067_v6, 0.0  ;;  %v6082_v49 = vsel %vm18071_vm14, %v18070_v60, 0.0  ;;  %v18073_v13 = vmax.f32 %v18072_v25, 0.0  ;;  %vm18074_vm10 = vcmp.lt.s32.totalorder %v17522_v43, 22201 }
 0x568   : > { %v6434_v63 = vadd.f32 %v6433_v59, %v6081_v17  ;;  %v6504_v52 = vadd.f32 %v6503_v27, %v6150_v21  ;;  %v18076_v9 = vmax.f32 %v18075_v39, 0.0  ;;  %vm18077_vm2 = vcmp.lt.s32.totalorder %v17751_v0, 22201  ;;  %v18091_v21 = vld [vmem:[#allocation316_spill] sm:$0xff]  ;;  %v18093_v27 = vld [vmem:[#allocation255_spill] sm:$0xff] }
 0x569   : > { %v6151_v44 = vsel %vm18074_vm10, %v18073_v13, 0.0  ;;  %v18079_v46 = vmax.f32 %v18078_v3, 0.0  ;;  %vm18080_vm4 = vcmp.lt.s32.totalorder %v17533_v40, 22201  ;;  %v18082_v33 = vmax.f32 %v18081_v15, 0.0  ;;  %v18096_v13 = vld [vmem:[#allocation318_spill] sm:$0xff]  ;;  %v18101_v3 = vld [vmem:[#allocation331_spill] sm:$0xff] }
 0x56a   : > { %v6083_v50 = vsel %vm18077_vm2, %v18076_v9, 0.0  ;;  %v6435_v11 = vadd.f32 %v6434_v63, %v6082_v49  ;;  %v6505_v19 = vadd.f32 %v6504_v52, %v6151_v44  ;;  %v18084_v4 = vmax.f32 %v18083_v24, 0.0  ;;  %v18098_v63 = vld [vmem:[#allocation257_spill] sm:$0xff] }
 0x56b   : > { %v6152_v7 = vsel %vm18080_vm4, %v18079_v46, 0.0  ;;  %v6084_v43 = vsel %vm5823_vm7, %v18082_v33, 0.0  ;;  %vm18085_vm14 = vcmp.lt.s32.totalorder %v17545_v28, 22201  ;;  %v18087_v58 = vmax.f32 %v18086_v53, 0.0 }
 0x56c   : > { %v6153_v16 = vsel %vm18085_vm14, %v18084_v4, 0.0  ;;  %v6436_v35 = vadd.f32 %v6435_v11, %v6083_v50  ;;  %v6506_v18 = vadd.f32 %v6505_v19, %v6152_v7  ;;  %v18089_v61 = vmax.f32 %v18088_v1, 0.0  ;;  %v18103_v7 = vld [vmem:[#allocation256_spill] sm:$0xff]  ;;  %v18108_v4 = vld [vmem:[#allocation258_spill] sm:$0xff]  ;;  %v18113_v1 = vld [vmem:[#allocation271_spill] sm:$0xff] }
 0x56d   : > { %v6085_v40 = vsel %vm5824_vm1, %v18087_v58, 0.0  ;;  %vm18090_vm10 = vcmp.lt.s32.totalorder %v17557_v8, 22201  ;;  %v18092_v59 = vmax.f32 %v18091_v21, 0.0  ;;  %v18094_v34 = vmax.f32 %v18093_v27, 0.0  ;;  %v18111_v58 = vld [vmem:[#allocation332_spill] sm:$0xff]  ;;  %v18116_v21 = vld [vmem:[#allocation334_spill] sm:$0xff] }
 0x56e   : > { %v6154_v17 = vsel %vm18090_vm10, %v18089_v61, 0.0  ;;  %v6437_v20 = vadd.f32 %v6436_v35, %v6084_v43  ;;  %v6507_v6 = vadd.f32 %v6506_v18, %v6153_v16  ;;  %vm18095_vm2 = vcmp.lt.s32.totalorder %v17568_v5, 22201  ;;  %v18106_v43 = vld [vmem:[#allocation333_spill] sm:$0xff] }
 0x56f   : > { %v6086_v28 = vsel %vm5825_vm3, %v18092_v59, 0.0  ;;  %v6155_v60 = vsel %vm18095_vm2, %v18094_v34, 0.0  ;;  %v18097_v44 = vmax.f32 %v18096_v13, 0.0  ;;  %v18099_v52 = vmax.f32 %v18098_v63, 0.0 }
 0x570   : > { %v6438_v49 = vadd.f32 %v6437_v20, %v6085_v40  ;;  %v6508_v25 = vadd.f32 %v6507_v6, %v6154_v17  ;;  %vm18100_vm4 = vcmp.lt.s32.totalorder %v17580_v2, 22201  ;;  %v18102_v46 = vmax.f32 %v18101_v3, 0.0  ;;  %v18128_v3 = vld [vmem:[#allocation274_spill] sm:$0xff] }
 0x571   : > { %v6087_v8 = vsel %vm5826_vm11, %v18097_v44, 0.0  ;;  %v6156_v39 = vsel %vm18100_vm4, %v18099_v52, 0.0  ;;  %v18104_v11 = vmax.f32 %v18103_v7, 0.0  ;;  %vm18105_vm14 = vcmp.lt.s32.totalorder %v17592_v38, 22201  ;;  %v18123_v44 = vld [vmem:[#allocation272_spill] sm:$0xff] }
 0x572   : > { %v6439_v9 = vadd.f32 %v6438_v49, %v6086_v28  ;;  %v6509_v50 = vadd.f32 %v6508_v25, %v6155_v60  ;;  %v6088_v5 = vsel %vm5827_vm8, %v18102_v46, 0.0  ;;  %v18107_v24 = vmax.f32 %v18106_v43, 0.0  ;;  %v18118_v28 = vld [vmem:[#allocation273_spill] sm:$0xff]  ;;  %v18121_v25 = vld [vmem:[#allocation347_spill] sm:$0xff] }
 0x573   : > { %v6157_v19 = vsel %vm18105_vm14, %v18104_v11, 0.0  ;;  %v18109_v16 = vmax.f32 %v18108_v4, 0.0  ;;  %vm18110_vm10 = vcmp.lt.s32.totalorder %v17980_v51, 22201  ;;  %v18112_v40 = vmax.f32 %v18111_v58, 0.0  ;;  %v18139_v58 = vld [vmem:[#allocation288_spill] sm:$0xff] }
 0x574   : > { %v6440_v15 = vadd.f32 %v6439_v9, %v6087_v8  ;;  %v6510_v33 = vadd.f32 %v6509_v50, %v6156_v39  ;;  %v6089_v2 = vsel %vm5828_vm13, %v18107_v24, 0.0  ;;  %v18114_v61 = vmax.f32 %v18113_v1, 0.0  ;;  %v18126_v9 = vld [vmem:[#allocation348_spill] sm:$0xff] }
 0x575   : > { %v6158_v35 = vsel %vm18110_vm10, %v18109_v16, 0.0  ;;  %v6090_v38 = vsel %vm5829_vm12, %v18112_v40, 0.0  ;;  %vm18115_vm2 = vcmp.lt.s32.totalorder %v17615_v48, 22201  ;;  %v18117_v59 = vmax.f32 %v18116_v21, 0.0  ;;  %v18136_v16 = vld [vmem:[#allocation289_spill] sm:$0xff] }
 0x576   : > { %v6441_v18 = vadd.f32 %v6440_v15, %v6088_v5  ;;  %v6511_v53 = vadd.f32 %v6510_v33, %v6157_v19  ;;  %v6159_v17 = vsel %vm18115_vm2, %v18114_v61, 0.0  ;;  %v18119_v27 = vmax.f32 %v18118_v28, 0.0  ;;  %v18131_v19 = vld [vmem:[#allocation340_spill] sm:$0xff]  ;;  %v18133_v33 = vld [vmem:[#allocation287_spill] sm:$0xff]  ;;  %v18142_v61 = vld [vmem:[#allocation290_spill] sm:$0xff] }
 0x577   : > { %v6091_v51 = vsel %vm5830_vm0, %v18117_v59, 0.0  ;;  %vm18120_vm4 = vcmp.lt.s32.totalorder %v17628_v41, 22201  ;;  %v18122_v13 = vmax.f32 %v18121_v25, 0.0  ;;  %v18124_v8 = vmax.f32 %v18123_v44, 0.0  ;;  %v18153_v25 = vld [vmem:[#allocation306_spill] sm:$0xff]  ;;  %v18156_v44 = vld [vmem:[#allocation319_spill] sm:$0xff] }
 0x578   : > { %v6442_v20 = vadd.f32 %v6441_v18, %v6089_v2  ;;  %v6512_v6 = vadd.f32 %v6511_v53, %v6158_v35  ;;  %v6160_v34 = vsel %vm18120_vm4, %v18119_v27, 0.0  ;;  %vm18125_vm14 = vcmp.lt.s32.totalorder %v17641_v47, 22201 }
 0x579   : > { %v6092_v48 = vsel %vm5831_vm6, %v18122_v13, 0.0  ;;  %v6161_v63 = vsel %vm18125_vm14, %v18124_v8, 0.0  ;;  %v18127_v50 = vmax.f32 %v18126_v9, 0.0  ;;  %v18129_v46 = vmax.f32 %v18128_v3, 0.0 }
 0x57a   : > { %v6443_v60 = vadd.f32 %v6442_v20, %v6090_v38  ;;  %v6513_v49 = vadd.f32 %v6512_v6, %v6159_v17  ;;  %vm18130_vm10 = vcmp.lt.s32.totalorder %v17654_v22, 22201  ;;  %v18132_v15 = vmax.f32 %v18131_v19, 0.0  ;;  %v18145_v6 = vld [vmem:[#allocation303_spill] sm:$0xff] }
 0x57b   : > { %v6093_v41 = vsel %vm5832_vm15, %v18127_v50, 0.0  ;;  %v6162_v5 = vsel %vm18130_vm10, %v18129_v46, 0.0  ;;  %v18134_v43 = vmax.f32 %v18133_v33, 0.0  ;;  %vm18135_vm2 = vcmp.lt.s32.totalorder %v17668_v54, 22201  ;;  %v18160_v50 = vld [vmem:[#allocation320_spill] sm:$0xff]  ;;  %v18162_v46 = vld [vmem:[#allocation322_spill] sm:$0xff] }
 0x57c   : > { %v6444_v52 = vadd.f32 %v6443_v60, %v6091_v51  ;;  %v6514_v39 = vadd.f32 %v6513_v49, %v6160_v34  ;;  %v6094_v47 = vsel %vm5833_vm9, %v18132_v15, 0.0  ;;  %v18137_v35 = vmax.f32 %v18136_v16, 0.0  ;;  %v18148_v51 = vld [vmem:[#allocation305_spill] sm:$0xff]  ;;  %v18150_v34 = vld [vmem:[#allocation304_spill] sm:$0xff]  ;;  %v18170_v16 = vld [vmem:[#allocation338_spill] sm:$0xff] }
 0x57d   : > { %v6163_v24 = vsel %vm18135_vm2, %v18134_v43, 0.0  ;;  %vm18138_vm4 = vcmp.lt.s32.totalorder %v17681_v55, 22201  ;;  %v18140_v40 = vmax.f32 %v18139_v58, 0.0  ;;  %vm18141_vm14 = vcmp.lt.s32.totalorder %v17693_v23, 22201 }
 0x57e   : > { %v6445_v7 = vadd.f32 %v6444_v52, %v6092_v48  ;;  %v6515_v11 = vadd.f32 %v6514_v39, %v6161_v63  ;;  %v6164_v22 = vsel %vm18138_vm4, %v18137_v35, 0.0  ;;  %v18143_v17 = vmax.f32 %v18142_v61, 0.0  ;;  %v18158_v52 = vld [vmem:[#allocation321_spill] sm:$0xff]  ;;  %v18176_v61 = vld [vmem:[#allocation344_spill] sm:$0xff] }
 0x57f   : > { %v6165_v38 = vsel %vm18141_vm14, %v18140_v40, 0.0  ;;  %vm18144_vm10 = vcmp.lt.s32.totalorder %v17706_v45, 22201  ;;  %v18146_v21 = vmax.f32 %v18145_v6, 0.0  ;;  %vm18147_vm2 = vcmp.lt.s32.totalorder %v17718_v29, 22201  ;;  %v18174_v40 = vld [vmem:[#allocation350_spill] sm:$0xff]  ;;  %v6587_v6 = vld [vmem:[%s15676_s4 + $0x40] sm:$0xff] }
 0x580   : > { %v6446_v2 = vadd.f32 %v6445_v7, %v6093_v41  ;;  %v6516_v4 = vadd.f32 %v6515_v11, %v6162_v5  ;;  %v6166_v54 = vsel %vm18144_vm10, %v18143_v17, 0.0  ;;  %v18149_v28 = vmax.f32 %v18148_v51, 0.0  ;;  %v18164_v11 = vld [vmem:[#allocation335_spill] sm:$0xff]  ;;  %v6603_v51 = vld [vmem:[%s15676_s4 + $0xc0] sm:$0xff] }
 0x581   : > { %v6167_v55 = vsel %vm18147_vm2, %v18146_v21, 0.0  ;;  %v18151_v60 = vmax.f32 %v18150_v34, 0.0  ;;  %vm18152_vm4 = vcmp.lt.s32.totalorder %v17740_v30, 22201  ;;  %v18154_v13 = vmax.f32 %v18153_v25, 0.0  ;;  %v6596_v34 = vld [vmem:[%s15676_s4 + $0x88] sm:$0xff] }
 0x582   : > { %v6447_v18 = vadd.f32 %v6446_v2, %v6094_v47  ;;  %v6517_v53 = vadd.f32 %v6516_v4, %v6163_v24  ;;  %v6168_v23 = vsel %vm5820_vm5, %v18149_v28, 0.0  ;;  %vm18155_vm14 = vcmp.lt.s32.totalorder %v17751_v0, 22201  ;;  %v18166_v47 = vld [vmem:[#allocation337_spill] sm:$0xff]  ;;  %v18168_v24 = vld [vmem:[#allocation336_spill] sm:$0xff] }
 0x583   : > { %v6169_v49 = vsel %vm18152_vm4, %v18151_v60, 0.0  ;;  %v6170_v48 = vsel %vm18155_vm14, %v18154_v13, 0.0  ;;  %v18157_v8 = vmax.f32 %v18156_v44, 0.0  ;;  %v18159_v39 = vmax.f32 %v18158_v52, 0.0  ;;  %v6604_v60 = vld [vmem:[%s15676_s4 + $0xc8] sm:$0xff]  ;;  %v6182_v13 = vld [vmem:[#allocation2] sm:$0xff] }
 0x584   : > { %6448 = vadd.xlane.f32.xlu1 %v6447_v18  ;;  %v6518_v1 = vadd.f32 %v6517_v53, %v6164_v22  ;;  %v18161_v41 = vmax.f32 %v18160_v50, 0.0  ;;  %v18163_v5 = vmax.f32 %v18162_v46, 0.0  ;;  %v18165_v19 = vmax.f32 %v18164_v11, 0.0  ;;  %v18172_v18 = vld [vmem:[#allocation349_spill] sm:$0xff] }
 0x585   : > { %v6171_v63 = vsel %vm5823_vm7, %v18157_v8, 0.0  ;;  %v6172_v9 = vsel %vm5824_vm1, %v18159_v39, 0.0  ;;  %v18167_v33 = vmax.f32 %v18166_v47, 0.0  ;;  %v18169_v2 = vmax.f32 %v18168_v24, 0.0  ;;  %v6183_v8 = vld [vmem:[#allocation2 + $0x8] sm:$0xff]  ;;  %v6184_v39 = vld [vmem:[#allocation2 + $0x10] sm:$0xff] }
 0x586   : > { %v6519_v20 = vadd.f32 %v6518_v1, %v6165_v38  ;;  %v6173_v3 = vsel %vm5825_vm3, %v18161_v41, 0.0  ;;  %v6174_v7 = vsel %vm5826_vm11, %v18163_v5, 0.0  ;;  %v6175_v15 = vsel %vm5827_vm8, %v18165_v19, 0.0  ;;  %v6581_v41 = vld [vmem:[%s15676_s4 + $0x10] sm:$0xff]  ;;  %v6590_v5 = vld [vmem:[%s15676_s4 + $0x58] sm:$0xff] }
 0x587   : > { %v6176_v43 = vsel %vm5828_vm13, %v18167_v33, 0.0  ;;  %v6177_v4 = vsel %vm5829_vm12, %v18169_v2, 0.0  ;;  %v18171_v35 = vmax.f32 %v18170_v16, 0.0  ;;  %v18173_v53 = vmax.f32 %v18172_v18, 0.0  ;;  %v6598_v24 = vld [vmem:[%s15676_s4 + $0x98] sm:$0xff]  ;;  %v6584_v18 = vld [vmem:[%s15676_s4 + $0x28] sm:$0xff] }
 0x588   : > { %v6520_v59 = vadd.f32 %v6519_v20, %v6166_v54  ;;  %v18175_v38 = vmax.f32 %v18174_v40, 0.0  ;;  %v18177_v17 = vmax.f32 %v18176_v61, 0.0  ;;  %v8918_v21 = vcombine.high %v6579_v57, %v6587_v6  ;;  %v6606_v2 = vld [vmem:[%s15676_s4 + $0xd8] sm:$0xff]  ;;  %v6600_v61 = vld [vmem:[%s15676_s4 + $0xa8] sm:$0xff] }
 0x589   : > { %v6178_v22 = vsel %vm5830_vm0, %v18171_v35, 0.0  ;;  %v6179_v58 = vsel %vm5831_vm6, %v18173_v53, 0.0  ;;  %v8920_v28 = vcombine.high %v6580_v42, %v6588_v32  ;;  %v8935_v25 = vcombine.low %v6596_v34, %v6604_v60  ;;  %v6592_v53 = vld [vmem:[%s15676_s4 + $0x68] sm:$0xff] }
 0x58a   : > { %v6521_v27 = vadd.f32 %v6520_v59, %v6167_v55  ;;  %v6180_v1 = vsel %vm5832_vm15, %v18175_v38, 0.0  ;;  %v6181_v54 = vsel %vm5833_vm9, %v18177_v17, 0.0  ;;  %v8917_v55 = vcombine.low %v6579_v57, %v6587_v6  ;;  %v6595_v59 = vld [vmem:[%s15676_s4 + $0x80] sm:$0xff]  ;;  %6858 = vmatprep.subr.bf16.mxu0 %v8918_v21  ;;  %v6608_v17 = vld [vmem:[%s15676_s4 + $0xe8] sm:$0xff]  ;;  %v6585_v6 = vld [vmem:[%s15676_s4 + $0x30] sm:$0xff] }
 0x58b   : > { %6899 = vmatprep.subr.bf16.mxu1 %v8920_v28  ;;  %v8940_v35 = vcombine.high %v6598_v24, %v6606_v2  ;;  %vm18178_vm3 = vcmask 261120   ;;  %v8928_v38 = vcombine.high %v6584_v18, %v6592_v53  ;;  %v8944_v57 = vcombine.high %v6600_v61, %v6608_v17  ;;  %v6586_v21 = vld [vmem:[%s15676_s4 + $0x38] sm:$0xff] }
 0x58c   : > { %v6522_v45 = vadd.f32 %v6521_v27, %v6168_v23  ;;  %v8919_v23 = vcombine.low %v6580_v42, %v6588_v32  ;;  %v8934_v27 = vcombine.high %v6595_v59, %v6603_v51  ;;  %6859 = vmatpush1.bf16.msra.mxu0 %v8917_v55  ;;  %vm18179_vm6 = vmmov %vm18178_vm3  ;;  %v6593_v42 = vld [vmem:[%s15676_s4 + $0x70] sm:$0xff]  ;;  %v6594_v32 = vld [vmem:[%s15676_s4 + $0x78] sm:$0xff]  ;;  %vm8563_vm1 = vcmask 57344  }
 0x58d   : > { %vm18180_vm13 = vmmov %vm18178_vm3  ;;  %v8932_v28 = vcombine.high %v6586_v21, %v6594_v32 }
 0x58e   : > { %v6523_v29 = vadd.f32 %v6522_v45, %v6169_v49  ;;  %v8936_v49 = vcombine.high %v6596_v34, %v6604_v60  ;;  %v8933_v45 = vcombine.low %v6595_v59, %v6603_v51  ;;  %6900 = vmatpush1.bf16.msra.mxu1 %v8919_v23  ;;  %6860 = vmatprep.subr.bf16.mxu0 %v8934_v27  ;;  %vm18181_vm7 = vmmov %vm18178_vm3  ;;  %v6601_v23 = vld [vmem:[%s15676_s4 + $0xb0] sm:$0xff]  ;;  %v6602_v34 = vld [vmem:[%s15676_s4 + $0xb8] sm:$0xff] }
 0x58f   : > { %v8943_v59 = vcombine.low %v6600_v61, %v6608_v17  ;;  %v8930_v51 = vcombine.high %v6585_v6, %v6593_v42  ;;  %v6609_v27 = vld [vmem:[%s15676_s4 + $0xf0] sm:$0xff]  ;;  %v6610_v60 = vld [vmem:[%s15676_s4 + $0xf8] sm:$0xff]  ;;  %vm18182_vm9 = vmmov %vm18178_vm3 }
 0x590   : > { %v6524_v10 = vadd.f32 %v6523_v29, %v6170_v48  ;;  %6901 = vmatprep.subr.bf16.mxu1 %v8936_v49  ;;  %6861 = vmatpush1.bf16.msra.mxu0 %v8933_v45  ;;  %v8929_v49 = vcombine.low %v6585_v6, %v6593_v42  ;;  %v8931_v45 = vcombine.low %v6586_v21, %v6594_v32  ;;  %vm18183_vm12 = vmmov %vm18178_vm3  ;;  %v15296_v17 = vld [vmem:[%s15677_s5] sm:$0xff] }
 0x591   : > { %vm18184_vm11 = vmmov %vm18178_vm3 }
 0x592   : > { %v6525_v30 = vadd.f32 %v6524_v10, %v6171_v63  ;;  %6902 = vmatpush1.bf16.msra.mxu1 %v8935_v25  ;;  %v8946_v25 = vcombine.high %v6601_v23, %v6609_v27  ;;  %vm18185_vm15 = vmmov %vm18178_vm3 }
 0x594   : > { %v6526_v0 = vadd.f32 %v6525_v30, %v6172_v9 }
 0x596   : > { %v6527_v36 = vadd.f32 %v6526_v0, %v6173_v3  ;;  %v6589_v3 = vld [vmem:[%s15676_s4 + $0x50] sm:$0xff]  ;;  %v6582_v0 = vld [vmem:[%s15676_s4 + $0x18] sm:$0xff] }
 0x597   : > { %v8922_v46 = vcombine.high %v6581_v41, %v6589_v3  ;;  %v8923_v11 = vcombine.low %v6582_v0, %v6590_v5  ;;  %v8924_v19 = vcombine.high %v6582_v0, %v6590_v5  ;;  %v9617_v0 = vld [vmem:[%s15678_s6 + $0x90] sm:$0xff]   ;;  %v9619_v5 = vld [vmem:[%s15678_s6 + $0xd8] sm:$0xff]  }
 0x598   : > { %v6528_v37 = vadd.f32 %v6527_v36, %v6174_v7  ;;  %v9792_v7 = vmov 0   ;;  %v8921_v36 = vcombine.low %v6581_v41, %v6589_v3  ;;  %v9615_v41 = vld [vmem:[%s15678_s6 + $0xd0] sm:$0xff]  }
 0x599   : > { %6890 = vmatprep.mubr.bf16.mxu0 %v9792_v7  ;;  %6931 = vmatprep.mubr.bf16.mxu1 %v9792_v7  ;;  %v9616_v3 = vld [vmem:[%s15678_s6 + $0x10] sm:$0xff]  }
 0x59a   : > { %v6529_v26 = vadd.f32 %v6528_v37, %v6175_v15  ;;  %6940 = vmatprep.subr.bf16.mxu0 %v8922_v46  ;;  %6981 = vmatprep.subr.bf16.mxu1 %v8924_v19  ;;  %v6185_v15 = vld [vmem:[#allocation2 + $0x18] sm:$0xff]  ;;  %v9623_v19 = vld [vmem:[%s15678_s6 + $0xe0] sm:$0xff]  }
 0x59b   : > { %v9618_v46 = vld [vmem:[%s15678_s6 + $0x58] sm:$0xff]  }
 0x59c   : > { %v6530_v56 = vadd.f32 %v6529_v26, %v6176_v43  ;;  %v6597_v43 = vld [vmem:[%s15676_s4 + $0x90] sm:$0xff] }
 0x59d   : > { %v6605_v26 = vld [vmem:[%s15676_s4 + $0xd0] sm:$0xff] }
 0x59e   : > { %v6531_v31 = vadd.f32 %v6530_v56, %v6177_v4  ;;  %v8938_v16 = vcombine.high %v6597_v43, %v6605_v26 }
 0x5a0   : > { %v6532_v62 = vadd.f32 %v6531_v31, %v6178_v22  ;;  %v6583_v22 = vld [vmem:[%s15676_s4 + $0x20] sm:$0xff] }
 0x5a1   : > { %v6591_v31 = vld [vmem:[%s15676_s4 + $0x60] sm:$0xff] }
 0x5a2   : > { %v6533_v12 = vadd.f32 %v6532_v62, %v6179_v58  ;;  %v8937_v58 = vcombine.low %v6597_v43, %v6605_v26  ;;  %v8939_v62 = vcombine.low %v6598_v24, %v6606_v2  ;;  %v8926_v40 = vcombine.high %v6583_v22, %v6591_v31  ;;  %v9628_v43 = vld [vmem:[%s15678_s6 + $0x28] sm:$0xff]   ;;  %v9630_v24 = vld [vmem:[%s15678_s6 + $0x70] sm:$0xff]  }
 0x5a3   : > { %v9629_v26 = vld [vmem:[%s15678_s6 + $0xa8] sm:$0xff]   ;;  %v9631_v2 = vld [vmem:[%s15678_s6 + $0xf0] sm:$0xff]  }
 0x5a4   : > { %v6534_v14 = vadd.f32 %v6533_v12, %v6180_v1  ;;  %v6599_v1 = vld [vmem:[%s15676_s4 + $0xa0] sm:$0xff] }
 0x5a5   : > { %v6607_v12 = vld [vmem:[%s15676_s4 + $0xe0] sm:$0xff] }
 0x5a6   : > { %v6535_v20 = vadd.f32 %v6534_v14, %v6181_v54  ;;  %v8925_v54 = vcombine.low %v6583_v22, %v6591_v31  ;;  %v8927_v14 = vcombine.low %v6584_v18, %v6592_v53  ;;  %v8941_v55 = vcombine.low %v6599_v1, %v6607_v12  ;;  %v9636_v22 = vld [vmem:[%s15678_s6 + $0x38] sm:$0xff]   ;;  %v9638_v18 = vld [vmem:[%s15678_s6 + $0x140] sm:$0xff]  }
 0x5a7   : > { %v9637_v31 = vld [vmem:[%s15678_s6 + $0xb8] sm:$0xff]   ;;  %v9639_v53 = vld [vmem:[%s15678_s6 + $0x1c0] sm:$0xff]  }
 0x5a8   : > { %6536 = vadd.xlane.f32.xlu1 %v6535_v20  ;;  %v8942_v20 = vcombine.high %v6599_v1, %v6607_v12 }
 0x5d3   : > { %v6273_v48 = vpop.xlane.xlu0 %6272 }
 0x5d4   : > { %v6538_v29 = vadd.f32 %v6273_v48, %v6182_v13  ;;  %v8948_v13 = vcombine.high %v6602_v34, %v6610_v60  ;;  %v8945_v48 = vcombine.low %v6601_v23, %v6609_v27 }
 0x5d6   : > { %v6542_v44 = vmul.f32 4.5043016e-05, %v6538_v29  ;;  %v8947_v29 = vcombine.low %v6602_v34, %v6610_v60 }
 0x5d8   : > { %6546 = vxpose.xlu0.b32.start [1/4] (short) (narrow) %v6542_v44, 8  ;;  %v9606_v44 = vld [vmem:[%s15678_s6 + $0x40] sm:$0xff]  }
 0x5f1   : > { %v6361_v63 = vpop.xlane.xlu0 %6360 }
 0x5f2   : > { %v6539_v10 = vadd.f32 %v6361_v63, %v6183_v8  ;;  %v9607_v8 = vld [vmem:[%s15678_s6 + $0xc0] sm:$0xff]  }
 0x5f3   : > { %v9608_v63 = vld [vmem:[%s15678_s6] sm:$0xff]  }
 0x5f4   : > { %v6543_v52 = vmul.f32 4.5043016e-05, %v6539_v10  ;;  %v9609_v10 = vld [vmem:[%s15678_s6 + $0x80] sm:$0xff]  }
 0x5f6   : > { %6547 = vxpose.xlu0.b32.cont [2/4] (short) (narrow) %v6543_v52, 8  ;;  %v9610_v52 = vld [vmem:[%s15678_s6 + $0x48] sm:$0xff]  }
 0x611   : > { %v6449_v9 = vpop.xlane.xlu1 %6448 }
 0x612   : > { %v6540_v30 = vadd.f32 %v6449_v9, %v6184_v39  ;;  %v9611_v39 = vld [vmem:[%s15678_s6 + $0xc8] sm:$0xff]  }
 0x613   : > { %v9612_v9 = vld [vmem:[%s15678_s6 + $0x8] sm:$0xff]  }
 0x614   : > { %v6544_v50 = vmul.f32 4.5043016e-05, %v6540_v30  ;;  %v9613_v30 = vld [vmem:[%s15678_s6 + $0x88] sm:$0xff]  }
 0x616   : > { %6548 = vxpose.xlu0.b32.cont [3/4] (short) (narrow) %v6544_v50, 8  ;;  %v9614_v50 = vld [vmem:[%s15678_s6 + $0x50] sm:$0xff]  }
 0x635   : > { %v6537_v37 = vpop.xlane.xlu1 %6536 }
 0x636   : > { %v6541_v47 = vadd.f32 %v6537_v37, %v6185_v15  ;;  %v9624_v15 = vld [vmem:[%s15678_s6 + $0x20] sm:$0xff]  }
 0x637   : > { %v9625_v37 = vld [vmem:[%s15678_s6 + $0xa0] sm:$0xff]  }
 0x638   : > { %v6545_v33 = vmul.f32 4.5043016e-05, %v6541_v47  ;;  %v9626_v47 = vld [vmem:[%s15678_s6 + $0x68] sm:$0xff]  }
 0x63a   : > { %6549 = vxpose.xlu0.b32.end [4/4] (short) (narrow) %v6545_v33, 8  ;;  %v9627_v33 = vld [vmem:[%s15678_s6 + $0xe8] sm:$0xff]  }
 0x6ae   : > { %v6562_v4 = vpop.trf.xlu0 }
 0x6af   : > { %v15103_v56 = vpack.c.bf16 %v6562_v4, %v6562_v4  ;;  %v9632_v4 = vld [vmem:[%s15678_s6 + $0x30] sm:$0xff]  }
 0x6b1   : > { %8949 = vmatmul.mubr.msk.bf16.vlgmr.msra.gmra.mrb[0].mxu0 %vm18178_vm3, %v15103_v56  ;;  %8950 = vmatmul.mubr.msk.bf16.vlgmr.msra.gmra.mrb[0].mxu1 %vm18179_vm6, %v15103_v56 }
 0x6b2   : > { %6941 = vmatpush1.bf16.msra.mxu0 %v8921_v36  ;;  %6982 = vmatpush1.bf16.msra.mxu1 %v8923_v11  ;;  %v9621_v36 = vld [vmem:[%s15678_s6 + $0x98] sm:$0xff]   ;;  %v9622_v11 = vld [vmem:[%s15678_s6 + $0x60] sm:$0xff]  }
 0x6b3   : > { %6942 = vmatprep.subr.bf16.mxu0 %v8938_v16  ;;  %6983 = vmatprep.subr.bf16.mxu1 %v8940_v35  ;;  %v9634_v16 = vld [vmem:[%s15678_s6 + $0x78] sm:$0xff]  }
 0x6b4   : > { %6972 = vmatprep.mubr.bf16.mxu0 %v9792_v7  ;;  %7013 = vmatprep.mubr.bf16.mxu1 %v9792_v7  ;;  %v9635_v35 = vld [vmem:[%s15678_s6 + $0xf8] sm:$0xff]  }
 0x6b6   : > { %6943 = vmatpush1.bf16.msra.mxu0 %v8937_v58  ;;  %6984 = vmatpush1.bf16.msra.mxu1 %v8939_v62  ;;  %v18186_v58 = vlaneseq }
 0x6b7   : > { %7022 = vmatprep.subr.bf16.mxu0 %v8926_v40  ;;  %7063 = vmatprep.subr.bf16.mxu1 %v8928_v38  ;;  %v15284_v38 = vld [vmem:[%s15677_s5 + $0x8] sm:$0xff] }
 0x6b8   : > { %v15278_v62 = vshrl.u32 %v18186_v58, 7  ;;  %v9650_v58 = vld [vmem:[%s15678_s6 + $0x158] sm:$0xff]  }
 0x6b9   : > { %8951 = vmatmul.mubr.msk.bf16.vlgmr.msra.gmra.mrb[4].mxu0 %vm18180_vm13, %v15103_v56  ;;  %8952 = vmatmul.mubr.msk.bf16.vlgmr.msra.gmra.mrb[4].mxu1 %vm18181_vm7, %v15103_v56 }
 0x6ba   : > { %7023 = vmatpush1.bf16.msra.mxu0 %v8925_v54  ;;  %7064 = vmatpush1.bf16.msra.mxu1 %v8927_v14  ;;  %v6801_v40 = vsub.s32 6, %v15278_v62  ;;  %v6777_v12 = vsub.s32 0, %v15278_v62  ;;  %v6785_v61 = vsub.s32 2, %v15278_v62  ;;  %v6781_v54 = vsub.s32 1, %v15278_v62 }
 0x6bb   : > { %7024 = vmatprep.subr.bf16.mxu0 %v8942_v20  ;;  %7065 = vmatprep.subr.bf16.mxu1 %v8944_v57  ;;  %v6789_v14 = vsub.s32 3, %v15278_v62 }
 0x6bc   : > { %7054 = vmatprep.mubr.bf16.mxu0 %v9792_v7  ;;  %7095 = vmatprep.mubr.bf16.mxu1 %v9792_v7  ;;  %v15289_v1 = vrot.slane %v15284_v38, %v6801_v40  ;;  %v6778_v20 = vrot.slane %v15296_v17, %v6777_v12  ;;  %v6786_v57 = vrot.slane %v15296_v17, %v6785_v61 }
 0x6bd   : > { %v6782_v6 = vrot.slane %v15296_v17, %v6781_v54  ;;  %v6790_v42 = vrot.slane %v15296_v17, %v6789_v14 }
 0x6be   : > { %7025 = vmatpush1.bf16.msra.mxu0 %v8941_v55  ;;  %7066 = vmatpush1.bf16.msra.mxu1 %v8943_v59 }
 0x6bf   : > { %7104 = vmatprep.subr.bf16.mxu0 %v8930_v51  ;;  %7145 = vmatprep.subr.bf16.mxu1 %v8932_v28 }
 0x6c1   : > { %8953 = vmatmul.mubr.msk.bf16.vlgmr.msra.gmra.mrb[8].mxu0 %vm18182_vm9, %v15103_v56  ;;  %8954 = vmatmul.mubr.msk.bf16.vlgmr.msra.gmra.mrb[8].mxu1 %vm18183_vm12, %v15103_v56 }
 0x6c2   : > { %7105 = vmatpush1.bf16.msra.mxu0 %v8929_v49  ;;  %7146 = vmatpush1.bf16.msra.mxu1 %v8931_v45  ;;  %v6797_v49 = vsub.s32 5, %v15278_v62  ;;  %v6805_v45 = vsub.s32 7, %v15278_v62 }
 0x6c3   : > { %7106 = vmatprep.subr.bf16.mxu0 %v8946_v25  ;;  %7147 = vmatprep.subr.bf16.mxu1 %v8948_v13 }
 0x6c4   : > { %7136 = vmatprep.mubr.bf16.mxu0 %v9792_v7  ;;  %7177 = vmatprep.mubr.bf16.mxu1 %v9792_v7  ;;  %v9620_v7 = vld [vmem:[%s15678_s6 + $0x18] sm:$0xff]  }
 0x6c6   : > { %7107 = vmatpush1.bf16.msra.mxu0 %v8945_v48  ;;  %7148 = vmatpush1.bf16.msra.mxu1 %v8947_v29 }
 0x6c7   : > { %9091 = vmatprep.subr.bf16.mxu0 %v9606_v44  ;;  %9113 = vmatprep.subr.bf16.mxu1 %v9607_v8 }
 0x6c9   : > { %8955 = vmatmul.mubr.msk.bf16.vlgmr.msra.gmra.mrb[12].mxu0 %vm18184_vm11, %v15103_v56  ;;  %8956 = vmatmul.mubr.msk.bf16.vlgmr.msra.gmra.mrb[12].mxu1 %vm18185_vm15, %v15103_v56  ;;  %v9633_v56 = vld [vmem:[%s15678_s6 + $0xb0] sm:$0xff]  }
 0x6ca   : > { %9092 = vmatpush3.bf16.msra.mxu0 %v9608_v63  ;;  %9114 = vmatpush3.bf16.msra.mxu1 %v9609_v10 }
 0x6cb   : > { %9093 = vmatprep.subr.bf16.mxu0 %v9610_v52  ;;  %9115 = vmatprep.subr.bf16.mxu1 %v9611_v39  ;;  %v6798_v52 = vrot.slane %v15296_v17, %v6797_v49  ;;  %v6806_v39 = vrot.slane %v15296_v17, %v6805_v45 }
 0x6ce   : > { %9094 = vmatpush3.bf16.msra.mxu0 %v9612_v9  ;;  %9116 = vmatpush3.bf16.msra.mxu1 %v9613_v30  ;;  %v9640_v9 = vld [vmem:[%s15678_s6 + $0x100] sm:$0xff]  }
 0x6cf   : > { %9095 = vmatprep.subr.bf16.mxu0 %v9614_v50  ;;  %9117 = vmatprep.subr.bf16.mxu1 %v9615_v41  ;;  %v9641_v30 = vld [vmem:[%s15678_s6 + $0x180] sm:$0xff]  }
 0x6d2   : > { %9096 = vmatpush3.bf16.msra.mxu0 %v9616_v3  ;;  %9118 = vmatpush3.bf16.msra.mxu1 %v9617_v0  ;;  %v9642_v3 = vld [vmem:[%s15678_s6 + $0x148] sm:$0xff]  }
 0x6d3   : > { %9097 = vmatprep.subr.bf16.mxu0 %v9618_v46  ;;  %9119 = vmatprep.subr.bf16.mxu1 %v9619_v5  ;;  %v9643_v0 = vld [vmem:[%s15678_s6 + $0x1c8] sm:$0xff]  }
 0x6d6   : > { %9098 = vmatpush3.bf16.msra.mxu0 %v9620_v7  ;;  %9120 = vmatpush3.bf16.msra.mxu1 %v9621_v36 }
 0x6d7   : > { %9099 = vmatprep.subr.bf16.mxu0 %v9622_v11  ;;  %9121 = vmatprep.subr.bf16.mxu1 %v9623_v19 }
 0x6da   : > { %9100 = vmatpush3.bf16.msra.mxu0 %v9624_v15  ;;  %9122 = vmatpush3.bf16.msra.mxu1 %v9625_v37 }
 0x6db   : > { %9101 = vmatprep.subr.bf16.mxu0 %v9626_v47  ;;  %9123 = vmatprep.subr.bf16.mxu1 %v9627_v33  ;;  %v9644_v47 = vld [vmem:[%s15678_s6 + $0x108] sm:$0xff]  }
 0x6dc   : > { %v9645_v33 = vld [vmem:[%s15678_s6 + $0x188] sm:$0xff]  }
 0x6de   : > { %9102 = vmatpush3.bf16.msra.mxu0 %v9628_v43  ;;  %9124 = vmatpush3.bf16.msra.mxu1 %v9629_v26 }
 0x6df   : > { %9103 = vmatprep.subr.bf16.mxu0 %v9630_v24  ;;  %9125 = vmatprep.subr.bf16.mxu1 %v9631_v2  ;;  %v9646_v24 = vld [vmem:[%s15678_s6 + $0x150] sm:$0xff]  }
 0x6e0   : > { %v9647_v2 = vld [vmem:[%s15678_s6 + $0x1d0] sm:$0xff]  }
 0x6e2   : > { %9104 = vmatpush3.bf16.msra.mxu0 %v9632_v4  ;;  %9126 = vmatpush3.bf16.msra.mxu1 %v9633_v56 }
 0x6e3   : > { %9105 = vmatprep.subr.bf16.mxu0 %v9634_v16  ;;  %9127 = vmatprep.subr.bf16.mxu1 %v9635_v35  ;;  %v6810_v16 = vrot.slane %v15284_v38, %v6777_v12  ;;  %v6818_v35 = vrot.slane %v15284_v38, %v6785_v61  ;;  %v9651_v12 = vld [vmem:[%s15678_s6 + $0x1d8] sm:$0xff]  }
 0x6e6   : > { %9106 = vmatpush3.bf16.msra.mxu0 %v9636_v22  ;;  %9128 = vmatpush3.bf16.msra.mxu1 %v9637_v31 }
 0x6e7   : > { %9135 = vmatprep.subr.bf16.mxu0 %v9638_v18  ;;  %9157 = vmatprep.subr.bf16.mxu1 %v9639_v53  ;;  %v9648_v18 = vld [vmem:[%s15678_s6 + $0x110] sm:$0xff]  }
 0x6e8   : > { %v9649_v53 = vld [vmem:[%s15678_s6 + $0x190] sm:$0xff]  }
 0x784   : > { %v6892_v21 = vpop.f32.mrb[0].mxu0  ;;  %v6933_v32 = vpop.f32.mrb[0].mxu1 }
 0x785   : > { %v6893_v55 = vadd.f32 %v6892_v21, %v6778_v20  ;;  %v6934_v59 = vadd.f32 %v6933_v32, %v6786_v57  ;;  %v6894_v51 = vpop.f32.mrb[1].mxu0  ;;  %v6935_v28 = vpop.f32.mrb[1].mxu1 }
 0x786   : > { %v6895_v23 = vadd.f32 %v6894_v51, %v6782_v6  ;;  %v6936_v27 = vadd.f32 %v6935_v28, %v6790_v42  ;;  %v6896_v34 = vpop.f32.mrb[2].mxu0  ;;  %v6937_v60 = vpop.f32.mrb[2].mxu1  ;;  %v9653_v51 = vld [vmem:[%s15678_s6 + $0x198] sm:$0xff]   ;;  %v6793_v28 = vsub.s32 4, %v15278_v62 }
 0x787   : > { %v7186_v25 = vmax.f32 %v6893_v55, 0.0  ;;  %v7188_v13 = vmax.f32 %v6934_v59, 0.0  ;;  %v6897_v48 = vpop.f32.mrb[3].mxu0  ;;  %v6938_v29 = vpop.f32.mrb[3].mxu1  ;;  %v9652_v59 = vld [vmem:[%s15678_s6 + $0x118] sm:$0xff]   ;;  %v9654_v34 = vld [vmem:[%s15678_s6 + $0x160] sm:$0xff]  }
 0x788   : > { %v7187_v44 = vmax.f32 %v6895_v23, 0.0  ;;  %v7189_v8 = vmax.f32 %v6936_v27, 0.0  ;;  %v9655_v60 = vld [vmem:[%s15678_s6 + $0x1e0] sm:$0xff]   ;;  %v9658_v29 = vld [vmem:[%s15678_s6 + $0x168] sm:$0xff]   ;;  %v9699_v62 = vld [vmem:[%s15678_s6 + $0x2f8] sm:$0xff]  }
 0x789   : > { %v7202_v50 = vpack.c.bf16 %v7186_v25, %v7186_v25  ;;  %v7204_v41 = vpack.c.bf16 %v7188_v13, %v7188_v13  ;;  %v6826_v25 = vrot.slane %v15284_v38, %v6793_v28  ;;  %v9656_v13 = vld [vmem:[%s15678_s6 + $0x120] sm:$0xff]  }
 0x78a   : > { %v7203_v63 = vpack.c.bf16 %v7187_v44, %v7187_v44  ;;  %v7205_v10 = vpack.c.bf16 %v7189_v8, %v7189_v8  ;;  %v9657_v48 = vld [vmem:[%s15678_s6 + $0x1a0] sm:$0xff]   ;;  %v9659_v44 = vld [vmem:[%s15678_s6 + $0x1e8] sm:$0xff]  }
 0x78c   : > { %v15328_v46 = vpop.f32.mrb[4].mxu0  ;;  %v15330_v5 = vpop.f32.mrb[4].mxu1  ;;  %8275 = vmatprep.mubr.bf16.mxu0 %v7203_v63  ;;  %8315 = vmatprep.mubr.bf16.mxu1 %v7205_v10 }
 0x78d   : > { %v6976_v7 = vpop.f32.mrb[5].mxu0  ;;  %v7017_v36 = vpop.f32.mrb[5].mxu1  ;;  %8276 = vmatmul.mubr.bf16.vlgmr.msra.gmra.mrb[16].mxu0 %v7202_v50  ;;  %8316 = vmatmul.mubr.bf16.vlgmr.msra.gmra.mrb[16].mxu1 %v7204_v41  ;;  %v9660_v41 = vld [vmem:[%s15678_s6 + $0x128] sm:$0xff]  }
 0x78e   : > { %v6977_v11 = vadd.f32 %v6976_v7, %v6798_v52  ;;  %v7018_v19 = vadd.f32 %v7017_v36, %v6806_v39  ;;  %9136 = vmatpush3.bf16.msra.mxu0 %v9640_v9  ;;  %9158 = vmatpush3.bf16.msra.mxu1 %v9641_v30  ;;  %v6978_v15 = vpop.f32.mrb[6].mxu0  ;;  %v7019_v37 = vpop.f32.mrb[6].mxu1 }
 0x78f   : > { %v6979_v43 = vpop.f32.mrb[7].mxu0  ;;  %v7020_v26 = vpop.f32.mrb[7].mxu1  ;;  %9137 = vmatprep.subr.bf16.mxu0 %v9642_v3  ;;  %9159 = vmatprep.subr.bf16.mxu1 %v9643_v0  ;;  %v9661_v3 = vld [vmem:[%s15678_s6 + $0x1a8] sm:$0xff]   ;;  %v6794_v0 = vrot.slane %v15296_v17, %v6793_v28  ;;  %v6814_v15 = vrot.slane %v15284_v38, %v6781_v54  ;;  %v9665_v37 = vld [vmem:[%s15678_s6 + $0x1b0] sm:$0xff]   ;;  %v9666_v54 = vld [vmem:[%s15678_s6 + $0x178] sm:$0xff]  }
 0x790   : > { %v7191_v4 = vmax.f32 %v6977_v11, 0.0  ;;  %v7193_v56 = vmax.f32 %v7018_v19, 0.0  ;;  %v9662_v11 = vld [vmem:[%s15678_s6 + $0x170] sm:$0xff]   ;;  %v9682_v28 = vld [vmem:[%s15678_s6 + $0x258] sm:$0xff]  }
 0x791   : > { %v9663_v19 = vld [vmem:[%s15678_s6 + $0x1f0] sm:$0xff]  }
 0x792   : > { %v7207_v22 = vpack.c.bf16 %v7191_v4, %v7191_v4  ;;  %v7209_v31 = vpack.c.bf16 %v7193_v56, %v7193_v56  ;;  %9138 = vmatpush3.bf16.msra.mxu0 %v9644_v47  ;;  %9160 = vmatpush3.bf16.msra.mxu1 %v9645_v33  ;;  %v6975_v47 = vadd.f32 %v15328_v46, %v6794_v0  ;;  %v9668_v46 = vld [vmem:[%s15678_s6 + $0x138] sm:$0xff]   ;;  %v9670_v4 = vld [vmem:[%s15678_s6 + $0x240] sm:$0xff]   ;;  %v9696_v0 = vld [vmem:[%s15678_s6 + $0x230] sm:$0xff]  }
 0x793   : > { %9139 = vmatprep.subr.bf16.mxu0 %v9646_v24  ;;  %9161 = vmatprep.subr.bf16.mxu1 %v9647_v2  ;;  %v9671_v56 = vld [vmem:[%s15678_s6 + $0x2c0] sm:$0xff]  }
 0x794   : > { %v7056_v61 = vpop.f32.mrb[8].mxu0  ;;  %v7097_v20 = vpop.f32.mrb[8].mxu1  ;;  %8355 = vmatprep.mubr.bf16.mxu0 %v7207_v22  ;;  %8395 = vmatprep.mubr.bf16.mxu1 %v7209_v31  ;;  %v7190_v24 = vmax.f32 %v6975_v47, 0.0  ;;  %v9672_v22 = vld [vmem:[%s15678_s6 + $0x200] sm:$0xff]   ;;  %v9706_v47 = vld [vmem:[%s15678_s6 + $0x348] sm:$0xff]  }
 0x795   : > { %v15358_v57 = vadd.f32 %v7056_v61, %v6810_v16  ;;  %v15360_v6 = vadd.f32 %v7097_v20, %v6818_v35  ;;  %v7058_v42 = vpop.f32.mrb[9].mxu0  ;;  %v7099_v21 = vpop.f32.mrb[9].mxu1  ;;  %v9675_v61 = vld [vmem:[%s15678_s6 + $0x2c8] sm:$0xff]  }
 0x796   : > { %9140 = vmatpush3.bf16.msra.mxu0 %v9648_v18  ;;  %9162 = vmatpush3.bf16.msra.mxu1 %v9649_v53  ;;  %v7060_v32 = vpop.f32.mrb[10].mxu0  ;;  %v7101_v55 = vpop.f32.mrb[10].mxu1  ;;  %v7059_v43 = vadd.f32 %v7058_v42, %v6814_v15  ;;  %v7206_v31 = vpack.c.bf16 %v7190_v24, %v7190_v24  ;;  %v9673_v53 = vld [vmem:[%s15678_s6 + $0x280] sm:$0xff]   ;;  %v9676_v42 = vld [vmem:[%s15678_s6 + $0x208] sm:$0xff]   ;;  %v9712_v24 = vld [vmem:[%s15678_s6 + $0x310] sm:$0xff]  }
 0x797   : > { %v7061_v23 = vpop.f32.mrb[11].mxu0  ;;  %v7102_v27 = vpop.f32.mrb[11].mxu1  ;;  %9141 = vmatprep.subr.bf16.mxu0 %v9650_v58  ;;  %9163 = vmatprep.subr.bf16.mxu1 %v9651_v12  ;;  %v9674_v12 = vld [vmem:[%s15678_s6 + $0x248] sm:$0xff]   ;;  %v9678_v32 = vld [vmem:[%s15678_s6 + $0x250] sm:$0xff]  }
 0x798   : > { %v7195_v16 = vmax.f32 %v7059_v43, 0.0  ;;  %v9679_v55 = vld [vmem:[%s15678_s6 + $0x2d0] sm:$0xff]   ;;  %v9683_v23 = vld [vmem:[%s15678_s6 + $0x2d8] sm:$0xff]   ;;  %v9708_v43 = vld [vmem:[%s15678_s6 + $0x308] sm:$0xff]  }
 0x799   : > { %v9684_v27 = vld [vmem:[%s15678_s6 + $0x218] sm:$0xff]  }
 0x79a   : > { %9142 = vmatpush3.bf16.msra.mxu0 %v9652_v59  ;;  %9164 = vmatpush3.bf16.msra.mxu1 %v9653_v51  ;;  %v7211_v58 = vpack.c.bf16 %v7195_v16, %v7195_v16  ;;  %v9680_v59 = vld [vmem:[%s15678_s6 + $0x210] sm:$0xff]   ;;  %v9716_v16 = vld [vmem:[%s15678_s6 + $0x318] sm:$0xff]  }
 0x79b   : > { %9143 = vmatprep.subr.bf16.mxu0 %v9654_v34  ;;  %9165 = vmatprep.subr.bf16.mxu1 %v9655_v60  ;;  %v9681_v51 = vld [vmem:[%s15678_s6 + $0x290] sm:$0xff]   ;;  %v9685_v34 = vld [vmem:[%s15678_s6 + $0x298] sm:$0xff]   ;;  %v9686_v60 = vld [vmem:[%s15678_s6 + $0x260] sm:$0xff]  }
 0x79c   : > { %v7138_v8 = vpop.f32.mrb[12].mxu0  ;;  %v7179_v63 = vpop.f32.mrb[12].mxu1 }
 0x79d   : > { %v15388_v10 = vadd.f32 %v7138_v8, %v6826_v25  ;;  %v15391_v52 = vadd.f32 %v7179_v63, %v15289_v1  ;;  %v15393_v39 = vpop.f32.mrb[13].mxu0  ;;  %v15395_v9 = vpop.f32.mrb[13].mxu1  ;;  %v6802_v1 = vrot.slane %v15296_v17, %v6801_v40  ;;  %v6822_v40 = vrot.slane %v15284_v38, %v6789_v14  ;;  %v9664_v17 = vld [vmem:[%s15678_s6 + $0x130] sm:$0xff]   ;;  %v9667_v14 = vld [vmem:[%s15678_s6 + $0x1f8] sm:$0xff]   ;;  %v9687_v25 = vld [vmem:[%s15678_s6 + $0x2e0] sm:$0xff]  }
 0x79e   : > { %9144 = vmatpush3.bf16.msra.mxu0 %v9656_v13  ;;  %9166 = vmatpush3.bf16.msra.mxu1 %v9657_v48  ;;  %v7142_v30 = vpop.f32.mrb[14].mxu0  ;;  %v7183_v50 = vpop.f32.mrb[14].mxu1  ;;  %v9688_v13 = vld [vmem:[%s15678_s6 + $0x220] sm:$0xff]   ;;  %v9692_v8 = vld [vmem:[%s15678_s6 + $0x228] sm:$0xff]  }
 0x79f   : > { %v7143_v7 = vpop.f32.mrb[15].mxu0  ;;  %v7184_v36 = vpop.f32.mrb[15].mxu1  ;;  %9145 = vmatprep.subr.bf16.mxu0 %v9658_v29  ;;  %9167 = vmatprep.subr.bf16.mxu1 %v9659_v44  ;;  %v7016_v33 = vadd.f32 %v15330_v5, %v6802_v1  ;;  %v7100_v26 = vadd.f32 %v7099_v21, %v6822_v40  ;;  %v9669_v5 = vld [vmem:[%s15678_s6 + $0x1b8] sm:$0xff]   ;;  %v9677_v21 = vld [vmem:[%s15678_s6 + $0x288] sm:$0xff]   ;;  %v9689_v48 = vld [vmem:[%s15678_s6 + $0x2a0] sm:$0xff]  }
 0x7a0   : > { %v9690_v29 = vld [vmem:[%s15678_s6 + $0x268] sm:$0xff]   ;;  %v9694_v30 = vld [vmem:[%s15678_s6 + $0x270] sm:$0xff]   ;;  %v9698_v7 = vld [vmem:[%s15678_s6 + $0x278] sm:$0xff]   ;;  %v7194_v36 = vmax.f32 %v15358_v57, 0.0 }
 0x7a1   : > { %v7192_v2 = vmax.f32 %v7016_v33, 0.0  ;;  %v7197_v35 = vmax.f32 %v7100_v26, 0.0  ;;  %v9691_v44 = vld [vmem:[%s15678_s6 + $0x2e8] sm:$0xff]   ;;  %v9695_v50 = vld [vmem:[%s15678_s6 + $0x2f0] sm:$0xff]   ;;  %v9704_v57 = vld [vmem:[%s15678_s6 + $0x300] sm:$0xff]  }
 0x7a2   : > { %9146 = vmatpush3.bf16.msra.mxu0 %v9660_v41  ;;  %9168 = vmatpush3.bf16.msra.mxu1 %v9661_v3  ;;  %v9693_v63 = vld [vmem:[%s15678_s6 + $0x2a8] sm:$0xff]   ;;  %v6830_v41 = vrot.slane %v15284_v38, %v6797_v49  ;;  %v6838_v3 = vrot.slane %v15284_v38, %v6805_v45  ;;  %v9697_v1 = vld [vmem:[%s15678_s6 + $0x2b0] sm:$0xff]   ;;  %v9700_v45 = vld [vmem:[%s15678_s6 + $0x238] sm:$0xff]  }
 0x7a3   : > { %9147 = vmatprep.subr.bf16.mxu0 %v9662_v11  ;;  %9169 = vmatprep.subr.bf16.mxu1 %v9663_v19  ;;  %v7208_v18 = vpack.c.bf16 %v7192_v2, %v7192_v2  ;;  %v7213_v20 = vpack.c.bf16 %v7197_v35, %v7197_v35  ;;  %v9701_v11 = vld [vmem:[%s15678_s6 + $0x2b8] sm:$0xff]   ;;  %v9702_v19 = vld [vmem:[%s15678_s6 + $0x340] sm:$0xff]   ;;  %v9709_v26 = vld [vmem:[%s15678_s6 + $0x388] sm:$0xff]  }
 0x7a4   : > { %v7141_v38 = vadd.f32 %v15393_v39, %v6830_v41  ;;  %v7182_v49 = vadd.f32 %v15395_v9, %v6838_v3  ;;  %v7196_v39 = vmax.f32 %v15360_v6, 0.0  ;;  %v9703_v9 = vld [vmem:[%s15678_s6 + $0x3c0] sm:$0xff]   ;;  %v9713_v2 = vld [vmem:[%s15678_s6 + $0x390] sm:$0xff]   ;;  %v9717_v35 = vld [vmem:[%s15678_s6 + $0x398] sm:$0xff]  }
 0x7a6   : > { %9148 = vmatpush3.bf16.msra.mxu0 %v9664_v17  ;;  %9170 = vmatpush3.bf16.msra.mxu1 %v9665_v37  ;;  %v7199_v15 = vmax.f32 %v7141_v38, 0.0  ;;  %v7201_v40 = vmax.f32 %v7182_v49, 0.0  ;;  %v7210_v17 = vpack.c.bf16 %v7194_v36, %v7194_v36  ;;  %v9705_v37 = vld [vmem:[%s15678_s6 + $0x380] sm:$0xff]   ;;  %v7212_v6 = vpack.c.bf16 %v7196_v39, %v7196_v39 }
 0x7a7   : > { %9149 = vmatprep.subr.bf16.mxu0 %v9666_v54  ;;  %9171 = vmatprep.subr.bf16.mxu1 %v9667_v14  ;;  %v9707_v54 = vld [vmem:[%s15678_s6 + $0x3c8] sm:$0xff]  }
 0x7a8   : > { %v7215_v33 = vpack.c.bf16 %v7199_v15, %v7199_v15  ;;  %v7217_v14 = vpack.c.bf16 %v7201_v40, %v7201_v40 }
 0x7aa   : > { %9150 = vmatpush3.bf16.msra.mxu0 %v9668_v46  ;;  %9172 = vmatpush3.bf16.msra.mxu1 %v9669_v5  ;;  %v9710_v46 = vld [vmem:[%s15678_s6 + $0x350] sm:$0xff]  }
 0x7ab   : > { %9179 = vmatprep.subr.bf16.mxu0 %v9670_v4  ;;  %9201 = vmatprep.subr.bf16.mxu1 %v9671_v56  ;;  %v9711_v5 = vld [vmem:[%s15678_s6 + $0x3d0] sm:$0xff]   ;;  %v9714_v4 = vld [vmem:[%s15678_s6 + $0x358] sm:$0xff]  }
 0x7ac   : > { %v9715_v56 = vld [vmem:[%s15678_s6 + $0x3d8] sm:$0xff]  }
 0x7ad   : > { %8356 = vmatmul.mubr.bf16.vlgmr.msra.gmra.mrb[20].mxu0 %v7206_v31  ;;  %8396 = vmatmul.mubr.bf16.vlgmr.msra.gmra.mrb[20].mxu1 %v7208_v18  ;;  %v9719_v31 = vld [vmem:[%s15678_s6 + $0x3e0] sm:$0xff]  }
 0x7ae   : > { %9180 = vmatpush3.bf16.msra.mxu0 %v9672_v22  ;;  %8435 = vmatprep.mubr.bf16.mxu0 %v7211_v58  ;;  %v9718_v22 = vld [vmem:[%s15678_s6 + $0x360] sm:$0xff]   ;;  %v9722_v58 = vld [vmem:[%s15678_s6 + $0x368] sm:$0xff]  }
 0x7af   : > { %9202 = vmatpush3.bf16.msra.mxu1 %v9673_v53  ;;  %8475 = vmatprep.mubr.bf16.mxu1 %v7213_v20  ;;  %v9720_v18 = vld [vmem:[%s15678_s6 + $0x320] sm:$0xff]   ;;  %v9725_v20 = vld [vmem:[%s15678_s6 + $0x3a8] sm:$0xff]  }
 0x7b0   : > { %9181 = vmatprep.subr.bf16.mxu0 %v9674_v12  ;;  %9203 = vmatprep.subr.bf16.mxu1 %v9675_v61  ;;  %v9721_v53 = vld [vmem:[%s15678_s6 + $0x3a0] sm:$0xff]   ;;  %v9723_v12 = vld [vmem:[%s15678_s6 + $0x3e8] sm:$0xff]  }
 0x7b1   : > { %v9724_v61 = vld [vmem:[%s15678_s6 + $0x328] sm:$0xff]  }
 0x7b2   : > { %9182 = vmatpush3.bf16.msra.mxu0 %v9676_v42  ;;  %v9726_v42 = vld [vmem:[%s15678_s6 + $0x370] sm:$0xff]  }
 0x7b3   : > { %9204 = vmatpush3.bf16.msra.mxu1 %v9677_v21  ;;  %9183 = vmatprep.subr.bf16.mxu0 %v9678_v32  ;;  %v9727_v21 = vld [vmem:[%s15678_s6 + $0x3f0] sm:$0xff]  }
 0x7b4   : > { %9205 = vmatprep.subr.bf16.mxu1 %v9679_v55  ;;  %v9728_v32 = vld [vmem:[%s15678_s6 + $0x330] sm:$0xff]  }
 0x7b5   : > { %v9729_v55 = vld [vmem:[%s15678_s6 + $0x3b0] sm:$0xff]  }
 0x7b6   : > { %9184 = vmatpush3.bf16.msra.mxu0 %v9680_v59  ;;  %v9730_v59 = vld [vmem:[%s15678_s6 + $0x378] sm:$0xff]  }
 0x7b7   : > { %9206 = vmatpush3.bf16.msra.mxu1 %v9681_v51  ;;  %9185 = vmatprep.subr.bf16.mxu0 %v9682_v28  ;;  %v9731_v51 = vld [vmem:[%s15678_s6 + $0x3f8] sm:$0xff]  }
 0x7b8   : > { %9207 = vmatprep.subr.bf16.mxu1 %v9683_v23  ;;  %v9732_v28 = vld [vmem:[%s15678_s6 + $0x338] sm:$0xff]   ;;  %v7198_v23 = vmax.f32 %v15388_v10, 0.0  ;;  %v7474_v10 = vld [vmem:[%s15679_s7] sm:$0x1] }
 0x7ba   : > { %9186 = vmatpush3.bf16.msra.mxu0 %v9684_v27  ;;  %v9733_v27 = vld [vmem:[%s15678_s6 + $0x3b8] sm:$0xff]  }
 0x7bb   : > { %9208 = vmatpush3.bf16.msra.mxu1 %v9685_v34  ;;  %9187 = vmatprep.subr.bf16.mxu0 %v9686_v60  ;;  %v7200_v34 = vmax.f32 %v15391_v52, 0.0  ;;  %v7214_v60 = vpack.c.bf16 %v7198_v23, %v7198_v23 }
 0x7bc   : > { %9209 = vmatprep.subr.bf16.mxu1 %v9687_v25 }
 0x7bd   : > { %v7216_v25 = vpack.c.bf16 %v7200_v34, %v7200_v34 }
 0x7be   : > { %9188 = vmatpush3.bf16.msra.mxu0 %v9688_v13 }
 0x7bf   : > { %9210 = vmatpush3.bf16.msra.mxu1 %v9689_v48  ;;  %9189 = vmatprep.subr.bf16.mxu0 %v9690_v29 }
 0x7c0   : > { %9211 = vmatprep.subr.bf16.mxu1 %v9691_v44 }
 0x7c2   : > { %9190 = vmatpush3.bf16.msra.mxu0 %v9692_v8 }
 0x7c3   : > { %9212 = vmatpush3.bf16.msra.mxu1 %v9693_v63  ;;  %9191 = vmatprep.subr.bf16.mxu0 %v9694_v30 }
 0x7c4   : > { %9213 = vmatprep.subr.bf16.mxu1 %v9695_v50 }
 0x7c6   : > { %9192 = vmatpush3.bf16.msra.mxu0 %v9696_v0 }
 0x7c7   : > { %9214 = vmatpush3.bf16.msra.mxu1 %v9697_v1  ;;  %9193 = vmatprep.subr.bf16.mxu0 %v9698_v7 }
 0x7c8   : > { %9215 = vmatprep.subr.bf16.mxu1 %v9699_v62 }
 0x7ca   : > { %9194 = vmatpush3.bf16.msra.mxu0 %v9700_v45 }
 0x7cb   : > { %9216 = vmatpush3.bf16.msra.mxu1 %v9701_v11  ;;  %9223 = vmatprep.subr.bf16.mxu0 %v9702_v19 }
 0x7cc   : > { %9245 = vmatprep.subr.bf16.mxu1 %v9703_v9 }
 0x7cd   : > { %8436 = vmatmul.mubr.bf16.vlgmr.msra.gmra.mrb[24].mxu0 %v7210_v17 }
 0x7ce   : > { %8476 = vmatmul.mubr.bf16.vlgmr.msra.gmra.mrb[24].mxu1 %v7212_v6  ;;  %9224 = vmatpush3.bf16.msra.mxu0 %v9704_v57 }
 0x7cf   : > { %8515 = vmatprep.mubr.bf16.mxu0 %v7215_v33  ;;  %9246 = vmatpush3.bf16.msra.mxu1 %v9705_v37 }
 0x7d0   : > { %8555 = vmatprep.mubr.bf16.mxu1 %v7217_v14  ;;  %9225 = vmatprep.subr.bf16.mxu0 %v9706_v47 }
 0x7d1   : > { %9247 = vmatprep.subr.bf16.mxu1 %v9707_v54 }
 0x7d2   : > { %9226 = vmatpush3.bf16.msra.mxu0 %v9708_v43 }
 0x7d3   : > { %9248 = vmatpush3.bf16.msra.mxu1 %v9709_v26  ;;  %9227 = vmatprep.subr.bf16.mxu0 %v9710_v46 }
 0x7d4   : > { %9249 = vmatprep.subr.bf16.mxu1 %v9711_v5 }
 0x7d6   : > { %9228 = vmatpush3.bf16.msra.mxu0 %v9712_v24 }
 0x7d7   : > { %9250 = vmatpush3.bf16.msra.mxu1 %v9713_v2  ;;  %9229 = vmatprep.subr.bf16.mxu0 %v9714_v4 }
 0x7d8   : > { %9251 = vmatprep.subr.bf16.mxu1 %v9715_v56 }
 0x7da   : > { %9230 = vmatpush3.bf16.msra.mxu0 %v9716_v16 }
 0x7db   : > { %9252 = vmatpush3.bf16.msra.mxu1 %v9717_v35  ;;  %9231 = vmatprep.subr.bf16.mxu0 %v9718_v22 }
 0x7dc   : > { %9253 = vmatprep.subr.bf16.mxu1 %v9719_v31 }
 0x7de   : > { %9232 = vmatpush3.bf16.msra.mxu0 %v9720_v18 }
 0x7df   : > { %9254 = vmatpush3.bf16.msra.mxu1 %v9721_v53  ;;  %9233 = vmatprep.subr.bf16.mxu0 %v9722_v58 }
 0x7e0   : > { %9255 = vmatprep.subr.bf16.mxu1 %v9723_v12 }
 0x7e2   : > { %9234 = vmatpush3.bf16.msra.mxu0 %v9724_v61 }
 0x7e3   : > { %9256 = vmatpush3.bf16.msra.mxu1 %v9725_v20  ;;  %9235 = vmatprep.subr.bf16.mxu0 %v9726_v42 }
 0x7e4   : > { %9257 = vmatprep.subr.bf16.mxu1 %v9727_v21 }
 0x7e6   : > { %9236 = vmatpush3.bf16.msra.mxu0 %v9728_v32 }
 0x7e7   : > { %9258 = vmatpush3.bf16.msra.mxu1 %v9729_v55  ;;  %9237 = vmatprep.subr.bf16.mxu0 %v9730_v59 }
 0x7e8   : > { %9259 = vmatprep.subr.bf16.mxu1 %v9731_v51 }
 0x7ea   : > { %9238 = vmatpush3.bf16.msra.mxu0 %v9732_v28 }
 0x7eb   : > { %9260 = vmatpush3.bf16.msra.mxu1 %v9733_v27 }
 0x7ed   : > { %8516 = vmatmul.mubr.bf16.vlgmr.msra.gmra.mrb[28].mxu0 %v7214_v60 }
 0x7ee   : > { %8556 = vmatmul.mubr.bf16.vlgmr.msra.gmra.mrb[28].mxu1 %v7216_v25 }
 0x860   : > { %v9107_v13 = vpop.f32.mrb[16].mxu0  ;;  %v9129_v48 = vpop.f32.mrb[16].mxu1 }
 0x861   : > { %v9108_v29 = vpop.f32.mrb[17].mxu0  ;;  %v9130_v44 = vpop.f32.mrb[17].mxu1 }
 0x862   : > { %v9109_v8 = vadd.f32 %v9108_v29, %v9107_v13  ;;  %v9131_v63 = vadd.f32 %v9130_v44, %v9129_v48  ;;  %v9110_v30 = vpop.f32.mrb[18].mxu0  ;;  %v9132_v50 = vpop.f32.mrb[18].mxu1 }
 0x863   : > { %v9111_v52 = vpop.f32.mrb[19].mxu0  ;;  %v9133_v41 = vpop.f32.mrb[19].mxu1 }
 0x864   : > { %v8278_v3 = vadd.f32 %v9109_v8, %v7474_v10 }
 0x866   : > { %v8318_v0 = vadd.f32 %v9131_v63, %v8278_v3 }
 0x880   : > { %v9151_v1 = vpop.f32.mrb[20].mxu0  ;;  %v9173_v7 = vpop.f32.mrb[20].mxu1 }
 0x881   : > { %v9152_v62 = vpop.f32.mrb[21].mxu0  ;;  %v9174_v38 = vpop.f32.mrb[21].mxu1 }
 0x882   : > { %v9153_v49 = vadd.f32 %v9152_v62, %v9151_v1  ;;  %v9175_v45 = vadd.f32 %v9174_v38, %v9173_v7  ;;  %v9154_v36 = vpop.f32.mrb[22].mxu0  ;;  %v9176_v11 = vpop.f32.mrb[22].mxu1 }
 0x883   : > { %v9155_v19 = vpop.f32.mrb[23].mxu0  ;;  %v9177_v39 = vpop.f32.mrb[23].mxu1 }
 0x884   : > { %v8358_v9 = vadd.f32 %v9153_v49, %v8318_v0 }
 0x886   : > { %v8398_v15 = vadd.f32 %v9175_v45, %v8358_v9 }
 0x8a0   : > { %v9195_v40 = vpop.f32.mrb[24].mxu0 }
 0x8a1   : > { %v9217_v57 = vpop.f32.mrb[24].mxu1  ;;  %v9196_v17 = vpop.f32.mrb[25].mxu0 }
 0x8a2   : > { %v9197_v37 = vadd.f32 %v9196_v17, %v9195_v40  ;;  %v9218_v6 = vpop.f32.mrb[25].mxu1  ;;  %v9198_v47 = vpop.f32.mrb[26].mxu0 }
 0x8a3   : > { %v9219_v33 = vadd.f32 %v9218_v6, %v9217_v57  ;;  %v9220_v54 = vpop.f32.mrb[26].mxu1  ;;  %v9199_v14 = vpop.f32.mrb[27].mxu0 }
 0x8a4   : > { %v8438_v43 = vadd.f32 %v9197_v37, %v8398_v15  ;;  %v9221_v26 = vpop.f32.mrb[27].mxu1 }
 0x8a6   : > { %v8478_v46 = vadd.f32 %v9219_v33, %v8438_v43 }
 0x8c0   : > { %v9239_v5 = vpop.f32.mrb[28].mxu0 }
 0x8c1   : > { %v9261_v24 = vpop.f32.mrb[28].mxu1  ;;  %v9240_v2 = vpop.f32.mrb[29].mxu0 }
 0x8c2   : > { %v9241_v4 = vadd.f32 %v9240_v2, %v9239_v5  ;;  %v9262_v56 = vpop.f32.mrb[29].mxu1  ;;  %v9242_v16 = vpop.f32.mrb[30].mxu0 }
 0x8c3   : > { %v9263_v35 = vadd.f32 %v9262_v56, %v9261_v24  ;;  %v9264_v22 = vpop.f32.mrb[30].mxu1  ;;  %v9243_v31 = vpop.f32.mrb[31].mxu0 }
 0x8c4   : > { %v8518_v18 = vadd.f32 %v9241_v4, %v8478_v46  ;;  %v9265_v53 = vpop.f32.mrb[31].mxu1 }
 0x8c6   : > { %v8558_v58 = vadd.f32 %v9263_v35, %v8518_v18 }
 0x8c8   : > { %8564 = vst.msk [vmem:[%s697_s21] sm:$0x1] %vm8563_vm1, %v8558_v58 }
 0x8c9 PF: > { %s18_s11 = sadd.s32 1, %s9788_s11   ;;  %s18187_s27 = smov %s9768_s28 }
 0x8ca   : > { %p15_p0 = scmp.ge.s32.totalorder %s18_s11, 6   ;;  %s18188_s28 = smov %s9889_s18 }
 0x8cb   : > { %s18189_s29 = smov %s9780_s9  ;;  %s18190_s30 = smov %s9784_s10 }
 0x8cc   : > { %s18191_s9 = smov %s18194_s12  ;;  %s18192_s10 = smov %s18198_s13 }
 0x8cd   :  { %17 = sbr.rel (!%p15_p0) target bundleno = 4 (0x4), region = 131 }

</bundles_post_ra>
